<compile_context>
chip_gen: v6e
topology: v6e:2x2x1
jax: 0.10.0
libtpu: 0.0.40
codegen_flags: <defaults>
</compile_context>

<pallas_src>
import functools
import math

import jax
import jax.numpy as jnp
from jax.experimental import pallas as pl
from jax.experimental.pallas import tpu as pltpu


# ----------------------------------------------------------------------------
# Kernel: one full decoder layer for a tile of TB batch elements.
# ----------------------------------------------------------------------------
def _decoder_layer_kernel(
    tgt_ref,        # (TB, St, D)
    mem_ref,        # (TB, Sm, D)
    sa_wqkv_ref,    # (D, 3D)  fused self-attn QKV weights (in, out), scale folded into Q
    sa_bqkv_ref,    # (1, 3D)  f32 bias, scale folded into Q part
    sa_wo_ref,      # (D, D)   self-attn out_proj.weight^T
    sa_bo_ref,      # (1, D)
    ca_wq_ref,      # (D, D)   cross-attn Q weights (scale folded)
    ca_bq_ref,      # (1, D)
    ca_wkv_ref,     # (D, 2D)  fused cross-attn K/V weights
    ca_bkv_ref,     # (1, 2D)
    ca_wo_ref,      # (D, D)
    ca_bo_ref,      # (1, D)
    ln1w_ref, ln1b_ref,   # (1, D)
    ln2w_ref, ln2b_ref,   # (1, D)
    ln3w_ref, ln3b_ref,   # (1, D)
    w1_ref,         # (D, F)   linear1.weight^T
    b1_ref,         # (1, F)
    w2_ref,         # (F, D)   linear2.weight^T
    b2_ref,         # (1, D)
    o_ref,          # (TB, St, D)
    *,
    nhead: int,
    eps: float,
):
    TB, St, D = tgt_ref.shape
    Sm = mem_ref.shape[1]
    hd = D // nhead
    inv_d = 1.0 / D
    f32 = jnp.float32

    # Flatten (TB, S, D) -> (TB*S, D): leading-dim merge is layout-free and lets
    # every projection / FFN matmul run with M = TB*S rows on the MXU.
    x = tgt_ref[...].reshape(TB * St, D)
    mem = mem_ref[...].reshape(TB * Sm, D)
    dt = x.dtype                      # MXU operand dtype (f32 or bf16)

    # ---- hoist all parameter reads (single read each; JAX does not CSE) ----
    sa_wqkv = sa_wqkv_ref[...]
    sa_bqkv = sa_bqkv_ref[...]
    sa_wo = sa_wo_ref[...]
    sa_bo = sa_bo_ref[...]
    ca_wq = ca_wq_ref[...]
    ca_bq = ca_bq_ref[...]
    ca_wkv = ca_wkv_ref[...]
    ca_bkv = ca_bkv_ref[...]
    ca_wo = ca_wo_ref[...]
    ca_bo = ca_bo_ref[...]
    ln1w, ln1b = ln1w_ref[...], ln1b_ref[...]
    ln2w, ln2b = ln2w_ref[...], ln2b_ref[...]
    ln3w, ln3b = ln3w_ref[...], ln3b_ref[...]
    w1, b1 = w1_ref[...], b1_ref[...]
    w2, b2 = w2_ref[...], b2_ref[...]

    def layer_norm(t, w, b):
        # t: (M, D) f32 — single-pass stats: var = E[x^2] - mu^2.
        mu = jnp.sum(t, axis=-1, keepdims=True) * inv_d
        ms = jnp.sum(t * t, axis=-1, keepdims=True) * inv_d
        var = ms - mu * mu
        return (t - mu) * jax.lax.rsqrt(var + eps) * w + b

    def attention(q2d, k2d, v2d, Sq, Sk, wo, bo):
        """q2d: (TB*Sq, D), k2d/v2d: (TB*Sk, D) in dt; heads live on the lane axis.

        The 1/sqrt(hd) scale is pre-folded into the Q projection, so scores are
        a plain q.k contraction. Per-(batch, head) loops are static/unrolled;
        all slices are static (lane slices are hd-aligned, row slices are S-
        aligned), so they are cheap views/copies, not layout changes.
        """
        # TODO(synk): for production St/Sm >> a few hundred, switch to a
        # flash-style KV-tiled online softmax instead of materializing (Sq, Sk).
        ctx_rows = []
        for b in range(TB):
            qb = q2d[b * Sq:(b + 1) * Sq]
            kb = k2d[b * Sk:(b + 1) * Sk]
            vb = v2d[b * Sk:(b + 1) * Sk]
            head_ctx = []
            for h in range(nhead):
                lo, hi = h * hd, (h + 1) * hd
                s = jnp.einsum('qe,ke->qk', qb[:, lo:hi], kb[:, lo:hi],
                               preferred_element_type=f32)
                s = s - jnp.max(s, axis=-1, keepdims=True)
                p = jnp.exp(s)
                p = p * pl.reciprocal(jnp.sum(p, axis=-1, keepdims=True),
                                      approx=True)
                head_ctx.append(jnp.dot(p.astype(dt), vb[:, lo:hi],
                                        preferred_element_type=f32))
            ctx_rows.append(jnp.concatenate(head_ctx, axis=-1))    # (Sq, D) f32
        ctx = jnp.concatenate(ctx_rows, axis=0).astype(dt)          # (TB*Sq, D)
        # One (M, D) @ (D, D): the cross-head reduction happens inside the MXU
        # contraction (f32 accumulator) instead of on the VPU.
        return jnp.dot(ctx, wo, preferred_element_type=f32) + bo

    # ---- self-attention block + post-norm -----------------------------------
    qkv = (jnp.dot(x, sa_wqkv, preferred_element_type=f32) + sa_bqkv).astype(dt)
    sa = attention(qkv[:, :D], qkv[:, D:2 * D], qkv[:, 2 * D:], St, St,
                   sa_wo, sa_bo)
    y1 = layer_norm(x.astype(f32) + sa, ln1w, ln1b)

    # ---- cross-attention block (query = y1, key/value = memory) + post-norm -
    q2 = (jnp.dot(y1.astype(dt), ca_wq, preferred_element_type=f32)
          + ca_bq).astype(dt)
    kv = (jnp.dot(mem, ca_wkv, preferred_element_type=f32) + ca_bkv).astype(dt)
    ca = attention(q2, kv[:, :D], kv[:, D:], St, Sm, ca_wo, ca_bo)
    y2 = layer_norm(y1 + ca, ln2w, ln2b)

    # ---- feed-forward block + post-norm --------------------------------------
    # TODO(synk): tile the hidden dim F (stream (D,tf)/(tf,D) weight slabs) for
    # production F on v7x's 64 MiB VMEM.
    h = jnp.dot(y2.astype(dt), w1, preferred_element_type=f32) + b1
    h = jnp.maximum(h, 0.0).astype(dt)                 # ReLU (default activation)
    ff = jnp.dot(h, w2, preferred_element_type=f32) + b2
    y3 = layer_norm(y2 + ff, ln3w, ln3b)

    o_ref[...] = y3.reshape(TB, St, D).astype(o_ref.dtype)


# ----------------------------------------------------------------------------
# Wrapper: parameter re-layout + pallas_call
# ----------------------------------------------------------------------------
def _prep_kernel_params(p, nhead, mxu_dtype):
    """PyTorch-layout params -> fused, pre-transposed, scale-folded kernel layout."""
    D = p["sa_wo"].shape[0]
    hd = D // nhead
    scale = 1.0 / math.sqrt(hd)
    f32 = jnp.float32

    def fold_q(w_in_proj, b_in_proj):
        # w: (3D, D) torch (out,in); b: (1, 3D). Fold 1/sqrt(hd) into the Q rows.
        w = jnp.concatenate([w_in_proj[:D] * scale, w_in_proj[D:]], axis=0)
        b = jnp.concatenate([b_in_proj[:, :D] * scale, b_in_proj[:, D:]], axis=1)
        return w, b

    sa_w, sa_b = fold_q(p["sa_wqkv"], p["sa_bqkv"])
    ca_w, ca_b = fold_q(p["ca_wqkv"], p["ca_bqkv"])

    def t(w):  # (out, in) -> (in, out), in the MXU operand dtype
        return jnp.transpose(w).astype(mxu_dtype)

    return dict(
        sa_wqkv=t(sa_w),                         # (D, 3D)
        sa_bqkv=sa_b.astype(f32),                # (1, 3D)
        sa_wo=t(p["sa_wo"]), sa_bo=p["sa_bo"].astype(f32),
        ca_wq=t(ca_w[:D]), ca_bq=ca_b[:, :D].astype(f32),
        ca_wkv=t(ca_w[D:]), ca_bkv=ca_b[:, D:].astype(f32),
        ca_wo=t(p["ca_wo"]), ca_bo=p["ca_bo"].astype(f32),
        ln1w=p["ln1w"].astype(f32), ln1b=p["ln1b"].astype(f32),
        ln2w=p["ln2w"].astype(f32), ln2b=p["ln2b"].astype(f32),
        ln3w=p["ln3w"].astype(f32), ln3b=p["ln3b"].astype(f32),
        w1=t(p["w1"]), b1=p["b1"].astype(f32),   # (D, F), (1, F)
        w2=t(p["w2"]), b2=p["b2"].astype(f32),   # (F, D), (1, D)
    )


def _pick_batch_tile(B, St):
    """Largest divisor of B (capped) so projection/FFN matmuls see ~256 MXU rows."""
    cap = max(1, min(8, 256 // max(St, 1), B))
    tb = 1
    for d in range(1, cap + 1):
        if B % d == 0:
            tb = d
    return tb


def _estimate_vmem_bytes(TB, St, Sm, D, F, H, in_itemsize):
    """Rough per-step VMEM footprint (weights 1x, I/O blocks 2x, f32 intermediates)."""
    M, Mm = TB * St, TB * Sm
    weights = (3 * D * D + 4 * D * D + 2 * D * D + 2 * D * F) * in_itemsize \
        + (3 * D + 2 * D + 10 * D + F) * 4
    io = 2 * (2 * TB * St * D + TB * Sm * D) * in_itemsize
    inter = (M * 3 * D + Mm * 2 * D + M * F + 8 * M * D) * 4 \
        + H * St * max(St, Sm) * 4
    return int(1.5 * (weights + io + inter))


def _pick_vmem_limit(est_bytes):
    cap = 128 * 1024 * 1024
    try:
        cap = int(getattr(pltpu.get_tpu_info(), "vmem_capacity_bytes", cap))
    except Exception:
        pass
    headroom = 8 * 1024 * 1024        # Mosaic internal scratch + output buffers
    return int(min(max(est_bytes, 32 * 1024 * 1024), cap - headroom))


def decoder_layer_pallas_bsd(tgt_bsd, mem_bsd, params, *, nhead, eps=1e-5):
    """One TransformerDecoderLayer. tgt_bsd: (B, St, D), mem_bsd: (B, Sm, D)."""
    B, St, D = tgt_bsd.shape
    _, Sm, _ = mem_bsd.shape
    assert D % nhead == 0
    kp = _prep_kernel_params(params, nhead, mxu_dtype=tgt_bsd.dtype)
    F = kp["w1"].shape[1]

    TB = _pick_batch_tile(B, St)
    grid = (B // TB,)
    vmem_limit = _pick_vmem_limit(
        _estimate_vmem_bytes(TB, St, Sm, D, F, nhead,
                             jnp.dtype(tgt_bsd.dtype).itemsize))

    kernel = functools.partial(_decoder_layer_kernel, nhead=nhead, eps=eps)

    def wspec(shape, single_buffer):
        # Weight/constant blocks: index never changes across the grid, so a
        # single buffer halves their VMEM footprint (matters most on v7x).
        zeros = (0,) * len(shape)
        idx = lambda i, _z=zeros: _z
        if single_buffer and hasattr(pl, "Buffered"):
            try:
                return pl.BlockSpec(shape, idx, pipeline_mode=pl.Buffered(1))
            except TypeError:
                pass
        return pl.BlockSpec(shape, idx)

    def build(single_buffer_weights):
        ws = lambda shape: wspec(shape, single_buffer_weights)
        return pl.pallas_call(
            kernel,
            out_shape=jax.ShapeDtypeStruct((B, St, D), tgt_bsd.dtype),
            grid_spec=pltpu.PrefetchScalarGridSpec(
                num_scalar_prefetch=0,
                grid=grid,
                in_specs=[
                    pl.BlockSpec((TB, St, D), lambda i: (i, 0, 0)),   # tgt
                    pl.BlockSpec((TB, Sm, D), lambda i: (i, 0, 0)),   # memory
                    ws((D, 3 * D)), ws((1, 3 * D)),                   # sa qkv w/b
                    ws((D, D)), ws((1, D)),                           # sa out w/b
                    ws((D, D)), ws((1, D)),                           # ca q w/b
                    ws((D, 2 * D)), ws((1, 2 * D)),                   # ca kv w/b
                    ws((D, D)), ws((1, D)),                           # ca out w/b
                    ws((1, D)), ws((1, D)),                           # ln1
                    ws((1, D)), ws((1, D)),                           # ln2
                    ws((1, D)), ws((1, D)),                           # ln3
                    ws((D, F)), ws((1, F)),                           # linear1
                    ws((F, D)), ws((1, D)),                           # linear2
                ],
                out_specs=pl.BlockSpec((TB, St, D), lambda i: (i, 0, 0)),
            ),
            compiler_params=pltpu.CompilerParams(
                dimension_semantics=("parallel",),
                vmem_limit_bytes=vmem_limit),
        )

    # TODO(synk): add a second "parallel" query-tile grid axis so both v7x
    # TensorCores get work when B // TB is small and St is large.
    args = (
        tgt_bsd, mem_bsd,
        kp["sa_wqkv"], kp["sa_bqkv"], kp["sa_wo"], kp["sa_bo"],
        kp["ca_wq"], kp["ca_bq"], kp["ca_wkv"], kp["ca_bkv"],
        kp["ca_wo"], kp["ca_bo"],
        kp["ln1w"], kp["ln1b"], kp["ln2w"], kp["ln2b"], kp["ln3w"], kp["ln3b"],
        kp["w1"], kp["b1"], kp["w2"], kp["b2"],
    )
    try:
        return build(single_buffer_weights=True)(*args)
    except Exception:
        # Fallback to default double-buffered weight blocks (always supported).
        return build(single_buffer_weights=False)(*args)


def transformer_decoder_layer_pallas(tgt_sbd, mem_sbd, params, *, nhead, eps=1e-5):
    """PyTorch-compatible entry: batch_first=False (S, B, D) inputs.

    Returns (output, attn_weights) with attn_weights=None (need_attn_weights=False).
    Callers with batch-first tensors should call decoder_layer_pallas_bsd
    directly and skip the boundary transposes.
    """
    # TODO(synk): tgt_mask / memory_mask / key_padding_mask are not implemented
    # (None-mask path only); dropouts are identity (eval-mode inference).
    tgt = jnp.transpose(tgt_sbd, (1, 0, 2))   # (B, St, D)
    mem = jnp.transpose(mem_sbd, (1, 0, 2))   # (B, Sm, D)
    out = decoder_layer_pallas_bsd(tgt, mem, params, nhead=nhead, eps=eps)
    return jnp.transpose(out, (1, 0, 2)), None


# ----------------------------------------------------------------------------
# Pure-JAX reference (PyTorch-layout weights) for the correctness check.
# ----------------------------------------------------------------------------
def _ref_mha(q_in, kv_in, wqkv, bqkv, wo, bo, nhead):
    B, Sq, D = q_in.shape
    Sk = kv_in.shape[1]
    hd = D // nhead
    wq, wk, wv = wqkv[:D], wqkv[D:2 * D], wqkv[2 * D:]
    bq, bk, bv = bqkv[0, :D], bqkv[0, D:2 * D], bqkv[0, 2 * D:]
    q = jnp.einsum("bsd,ed->bse", q_in, wq) + bq
    k = jnp.einsum("bsd,ed->bse", kv_in, wk) + bk
    v = jnp.einsum("bsd,ed->bse", kv_in, wv) + bv

    def heads(t, S):
        return t.reshape(B, S, nhead, hd).transpose(0, 2, 1, 3)

    qh, kh, vh = heads(q, Sq), heads(k, Sk), heads(v, Sk)
    s = jnp.einsum("bhqe,bhke->bhqk", qh, kh) / math.sqrt(hd)
    p = jax.nn.softmax(s, axis=-1)
    o = jnp.einsum("bhqk,bhke->bhqe", p, vh).transpose(0, 2, 1, 3).reshape(B, Sq, D)
    return jnp.einsum("bsd,ed->bse", o, wo) + bo[0]


def _reference_decoder_layer_bsd(tgt, mem, p, nhead, eps=1e-5):
    def ln(t, w, b):
        mu = jnp.mean(t, -1, keepdims=True)
        var = jnp.mean((t - mu) ** 2, -1, keepdims=True)
        return (t - mu) * jax.lax.rsqrt(var + eps) * w[0] + b[0]

    sa = _ref_mha(tgt, tgt, p["sa_wqkv"], p["sa_bqkv"], p["sa_wo"], p["sa_bo"], nhead)
    x = ln(tgt + sa, p["ln1w"], p["ln1b"])
    ca = _ref_mha(x, mem, p["ca_wqkv"], p["ca_bqkv"], p["ca_wo"], p["ca_bo"], nhead)
    x = ln(x + ca, p["ln2w"], p["ln2b"])
    h = jax.nn.relu(jnp.einsum("bsd,fd->bsf", x, p["w1"]) + p["b1"][0])
    ff = jnp.einsum("bsf,df->bsd", h, p["w2"]) + p["b2"][0]
    return ln(x + ff, p["ln3w"], p["ln3b"])


def _reference_decoder(tgt_sbd, mem_sbd, p, nhead):
    tgt = jnp.transpose(tgt_sbd, (1, 0, 2))
    mem = jnp.transpose(mem_sbd, (1, 0, 2))
    out = _reference_decoder_layer_bsd(tgt, mem, p, nhead)
    return jnp.transpose(out, (1, 0, 2))


# ----------------------------------------------------------------------------
# Deterministic parameter construction (PyTorch weight layouts).
# ----------------------------------------------------------------------------
def make_decoder_layer_params(key, d_model, dim_feedforward):
    ks = jax.random.split(key, 12)
    s = 1.0 / math.sqrt(d_model)
    sf = 1.0 / math.sqrt(dim_feedforward)

    def u(k, shape, b):
        return jax.random.uniform(k, shape, jnp.float32, -b, b)

    return {
        "sa_wqkv": u(ks[0], (3 * d_model, d_model), s),
        "sa_bqkv": u(ks[1], (1, 3 * d_model), s),
        "sa_wo":   u(ks[2], (d_model, d_model), s),
        "sa_bo":   u(ks[3], (1, d_model), s),
        "ca_wqkv": u(ks[4], (3 * d_model, d_model), s),
        "ca_bqkv": u(ks[5], (1, 3 * d_model), s),
        "ca_wo":   u(ks[6], (d_model, d_model), s),
        "ca_bo":   u(ks[7], (1, d_model), s),
        "ln1w": jnp.ones((1, d_model), jnp.float32),
        "ln1b": jnp.zeros((1, d_model), jnp.float32),
        "ln2w": jnp.ones((1, d_model), jnp.float32),
        "ln2b": jnp.zeros((1, d_model), jnp.float32),
        "ln3w": jnp.ones((1, d_model), jnp.float32),
        "ln3b": jnp.zeros((1, d_model), jnp.float32),
        "w1": u(ks[8], (dim_feedforward, d_model), s),
        "b1": u(ks[9], (1, dim_feedforward), s),
        "w2": u(ks[10], (d_model, dim_feedforward), sf),
        "b2": u(ks[11], (1, d_model), sf),
    }


if __name__ == "__main__":
    # Small, lane-aligned config: D multiple of 128, head_dim = 128.
    TGT_SEQ, MEM_SEQ, BATCH = 16, 8, 2
    D_MODEL, NHEAD, DIM_FF = 256, 2, 512

    key = jax.random.PRNGKey(0)
    k_tgt, k_mem, k_p = jax.random.split(key, 3)
    tgt = jax.random.normal(k_tgt, (TGT_SEQ, BATCH, D_MODEL), jnp.float32)
    memory = jax.random.normal(k_mem, (MEM_SEQ, BATCH, D_MODEL), jnp.float32)
    params = make_decoder_layer_params(k_p, D_MODEL, DIM_FF)

    out, attn_w = transformer_decoder_layer_pallas(tgt, memory, params, nhead=NHEAD)
    out = jax.block_until_ready(out)

    ref = jax.block_until_ready(_reference_decoder(tgt, memory, params, NHEAD))
    assert out.shape == (TGT_SEQ, BATCH, D_MODEL)
    assert attn_w is None
    # tolerance 2e-3: approx (EUP) reciprocal in the softmax denominator.
    max_err = float(jnp.max(jnp.abs(out - ref)))
    assert jnp.allclose(out, ref, atol=2e-3, rtol=2e-3), f"mismatch vs reference: {max_err}"

    print("KERNEL_OK")
</pallas_src>

<mosaic_0001>
module attributes {stable_mosaic.version = 11 : i64} {
  func.func @_decoder_layer_kernel(%arg0: i32, %arg1: memref<2x16x256xf32, #tpu.memory_space<vmem>>, %arg2: memref<2x8x256xf32, #tpu.memory_space<vmem>>, %arg3: memref<256x768xf32, #tpu.memory_space<vmem>>, %arg4: memref<1x768xf32, #tpu.memory_space<vmem>>, %arg5: memref<256x256xf32, #tpu.memory_space<vmem>>, %arg6: memref<1x256xf32, #tpu.memory_space<vmem>>, %arg7: memref<256x256xf32, #tpu.memory_space<vmem>>, %arg8: memref<1x256xf32, #tpu.memory_space<vmem>>, %arg9: memref<256x512xf32, #tpu.memory_space<vmem>>, %arg10: memref<1x512xf32, #tpu.memory_space<vmem>>, %arg11: memref<256x256xf32, #tpu.memory_space<vmem>>, %arg12: memref<1x256xf32, #tpu.memory_space<vmem>>, %arg13: memref<1x256xf32, #tpu.memory_space<vmem>>, %arg14: memref<1x256xf32, #tpu.memory_space<vmem>>, %arg15: memref<1x256xf32, #tpu.memory_space<vmem>>, %arg16: memref<1x256xf32, #tpu.memory_space<vmem>>, %arg17: memref<1x256xf32, #tpu.memory_space<vmem>>, %arg18: memref<1x256xf32, #tpu.memory_space<vmem>>, %arg19: memref<256x512xf32, #tpu.memory_space<vmem>>, %arg20: memref<1x512xf32, #tpu.memory_space<vmem>>, %arg21: memref<512x256xf32, #tpu.memory_space<vmem>>, %arg22: memref<1x256xf32, #tpu.memory_space<vmem>>, %arg23: memref<2x16x256xf32, #tpu.memory_space<vmem>>) attributes {dimension_semantics = [#tpu.dimension_semantics<parallel>], iteration_bounds = array<i64: 1>, scalar_prefetch = 0 : i64, scratch_operands = 0 : i64, tpu.core_type = #tpu.core_type<tc>, window_params = [{transform_indices = @transform_0, window_bounds = array<i64: 2, 16, 256>}, {transform_indices = @transform_1, window_bounds = array<i64: 2, 8, 256>}, {pipeline_mode = #tpu.pipeline_mode<synchronous>, transform_indices = @transform_2, window_bounds = array<i64: 256, 768>}, {pipeline_mode = #tpu.pipeline_mode<synchronous>, transform_indices = @transform_3, window_bounds = array<i64: 1, 768>}, {pipeline_mode = #tpu.pipeline_mode<synchronous>, transform_indices = @transform_4, window_bounds = array<i64: 256, 256>}, {pipeline_mode = #tpu.pipeline_mode<synchronous>, transform_indices = @transform_5, window_bounds = array<i64: 1, 256>}, {pipeline_mode = #tpu.pipeline_mode<synchronous>, transform_indices = @transform_6, window_bounds = array<i64: 256, 256>}, {pipeline_mode = #tpu.pipeline_mode<synchronous>, transform_indices = @transform_7, window_bounds = array<i64: 1, 256>}, {pipeline_mode = #tpu.pipeline_mode<synchronous>, transform_indices = @transform_8, window_bounds = array<i64: 256, 512>}, {pipeline_mode = #tpu.pipeline_mode<synchronous>, transform_indices = @transform_9, window_bounds = array<i64: 1, 512>}, {pipeline_mode = #tpu.pipeline_mode<synchronous>, transform_indices = @transform_10, window_bounds = array<i64: 256, 256>}, {pipeline_mode = #tpu.pipeline_mode<synchronous>, transform_indices = @transform_11, window_bounds = array<i64: 1, 256>}, {pipeline_mode = #tpu.pipeline_mode<synchronous>, transform_indices = @transform_12, window_bounds = array<i64: 1, 256>}, {pipeline_mode = #tpu.pipeline_mode<synchronous>, transform_indices = @transform_13, window_bounds = array<i64: 1, 256>}, {pipeline_mode = #tpu.pipeline_mode<synchronous>, transform_indices = @transform_14, window_bounds = array<i64: 1, 256>}, {pipeline_mode = #tpu.pipeline_mode<synchronous>, transform_indices = @transform_15, window_bounds = array<i64: 1, 256>}, {pipeline_mode = #tpu.pipeline_mode<synchronous>, transform_indices = @transform_16, window_bounds = array<i64: 1, 256>}, {pipeline_mode = #tpu.pipeline_mode<synchronous>, transform_indices = @transform_17, window_bounds = array<i64: 1, 256>}, {pipeline_mode = #tpu.pipeline_mode<synchronous>, transform_indices = @transform_18, window_bounds = array<i64: 256, 512>}, {pipeline_mode = #tpu.pipeline_mode<synchronous>, transform_indices = @transform_19, window_bounds = array<i64: 1, 512>}, {pipeline_mode = #tpu.pipeline_mode<synchronous>, transform_indices = @transform_20, window_bounds = array<i64: 512, 256>}, {pipeline_mode = #tpu.pipeline_mode<synchronous>, transform_indices = @transform_21, window_bounds = array<i64: 1, 256>}, {transform_indices = @transform_22, window_bounds = array<i64: 2, 16, 256>}]} {
    %c0 = arith.constant 0 : index
    %c0_0 = arith.constant 0 : index
    %c0_1 = arith.constant 0 : index
    %0 = vector.load %arg1[%c0, %c0_0, %c0_1] : memref<2x16x256xf32, #tpu.memory_space<vmem>>, vector<2x16x256xf32>
    %1 = vector.shape_cast %0 : vector<2x16x256xf32> to vector<32x256xf32>
    %c0_2 = arith.constant 0 : index
    %c0_3 = arith.constant 0 : index
    %c0_4 = arith.constant 0 : index
    %2 = vector.load %arg2[%c0_2, %c0_3, %c0_4] : memref<2x8x256xf32, #tpu.memory_space<vmem>>, vector<2x8x256xf32>
    %3 = vector.shape_cast %2 : vector<2x8x256xf32> to vector<16x256xf32>
    %c0_5 = arith.constant 0 : index
    %c0_6 = arith.constant 0 : index
    %4 = vector.load %arg3[%c0_5, %c0_6] : memref<256x768xf32, #tpu.memory_space<vmem>>, vector<256x768xf32>
    %c0_7 = arith.constant 0 : index
    %c0_8 = arith.constant 0 : index
    %5 = vector.load %arg4[%c0_7, %c0_8] : memref<1x768xf32, #tpu.memory_space<vmem>>, vector<1x768xf32>
    %c0_9 = arith.constant 0 : index
    %c0_10 = arith.constant 0 : index
    %6 = vector.load %arg5[%c0_9, %c0_10] : memref<256x256xf32, #tpu.memory_space<vmem>>, vector<256x256xf32>
    %c0_11 = arith.constant 0 : index
    %c0_12 = arith.constant 0 : index
    %7 = vector.load %arg6[%c0_11, %c0_12] : memref<1x256xf32, #tpu.memory_space<vmem>>, vector<1x256xf32>
    %c0_13 = arith.constant 0 : index
    %c0_14 = arith.constant 0 : index
    %8 = vector.load %arg7[%c0_13, %c0_14] : memref<256x256xf32, #tpu.memory_space<vmem>>, vector<256x256xf32>
    %c0_15 = arith.constant 0 : index
    %c0_16 = arith.constant 0 : index
    %9 = vector.load %arg8[%c0_15, %c0_16] : memref<1x256xf32, #tpu.memory_space<vmem>>, vector<1x256xf32>
    %c0_17 = arith.constant 0 : index
    %c0_18 = arith.constant 0 : index
    %10 = vector.load %arg9[%c0_17, %c0_18] : memref<256x512xf32, #tpu.memory_space<vmem>>, vector<256x512xf32>
    %c0_19 = arith.constant 0 : index
    %c0_20 = arith.constant 0 : index
    %11 = vector.load %arg10[%c0_19, %c0_20] : memref<1x512xf32, #tpu.memory_space<vmem>>, vector<1x512xf32>
    %c0_21 = arith.constant 0 : index
    %c0_22 = arith.constant 0 : index
    %12 = vector.load %arg11[%c0_21, %c0_22] : memref<256x256xf32, #tpu.memory_space<vmem>>, vector<256x256xf32>
    %c0_23 = arith.constant 0 : index
    %c0_24 = arith.constant 0 : index
    %13 = vector.load %arg12[%c0_23, %c0_24] : memref<1x256xf32, #tpu.memory_space<vmem>>, vector<1x256xf32>
    %c0_25 = arith.constant 0 : index
    %c0_26 = arith.constant 0 : index
    %14 = vector.load %arg13[%c0_25, %c0_26] : memref<1x256xf32, #tpu.memory_space<vmem>>, vector<1x256xf32>
    %c0_27 = arith.constant 0 : index
    %c0_28 = arith.constant 0 : index
    %15 = vector.load %arg14[%c0_27, %c0_28] : memref<1x256xf32, #tpu.memory_space<vmem>>, vector<1x256xf32>
    %c0_29 = arith.constant 0 : index
    %c0_30 = arith.constant 0 : index
    %16 = vector.load %arg15[%c0_29, %c0_30] : memref<1x256xf32, #tpu.memory_space<vmem>>, vector<1x256xf32>
    %c0_31 = arith.constant 0 : index
    %c0_32 = arith.constant 0 : index
    %17 = vector.load %arg16[%c0_31, %c0_32] : memref<1x256xf32, #tpu.memory_space<vmem>>, vector<1x256xf32>
    %c0_33 = arith.constant 0 : index
    %c0_34 = arith.constant 0 : index
    %18 = vector.load %arg17[%c0_33, %c0_34] : memref<1x256xf32, #tpu.memory_space<vmem>>, vector<1x256xf32>
    %c0_35 = arith.constant 0 : index
    %c0_36 = arith.constant 0 : index
    %19 = vector.load %arg18[%c0_35, %c0_36] : memref<1x256xf32, #tpu.memory_space<vmem>>, vector<1x256xf32>
    %c0_37 = arith.constant 0 : index
    %c0_38 = arith.constant 0 : index
    %20 = vector.load %arg19[%c0_37, %c0_38] : memref<256x512xf32, #tpu.memory_space<vmem>>, vector<256x512xf32>
    %c0_39 = arith.constant 0 : index
    %c0_40 = arith.constant 0 : index
    %21 = vector.load %arg20[%c0_39, %c0_40] : memref<1x512xf32, #tpu.memory_space<vmem>>, vector<1x512xf32>
    %c0_41 = arith.constant 0 : index
    %c0_42 = arith.constant 0 : index
    %22 = vector.load %arg21[%c0_41, %c0_42] : memref<512x256xf32, #tpu.memory_space<vmem>>, vector<512x256xf32>
    %c0_43 = arith.constant 0 : index
    %c0_44 = arith.constant 0 : index
    %23 = vector.load %arg22[%c0_43, %c0_44] : memref<1x256xf32, #tpu.memory_space<vmem>>, vector<1x256xf32>
    %cst = arith.constant dense<0.000000e+00> : vector<32x768xf32>
    %24 = tpu.matmul %1, %4, %cst {dimension_numbers = #tpu.dot_dimension_numbers<[1], [0], [0], [1], [0, 0, 1, 1], [], []>} : vector<32x256xf32>, vector<256x768xf32>, vector<32x768xf32> -> vector<32x768xf32>
    %25 = vector.broadcast %5 : vector<1x768xf32> to vector<32x768xf32>
    %26 = arith.addf %24, %25 : vector<32x768xf32>
    %27 = vector.extract_strided_slice %26 {offsets = [0, 0], sizes = [32, 256], strides = [1, 1]} : vector<32x768xf32> to vector<32x256xf32>
    %28 = vector.extract_strided_slice %26 {offsets = [0, 256], sizes = [32, 256], strides = [1, 1]} : vector<32x768xf32> to vector<32x256xf32>
    %29 = vector.extract_strided_slice %26 {offsets = [0, 512], sizes = [32, 256], strides = [1, 1]} : vector<32x768xf32> to vector<32x256xf32>
    %30 = vector.extract_strided_slice %27 {offsets = [0, 0], sizes = [16, 256], strides = [1, 1]} : vector<32x256xf32> to vector<16x256xf32>
    %31 = vector.extract_strided_slice %28 {offsets = [0, 0], sizes = [16, 256], strides = [1, 1]} : vector<32x256xf32> to vector<16x256xf32>
    %32 = vector.extract_strided_slice %29 {offsets = [0, 0], sizes = [16, 256], strides = [1, 1]} : vector<32x256xf32> to vector<16x256xf32>
    %33 = vector.extract_strided_slice %30 {offsets = [0, 0], sizes = [16, 128], strides = [1, 1]} : vector<16x256xf32> to vector<16x128xf32>
    %34 = vector.extract_strided_slice %31 {offsets = [0, 0], sizes = [16, 128], strides = [1, 1]} : vector<16x256xf32> to vector<16x128xf32>
    "tpu.trace_start"() <{level = 10 : i32, message = "qe,ke->qk"}> : () -> ()
    %cst_45 = arith.constant dense<0.000000e+00> : vector<16x16xf32>
    %35 = tpu.matmul %33, %34, %cst_45 {dimension_numbers = #tpu.dot_dimension_numbers<[1], [1], [0], [0], [0, 0, 1, 0], [], []>} : vector<16x128xf32>, vector<16x128xf32>, vector<16x16xf32> -> vector<16x16xf32>
    "tpu.trace_stop"() : () -> ()
    %cst_46 = arith.constant dense<0xFF800000> : vector<16xf32>
    %36 = vector.multi_reduction <maximumf>, %35, %cst_46 [1] : vector<16x16xf32> to vector<16xf32>
    %37 = vector.shape_cast %36 : vector<16xf32> to vector<16x1xf32>
    %38 = vector.broadcast %37 : vector<16x1xf32> to vector<16x16xf32>
    %39 = arith.subf %35, %38 : vector<16x16xf32>
    %40 = math.exp %39 : vector<16x16xf32>
    %cst_47 = arith.constant dense<0.000000e+00> : vector<16xf32>
    %41 = vector.multi_reduction <add>, %40, %cst_47 [1] : vector<16x16xf32> to vector<16xf32>
    %42 = vector.shape_cast %41 : vector<16xf32> to vector<16x1xf32>
    %43 = tpu.reciprocal %42 {approx = true} : vector<16x1xf32> -> vector<16x1xf32>
    %44 = vector.broadcast %43 : vector<16x1xf32> to vector<16x16xf32>
    %45 = arith.mulf %40, %44 : vector<16x16xf32>
    %46 = vector.extract_strided_slice %32 {offsets = [0, 0], sizes = [16, 128], strides = [1, 1]} : vector<16x256xf32> to vector<16x128xf32>
    %cst_48 = arith.constant dense<0.000000e+00> : vector<16x128xf32>
    %47 = tpu.matmul %45, %46, %cst_48 {dimension_numbers = #tpu.dot_dimension_numbers<[1], [0], [0], [1], [0, 0, 1, 1], [], []>} : vector<16x16xf32>, vector<16x128xf32>, vector<16x128xf32> -> vector<16x128xf32>
    %48 = vector.extract_strided_slice %30 {offsets = [0, 128], sizes = [16, 128], strides = [1, 1]} : vector<16x256xf32> to vector<16x128xf32>
    %49 = vector.extract_strided_slice %31 {offsets = [0, 128], sizes = [16, 128], strides = [1, 1]} : vector<16x256xf32> to vector<16x128xf32>
    "tpu.trace_start"() <{level = 10 : i32, message = "qe,ke->qk"}> : () -> ()
    %cst_49 = arith.constant dense<0.000000e+00> : vector<16x16xf32>
    %50 = tpu.matmul %48, %49, %cst_49 {dimension_numbers = #tpu.dot_dimension_numbers<[1], [1], [0], [0], [0, 0, 1, 0], [], []>} : vector<16x128xf32>, vector<16x128xf32>, vector<16x16xf32> -> vector<16x16xf32>
    "tpu.trace_stop"() : () -> ()
    %cst_50 = arith.constant dense<0xFF800000> : vector<16xf32>
    %51 = vector.multi_reduction <maximumf>, %50, %cst_50 [1] : vector<16x16xf32> to vector<16xf32>
    %52 = vector.shape_cast %51 : vector<16xf32> to vector<16x1xf32>
    %53 = vector.broadcast %52 : vector<16x1xf32> to vector<16x16xf32>
    %54 = arith.subf %50, %53 : vector<16x16xf32>
    %55 = math.exp %54 : vector<16x16xf32>
    %cst_51 = arith.constant dense<0.000000e+00> : vector<16xf32>
    %56 = vector.multi_reduction <add>, %55, %cst_51 [1] : vector<16x16xf32> to vector<16xf32>
    %57 = vector.shape_cast %56 : vector<16xf32> to vector<16x1xf32>
    %58 = tpu.reciprocal %57 {approx = true} : vector<16x1xf32> -> vector<16x1xf32>
    %59 = vector.broadcast %58 : vector<16x1xf32> to vector<16x16xf32>
    %60 = arith.mulf %55, %59 : vector<16x16xf32>
    %61 = vector.extract_strided_slice %32 {offsets = [0, 128], sizes = [16, 128], strides = [1, 1]} : vector<16x256xf32> to vector<16x128xf32>
    %cst_52 = arith.constant dense<0.000000e+00> : vector<16x128xf32>
    %62 = tpu.matmul %60, %61, %cst_52 {dimension_numbers = #tpu.dot_dimension_numbers<[1], [0], [0], [1], [0, 0, 1, 1], [], []>} : vector<16x16xf32>, vector<16x128xf32>, vector<16x128xf32> -> vector<16x128xf32>
    %63 = tpu.concatenate %47, %62 in 1 : vector<16x128xf32>, vector<16x128xf32> -> vector<16x256xf32>
    %64 = vector.extract_strided_slice %27 {offsets = [16, 0], sizes = [16, 256], strides = [1, 1]} : vector<32x256xf32> to vector<16x256xf32>
    %65 = vector.extract_strided_slice %28 {offsets = [16, 0], sizes = [16, 256], strides = [1, 1]} : vector<32x256xf32> to vector<16x256xf32>
    %66 = vector.extract_strided_slice %29 {offsets = [16, 0], sizes = [16, 256], strides = [1, 1]} : vector<32x256xf32> to vector<16x256xf32>
    %67 = vector.extract_strided_slice %64 {offsets = [0, 0], sizes = [16, 128], strides = [1, 1]} : vector<16x256xf32> to vector<16x128xf32>
    %68 = vector.extract_strided_slice %65 {offsets = [0, 0], sizes = [16, 128], strides = [1, 1]} : vector<16x256xf32> to vector<16x128xf32>
    "tpu.trace_start"() <{level = 10 : i32, message = "qe,ke->qk"}> : () -> ()
    %cst_53 = arith.constant dense<0.000000e+00> : vector<16x16xf32>
    %69 = tpu.matmul %67, %68, %cst_53 {dimension_numbers = #tpu.dot_dimension_numbers<[1], [1], [0], [0], [0, 0, 1, 0], [], []>} : vector<16x128xf32>, vector<16x128xf32>, vector<16x16xf32> -> vector<16x16xf32>
    "tpu.trace_stop"() : () -> ()
    %cst_54 = arith.constant dense<0xFF800000> : vector<16xf32>
    %70 = vector.multi_reduction <maximumf>, %69, %cst_54 [1] : vector<16x16xf32> to vector<16xf32>
    %71 = vector.shape_cast %70 : vector<16xf32> to vector<16x1xf32>
    %72 = vector.broadcast %71 : vector<16x1xf32> to vector<16x16xf32>
    %73 = arith.subf %69, %72 : vector<16x16xf32>
    %74 = math.exp %73 : vector<16x16xf32>
    %cst_55 = arith.constant dense<0.000000e+00> : vector<16xf32>
    %75 = vector.multi_reduction <add>, %74, %cst_55 [1] : vector<16x16xf32> to vector<16xf32>
    %76 = vector.shape_cast %75 : vector<16xf32> to vector<16x1xf32>
    %77 = tpu.reciprocal %76 {approx = true} : vector<16x1xf32> -> vector<16x1xf32>
    %78 = vector.broadcast %77 : vector<16x1xf32> to vector<16x16xf32>
    %79 = arith.mulf %74, %78 : vector<16x16xf32>
    %80 = vector.extract_strided_slice %66 {offsets = [0, 0], sizes = [16, 128], strides = [1, 1]} : vector<16x256xf32> to vector<16x128xf32>
    %cst_56 = arith.constant dense<0.000000e+00> : vector<16x128xf32>
    %81 = tpu.matmul %79, %80, %cst_56 {dimension_numbers = #tpu.dot_dimension_numbers<[1], [0], [0], [1], [0, 0, 1, 1], [], []>} : vector<16x16xf32>, vector<16x128xf32>, vector<16x128xf32> -> vector<16x128xf32>
    %82 = vector.extract_strided_slice %64 {offsets = [0, 128], sizes = [16, 128], strides = [1, 1]} : vector<16x256xf32> to vector<16x128xf32>
    %83 = vector.extract_strided_slice %65 {offsets = [0, 128], sizes = [16, 128], strides = [1, 1]} : vector<16x256xf32> to vector<16x128xf32>
    "tpu.trace_start"() <{level = 10 : i32, message = "qe,ke->qk"}> : () -> ()
    %cst_57 = arith.constant dense<0.000000e+00> : vector<16x16xf32>
    %84 = tpu.matmul %82, %83, %cst_57 {dimension_numbers = #tpu.dot_dimension_numbers<[1], [1], [0], [0], [0, 0, 1, 0], [], []>} : vector<16x128xf32>, vector<16x128xf32>, vector<16x16xf32> -> vector<16x16xf32>
    "tpu.trace_stop"() : () -> ()
    %cst_58 = arith.constant dense<0xFF800000> : vector<16xf32>
    %85 = vector.multi_reduction <maximumf>, %84, %cst_58 [1] : vector<16x16xf32> to vector<16xf32>
    %86 = vector.shape_cast %85 : vector<16xf32> to vector<16x1xf32>
    %87 = vector.broadcast %86 : vector<16x1xf32> to vector<16x16xf32>
    %88 = arith.subf %84, %87 : vector<16x16xf32>
    %89 = math.exp %88 : vector<16x16xf32>
    %cst_59 = arith.constant dense<0.000000e+00> : vector<16xf32>
    %90 = vector.multi_reduction <add>, %89, %cst_59 [1] : vector<16x16xf32> to vector<16xf32>
    %91 = vector.shape_cast %90 : vector<16xf32> to vector<16x1xf32>
    %92 = tpu.reciprocal %91 {approx = true} : vector<16x1xf32> -> vector<16x1xf32>
    %93 = vector.broadcast %92 : vector<16x1xf32> to vector<16x16xf32>
    %94 = arith.mulf %89, %93 : vector<16x16xf32>
    %95 = vector.extract_strided_slice %66 {offsets = [0, 128], sizes = [16, 128], strides = [1, 1]} : vector<16x256xf32> to vector<16x128xf32>
    %cst_60 = arith.constant dense<0.000000e+00> : vector<16x128xf32>
    %96 = tpu.matmul %94, %95, %cst_60 {dimension_numbers = #tpu.dot_dimension_numbers<[1], [0], [0], [1], [0, 0, 1, 1], [], []>} : vector<16x16xf32>, vector<16x128xf32>, vector<16x128xf32> -> vector<16x128xf32>
    %97 = tpu.concatenate %81, %96 in 1 : vector<16x128xf32>, vector<16x128xf32> -> vector<16x256xf32>
    %98 = tpu.concatenate %63, %97 in 0 : vector<16x256xf32>, vector<16x256xf32> -> vector<32x256xf32>
    %cst_61 = arith.constant dense<0.000000e+00> : vector<32x256xf32>
    %99 = tpu.matmul %98, %6, %cst_61 {dimension_numbers = #tpu.dot_dimension_numbers<[1], [0], [0], [1], [0, 0, 1, 1], [], []>} : vector<32x256xf32>, vector<256x256xf32>, vector<32x256xf32> -> vector<32x256xf32>
    %100 = vector.broadcast %7 : vector<1x256xf32> to vector<32x256xf32>
    %101 = arith.addf %99, %100 : vector<32x256xf32>
    %102 = arith.addf %1, %101 : vector<32x256xf32>
    %cst_62 = arith.constant dense<0.000000e+00> : vector<32xf32>
    %103 = vector.multi_reduction <add>, %102, %cst_62 [1] : vector<32x256xf32> to vector<32xf32>
    %104 = vector.shape_cast %103 : vector<32xf32> to vector<32x1xf32>
    %cst_63 = arith.constant 3.906250e-03 : f32
    %105 = vector.broadcast %cst_63 : f32 to vector<32x1xf32>
    %106 = arith.mulf %104, %105 : vector<32x1xf32>
    %107 = arith.mulf %102, %102 : vector<32x256xf32>
    %cst_64 = arith.constant dense<0.000000e+00> : vector<32xf32>
    %108 = vector.multi_reduction <add>, %107, %cst_64 [1] : vector<32x256xf32> to vector<32xf32>
    %109 = vector.shape_cast %108 : vector<32xf32> to vector<32x1xf32>
    %cst_65 = arith.constant 3.906250e-03 : f32
    %110 = vector.broadcast %cst_65 : f32 to vector<32x1xf32>
    %111 = arith.mulf %109, %110 : vector<32x1xf32>
    %112 = arith.mulf %106, %106 : vector<32x1xf32>
    %113 = arith.subf %111, %112 : vector<32x1xf32>
    %114 = vector.broadcast %106 : vector<32x1xf32> to vector<32x256xf32>
    %115 = arith.subf %102, %114 : vector<32x256xf32>
    %cst_66 = arith.constant 9.99999974E-6 : f32
    %116 = vector.broadcast %cst_66 : f32 to vector<32x1xf32>
    %117 = arith.addf %113, %116 : vector<32x1xf32>
    %118 = math.rsqrt %117 : vector<32x1xf32>
    %119 = vector.broadcast %118 : vector<32x1xf32> to vector<32x256xf32>
    %120 = arith.mulf %115, %119 : vector<32x256xf32>
    %121 = vector.broadcast %14 : vector<1x256xf32> to vector<32x256xf32>
    %122 = arith.mulf %120, %121 : vector<32x256xf32>
    %123 = vector.broadcast %15 : vector<1x256xf32> to vector<32x256xf32>
    %124 = arith.addf %122, %123 : vector<32x256xf32>
    %cst_67 = arith.constant dense<0.000000e+00> : vector<32x256xf32>
    %125 = tpu.matmul %124, %8, %cst_67 {dimension_numbers = #tpu.dot_dimension_numbers<[1], [0], [0], [1], [0, 0, 1, 1], [], []>} : vector<32x256xf32>, vector<256x256xf32>, vector<32x256xf32> -> vector<32x256xf32>
    %126 = vector.broadcast %9 : vector<1x256xf32> to vector<32x256xf32>
    %127 = arith.addf %125, %126 : vector<32x256xf32>
    %cst_68 = arith.constant dense<0.000000e+00> : vector<16x512xf32>
    %128 = tpu.matmul %3, %10, %cst_68 {dimension_numbers = #tpu.dot_dimension_numbers<[1], [0], [0], [1], [0, 0, 1, 1], [], []>} : vector<16x256xf32>, vector<256x512xf32>, vector<16x512xf32> -> vector<16x512xf32>
    %129 = vector.broadcast %11 : vector<1x512xf32> to vector<16x512xf32>
    %130 = arith.addf %128, %129 : vector<16x512xf32>
    %131 = vector.extract_strided_slice %130 {offsets = [0, 0], sizes = [16, 256], strides = [1, 1]} : vector<16x512xf32> to vector<16x256xf32>
    %132 = vector.extract_strided_slice %130 {offsets = [0, 256], sizes = [16, 256], strides = [1, 1]} : vector<16x512xf32> to vector<16x256xf32>
    %133 = vector.extract_strided_slice %127 {offsets = [0, 0], sizes = [16, 256], strides = [1, 1]} : vector<32x256xf32> to vector<16x256xf32>
    %134 = vector.extract_strided_slice %131 {offsets = [0, 0], sizes = [8, 256], strides = [1, 1]} : vector<16x256xf32> to vector<8x256xf32>
    %135 = vector.extract_strided_slice %132 {offsets = [0, 0], sizes = [8, 256], strides = [1, 1]} : vector<16x256xf32> to vector<8x256xf32>
    %136 = vector.extract_strided_slice %133 {offsets = [0, 0], sizes = [16, 128], strides = [1, 1]} : vector<16x256xf32> to vector<16x128xf32>
    %137 = vector.extract_strided_slice %134 {offsets = [0, 0], sizes = [8, 128], strides = [1, 1]} : vector<8x256xf32> to vector<8x128xf32>
    "tpu.trace_start"() <{level = 10 : i32, message = "qe,ke->qk"}> : () -> ()
    %cst_69 = arith.constant dense<0.000000e+00> : vector<16x8xf32>
    %138 = tpu.matmul %136, %137, %cst_69 {dimension_numbers = #tpu.dot_dimension_numbers<[1], [1], [0], [0], [0, 0, 1, 0], [], []>} : vector<16x128xf32>, vector<8x128xf32>, vector<16x8xf32> -> vector<16x8xf32>
    "tpu.trace_stop"() : () -> ()
    %cst_70 = arith.constant dense<0xFF800000> : vector<16xf32>
    %139 = vector.multi_reduction <maximumf>, %138, %cst_70 [1] : vector<16x8xf32> to vector<16xf32>
    %140 = vector.shape_cast %139 : vector<16xf32> to vector<16x1xf32>
    %141 = vector.broadcast %140 : vector<16x1xf32> to vector<16x8xf32>
    %142 = arith.subf %138, %141 : vector<16x8xf32>
    %143 = math.exp %142 : vector<16x8xf32>
    %cst_71 = arith.constant dense<0.000000e+00> : vector<16xf32>
    %144 = vector.multi_reduction <add>, %143, %cst_71 [1] : vector<16x8xf32> to vector<16xf32>
    %145 = vector.shape_cast %144 : vector<16xf32> to vector<16x1xf32>
    %146 = tpu.reciprocal %145 {approx = true} : vector<16x1xf32> -> vector<16x1xf32>
    %147 = vector.broadcast %146 : vector<16x1xf32> to vector<16x8xf32>
    %148 = arith.mulf %143, %147 : vector<16x8xf32>
    %149 = vector.extract_strided_slice %135 {offsets = [0, 0], sizes = [8, 128], strides = [1, 1]} : vector<8x256xf32> to vector<8x128xf32>
    %cst_72 = arith.constant dense<0.000000e+00> : vector<16x128xf32>
    %150 = tpu.matmul %148, %149, %cst_72 {dimension_numbers = #tpu.dot_dimension_numbers<[1], [0], [0], [1], [0, 0, 1, 1], [], []>} : vector<16x8xf32>, vector<8x128xf32>, vector<16x128xf32> -> vector<16x128xf32>
    %151 = vector.extract_strided_slice %133 {offsets = [0, 128], sizes = [16, 128], strides = [1, 1]} : vector<16x256xf32> to vector<16x128xf32>
    %152 = vector.extract_strided_slice %134 {offsets = [0, 128], sizes = [8, 128], strides = [1, 1]} : vector<8x256xf32> to vector<8x128xf32>
    "tpu.trace_start"() <{level = 10 : i32, message = "qe,ke->qk"}> : () -> ()
    %cst_73 = arith.constant dense<0.000000e+00> : vector<16x8xf32>
    %153 = tpu.matmul %151, %152, %cst_73 {dimension_numbers = #tpu.dot_dimension_numbers<[1], [1], [0], [0], [0, 0, 1, 0], [], []>} : vector<16x128xf32>, vector<8x128xf32>, vector<16x8xf32> -> vector<16x8xf32>
    "tpu.trace_stop"() : () -> ()
    %cst_74 = arith.constant dense<0xFF800000> : vector<16xf32>
    %154 = vector.multi_reduction <maximumf>, %153, %cst_74 [1] : vector<16x8xf32> to vector<16xf32>
    %155 = vector.shape_cast %154 : vector<16xf32> to vector<16x1xf32>
    %156 = vector.broadcast %155 : vector<16x1xf32> to vector<16x8xf32>
    %157 = arith.subf %153, %156 : vector<16x8xf32>
    %158 = math.exp %157 : vector<16x8xf32>
    %cst_75 = arith.constant dense<0.000000e+00> : vector<16xf32>
    %159 = vector.multi_reduction <add>, %158, %cst_75 [1] : vector<16x8xf32> to vector<16xf32>
    %160 = vector.shape_cast %159 : vector<16xf32> to vector<16x1xf32>
    %161 = tpu.reciprocal %160 {approx = true} : vector<16x1xf32> -> vector<16x1xf32>
    %162 = vector.broadcast %161 : vector<16x1xf32> to vector<16x8xf32>
    %163 = arith.mulf %158, %162 : vector<16x8xf32>
    %164 = vector.extract_strided_slice %135 {offsets = [0, 128], sizes = [8, 128], strides = [1, 1]} : vector<8x256xf32> to vector<8x128xf32>
    %cst_76 = arith.constant dense<0.000000e+00> : vector<16x128xf32>
    %165 = tpu.matmul %163, %164, %cst_76 {dimension_numbers = #tpu.dot_dimension_numbers<[1], [0], [0], [1], [0, 0, 1, 1], [], []>} : vector<16x8xf32>, vector<8x128xf32>, vector<16x128xf32> -> vector<16x128xf32>
    %166 = tpu.concatenate %150, %165 in 1 : vector<16x128xf32>, vector<16x128xf32> -> vector<16x256xf32>
    %167 = vector.extract_strided_slice %127 {offsets = [16, 0], sizes = [16, 256], strides = [1, 1]} : vector<32x256xf32> to vector<16x256xf32>
    %168 = vector.extract_strided_slice %131 {offsets = [8, 0], sizes = [8, 256], strides = [1, 1]} : vector<16x256xf32> to vector<8x256xf32>
    %169 = vector.extract_strided_slice %132 {offsets = [8, 0], sizes = [8, 256], strides = [1, 1]} : vector<16x256xf32> to vector<8x256xf32>
    %170 = vector.extract_strided_slice %167 {offsets = [0, 0], sizes = [16, 128], strides = [1, 1]} : vector<16x256xf32> to vector<16x128xf32>
    %171 = vector.extract_strided_slice %168 {offsets = [0, 0], sizes = [8, 128], strides = [1, 1]} : vector<8x256xf32> to vector<8x128xf32>
    "tpu.trace_start"() <{level = 10 : i32, message = "qe,ke->qk"}> : () -> ()
    %cst_77 = arith.constant dense<0.000000e+00> : vector<16x8xf32>
    %172 = tpu.matmul %170, %171, %cst_77 {dimension_numbers = #tpu.dot_dimension_numbers<[1], [1], [0], [0], [0, 0, 1, 0], [], []>} : vector<16x128xf32>, vector<8x128xf32>, vector<16x8xf32> -> vector<16x8xf32>
    "tpu.trace_stop"() : () -> ()
    %cst_78 = arith.constant dense<0xFF800000> : vector<16xf32>
    %173 = vector.multi_reduction <maximumf>, %172, %cst_78 [1] : vector<16x8xf32> to vector<16xf32>
    %174 = vector.shape_cast %173 : vector<16xf32> to vector<16x1xf32>
    %175 = vector.broadcast %174 : vector<16x1xf32> to vector<16x8xf32>
    %176 = arith.subf %172, %175 : vector<16x8xf32>
    %177 = math.exp %176 : vector<16x8xf32>
    %cst_79 = arith.constant dense<0.000000e+00> : vector<16xf32>
    %178 = vector.multi_reduction <add>, %177, %cst_79 [1] : vector<16x8xf32> to vector<16xf32>
    %179 = vector.shape_cast %178 : vector<16xf32> to vector<16x1xf32>
    %180 = tpu.reciprocal %179 {approx = true} : vector<16x1xf32> -> vector<16x1xf32>
    %181 = vector.broadcast %180 : vector<16x1xf32> to vector<16x8xf32>
    %182 = arith.mulf %177, %181 : vector<16x8xf32>
    %183 = vector.extract_strided_slice %169 {offsets = [0, 0], sizes = [8, 128], strides = [1, 1]} : vector<8x256xf32> to vector<8x128xf32>
    %cst_80 = arith.constant dense<0.000000e+00> : vector<16x128xf32>
    %184 = tpu.matmul %182, %183, %cst_80 {dimension_numbers = #tpu.dot_dimension_numbers<[1], [0], [0], [1], [0, 0, 1, 1], [], []>} : vector<16x8xf32>, vector<8x128xf32>, vector<16x128xf32> -> vector<16x128xf32>
    %185 = vector.extract_strided_slice %167 {offsets = [0, 128], sizes = [16, 128], strides = [1, 1]} : vector<16x256xf32> to vector<16x128xf32>
    %186 = vector.extract_strided_slice %168 {offsets = [0, 128], sizes = [8, 128], strides = [1, 1]} : vector<8x256xf32> to vector<8x128xf32>
    "tpu.trace_start"() <{level = 10 : i32, message = "qe,ke->qk"}> : () -> ()
    %cst_81 = arith.constant dense<0.000000e+00> : vector<16x8xf32>
    %187 = tpu.matmul %185, %186, %cst_81 {dimension_numbers = #tpu.dot_dimension_numbers<[1], [1], [0], [0], [0, 0, 1, 0], [], []>} : vector<16x128xf32>, vector<8x128xf32>, vector<16x8xf32> -> vector<16x8xf32>
    "tpu.trace_stop"() : () -> ()
    %cst_82 = arith.constant dense<0xFF800000> : vector<16xf32>
    %188 = vector.multi_reduction <maximumf>, %187, %cst_82 [1] : vector<16x8xf32> to vector<16xf32>
    %189 = vector.shape_cast %188 : vector<16xf32> to vector<16x1xf32>
    %190 = vector.broadcast %189 : vector<16x1xf32> to vector<16x8xf32>
    %191 = arith.subf %187, %190 : vector<16x8xf32>
    %192 = math.exp %191 : vector<16x8xf32>
    %cst_83 = arith.constant dense<0.000000e+00> : vector<16xf32>
    %193 = vector.multi_reduction <add>, %192, %cst_83 [1] : vector<16x8xf32> to vector<16xf32>
    %194 = vector.shape_cast %193 : vector<16xf32> to vector<16x1xf32>
    %195 = tpu.reciprocal %194 {approx = true} : vector<16x1xf32> -> vector<16x1xf32>
    %196 = vector.broadcast %195 : vector<16x1xf32> to vector<16x8xf32>
    %197 = arith.mulf %192, %196 : vector<16x8xf32>
    %198 = vector.extract_strided_slice %169 {offsets = [0, 128], sizes = [8, 128], strides = [1, 1]} : vector<8x256xf32> to vector<8x128xf32>
    %cst_84 = arith.constant dense<0.000000e+00> : vector<16x128xf32>
    %199 = tpu.matmul %197, %198, %cst_84 {dimension_numbers = #tpu.dot_dimension_numbers<[1], [0], [0], [1], [0, 0, 1, 1], [], []>} : vector<16x8xf32>, vector<8x128xf32>, vector<16x128xf32> -> vector<16x128xf32>
    %200 = tpu.concatenate %184, %199 in 1 : vector<16x128xf32>, vector<16x128xf32> -> vector<16x256xf32>
    %201 = tpu.concatenate %166, %200 in 0 : vector<16x256xf32>, vector<16x256xf32> -> vector<32x256xf32>
    %cst_85 = arith.constant dense<0.000000e+00> : vector<32x256xf32>
    %202 = tpu.matmul %201, %12, %cst_85 {dimension_numbers = #tpu.dot_dimension_numbers<[1], [0], [0], [1], [0, 0, 1, 1], [], []>} : vector<32x256xf32>, vector<256x256xf32>, vector<32x256xf32> -> vector<32x256xf32>
    %203 = vector.broadcast %13 : vector<1x256xf32> to vector<32x256xf32>
    %204 = arith.addf %202, %203 : vector<32x256xf32>
    %205 = arith.addf %124, %204 : vector<32x256xf32>
    %cst_86 = arith.constant dense<0.000000e+00> : vector<32xf32>
    %206 = vector.multi_reduction <add>, %205, %cst_86 [1] : vector<32x256xf32> to vector<32xf32>
    %207 = vector.shape_cast %206 : vector<32xf32> to vector<32x1xf32>
    %cst_87 = arith.constant 3.906250e-03 : f32
    %208 = vector.broadcast %cst_87 : f32 to vector<32x1xf32>
    %209 = arith.mulf %207, %208 : vector<32x1xf32>
    %210 = arith.mulf %205, %205 : vector<32x256xf32>
    %cst_88 = arith.constant dense<0.000000e+00> : vector<32xf32>
    %211 = vector.multi_reduction <add>, %210, %cst_88 [1] : vector<32x256xf32> to vector<32xf32>
    %212 = vector.shape_cast %211 : vector<32xf32> to vector<32x1xf32>
    %cst_89 = arith.constant 3.906250e-03 : f32
    %213 = vector.broadcast %cst_89 : f32 to vector<32x1xf32>
    %214 = arith.mulf %212, %213 : vector<32x1xf32>
    %215 = arith.mulf %209, %209 : vector<32x1xf32>
    %216 = arith.subf %214, %215 : vector<32x1xf32>
    %217 = vector.broadcast %209 : vector<32x1xf32> to vector<32x256xf32>
    %218 = arith.subf %205, %217 : vector<32x256xf32>
    %cst_90 = arith.constant 9.99999974E-6 : f32
    %219 = vector.broadcast %cst_90 : f32 to vector<32x1xf32>
    %220 = arith.addf %216, %219 : vector<32x1xf32>
    %221 = math.rsqrt %220 : vector<32x1xf32>
    %222 = vector.broadcast %221 : vector<32x1xf32> to vector<32x256xf32>
    %223 = arith.mulf %218, %222 : vector<32x256xf32>
    %224 = vector.broadcast %16 : vector<1x256xf32> to vector<32x256xf32>
    %225 = arith.mulf %223, %224 : vector<32x256xf32>
    %226 = vector.broadcast %17 : vector<1x256xf32> to vector<32x256xf32>
    %227 = arith.addf %225, %226 : vector<32x256xf32>
    %cst_91 = arith.constant dense<0.000000e+00> : vector<32x512xf32>
    %228 = tpu.matmul %227, %20, %cst_91 {dimension_numbers = #tpu.dot_dimension_numbers<[1], [0], [0], [1], [0, 0, 1, 1], [], []>} : vector<32x256xf32>, vector<256x512xf32>, vector<32x512xf32> -> vector<32x512xf32>
    %229 = vector.broadcast %21 : vector<1x512xf32> to vector<32x512xf32>
    %230 = arith.addf %228, %229 : vector<32x512xf32>
    %cst_92 = arith.constant 0.000000e+00 : f32
    %231 = vector.broadcast %cst_92 : f32 to vector<32x512xf32>
    %232 = arith.maximumf %230, %231 : vector<32x512xf32>
    %cst_93 = arith.constant dense<0.000000e+00> : vector<32x256xf32>
    %233 = tpu.matmul %232, %22, %cst_93 {dimension_numbers = #tpu.dot_dimension_numbers<[1], [0], [0], [1], [0, 0, 1, 1], [], []>} : vector<32x512xf32>, vector<512x256xf32>, vector<32x256xf32> -> vector<32x256xf32>
    %234 = vector.broadcast %23 : vector<1x256xf32> to vector<32x256xf32>
    %235 = arith.addf %233, %234 : vector<32x256xf32>
    %236 = arith.addf %227, %235 : vector<32x256xf32>
    %cst_94 = arith.constant dense<0.000000e+00> : vector<32xf32>
    %237 = vector.multi_reduction <add>, %236, %cst_94 [1] : vector<32x256xf32> to vector<32xf32>
    %238 = vector.shape_cast %237 : vector<32xf32> to vector<32x1xf32>
    %cst_95 = arith.constant 3.906250e-03 : f32
    %239 = vector.broadcast %cst_95 : f32 to vector<32x1xf32>
    %240 = arith.mulf %238, %239 : vector<32x1xf32>
    %241 = arith.mulf %236, %236 : vector<32x256xf32>
    %cst_96 = arith.constant dense<0.000000e+00> : vector<32xf32>
    %242 = vector.multi_reduction <add>, %241, %cst_96 [1] : vector<32x256xf32> to vector<32xf32>
    %243 = vector.shape_cast %242 : vector<32xf32> to vector<32x1xf32>
    %cst_97 = arith.constant 3.906250e-03 : f32
    %244 = vector.broadcast %cst_97 : f32 to vector<32x1xf32>
    %245 = arith.mulf %243, %244 : vector<32x1xf32>
    %246 = arith.mulf %240, %240 : vector<32x1xf32>
    %247 = arith.subf %245, %246 : vector<32x1xf32>
    %248 = vector.broadcast %240 : vector<32x1xf32> to vector<32x256xf32>
    %249 = arith.subf %236, %248 : vector<32x256xf32>
    %cst_98 = arith.constant 9.99999974E-6 : f32
    %250 = vector.broadcast %cst_98 : f32 to vector<32x1xf32>
    %251 = arith.addf %247, %250 : vector<32x1xf32>
    %252 = math.rsqrt %251 : vector<32x1xf32>
    %253 = vector.broadcast %252 : vector<32x1xf32> to vector<32x256xf32>
    %254 = arith.mulf %249, %253 : vector<32x256xf32>
    %255 = vector.broadcast %18 : vector<1x256xf32> to vector<32x256xf32>
    %256 = arith.mulf %254, %255 : vector<32x256xf32>
    %257 = vector.broadcast %19 : vector<1x256xf32> to vector<32x256xf32>
    %258 = arith.addf %256, %257 : vector<32x256xf32>
    %259 = vector.shape_cast %258 : vector<32x256xf32> to vector<2x16x256xf32>
    %c0_99 = arith.constant 0 : index
    %c0_100 = arith.constant 0 : index
    %c0_101 = arith.constant 0 : index
    %260 = vector.load %arg23[%c0_99, %c0_100, %c0_101] : memref<2x16x256xf32, #tpu.memory_space<vmem>>, vector<2x16x256xf32>
    tpu.vector_store %arg23[%c0_99, %c0_100, %c0_101], %259 {strides = array<i32>} : memref<2x16x256xf32, #tpu.memory_space<vmem>>, vector<2x16x256xf32>,
    return
  }
  func.func @transform_0(%arg0: i32) -> (i32, i32, i32) {
    %c0_i32 = arith.constant 0 : i32
    %c0_i32_0 = arith.constant 0 : i32
    %c0_i32_1 = arith.constant 0 : i32
    return %arg0, %c0_i32, %c0_i32_0 : i32, i32, i32
  }
  func.func @transform_1(%arg0: i32) -> (i32, i32, i32) {
    %c0_i32 = arith.constant 0 : i32
    %c0_i32_0 = arith.constant 0 : i32
    %c0_i32_1 = arith.constant 0 : i32
    return %arg0, %c0_i32, %c0_i32_0 : i32, i32, i32
  }
  func.func @transform_2(%arg0: i32) -> (i32, i32) {
    %c0_i32 = arith.constant 0 : i32
    %c0_i32_0 = arith.constant 0 : i32
    %c0_i32_1 = arith.constant 0 : i32
    return %c0_i32, %c0_i32_0 : i32, i32
  }
  func.func @transform_3(%arg0: i32) -> (i32, i32) {
    %c0_i32 = arith.constant 0 : i32
    %c0_i32_0 = arith.constant 0 : i32
    %c0_i32_1 = arith.constant 0 : i32
    return %c0_i32, %c0_i32_0 : i32, i32
  }
  func.func @transform_4(%arg0: i32) -> (i32, i32) {
    %c0_i32 = arith.constant 0 : i32
    %c0_i32_0 = arith.constant 0 : i32
    %c0_i32_1 = arith.constant 0 : i32
    return %c0_i32, %c0_i32_0 : i32, i32
  }
  func.func @transform_5(%arg0: i32) -> (i32, i32) {
    %c0_i32 = arith.constant 0 : i32
    %c0_i32_0 = arith.constant 0 : i32
    %c0_i32_1 = arith.constant 0 : i32
    return %c0_i32, %c0_i32_0 : i32, i32
  }
  func.func @transform_6(%arg0: i32) -> (i32, i32) {
    %c0_i32 = arith.constant 0 : i32
    %c0_i32_0 = arith.constant 0 : i32
    %c0_i32_1 = arith.constant 0 : i32
    return %c0_i32, %c0_i32_0 : i32, i32
  }
  func.func @transform_7(%arg0: i32) -> (i32, i32) {
    %c0_i32 = arith.constant 0 : i32
    %c0_i32_0 = arith.constant 0 : i32
    %c0_i32_1 = arith.constant 0 : i32
    return %c0_i32, %c0_i32_0 : i32, i32
  }
  func.func @transform_8(%arg0: i32) -> (i32, i32) {
    %c0_i32 = arith.constant 0 : i32
    %c0_i32_0 = arith.constant 0 : i32
    %c0_i32_1 = arith.constant 0 : i32
    return %c0_i32, %c0_i32_0 : i32, i32
  }
  func.func @transform_9(%arg0: i32) -> (i32, i32) {
    %c0_i32 = arith.constant 0 : i32
    %c0_i32_0 = arith.constant 0 : i32
    %c0_i32_1 = arith.constant 0 : i32
    return %c0_i32, %c0_i32_0 : i32, i32
  }
  func.func @transform_10(%arg0: i32) -> (i32, i32) {
    %c0_i32 = arith.constant 0 : i32
    %c0_i32_0 = arith.constant 0 : i32
    %c0_i32_1 = arith.constant 0 : i32
    return %c0_i32, %c0_i32_0 : i32, i32
  }
  func.func @transform_11(%arg0: i32) -> (i32, i32) {
    %c0_i32 = arith.constant 0 : i32
    %c0_i32_0 = arith.constant 0 : i32
    %c0_i32_1 = arith.constant 0 : i32
    return %c0_i32, %c0_i32_0 : i32, i32
  }
  func.func @transform_12(%arg0: i32) -> (i32, i32) {
    %c0_i32 = arith.constant 0 : i32
    %c0_i32_0 = arith.constant 0 : i32
    %c0_i32_1 = arith.constant 0 : i32
    return %c0_i32, %c0_i32_0 : i32, i32
  }
  func.func @transform_13(%arg0: i32) -> (i32, i32) {
    %c0_i32 = arith.constant 0 : i32
    %c0_i32_0 = arith.constant 0 : i32
    %c0_i32_1 = arith.constant 0 : i32
    return %c0_i32, %c0_i32_0 : i32, i32
  }
  func.func @transform_14(%arg0: i32) -> (i32, i32) {
    %c0_i32 = arith.constant 0 : i32
    %c0_i32_0 = arith.constant 0 : i32
    %c0_i32_1 = arith.constant 0 : i32
    return %c0_i32, %c0_i32_0 : i32, i32
  }
  func.func @transform_15(%arg0: i32) -> (i32, i32) {
    %c0_i32 = arith.constant 0 : i32
    %c0_i32_0 = arith.constant 0 : i32
    %c0_i32_1 = arith.constant 0 : i32
    return %c0_i32, %c0_i32_0 : i32, i32
  }
  func.func @transform_16(%arg0: i32) -> (i32, i32) {
    %c0_i32 = arith.constant 0 : i32
    %c0_i32_0 = arith.constant 0 : i32
    %c0_i32_1 = arith.constant 0 : i32
    return %c0_i32, %c0_i32_0 : i32, i32
  }
  func.func @transform_17(%arg0: i32) -> (i32, i32) {
    %c0_i32 = arith.constant 0 : i32
    %c0_i32_0 = arith.constant 0 : i32
    %c0_i32_1 = arith.constant 0 : i32
    return %c0_i32, %c0_i32_0 : i32, i32
  }
  func.func @transform_18(%arg0: i32) -> (i32, i32) {
    %c0_i32 = arith.constant 0 : i32
    %c0_i32_0 = arith.constant 0 : i32
    %c0_i32_1 = arith.constant 0 : i32
    return %c0_i32, %c0_i32_0 : i32, i32
  }
  func.func @transform_19(%arg0: i32) -> (i32, i32) {
    %c0_i32 = arith.constant 0 : i32
    %c0_i32_0 = arith.constant 0 : i32
    %c0_i32_1 = arith.constant 0 : i32
    return %c0_i32, %c0_i32_0 : i32, i32
  }
  func.func @transform_20(%arg0: i32) -> (i32, i32) {
    %c0_i32 = arith.constant 0 : i32
    %c0_i32_0 = arith.constant 0 : i32
    %c0_i32_1 = arith.constant 0 : i32
    return %c0_i32, %c0_i32_0 : i32, i32
  }
  func.func @transform_21(%arg0: i32) -> (i32, i32) {
    %c0_i32 = arith.constant 0 : i32
    %c0_i32_0 = arith.constant 0 : i32
    %c0_i32_1 = arith.constant 0 : i32
    return %c0_i32, %c0_i32_0 : i32, i32
  }
  func.func @transform_22(%arg0: i32) -> (i32, i32, i32) {
    %c0_i32 = arith.constant 0 : i32
    %c0_i32_0 = arith.constant 0 : i32
    %c0_i32_1 = arith.constant 0 : i32
    return %arg0, %c0_i32, %c0_i32_0 : i32, i32, i32
  }
}

module attributes {stable_mosaic.version = 11 : i64} {
  func.func @_decoder_layer_kernel(%arg0: i32, %arg1: memref<2x16x256xf32, #tpu.memory_space<vmem>>, %arg2: memref<2x8x256xf32, #tpu.memory_space<vmem>>, %arg3: memref<256x768xf32, #tpu.memory_space<vmem>>, %arg4: memref<1x768xf32, #tpu.memory_space<vmem>>, %arg5: memref<256x256xf32, #tpu.memory_space<vmem>>, %arg6: memref<1x256xf32, #tpu.memory_space<vmem>>, %arg7: memref<256x256xf32, #tpu.memory_space<vmem>>, %arg8: memref<1x256xf32, #tpu.memory_space<vmem>>, %arg9: memref<256x512xf32, #tpu.memory_space<vmem>>, %arg10: memref<1x512xf32, #tpu.memory_space<vmem>>, %arg11: memref<256x256xf32, #tpu.memory_space<vmem>>, %arg12: memref<1x256xf32, #tpu.memory_space<vmem>>, %arg13: memref<1x256xf32, #tpu.memory_space<vmem>>, %arg14: memref<1x256xf32, #tpu.memory_space<vmem>>, %arg15: memref<1x256xf32, #tpu.memory_space<vmem>>, %arg16: memref<1x256xf32, #tpu.memory_space<vmem>>, %arg17: memref<1x256xf32, #tpu.memory_space<vmem>>, %arg18: memref<1x256xf32, #tpu.memory_space<vmem>>, %arg19: memref<256x512xf32, #tpu.memory_space<vmem>>, %arg20: memref<1x512xf32, #tpu.memory_space<vmem>>, %arg21: memref<512x256xf32, #tpu.memory_space<vmem>>, %arg22: memref<1x256xf32, #tpu.memory_space<vmem>>, %arg23: memref<2x16x256xf32, #tpu.memory_space<vmem>>) attributes {dimension_semantics = [#tpu.dimension_semantics<parallel>], iteration_bounds = array<i64: 1>, scalar_prefetch = 0 : i64, scratch_operands = 0 : i64, tpu.core_type = #tpu.core_type<tc>, window_params = [{transform_indices = @transform_0, window_bounds = array<i64: 2, 16, 256>}, {transform_indices = @transform_1, window_bounds = array<i64: 2, 8, 256>}, {pipeline_mode = #tpu.pipeline_mode<synchronous>, transform_indices = @transform_2, window_bounds = array<i64: 256, 768>}, {pipeline_mode = #tpu.pipeline_mode<synchronous>, transform_indices = @transform_3, window_bounds = array<i64: 1, 768>}, {pipeline_mode = #tpu.pipeline_mode<synchronous>, transform_indices = @transform_4, window_bounds = array<i64: 256, 256>}, {pipeline_mode = #tpu.pipeline_mode<synchronous>, transform_indices = @transform_5, window_bounds = array<i64: 1, 256>}, {pipeline_mode = #tpu.pipeline_mode<synchronous>, transform_indices = @transform_6, window_bounds = array<i64: 256, 256>}, {pipeline_mode = #tpu.pipeline_mode<synchronous>, transform_indices = @transform_7, window_bounds = array<i64: 1, 256>}, {pipeline_mode = #tpu.pipeline_mode<synchronous>, transform_indices = @transform_8, window_bounds = array<i64: 256, 512>}, {pipeline_mode = #tpu.pipeline_mode<synchronous>, transform_indices = @transform_9, window_bounds = array<i64: 1, 512>}, {pipeline_mode = #tpu.pipeline_mode<synchronous>, transform_indices = @transform_10, window_bounds = array<i64: 256, 256>}, {pipeline_mode = #tpu.pipeline_mode<synchronous>, transform_indices = @transform_11, window_bounds = array<i64: 1, 256>}, {pipeline_mode = #tpu.pipeline_mode<synchronous>, transform_indices = @transform_12, window_bounds = array<i64: 1, 256>}, {pipeline_mode = #tpu.pipeline_mode<synchronous>, transform_indices = @transform_13, window_bounds = array<i64: 1, 256>}, {pipeline_mode = #tpu.pipeline_mode<synchronous>, transform_indices = @transform_14, window_bounds = array<i64: 1, 256>}, {pipeline_mode = #tpu.pipeline_mode<synchronous>, transform_indices = @transform_15, window_bounds = array<i64: 1, 256>}, {pipeline_mode = #tpu.pipeline_mode<synchronous>, transform_indices = @transform_16, window_bounds = array<i64: 1, 256>}, {pipeline_mode = #tpu.pipeline_mode<synchronous>, transform_indices = @transform_17, window_bounds = array<i64: 1, 256>}, {pipeline_mode = #tpu.pipeline_mode<synchronous>, transform_indices = @transform_18, window_bounds = array<i64: 256, 512>}, {pipeline_mode = #tpu.pipeline_mode<synchronous>, transform_indices = @transform_19, window_bounds = array<i64: 1, 512>}, {pipeline_mode = #tpu.pipeline_mode<synchronous>, transform_indices = @transform_20, window_bounds = array<i64: 512, 256>}, {pipeline_mode = #tpu.pipeline_mode<synchronous>, transform_indices = @transform_21, window_bounds = array<i64: 1, 256>}, {transform_indices = @transform_22, window_bounds = array<i64: 2, 16, 256>}]} {
    %c0 = arith.constant 0 : index
    %c0_0 = arith.constant 0 : index
    %c0_1 = arith.constant 0 : index
    %0 = vector.load %arg1[%c0, %c0_0, %c0_1] : memref<2x16x256xf32, #tpu.memory_space<vmem>>, vector<2x16x256xf32>
    %1 = vector.shape_cast %0 : vector<2x16x256xf32> to vector<32x256xf32>
    %c0_2 = arith.constant 0 : index
    %c0_3 = arith.constant 0 : index
    %c0_4 = arith.constant 0 : index
    %2 = vector.load %arg2[%c0_2, %c0_3, %c0_4] : memref<2x8x256xf32, #tpu.memory_space<vmem>>, vector<2x8x256xf32>
    %3 = vector.shape_cast %2 : vector<2x8x256xf32> to vector<16x256xf32>
    %c0_5 = arith.constant 0 : index
    %c0_6 = arith.constant 0 : index
    %4 = vector.load %arg3[%c0_5, %c0_6] : memref<256x768xf32, #tpu.memory_space<vmem>>, vector<256x768xf32>
    %c0_7 = arith.constant 0 : index
    %c0_8 = arith.constant 0 : index
    %5 = vector.load %arg4[%c0_7, %c0_8] : memref<1x768xf32, #tpu.memory_space<vmem>>, vector<1x768xf32>
    %c0_9 = arith.constant 0 : index
    %c0_10 = arith.constant 0 : index
    %6 = vector.load %arg5[%c0_9, %c0_10] : memref<256x256xf32, #tpu.memory_space<vmem>>, vector<256x256xf32>
    %c0_11 = arith.constant 0 : index
    %c0_12 = arith.constant 0 : index
    %7 = vector.load %arg6[%c0_11, %c0_12] : memref<1x256xf32, #tpu.memory_space<vmem>>, vector<1x256xf32>
    %c0_13 = arith.constant 0 : index
    %c0_14 = arith.constant 0 : index
    %8 = vector.load %arg7[%c0_13, %c0_14] : memref<256x256xf32, #tpu.memory_space<vmem>>, vector<256x256xf32>
    %c0_15 = arith.constant 0 : index
    %c0_16 = arith.constant 0 : index
    %9 = vector.load %arg8[%c0_15, %c0_16] : memref<1x256xf32, #tpu.memory_space<vmem>>, vector<1x256xf32>
    %c0_17 = arith.constant 0 : index
    %c0_18 = arith.constant 0 : index
    %10 = vector.load %arg9[%c0_17, %c0_18] : memref<256x512xf32, #tpu.memory_space<vmem>>, vector<256x512xf32>
    %c0_19 = arith.constant 0 : index
    %c0_20 = arith.constant 0 : index
    %11 = vector.load %arg10[%c0_19, %c0_20] : memref<1x512xf32, #tpu.memory_space<vmem>>, vector<1x512xf32>
    %c0_21 = arith.constant 0 : index
    %c0_22 = arith.constant 0 : index
    %12 = vector.load %arg11[%c0_21, %c0_22] : memref<256x256xf32, #tpu.memory_space<vmem>>, vector<256x256xf32>
    %c0_23 = arith.constant 0 : index
    %c0_24 = arith.constant 0 : index
    %13 = vector.load %arg12[%c0_23, %c0_24] : memref<1x256xf32, #tpu.memory_space<vmem>>, vector<1x256xf32>
    %c0_25 = arith.constant 0 : index
    %c0_26 = arith.constant 0 : index
    %14 = vector.load %arg13[%c0_25, %c0_26] : memref<1x256xf32, #tpu.memory_space<vmem>>, vector<1x256xf32>
    %c0_27 = arith.constant 0 : index
    %c0_28 = arith.constant 0 : index
    %15 = vector.load %arg14[%c0_27, %c0_28] : memref<1x256xf32, #tpu.memory_space<vmem>>, vector<1x256xf32>
    %c0_29 = arith.constant 0 : index
    %c0_30 = arith.constant 0 : index
    %16 = vector.load %arg15[%c0_29, %c0_30] : memref<1x256xf32, #tpu.memory_space<vmem>>, vector<1x256xf32>
    %c0_31 = arith.constant 0 : index
    %c0_32 = arith.constant 0 : index
    %17 = vector.load %arg16[%c0_31, %c0_32] : memref<1x256xf32, #tpu.memory_space<vmem>>, vector<1x256xf32>
    %c0_33 = arith.constant 0 : index
    %c0_34 = arith.constant 0 : index
    %18 = vector.load %arg17[%c0_33, %c0_34] : memref<1x256xf32, #tpu.memory_space<vmem>>, vector<1x256xf32>
    %c0_35 = arith.constant 0 : index
    %c0_36 = arith.constant 0 : index
    %19 = vector.load %arg18[%c0_35, %c0_36] : memref<1x256xf32, #tpu.memory_space<vmem>>, vector<1x256xf32>
    %c0_37 = arith.constant 0 : index
    %c0_38 = arith.constant 0 : index
    %20 = vector.load %arg19[%c0_37, %c0_38] : memref<256x512xf32, #tpu.memory_space<vmem>>, vector<256x512xf32>
    %c0_39 = arith.constant 0 : index
    %c0_40 = arith.constant 0 : index
    %21 = vector.load %arg20[%c0_39, %c0_40] : memref<1x512xf32, #tpu.memory_space<vmem>>, vector<1x512xf32>
    %c0_41 = arith.constant 0 : index
    %c0_42 = arith.constant 0 : index
    %22 = vector.load %arg21[%c0_41, %c0_42] : memref<512x256xf32, #tpu.memory_space<vmem>>, vector<512x256xf32>
    %c0_43 = arith.constant 0 : index
    %c0_44 = arith.constant 0 : index
    %23 = vector.load %arg22[%c0_43, %c0_44] : memref<1x256xf32, #tpu.memory_space<vmem>>, vector<1x256xf32>
    %cst = arith.constant dense<0.000000e+00> : vector<32x768xf32>
    %24 = tpu.matmul %1, %4, %cst {dimension_numbers = #tpu.dot_dimension_numbers<[1], [0], [0], [1], [0, 0, 1, 1], [], []>} : vector<32x256xf32>, vector<256x768xf32>, vector<32x768xf32> -> vector<32x768xf32>
    %25 = vector.broadcast %5 : vector<1x768xf32> to vector<32x768xf32>
    %26 = arith.addf %24, %25 : vector<32x768xf32>
    %27 = vector.extract_strided_slice %26 {offsets = [0, 0], sizes = [32, 256], strides = [1, 1]} : vector<32x768xf32> to vector<32x256xf32>
    %28 = vector.extract_strided_slice %26 {offsets = [0, 256], sizes = [32, 256], strides = [1, 1]} : vector<32x768xf32> to vector<32x256xf32>
    %29 = vector.extract_strided_slice %26 {offsets = [0, 512], sizes = [32, 256], strides = [1, 1]} : vector<32x768xf32> to vector<32x256xf32>
    %30 = vector.extract_strided_slice %27 {offsets = [0, 0], sizes = [16, 256], strides = [1, 1]} : vector<32x256xf32> to vector<16x256xf32>
    %31 = vector.extract_strided_slice %28 {offsets = [0, 0], sizes = [16, 256], strides = [1, 1]} : vector<32x256xf32> to vector<16x256xf32>
    %32 = vector.extract_strided_slice %29 {offsets = [0, 0], sizes = [16, 256], strides = [1, 1]} : vector<32x256xf32> to vector<16x256xf32>
    %33 = vector.extract_strided_slice %30 {offsets = [0, 0], sizes = [16, 128], strides = [1, 1]} : vector<16x256xf32> to vector<16x128xf32>
    %34 = vector.extract_strided_slice %31 {offsets = [0, 0], sizes = [16, 128], strides = [1, 1]} : vector<16x256xf32> to vector<16x128xf32>
    "tpu.trace_start"() <{level = 10 : i32, message = "qe,ke->qk"}> : () -> ()
    %cst_45 = arith.constant dense<0.000000e+00> : vector<16x16xf32>
    %35 = tpu.matmul %33, %34, %cst_45 {dimension_numbers = #tpu.dot_dimension_numbers<[1], [1], [0], [0], [0, 0, 1, 0], [], []>} : vector<16x128xf32>, vector<16x128xf32>, vector<16x16xf32> -> vector<16x16xf32>
    "tpu.trace_stop"() : () -> ()
    %cst_46 = arith.constant dense<0xFF800000> : vector<16xf32>
    %36 = vector.multi_reduction <maximumf>, %35, %cst_46 [1] : vector<16x16xf32> to vector<16xf32>
    %37 = vector.shape_cast %36 : vector<16xf32> to vector<16x1xf32>
    %38 = vector.broadcast %37 : vector<16x1xf32> to vector<16x16xf32>
    %39 = arith.subf %35, %38 : vector<16x16xf32>
    %40 = math.exp %39 : vector<16x16xf32>
    %cst_47 = arith.constant dense<0.000000e+00> : vector<16xf32>
    %41 = vector.multi_reduction <add>, %40, %cst_47 [1] : vector<16x16xf32> to vector<16xf32>
    %42 = vector.shape_cast %41 : vector<16xf32> to vector<16x1xf32>
    %43 = tpu.reciprocal %42 {approx = true} : vector<16x1xf32> -> vector<16x1xf32>
    %44 = vector.broadcast %43 : vector<16x1xf32> to vector<16x16xf32>
    %45 = arith.mulf %40, %44 : vector<16x16xf32>
    %46 = vector.extract_strided_slice %32 {offsets = [0, 0], sizes = [16, 128], strides = [1, 1]} : vector<16x256xf32> to vector<16x128xf32>
    %cst_48 = arith.constant dense<0.000000e+00> : vector<16x128xf32>
    %47 = tpu.matmul %45, %46, %cst_48 {dimension_numbers = #tpu.dot_dimension_numbers<[1], [0], [0], [1], [0, 0, 1, 1], [], []>} : vector<16x16xf32>, vector<16x128xf32>, vector<16x128xf32> -> vector<16x128xf32>
    %48 = vector.extract_strided_slice %30 {offsets = [0, 128], sizes = [16, 128], strides = [1, 1]} : vector<16x256xf32> to vector<16x128xf32>
    %49 = vector.extract_strided_slice %31 {offsets = [0, 128], sizes = [16, 128], strides = [1, 1]} : vector<16x256xf32> to vector<16x128xf32>
    "tpu.trace_start"() <{level = 10 : i32, message = "qe,ke->qk"}> : () -> ()
    %cst_49 = arith.constant dense<0.000000e+00> : vector<16x16xf32>
    %50 = tpu.matmul %48, %49, %cst_49 {dimension_numbers = #tpu.dot_dimension_numbers<[1], [1], [0], [0], [0, 0, 1, 0], [], []>} : vector<16x128xf32>, vector<16x128xf32>, vector<16x16xf32> -> vector<16x16xf32>
    "tpu.trace_stop"() : () -> ()
    %cst_50 = arith.constant dense<0xFF800000> : vector<16xf32>
    %51 = vector.multi_reduction <maximumf>, %50, %cst_50 [1] : vector<16x16xf32> to vector<16xf32>
    %52 = vector.shape_cast %51 : vector<16xf32> to vector<16x1xf32>
    %53 = vector.broadcast %52 : vector<16x1xf32> to vector<16x16xf32>
    %54 = arith.subf %50, %53 : vector<16x16xf32>
    %55 = math.exp %54 : vector<16x16xf32>
    %cst_51 = arith.constant dense<0.000000e+00> : vector<16xf32>
    %56 = vector.multi_reduction <add>, %55, %cst_51 [1] : vector<16x16xf32> to vector<16xf32>
    %57 = vector.shape_cast %56 : vector<16xf32> to vector<16x1xf32>
    %58 = tpu.reciprocal %57 {approx = true} : vector<16x1xf32> -> vector<16x1xf32>
    %59 = vector.broadcast %58 : vector<16x1xf32> to vector<16x16xf32>
    %60 = arith.mulf %55, %59 : vector<16x16xf32>
    %61 = vector.extract_strided_slice %32 {offsets = [0, 128], sizes = [16, 128], strides = [1, 1]} : vector<16x256xf32> to vector<16x128xf32>
    %cst_52 = arith.constant dense<0.000000e+00> : vector<16x128xf32>
    %62 = tpu.matmul %60, %61, %cst_52 {dimension_numbers = #tpu.dot_dimension_numbers<[1], [0], [0], [1], [0, 0, 1, 1], [], []>} : vector<16x16xf32>, vector<16x128xf32>, vector<16x128xf32> -> vector<16x128xf32>
    %63 = tpu.concatenate %47, %62 in 1 : vector<16x128xf32>, vector<16x128xf32> -> vector<16x256xf32>
    %64 = vector.extract_strided_slice %27 {offsets = [16, 0], sizes = [16, 256], strides = [1, 1]} : vector<32x256xf32> to vector<16x256xf32>
    %65 = vector.extract_strided_slice %28 {offsets = [16, 0], sizes = [16, 256], strides = [1, 1]} : vector<32x256xf32> to vector<16x256xf32>
    %66 = vector.extract_strided_slice %29 {offsets = [16, 0], sizes = [16, 256], strides = [1, 1]} : vector<32x256xf32> to vector<16x256xf32>
    %67 = vector.extract_strided_slice %64 {offsets = [0, 0], sizes = [16, 128], strides = [1, 1]} : vector<16x256xf32> to vector<16x128xf32>
    %68 = vector.extract_strided_slice %65 {offsets = [0, 0], sizes = [16, 128], strides = [1, 1]} : vector<16x256xf32> to vector<16x128xf32>
    "tpu.trace_start"() <{level = 10 : i32, message = "qe,ke->qk"}> : () -> ()
    %cst_53 = arith.constant dense<0.000000e+00> : vector<16x16xf32>
    %69 = tpu.matmul %67, %68, %cst_53 {dimension_numbers = #tpu.dot_dimension_numbers<[1], [1], [0], [0], [0, 0, 1, 0], [], []>} : vector<16x128xf32>, vector<16x128xf32>, vector<16x16xf32> -> vector<16x16xf32>
    "tpu.trace_stop"() : () -> ()
    %cst_54 = arith.constant dense<0xFF800000> : vector<16xf32>
    %70 = vector.multi_reduction <maximumf>, %69, %cst_54 [1] : vector<16x16xf32> to vector<16xf32>
    %71 = vector.shape_cast %70 : vector<16xf32> to vector<16x1xf32>
    %72 = vector.broadcast %71 : vector<16x1xf32> to vector<16x16xf32>
    %73 = arith.subf %69, %72 : vector<16x16xf32>
    %74 = math.exp %73 : vector<16x16xf32>
    %cst_55 = arith.constant dense<0.000000e+00> : vector<16xf32>
    %75 = vector.multi_reduction <add>, %74, %cst_55 [1] : vector<16x16xf32> to vector<16xf32>
    %76 = vector.shape_cast %75 : vector<16xf32> to vector<16x1xf32>
    %77 = tpu.reciprocal %76 {approx = true} : vector<16x1xf32> -> vector<16x1xf32>
    %78 = vector.broadcast %77 : vector<16x1xf32> to vector<16x16xf32>
    %79 = arith.mulf %74, %78 : vector<16x16xf32>
    %80 = vector.extract_strided_slice %66 {offsets = [0, 0], sizes = [16, 128], strides = [1, 1]} : vector<16x256xf32> to vector<16x128xf32>
    %cst_56 = arith.constant dense<0.000000e+00> : vector<16x128xf32>
    %81 = tpu.matmul %79, %80, %cst_56 {dimension_numbers = #tpu.dot_dimension_numbers<[1], [0], [0], [1], [0, 0, 1, 1], [], []>} : vector<16x16xf32>, vector<16x128xf32>, vector<16x128xf32> -> vector<16x128xf32>
    %82 = vector.extract_strided_slice %64 {offsets = [0, 128], sizes = [16, 128], strides = [1, 1]} : vector<16x256xf32> to vector<16x128xf32>
    %83 = vector.extract_strided_slice %65 {offsets = [0, 128], sizes = [16, 128], strides = [1, 1]} : vector<16x256xf32> to vector<16x128xf32>
    "tpu.trace_start"() <{level = 10 : i32, message = "qe,ke->qk"}> : () -> ()
    %cst_57 = arith.constant dense<0.000000e+00> : vector<16x16xf32>
    %84 = tpu.matmul %82, %83, %cst_57 {dimension_numbers = #tpu.dot_dimension_numbers<[1], [1], [0], [0], [0, 0, 1, 0], [], []>} : vector<16x128xf32>, vector<16x128xf32>, vector<16x16xf32> -> vector<16x16xf32>
    "tpu.trace_stop"() : () -> ()
    %cst_58 = arith.constant dense<0xFF800000> : vector<16xf32>
    %85 = vector.multi_reduction <maximumf>, %84, %cst_58 [1] : vector<16x16xf32> to vector<16xf32>
    %86 = vector.shape_cast %85 : vector<16xf32> to vector<16x1xf32>
    %87 = vector.broadcast %86 : vector<16x1xf32> to vector<16x16xf32>
    %88 = arith.subf %84, %87 : vector<16x16xf32>
    %89 = math.exp %88 : vector<16x16xf32>
    %cst_59 = arith.constant dense<0.000000e+00> : vector<16xf32>
    %90 = vector.multi_reduction <add>, %89, %cst_59 [1] : vector<16x16xf32> to vector<16xf32>
    %91 = vector.shape_cast %90 : vector<16xf32> to vector<16x1xf32>
    %92 = tpu.reciprocal %91 {approx = true} : vector<16x1xf32> -> vector<16x1xf32>
    %93 = vector.broadcast %92 : vector<16x1xf32> to vector<16x16xf32>
    %94 = arith.mulf %89, %93 : vector<16x16xf32>
    %95 = vector.extract_strided_slice %66 {offsets = [0, 128], sizes = [16, 128], strides = [1, 1]} : vector<16x256xf32> to vector<16x128xf32>
    %cst_60 = arith.constant dense<0.000000e+00> : vector<16x128xf32>
    %96 = tpu.matmul %94, %95, %cst_60 {dimension_numbers = #tpu.dot_dimension_numbers<[1], [0], [0], [1], [0, 0, 1, 1], [], []>} : vector<16x16xf32>, vector<16x128xf32>, vector<16x128xf32> -> vector<16x128xf32>
    %97 = tpu.concatenate %81, %96 in 1 : vector<16x128xf32>, vector<16x128xf32> -> vector<16x256xf32>
    %98 = tpu.concatenate %63, %97 in 0 : vector<16x256xf32>, vector<16x256xf32> -> vector<32x256xf32>
    %cst_61 = arith.constant dense<0.000000e+00> : vector<32x256xf32>
    %99 = tpu.matmul %98, %6, %cst_61 {dimension_numbers = #tpu.dot_dimension_numbers<[1], [0], [0], [1], [0, 0, 1, 1], [], []>} : vector<32x256xf32>, vector<256x256xf32>, vector<32x256xf32> -> vector<32x256xf32>
    %100 = vector.broadcast %7 : vector<1x256xf32> to vector<32x256xf32>
    %101 = arith.addf %99, %100 : vector<32x256xf32>
    %102 = arith.addf %1, %101 : vector<32x256xf32>
    %cst_62 = arith.constant dense<0.000000e+00> : vector<32xf32>
    %103 = vector.multi_reduction <add>, %102, %cst_62 [1] : vector<32x256xf32> to vector<32xf32>
    %104 = vector.shape_cast %103 : vector<32xf32> to vector<32x1xf32>
    %cst_63 = arith.constant 3.906250e-03 : f32
    %105 = vector.broadcast %cst_63 : f32 to vector<32x1xf32>
    %106 = arith.mulf %104, %105 : vector<32x1xf32>
    %107 = arith.mulf %102, %102 : vector<32x256xf32>
    %cst_64 = arith.constant dense<0.000000e+00> : vector<32xf32>
    %108 = vector.multi_reduction <add>, %107, %cst_64 [1] : vector<32x256xf32> to vector<32xf32>
    %109 = vector.shape_cast %108 : vector<32xf32> to vector<32x1xf32>
    %cst_65 = arith.constant 3.906250e-03 : f32
    %110 = vector.broadcast %cst_65 : f32 to vector<32x1xf32>
    %111 = arith.mulf %109, %110 : vector<32x1xf32>
    %112 = arith.mulf %106, %106 : vector<32x1xf32>
    %113 = arith.subf %111, %112 : vector<32x1xf32>
    %114 = vector.broadcast %106 : vector<32x1xf32> to vector<32x256xf32>
    %115 = arith.subf %102, %114 : vector<32x256xf32>
    %cst_66 = arith.constant 9.99999974E-6 : f32
    %116 = vector.broadcast %cst_66 : f32 to vector<32x1xf32>
    %117 = arith.addf %113, %116 : vector<32x1xf32>
    %118 = math.rsqrt %117 : vector<32x1xf32>
    %119 = vector.broadcast %118 : vector<32x1xf32> to vector<32x256xf32>
    %120 = arith.mulf %115, %119 : vector<32x256xf32>
    %121 = vector.broadcast %14 : vector<1x256xf32> to vector<32x256xf32>
    %122 = arith.mulf %120, %121 : vector<32x256xf32>
    %123 = vector.broadcast %15 : vector<1x256xf32> to vector<32x256xf32>
    %124 = arith.addf %122, %123 : vector<32x256xf32>
    %cst_67 = arith.constant dense<0.000000e+00> : vector<32x256xf32>
    %125 = tpu.matmul %124, %8, %cst_67 {dimension_numbers = #tpu.dot_dimension_numbers<[1], [0], [0], [1], [0, 0, 1, 1], [], []>} : vector<32x256xf32>, vector<256x256xf32>, vector<32x256xf32> -> vector<32x256xf32>
    %126 = vector.broadcast %9 : vector<1x256xf32> to vector<32x256xf32>
    %127 = arith.addf %125, %126 : vector<32x256xf32>
    %cst_68 = arith.constant dense<0.000000e+00> : vector<16x512xf32>
    %128 = tpu.matmul %3, %10, %cst_68 {dimension_numbers = #tpu.dot_dimension_numbers<[1], [0], [0], [1], [0, 0, 1, 1], [], []>} : vector<16x256xf32>, vector<256x512xf32>, vector<16x512xf32> -> vector<16x512xf32>
    %129 = vector.broadcast %11 : vector<1x512xf32> to vector<16x512xf32>
    %130 = arith.addf %128, %129 : vector<16x512xf32>
    %131 = vector.extract_strided_slice %130 {offsets = [0, 0], sizes = [16, 256], strides = [1, 1]} : vector<16x512xf32> to vector<16x256xf32>
    %132 = vector.extract_strided_slice %130 {offsets = [0, 256], sizes = [16, 256], strides = [1, 1]} : vector<16x512xf32> to vector<16x256xf32>
    %133 = vector.extract_strided_slice %127 {offsets = [0, 0], sizes = [16, 256], strides = [1, 1]} : vector<32x256xf32> to vector<16x256xf32>
    %134 = vector.extract_strided_slice %131 {offsets = [0, 0], sizes = [8, 256], strides = [1, 1]} : vector<16x256xf32> to vector<8x256xf32>
    %135 = vector.extract_strided_slice %132 {offsets = [0, 0], sizes = [8, 256], strides = [1, 1]} : vector<16x256xf32> to vector<8x256xf32>
    %136 = vector.extract_strided_slice %133 {offsets = [0, 0], sizes = [16, 128], strides = [1, 1]} : vector<16x256xf32> to vector<16x128xf32>
    %137 = vector.extract_strided_slice %134 {offsets = [0, 0], sizes = [8, 128], strides = [1, 1]} : vector<8x256xf32> to vector<8x128xf32>
    "tpu.trace_start"() <{level = 10 : i32, message = "qe,ke->qk"}> : () -> ()
    %cst_69 = arith.constant dense<0.000000e+00> : vector<16x8xf32>
    %138 = tpu.matmul %136, %137, %cst_69 {dimension_numbers = #tpu.dot_dimension_numbers<[1], [1], [0], [0], [0, 0, 1, 0], [], []>} : vector<16x128xf32>, vector<8x128xf32>, vector<16x8xf32> -> vector<16x8xf32>
    "tpu.trace_stop"() : () -> ()
    %cst_70 = arith.constant dense<0xFF800000> : vector<16xf32>
    %139 = vector.multi_reduction <maximumf>, %138, %cst_70 [1] : vector<16x8xf32> to vector<16xf32>
    %140 = vector.shape_cast %139 : vector<16xf32> to vector<16x1xf32>
    %141 = vector.broadcast %140 : vector<16x1xf32> to vector<16x8xf32>
    %142 = arith.subf %138, %141 : vector<16x8xf32>
    %143 = math.exp %142 : vector<16x8xf32>
    %cst_71 = arith.constant dense<0.000000e+00> : vector<16xf32>
    %144 = vector.multi_reduction <add>, %143, %cst_71 [1] : vector<16x8xf32> to vector<16xf32>
    %145 = vector.shape_cast %144 : vector<16xf32> to vector<16x1xf32>
    %146 = tpu.reciprocal %145 {approx = true} : vector<16x1xf32> -> vector<16x1xf32>
    %147 = vector.broadcast %146 : vector<16x1xf32> to vector<16x8xf32>
    %148 = arith.mulf %143, %147 : vector<16x8xf32>
    %149 = vector.extract_strided_slice %135 {offsets = [0, 0], sizes = [8, 128], strides = [1, 1]} : vector<8x256xf32> to vector<8x128xf32>
    %cst_72 = arith.constant dense<0.000000e+00> : vector<16x128xf32>
    %150 = tpu.matmul %148, %149, %cst_72 {dimension_numbers = #tpu.dot_dimension_numbers<[1], [0], [0], [1], [0, 0, 1, 1], [], []>} : vector<16x8xf32>, vector<8x128xf32>, vector<16x128xf32> -> vector<16x128xf32>
    %151 = vector.extract_strided_slice %133 {offsets = [0, 128], sizes = [16, 128], strides = [1, 1]} : vector<16x256xf32> to vector<16x128xf32>
    %152 = vector.extract_strided_slice %134 {offsets = [0, 128], sizes = [8, 128], strides = [1, 1]} : vector<8x256xf32> to vector<8x128xf32>
    "tpu.trace_start"() <{level = 10 : i32, message = "qe,ke->qk"}> : () -> ()
    %cst_73 = arith.constant dense<0.000000e+00> : vector<16x8xf32>
    %153 = tpu.matmul %151, %152, %cst_73 {dimension_numbers = #tpu.dot_dimension_numbers<[1], [1], [0], [0], [0, 0, 1, 0], [], []>} : vector<16x128xf32>, vector<8x128xf32>, vector<16x8xf32> -> vector<16x8xf32>
    "tpu.trace_stop"() : () -> ()
    %cst_74 = arith.constant dense<0xFF800000> : vector<16xf32>
    %154 = vector.multi_reduction <maximumf>, %153, %cst_74 [1] : vector<16x8xf32> to vector<16xf32>
    %155 = vector.shape_cast %154 : vector<16xf32> to vector<16x1xf32>
    %156 = vector.broadcast %155 : vector<16x1xf32> to vector<16x8xf32>
    %157 = arith.subf %153, %156 : vector<16x8xf32>
    %158 = math.exp %157 : vector<16x8xf32>
    %cst_75 = arith.constant dense<0.000000e+00> : vector<16xf32>
    %159 = vector.multi_reduction <add>, %158, %cst_75 [1] : vector<16x8xf32> to vector<16xf32>
    %160 = vector.shape_cast %159 : vector<16xf32> to vector<16x1xf32>
    %161 = tpu.reciprocal %160 {approx = true} : vector<16x1xf32> -> vector<16x1xf32>
    %162 = vector.broadcast %161 : vector<16x1xf32> to vector<16x8xf32>
    %163 = arith.mulf %158, %162 : vector<16x8xf32>
    %164 = vector.extract_strided_slice %135 {offsets = [0, 128], sizes = [8, 128], strides = [1, 1]} : vector<8x256xf32> to vector<8x128xf32>
    %cst_76 = arith.constant dense<0.000000e+00> : vector<16x128xf32>
    %165 = tpu.matmul %163, %164, %cst_76 {dimension_numbers = #tpu.dot_dimension_numbers<[1], [0], [0], [1], [0, 0, 1, 1], [], []>} : vector<16x8xf32>, vector<8x128xf32>, vector<16x128xf32> -> vector<16x128xf32>
    %166 = tpu.concatenate %150, %165 in 1 : vector<16x128xf32>, vector<16x128xf32> -> vector<16x256xf32>
    %167 = vector.extract_strided_slice %127 {offsets = [16, 0], sizes = [16, 256], strides = [1, 1]} : vector<32x256xf32> to vector<16x256xf32>
    %168 = vector.extract_strided_slice %131 {offsets = [8, 0], sizes = [8, 256], strides = [1, 1]} : vector<16x256xf32> to vector<8x256xf32>
    %169 = vector.extract_strided_slice %132 {offsets = [8, 0], sizes = [8, 256], strides = [1, 1]} : vector<16x256xf32> to vector<8x256xf32>
    %170 = vector.extract_strided_slice %167 {offsets = [0, 0], sizes = [16, 128], strides = [1, 1]} : vector<16x256xf32> to vector<16x128xf32>
    %171 = vector.extract_strided_slice %168 {offsets = [0, 0], sizes = [8, 128], strides = [1, 1]} : vector<8x256xf32> to vector<8x128xf32>
    "tpu.trace_start"() <{level = 10 : i32, message = "qe,ke->qk"}> : () -> ()
    %cst_77 = arith.constant dense<0.000000e+00> : vector<16x8xf32>
    %172 = tpu.matmul %170, %171, %cst_77 {dimension_numbers = #tpu.dot_dimension_numbers<[1], [1], [0], [0], [0, 0, 1, 0], [], []>} : vector<16x128xf32>, vector<8x128xf32>, vector<16x8xf32> -> vector<16x8xf32>
    "tpu.trace_stop"() : () -> ()
    %cst_78 = arith.constant dense<0xFF800000> : vector<16xf32>
    %173 = vector.multi_reduction <maximumf>, %172, %cst_78 [1] : vector<16x8xf32> to vector<16xf32>
    %174 = vector.shape_cast %173 : vector<16xf32> to vector<16x1xf32>
    %175 = vector.broadcast %174 : vector<16x1xf32> to vector<16x8xf32>
    %176 = arith.subf %172, %175 : vector<16x8xf32>
    %177 = math.exp %176 : vector<16x8xf32>
    %cst_79 = arith.constant dense<0.000000e+00> : vector<16xf32>
    %178 = vector.multi_reduction <add>, %177, %cst_79 [1] : vector<16x8xf32> to vector<16xf32>
    %179 = vector.shape_cast %178 : vector<16xf32> to vector<16x1xf32>
    %180 = tpu.reciprocal %179 {approx = true} : vector<16x1xf32> -> vector<16x1xf32>
    %181 = vector.broadcast %180 : vector<16x1xf32> to vector<16x8xf32>
    %182 = arith.mulf %177, %181 : vector<16x8xf32>
    %183 = vector.extract_strided_slice %169 {offsets = [0, 0], sizes = [8, 128], strides = [1, 1]} : vector<8x256xf32> to vector<8x128xf32>
    %cst_80 = arith.constant dense<0.000000e+00> : vector<16x128xf32>
    %184 = tpu.matmul %182, %183, %cst_80 {dimension_numbers = #tpu.dot_dimension_numbers<[1], [0], [0], [1], [0, 0, 1, 1], [], []>} : vector<16x8xf32>, vector<8x128xf32>, vector<16x128xf32> -> vector<16x128xf32>
    %185 = vector.extract_strided_slice %167 {offsets = [0, 128], sizes = [16, 128], strides = [1, 1]} : vector<16x256xf32> to vector<16x128xf32>
    %186 = vector.extract_strided_slice %168 {offsets = [0, 128], sizes = [8, 128], strides = [1, 1]} : vector<8x256xf32> to vector<8x128xf32>
    "tpu.trace_start"() <{level = 10 : i32, message = "qe,ke->qk"}> : () -> ()
    %cst_81 = arith.constant dense<0.000000e+00> : vector<16x8xf32>
    %187 = tpu.matmul %185, %186, %cst_81 {dimension_numbers = #tpu.dot_dimension_numbers<[1], [1], [0], [0], [0, 0, 1, 0], [], []>} : vector<16x128xf32>, vector<8x128xf32>, vector<16x8xf32> -> vector<16x8xf32>
    "tpu.trace_stop"() : () -> ()
    %cst_82 = arith.constant dense<0xFF800000> : vector<16xf32>
    %188 = vector.multi_reduction <maximumf>, %187, %cst_82 [1] : vector<16x8xf32> to vector<16xf32>
    %189 = vector.shape_cast %188 : vector<16xf32> to vector<16x1xf32>
    %190 = vector.broadcast %189 : vector<16x1xf32> to vector<16x8xf32>
    %191 = arith.subf %187, %190 : vector<16x8xf32>
    %192 = math.exp %191 : vector<16x8xf32>
    %cst_83 = arith.constant dense<0.000000e+00> : vector<16xf32>
    %193 = vector.multi_reduction <add>, %192, %cst_83 [1] : vector<16x8xf32> to vector<16xf32>
    %194 = vector.shape_cast %193 : vector<16xf32> to vector<16x1xf32>
    %195 = tpu.reciprocal %194 {approx = true} : vector<16x1xf32> -> vector<16x1xf32>
    %196 = vector.broadcast %195 : vector<16x1xf32> to vector<16x8xf32>
    %197 = arith.mulf %192, %196 : vector<16x8xf32>
    %198 = vector.extract_strided_slice %169 {offsets = [0, 128], sizes = [8, 128], strides = [1, 1]} : vector<8x256xf32> to vector<8x128xf32>
    %cst_84 = arith.constant dense<0.000000e+00> : vector<16x128xf32>
    %199 = tpu.matmul %197, %198, %cst_84 {dimension_numbers = #tpu.dot_dimension_numbers<[1], [0], [0], [1], [0, 0, 1, 1], [], []>} : vector<16x8xf32>, vector<8x128xf32>, vector<16x128xf32> -> vector<16x128xf32>
    %200 = tpu.concatenate %184, %199 in 1 : vector<16x128xf32>, vector<16x128xf32> -> vector<16x256xf32>
    %201 = tpu.concatenate %166, %200 in 0 : vector<16x256xf32>, vector<16x256xf32> -> vector<32x256xf32>
    %cst_85 = arith.constant dense<0.000000e+00> : vector<32x256xf32>
    %202 = tpu.matmul %201, %12, %cst_85 {dimension_numbers = #tpu.dot_dimension_numbers<[1], [0], [0], [1], [0, 0, 1, 1], [], []>} : vector<32x256xf32>, vector<256x256xf32>, vector<32x256xf32> -> vector<32x256xf32>
    %203 = vector.broadcast %13 : vector<1x256xf32> to vector<32x256xf32>
    %204 = arith.addf %202, %203 : vector<32x256xf32>
    %205 = arith.addf %124, %204 : vector<32x256xf32>
    %cst_86 = arith.constant dense<0.000000e+00> : vector<32xf32>
    %206 = vector.multi_reduction <add>, %205, %cst_86 [1] : vector<32x256xf32> to vector<32xf32>
    %207 = vector.shape_cast %206 : vector<32xf32> to vector<32x1xf32>
    %cst_87 = arith.constant 3.906250e-03 : f32
    %208 = vector.broadcast %cst_87 : f32 to vector<32x1xf32>
    %209 = arith.mulf %207, %208 : vector<32x1xf32>
    %210 = arith.mulf %205, %205 : vector<32x256xf32>
    %cst_88 = arith.constant dense<0.000000e+00> : vector<32xf32>
    %211 = vector.multi_reduction <add>, %210, %cst_88 [1] : vector<32x256xf32> to vector<32xf32>
    %212 = vector.shape_cast %211 : vector<32xf32> to vector<32x1xf32>
    %cst_89 = arith.constant 3.906250e-03 : f32
    %213 = vector.broadcast %cst_89 : f32 to vector<32x1xf32>
    %214 = arith.mulf %212, %213 : vector<32x1xf32>
    %215 = arith.mulf %209, %209 : vector<32x1xf32>
    %216 = arith.subf %214, %215 : vector<32x1xf32>
    %217 = vector.broadcast %209 : vector<32x1xf32> to vector<32x256xf32>
    %218 = arith.subf %205, %217 : vector<32x256xf32>
    %cst_90 = arith.constant 9.99999974E-6 : f32
    %219 = vector.broadcast %cst_90 : f32 to vector<32x1xf32>
    %220 = arith.addf %216, %219 : vector<32x1xf32>
    %221 = math.rsqrt %220 : vector<32x1xf32>
    %222 = vector.broadcast %221 : vector<32x1xf32> to vector<32x256xf32>
    %223 = arith.mulf %218, %222 : vector<32x256xf32>
    %224 = vector.broadcast %16 : vector<1x256xf32> to vector<32x256xf32>
    %225 = arith.mulf %223, %224 : vector<32x256xf32>
    %226 = vector.broadcast %17 : vector<1x256xf32> to vector<32x256xf32>
    %227 = arith.addf %225, %226 : vector<32x256xf32>
    %cst_91 = arith.constant dense<0.000000e+00> : vector<32x512xf32>
    %228 = tpu.matmul %227, %20, %cst_91 {dimension_numbers = #tpu.dot_dimension_numbers<[1], [0], [0], [1], [0, 0, 1, 1], [], []>} : vector<32x256xf32>, vector<256x512xf32>, vector<32x512xf32> -> vector<32x512xf32>
    %229 = vector.broadcast %21 : vector<1x512xf32> to vector<32x512xf32>
    %230 = arith.addf %228, %229 : vector<32x512xf32>
    %cst_92 = arith.constant 0.000000e+00 : f32
    %231 = vector.broadcast %cst_92 : f32 to vector<32x512xf32>
    %232 = arith.maximumf %230, %231 : vector<32x512xf32>
    %cst_93 = arith.constant dense<0.000000e+00> : vector<32x256xf32>
    %233 = tpu.matmul %232, %22, %cst_93 {dimension_numbers = #tpu.dot_dimension_numbers<[1], [0], [0], [1], [0, 0, 1, 1], [], []>} : vector<32x512xf32>, vector<512x256xf32>, vector<32x256xf32> -> vector<32x256xf32>
    %234 = vector.broadcast %23 : vector<1x256xf32> to vector<32x256xf32>
    %235 = arith.addf %233, %234 : vector<32x256xf32>
    %236 = arith.addf %227, %235 : vector<32x256xf32>
    %cst_94 = arith.constant dense<0.000000e+00> : vector<32xf32>
    %237 = vector.multi_reduction <add>, %236, %cst_94 [1] : vector<32x256xf32> to vector<32xf32>
    %238 = vector.shape_cast %237 : vector<32xf32> to vector<32x1xf32>
    %cst_95 = arith.constant 3.906250e-03 : f32
    %239 = vector.broadcast %cst_95 : f32 to vector<32x1xf32>
    %240 = arith.mulf %238, %239 : vector<32x1xf32>
    %241 = arith.mulf %236, %236 : vector<32x256xf32>
    %cst_96 = arith.constant dense<0.000000e+00> : vector<32xf32>
    %242 = vector.multi_reduction <add>, %241, %cst_96 [1] : vector<32x256xf32> to vector<32xf32>
    %243 = vector.shape_cast %242 : vector<32xf32> to vector<32x1xf32>
    %cst_97 = arith.constant 3.906250e-03 : f32
    %244 = vector.broadcast %cst_97 : f32 to vector<32x1xf32>
    %245 = arith.mulf %243, %244 : vector<32x1xf32>
    %246 = arith.mulf %240, %240 : vector<32x1xf32>
    %247 = arith.subf %245, %246 : vector<32x1xf32>
    %248 = vector.broadcast %240 : vector<32x1xf32> to vector<32x256xf32>
    %249 = arith.subf %236, %248 : vector<32x256xf32>
    %cst_98 = arith.constant 9.99999974E-6 : f32
    %250 = vector.broadcast %cst_98 : f32 to vector<32x1xf32>
    %251 = arith.addf %247, %250 : vector<32x1xf32>
    %252 = math.rsqrt %251 : vector<32x1xf32>
    %253 = vector.broadcast %252 : vector<32x1xf32> to vector<32x256xf32>
    %254 = arith.mulf %249, %253 : vector<32x256xf32>
    %255 = vector.broadcast %18 : vector<1x256xf32> to vector<32x256xf32>
    %256 = arith.mulf %254, %255 : vector<32x256xf32>
    %257 = vector.broadcast %19 : vector<1x256xf32> to vector<32x256xf32>
    %258 = arith.addf %256, %257 : vector<32x256xf32>
    %259 = vector.shape_cast %258 : vector<32x256xf32> to vector<2x16x256xf32>
    %c0_99 = arith.constant 0 : index
    %c0_100 = arith.constant 0 : index
    %c0_101 = arith.constant 0 : index
    %260 = vector.load %arg23[%c0_99, %c0_100, %c0_101] : memref<2x16x256xf32, #tpu.memory_space<vmem>>, vector<2x16x256xf32>
    tpu.vector_store %arg23[%c0_99, %c0_100, %c0_101], %259 {strides = array<i32>} : memref<2x16x256xf32, #tpu.memory_space<vmem>>, vector<2x16x256xf32>,
    return
  }
  func.func @transform_0(%arg0: i32) -> (i32, i32, i32) {
    %c0_i32 = arith.constant 0 : i32
    %c0_i32_0 = arith.constant 0 : i32
    %c0_i32_1 = arith.constant 0 : i32
    return %arg0, %c0_i32, %c0_i32_0 : i32, i32, i32
  }
  func.func @transform_1(%arg0: i32) -> (i32, i32, i32) {
    %c0_i32 = arith.constant 0 : i32
    %c0_i32_0 = arith.constant 0 : i32
    %c0_i32_1 = arith.constant 0 : i32
    return %arg0, %c0_i32, %c0_i32_0 : i32, i32, i32
  }
  func.func @transform_2(%arg0: i32) -> (i32, i32) {
    %c0_i32 = arith.constant 0 : i32
    %c0_i32_0 = arith.constant 0 : i32
    %c0_i32_1 = arith.constant 0 : i32
    return %c0_i32, %c0_i32_0 : i32, i32
  }
  func.func @transform_3(%arg0: i32) -> (i32, i32) {
    %c0_i32 = arith.constant 0 : i32
    %c0_i32_0 = arith.constant 0 : i32
    %c0_i32_1 = arith.constant 0 : i32
    return %c0_i32, %c0_i32_0 : i32, i32
  }
  func.func @transform_4(%arg0: i32) -> (i32, i32) {
    %c0_i32 = arith.constant 0 : i32
    %c0_i32_0 = arith.constant 0 : i32
    %c0_i32_1 = arith.constant 0 : i32
    return %c0_i32, %c0_i32_0 : i32, i32
  }
  func.func @transform_5(%arg0: i32) -> (i32, i32) {
    %c0_i32 = arith.constant 0 : i32
    %c0_i32_0 = arith.constant 0 : i32
    %c0_i32_1 = arith.constant 0 : i32
    return %c0_i32, %c0_i32_0 : i32, i32
  }
  func.func @transform_6(%arg0: i32) -> (i32, i32) {
    %c0_i32 = arith.constant 0 : i32
    %c0_i32_0 = arith.constant 0 : i32
    %c0_i32_1 = arith.constant 0 : i32
    return %c0_i32, %c0_i32_0 : i32, i32
  }
  func.func @transform_7(%arg0: i32) -> (i32, i32) {
    %c0_i32 = arith.constant 0 : i32
    %c0_i32_0 = arith.constant 0 : i32
    %c0_i32_1 = arith.constant 0 : i32
    return %c0_i32, %c0_i32_0 : i32, i32
  }
  func.func @transform_8(%arg0: i32) -> (i32, i32) {
    %c0_i32 = arith.constant 0 : i32
    %c0_i32_0 = arith.constant 0 : i32
    %c0_i32_1 = arith.constant 0 : i32
    return %c0_i32, %c0_i32_0 : i32, i32
  }
  func.func @transform_9(%arg0: i32) -> (i32, i32) {
    %c0_i32 = arith.constant 0 : i32
    %c0_i32_0 = arith.constant 0 : i32
    %c0_i32_1 = arith.constant 0 : i32
    return %c0_i32, %c0_i32_0 : i32, i32
  }
  func.func @transform_10(%arg0: i32) -> (i32, i32) {
    %c0_i32 = arith.constant 0 : i32
    %c0_i32_0 = arith.constant 0 : i32
    %c0_i32_1 = arith.constant 0 : i32
    return %c0_i32, %c0_i32_0 : i32, i32
  }
  func.func @transform_11(%arg0: i32) -> (i32, i32) {
    %c0_i32 = arith.constant 0 : i32
    %c0_i32_0 = arith.constant 0 : i32
    %c0_i32_1 = arith.constant 0 : i32
    return %c0_i32, %c0_i32_0 : i32, i32
  }
  func.func @transform_12(%arg0: i32) -> (i32, i32) {
    %c0_i32 = arith.constant 0 : i32
    %c0_i32_0 = arith.constant 0 : i32
    %c0_i32_1 = arith.constant 0 : i32
    return %c0_i32, %c0_i32_0 : i32, i32
  }
  func.func @transform_13(%arg0: i32) -> (i32, i32) {
    %c0_i32 = arith.constant 0 : i32
    %c0_i32_0 = arith.constant 0 : i32
    %c0_i32_1 = arith.constant 0 : i32
    return %c0_i32, %c0_i32_0 : i32, i32
  }
  func.func @transform_14(%arg0: i32) -> (i32, i32) {
    %c0_i32 = arith.constant 0 : i32
    %c0_i32_0 = arith.constant 0 : i32
    %c0_i32_1 = arith.constant 0 : i32
    return %c0_i32, %c0_i32_0 : i32, i32
  }
  func.func @transform_15(%arg0: i32) -> (i32, i32) {
    %c0_i32 = arith.constant 0 : i32
    %c0_i32_0 = arith.constant 0 : i32
    %c0_i32_1 = arith.constant 0 : i32
    return %c0_i32, %c0_i32_0 : i32, i32
  }
  func.func @transform_16(%arg0: i32) -> (i32, i32) {
    %c0_i32 = arith.constant 0 : i32
    %c0_i32_0 = arith.constant 0 : i32
    %c0_i32_1 = arith.constant 0 : i32
    return %c0_i32, %c0_i32_0 : i32, i32
  }
  func.func @transform_17(%arg0: i32) -> (i32, i32) {
    %c0_i32 = arith.constant 0 : i32
    %c0_i32_0 = arith.constant 0 : i32
    %c0_i32_1 = arith.constant 0 : i32
    return %c0_i32, %c0_i32_0 : i32, i32
  }
  func.func @transform_18(%arg0: i32) -> (i32, i32) {
    %c0_i32 = arith.constant 0 : i32
    %c0_i32_0 = arith.constant 0 : i32
    %c0_i32_1 = arith.constant 0 : i32
    return %c0_i32, %c0_i32_0 : i32, i32
  }
  func.func @transform_19(%arg0: i32) -> (i32, i32) {
    %c0_i32 = arith.constant 0 : i32
    %c0_i32_0 = arith.constant 0 : i32
    %c0_i32_1 = arith.constant 0 : i32
    return %c0_i32, %c0_i32_0 : i32, i32
  }
  func.func @transform_20(%arg0: i32) -> (i32, i32) {
    %c0_i32 = arith.constant 0 : i32
    %c0_i32_0 = arith.constant 0 : i32
    %c0_i32_1 = arith.constant 0 : i32
    return %c0_i32, %c0_i32_0 : i32, i32
  }
  func.func @transform_21(%arg0: i32) -> (i32, i32) {
    %c0_i32 = arith.constant 0 : i32
    %c0_i32_0 = arith.constant 0 : i32
    %c0_i32_1 = arith.constant 0 : i32
    return %c0_i32, %c0_i32_0 : i32, i32
  }
  func.func @transform_22(%arg0: i32) -> (i32, i32, i32) {
    %c0_i32 = arith.constant 0 : i32
    %c0_i32_0 = arith.constant 0 : i32
    %c0_i32_1 = arith.constant 0 : i32
    return %arg0, %c0_i32, %c0_i32_0 : i32, i32, i32
  }
}

</mosaic_0001>

<bundles_post_ra>
// kernel: tpu_custom_call.1
= control target key start
LH: loop header
LB: loop body
LE: loop exit
PB: predicated region body
PF: predicated region fallthrough
CT: control target
= control target key end

     0   :  { %s5664_s0 = inlined_call_operand.hbm [shape: f32[2,16,256], index: 0, kind: input, shape index: {}]   ;;  %s5665_s1 = inlined_call_operand.hbm [shape: f32[2,8,256], index: 1, kind: input, shape index: {}]   ;;  %s5666_s2 = inlined_call_operand.hbm [shape: f32[256,768], index: 2, kind: input, shape index: {}]   ;;  %s5667_s3 = inlined_call_operand.hbm [shape: f32[1,768], index: 3, kind: input, shape index: {}]   ;;  %s5668_s4 = inlined_call_operand.hbm [shape: f32[256,256], index: 4, kind: input, shape index: {}]   ;;  %s5669_s5 = inlined_call_operand.hbm [shape: f32[1,256], index: 5, kind: input, shape index: {}]   ;;  %s5670_s6 = inlined_call_operand.hbm [shape: f32[256,256], index: 6, kind: input, shape index: {}]   ;;  %s5671_s7 = inlined_call_operand.vmem [shape: f32[1,256], index: 7, kind: input, shape index: {}]   ;;  %s5672_s8 = inlined_call_operand.hbm [shape: f32[256,512], index: 8, kind: input, shape index: {}]   ;;  %s5673_s9 = inlined_call_operand.vmem [shape: f32[1,512], index: 9, kind: input, shape index: {}]   ;;  %s5674_s10 = inlined_call_operand.hbm [shape: f32[256,256], index: 10, kind: input, shape index: {}]   ;;  %s5675_s11 = inlined_call_operand.vmem [shape: f32[1,256], index: 11, kind: input, shape index: {}]   ;;  %s5676_s12 = inlined_call_operand.vmem [shape: f32[1,256], index: 12, kind: input, shape index: {}]   ;;  %s5677_s13 = inlined_call_operand.vmem [shape: f32[1,256], index: 13, kind: input, shape index: {}]   ;;  %s5678_s14 = inlined_call_operand.vmem [shape: f32[1,256], index: 14, kind: input, shape index: {}]   ;;  %s5679_s15 = inlined_call_operand.vmem [shape: f32[1,256], index: 15, kind: input, shape index: {}]   ;;  %s5680_s16 = inlined_call_operand.vmem [shape: f32[1,256], index: 16, kind: input, shape index: {}]   ;;  %s5681_s17 = inlined_call_operand.vmem [shape: f32[1,256], index: 17, kind: input, shape index: {}]   ;;  %s5682_s18 = inlined_call_operand.hbm [shape: f32[256,512], index: 18, kind: input, shape index: {}]   ;;  %s5683_s19 = inlined_call_operand.vmem [shape: f32[1,512], index: 19, kind: input, shape index: {}]   ;;  %s5684_s20 = inlined_call_operand.hbm [shape: f32[512,256], index: 20, kind: input, shape index: {}]   ;;  %s5685_s21 = inlined_call_operand.vmem [shape: f32[1,256], index: 21, kind: input, shape index: {}]   ;;  %s5686_s22 = inlined_call_operand.hbm [shape: f32[2,16,256], index: 22, kind: output, shape index: {}]  }
   0x1   :  { %5720 = sst [smem:[#allocation61_spill]] %s5664_s0 }
   0x2   :  { %5721 = sst [smem:[#allocation62_spill]] %s5665_s1 }
   0x3   :  { %5722 = sst [smem:[#allocation63_spill]] %s5666_s2 }
   0x4   :  { %5723 = sst [smem:[#allocation64_spill]] %s5667_s3 }
   0x5   :  { %5724 = sst [smem:[#allocation65_spill]] %s5668_s4 }
   0x6   :  { %5725 = sst [smem:[#allocation66_spill]] %s5669_s5 }
   0x7   :  { %5726 = sst [smem:[#allocation67_spill]] %s5670_s6 }
   0x8   :  { %5727 = sst [smem:[#allocation68_spill]] %s5686_s22 }
   0x9   :  { %27 = vsyncpa [#allocation3], 0 }
   0xa   :  { %28 = vsyncpa [#allocation6], 0 }
   0xb   :  { %29 = vsyncpa [#allocation9], 0 }
   0xc   :  { %30 = vsyncpa [#allocation12], 0 }
   0xd   :  { %31 = vsyncpa [#allocation15], 0 }
   0xe   :  { %32 = vsyncpa [#allocation18], 0 }
   0xf   :  { %33 = vsyncpa [#allocation4], 0  ;;  %s4597_s3 = smov [#allocation5]   ;;  %s4598_s29 = smov [#allocation8]  }
  0x10   :  { %s51_s28 = sshll.u32 %s4597_s3, 4  ;;  %s76_s30 = sshll.u32 %s4598_s29, 4  ;;  %s52_s28 = int_to_ptr.vmem [resolvable:$true] %s51_s28  ;;  %s77_s30 = int_to_ptr.vmem [resolvable:$true] %s76_s30 }
  0x11   :  { %s4351_s4 = scalar_lea.vmem %s52_s28, 512  ;;  %p4356_p1 = scmp.lt.s32.totalorder %s52_s28, %s52_s28 }
  0x12   :  { %p4352_p0 = scmp.ne.s32.totalorder %s52_s28, %s4351_s4  ;;  %p4357_p2 = scmp.lt.s32.totalorder %s4351_s4, %s4351_s4 }
  0x14   :  { %p4358_p3 = por %p4357_p2, %p4356_p1 }
  0x16   :  { %p4359_p4 = pnand %p4358_p3, %p4352_p0 }
  0x18   :  { %4362 = shalt.err (!%p4359_p4)
}
  0x19   :  { %s4599_s0 = smov 256   ;;  %s4600_s23 = smov 16  }
  0x1a   :  { %s5728_s24 = sld [smem:[#allocation62_spill]]  ;;  %s4371_s6 = scalar_lea.vmem %s77_s30, 96 }
  0x1b   :  { %p4372_p5 = scmp.ne.s32.totalorder %s77_s30, %s4371_s6  ;;  %p4376_p6 = scmp.lt.s32.totalorder %s77_s30, %s77_s30 }
  0x1c   :  { %p4377_p7 = scmp.lt.s32.totalorder %s4371_s6, %s4371_s6 }
  0x1e   :  { %p4378_p8 = por %p4377_p7, %p4376_p6 }
  0x20   :  { %57 = dma.hbm_to_vmem [thread:$0]  %s5728_s24, 512, %s52_s28, [#allocation6], %s4599_s0, %s4599_s0, %s4600_s23  }
  0x21   :  { %p4379_p9 = pnand %p4378_p8, %p4372_p5 }
  0x23   :  { %4382 = shalt.err (!%p4379_p9)
}
  0x24   :  { %s5729_s2 = sld [smem:[#allocation64_spill]]  ;;  %s4601_s27 = smov [#allocation11]  }
  0x25   :  { %s98_s3 = sshll.u32 %s4601_s27, 4  ;;  %s4602_s29 = smov [#allocation14]   ;;  %s99_s3 = int_to_ptr.vmem [resolvable:$true] %s98_s3 }
  0x26   :  { %s121_s4 = sshll.u32 %s4602_s29, 4  ;;  %s4391_s22 = scalar_lea.vmem %s99_s3, 32  ;;  %s122_s4 = int_to_ptr.vmem [resolvable:$true] %s121_s4 }
  0x27   :  { %p4392_p10 = scmp.ne.s32.totalorder %s99_s3, %s4391_s22  ;;  %p4396_p11 = scmp.lt.s32.totalorder %s99_s3, %s99_s3 }
  0x28   :  { %p4397_p12 = scmp.lt.s32.totalorder %s4391_s22, %s4391_s22 }
  0x2a   :  { %79 = dma.hbm_to_vmem [thread:$0]  %s5729_s2, 96, %s77_s30, [#allocation9]  }
  0x2b   :  { %p4398_p13 = por %p4397_p12, %p4396_p11 }
  0x2d   :  { %p4399_p0 = pnand %p4398_p13, %p4392_p10 }
  0x2f   :  { %4402 = shalt.err (!%p4399_p0)
}
  0x30   :  { %s5730_s5 = sld [smem:[#allocation66_spill]]  ;;  %s4411_s24 = scalar_lea.vmem %s122_s4, 16384 }
  0x31   :  { %p4412_p1 = scmp.ne.s32.totalorder %s122_s4, %s4411_s24  ;;  %p4416_p2 = scmp.lt.s32.totalorder %s122_s4, %s122_s4 }
  0x32   :  { %p4417_p3 = scmp.lt.s32.totalorder %s4411_s24, %s4411_s24 }
  0x34   :  { %p4418_p4 = por %p4417_p3, %p4416_p2 }
  0x36   :  { %101 = dma.hbm_to_vmem [thread:$0]  %s5730_s5, 32, %s99_s3, [#allocation12]  }
  0x37   :  { %p4419_p5 = pnand %p4418_p4, %p4412_p1 }
  0x39   :  { %4422 = shalt.err (!%p4419_p5)
}
  0x3a   :  { %s4603_s30 = smov 512   ;;  %s4604_s6 = smov 32  }
  0x3b   :  { %127 = dma.hbm_to_vmem [thread:$0]  %s5672_s8, 16384, %s122_s4, [#allocation15], %s4603_s30, %s4603_s30, %s4604_s6  }
  0x3c   :  { %s4605_s22 = smov [#allocation17]   ;;  %s4606_s27 = smov [#allocation2]  }
  0x3d   :  { %s161_s2 = sshll.u32 %s4605_s22, 4  ;;  %s39_s29 = sshll.u32 %s4606_s27, 4  ;;  %s162_s2 = int_to_ptr.vmem [resolvable:$true] %s161_s2  ;;  %s40_s29 = int_to_ptr.vmem [resolvable:$true] %s39_s29 }
  0x3e   :  { %s4431_s3 = scalar_lea.vmem %s162_s2, 16384  ;;  %p4436_p7 = scmp.lt.s32.totalorder %s162_s2, %s162_s2 }
  0x3f   :  { %p4432_p6 = scmp.ne.s32.totalorder %s162_s2, %s4431_s3  ;;  %p4437_p8 = scmp.lt.s32.totalorder %s4431_s3, %s4431_s3 }
  0x41   :  { %p4438_p9 = por %p4437_p8, %p4436_p7 }
  0x43   :  { %p4439_p10 = pnand %p4438_p9, %p4432_p6 }
  0x45   :  { %4442 = shalt.err (!%p4439_p10)
}
  0x46   :  { %167 = dma.hbm_to_vmem [thread:$0]  %s5682_s18, 16384, %s162_s2, [#allocation18], %s4603_s30, %s4603_s30, %s4604_s6  }
  0x47   :  { %s4451_s5 = scalar_lea.vmem %s40_s29, 1024  ;;  %p4456_p12 = scmp.lt.s32.totalorder %s40_s29, %s40_s29 }
  0x48   :  { %p4452_p11 = scmp.ne.s32.totalorder %s40_s29, %s4451_s5  ;;  %p4457_p13 = scmp.lt.s32.totalorder %s4451_s5, %s4451_s5 }
  0x4a   :  { %p4458_p0 = por %p4457_p13, %p4456_p12 }
  0x4c   :  { %p4459_p1 = pnand %p4458_p0, %p4452_p11 }
  0x4e   :  { %4462 = shalt.err (!%p4459_p1)
}
  0x4f   :  { %s5731_s24 = sld [smem:[#allocation61_spill]]  ;;  %s4607_s25 = smov [#allocation7]  }
  0x50   :  { %s63_s26 = sshll.u32 %s4607_s25, 4  ;;  %s64_s26 = int_to_ptr.vmem [resolvable:$true] %s63_s26 }
  0x51   :  { %s4471_s22 = scalar_lea.vmem %s64_s26, 24576  ;;  %p4476_p3 = scmp.lt.s32.totalorder %s64_s26, %s64_s26 }
  0x52   :  { %p4472_p2 = scmp.ne.s32.totalorder %s64_s26, %s4471_s22  ;;  %p4477_p4 = scmp.lt.s32.totalorder %s4471_s22, %s4471_s22 }
  0x54   :  { %p4478_p5 = por %p4477_p4, %p4476_p3 }
  0x55   :  { %45 = dma.hbm_to_vmem [thread:$0]  %s5731_s24, 1024, %s40_s29, [#allocation3], %s4599_s0, %s4599_s0, %s4600_s23  }
  0x56   :  { %p4479_p6 = pnand %p4478_p5, %p4472_p2 }
  0x58   :  { %4482 = shalt.err (!%p4479_p6)
}
  0x59   :  { %s4608_s18 = smov 768   ;;  %s4609_s30 = smov 48  }
  0x5a   :  { %s5732_s27 = sld [smem:[#allocation63_spill]]  ;;  %s4610_s3 = smov [#allocation10]  }
  0x5b   :  { %s85_s28 = sshll.u32 %s4610_s3, 4  ;;  %s4611_s29 = smov [#allocation13]   ;;  %s86_s28 = int_to_ptr.vmem [resolvable:$true] %s85_s28 }
  0x5c   :  { %s107_s1 = sshll.u32 %s4611_s29, 4  ;;  %s4491_s5 = scalar_lea.vmem %s86_s28, 8192  ;;  %s108_s1 = int_to_ptr.vmem [resolvable:$true] %s107_s1 }
  0x5d   :  { %p4492_p7 = scmp.ne.s32.totalorder %s86_s28, %s4491_s5  ;;  %p4496_p8 = scmp.lt.s32.totalorder %s86_s28, %s86_s28 }
  0x5e   :  { %p4497_p9 = scmp.lt.s32.totalorder %s4491_s5, %s4491_s5 }
  0x60   :  { %69 = dma.hbm_to_vmem [thread:$0]  %s5732_s27, 24576, %s64_s26, [#allocation6], %s4608_s18, %s4608_s18, %s4609_s30  }
  0x61   :  { %p4498_p10 = por %p4497_p9, %p4496_p8 }
  0x63   :  { %p4499_p11 = pnand %p4498_p10, %p4492_p7 }
  0x65   :  { %4502 = shalt.err (!%p4499_p11)
}
  0x66   :  { %s5733_s24 = sld [smem:[#allocation65_spill]]  ;;  %s4511_s25 = scalar_lea.vmem %s108_s1, 8192 }
  0x67   :  { %p4512_p12 = scmp.ne.s32.totalorder %s108_s1, %s4511_s25  ;;  %p4516_p13 = scmp.lt.s32.totalorder %s108_s1, %s108_s1 }
  0x68   :  { %p4517_p0 = scmp.lt.s32.totalorder %s4511_s25, %s4511_s25 }
  0x6a   :  { %p4518_p1 = por %p4517_p0, %p4516_p13 }
  0x6c   :  { %91 = dma.hbm_to_vmem [thread:$0]  %s5733_s24, 8192, %s86_s28, [#allocation9], %s4599_s0, %s4599_s0, %s4600_s23  }
  0x6d   :  { %p4519_p2 = pnand %p4518_p1, %p4512_p12 }
  0x6f   :  { %4522 = shalt.err (!%p4519_p2)
}
  0x70   :  { %s5734_s18 = sld [smem:[#allocation67_spill]]  ;;  %s4612_s30 = smov [#allocation16]  }
  0x71   :  { %s135_s6 = sshll.u32 %s4612_s30, 4  ;;  %s4613_s2 = smov [#allocation19]   ;;  %s136_s6 = int_to_ptr.vmem [resolvable:$true] %s135_s6 }
  0x72   :  { %s175_s27 = sshll.u32 %s4613_s2, 4  ;;  %s4531_s3 = scalar_lea.vmem %s136_s6, 8192  ;;  %s176_s27 = int_to_ptr.vmem [resolvable:$true] %s175_s27 }
  0x73   :  { %p4532_p3 = scmp.ne.s32.totalorder %s136_s6, %s4531_s3  ;;  %p4536_p4 = scmp.lt.s32.totalorder %s136_s6, %s136_s6 }
  0x74   :  { %p4537_p5 = scmp.lt.s32.totalorder %s4531_s3, %s4531_s3 }
  0x76   :  { %113 = dma.hbm_to_vmem [thread:$0]  %s5734_s18, 8192, %s108_s1, [#allocation12], %s4599_s0, %s4599_s0, %s4600_s23  }
  0x77   :  { %p4538_p6 = por %p4537_p5, %p4536_p4 }
  0x79   :  { %p4539_p7 = pnand %p4538_p6, %p4532_p3 }
  0x7b   :  { %4542 = shalt.err (!%p4539_p7)
}
  0x7c   :  { %141 = dma.hbm_to_vmem [thread:$0]  %s5674_s10, 8192, %s136_s6, [#allocation15], %s4599_s0, %s4599_s0, %s4600_s23  }
  0x7d   :  { %s4551_s1 = scalar_lea.vmem %s176_s27, 16384  ;;  %p4556_p9 = scmp.lt.s32.totalorder %s176_s27, %s176_s27 }
  0x7e   :  { %p4552_p8 = scmp.ne.s32.totalorder %s176_s27, %s4551_s1  ;;  %p4557_p10 = scmp.lt.s32.totalorder %s4551_s1, %s4551_s1 }
  0x80   :  { %p4558_p11 = por %p4557_p10, %p4556_p9 }
  0x82   :  { %p4559_p12 = pnand %p4558_p11, %p4552_p8 }
  0x84   :  { %4562 = shalt.err (!%p4559_p12)
}
  0x85   :  { %181 = dma.hbm_to_vmem [thread:$0]  %s5684_s20, 16384, %s176_s27, [#allocation18], %s4599_s0, %s4599_s0, %s4600_s23  }
  0x86   :  { %4583 = dma.done.wait [#allocation3], 1024  }
  0x87   :  { %4584 = vsyncadd [#allocation3], 4294966272 }
  0x88   :  { %4585 = dma.done.wait [#allocation6], 25088  }
  0x89   :  { %4586 = vsyncadd [#allocation6], 4294942208 }
  0x8a   :  { %4587 = dma.done.wait [#allocation9], 8288  }
  0x8b   :  { %4588 = vsyncadd [#allocation9], 4294959008 }
  0x8c   :  { %4589 = dma.done.wait [#allocation12], 8224  }
  0x8d   :  { %4590 = vsyncadd [#allocation12], 4294959072 }
  0x8e   :  { %4591 = dma.done.wait [#allocation15], 24576  }
  0x8f   :  { %4592 = vsyncadd [#allocation15], 4294942720 }
  0x90   :  { %4593 = dma.done.wait [#allocation18], 32768  }
  0x91   :  { %4594 = vsyncadd [#allocation18], 4294934528  ;;  %v320_v0 = vld [vmem:[#allocation7 + $0x2d8] sm:$0xff]  ;;  %v322_v1 = vld [vmem:[#allocation7 + $0x2e8] sm:$0xff]  ;;  %vm1383_vm0 = vcmask 130048   ;;  %vm2589_vm1 = vcmask 64512  }
  0x92   :  { %v319_v2 = vld [vmem:[#allocation7 + $0x2d0] sm:$0xff]  ;;  %1041 = vmatprep.subr.mxu0 %v320_v0  ;;  %1130 = vmatprep.subr.mxu1 %v322_v1  ;;  %v321_v3 = vld [vmem:[#allocation7 + $0x2e0] sm:$0xff]  ;;  %v314_v4 = vld [vmem:[#allocation7 + $0x2a8] sm:$0xff] }
  0x93   :  { %v316_v5 = vld [vmem:[#allocation7 + $0x2b8] sm:$0xff]  ;;  %1042 = vmatpush1.msra.mxu0 %v319_v2  ;;  %1131 = vmatpush1.msra.mxu1 %v321_v3  ;;  %v313_v6 = vld [vmem:[#allocation7 + $0x2a0] sm:$0xff]  ;;  %v315_v7 = vld [vmem:[#allocation7 + $0x2b0] sm:$0xff] }
  0x94   :  { %v308_v8 = vld [vmem:[#allocation7 + $0x278] sm:$0xff]  ;;  %1043 = vmatprep.subr.mxu0 %v314_v4  ;;  %1132 = vmatprep.subr.mxu1 %v316_v5  ;;  %v310_v9 = vld [vmem:[#allocation7 + $0x288] sm:$0xff]  ;;  %v307_v10 = vld [vmem:[#allocation7 + $0x270] sm:$0xff] }
  0x95   :  { %v309_v11 = vld [vmem:[#allocation7 + $0x280] sm:$0xff]  ;;  %1044 = vmatpush1.msra.mxu0 %v313_v6  ;;  %1133 = vmatpush1.msra.mxu1 %v315_v7  ;;  %v302_v12 = vld [vmem:[#allocation7 + $0x248] sm:$0xff]  ;;  %v304_v13 = vld [vmem:[#allocation7 + $0x258] sm:$0xff] }
  0x96   :  { %1045 = vmatprep.subr.mxu0 %v308_v8  ;;  %1134 = vmatprep.subr.mxu1 %v310_v9  ;;  %v301_v14 = vld [vmem:[#allocation7 + $0x240] sm:$0xff]  ;;  %v303_v15 = vld [vmem:[#allocation7 + $0x250] sm:$0xff]  ;;  %v296_v16 = vld [vmem:[#allocation7 + $0x218] sm:$0xff] }
  0x97   :  { %1046 = vmatpush1.msra.mxu0 %v307_v10  ;;  %1135 = vmatpush1.msra.mxu1 %v309_v11  ;;  %v298_v17 = vld [vmem:[#allocation7 + $0x228] sm:$0xff]  ;;  %v295_v18 = vld [vmem:[#allocation7 + $0x210] sm:$0xff]  ;;  %v297_v19 = vld [vmem:[#allocation7 + $0x220] sm:$0xff] }
  0x98   :  { %1047 = vmatprep.subr.mxu0 %v302_v12  ;;  %1136 = vmatprep.subr.mxu1 %v304_v13  ;;  %v290_v20 = vld [vmem:[#allocation7 + $0x1e8] sm:$0xff]  ;;  %v292_v21 = vld [vmem:[#allocation7 + $0x1f8] sm:$0xff]  ;;  %v289_v22 = vld [vmem:[#allocation7 + $0x1e0] sm:$0xff] }
  0x99   :  { %1048 = vmatpush1.msra.mxu0 %v301_v14  ;;  %1137 = vmatpush1.msra.mxu1 %v303_v15  ;;  %v291_v23 = vld [vmem:[#allocation7 + $0x1f0] sm:$0xff]  ;;  %v284_v24 = vld [vmem:[#allocation7 + $0x1b8] sm:$0xff]  ;;  %v286_v25 = vld [vmem:[#allocation7 + $0x1c8] sm:$0xff] }
  0x9a   :  { %1049 = vmatprep.subr.mxu0 %v296_v16  ;;  %1138 = vmatprep.subr.mxu1 %v298_v17  ;;  %v283_v26 = vld [vmem:[#allocation7 + $0x1b0] sm:$0xff]  ;;  %v285_v27 = vld [vmem:[#allocation7 + $0x1c0] sm:$0xff]  ;;  %v278_v28 = vld [vmem:[#allocation7 + $0x188] sm:$0xff] }
  0x9b   :  { %1050 = vmatpush1.msra.mxu0 %v295_v18  ;;  %1139 = vmatpush1.msra.mxu1 %v297_v19  ;;  %v280_v29 = vld [vmem:[#allocation7 + $0x198] sm:$0xff]  ;;  %v277_v30 = vld [vmem:[#allocation7 + $0x180] sm:$0xff]  ;;  %v279_v31 = vld [vmem:[#allocation7 + $0x190] sm:$0xff] }
  0x9c   :  { %1051 = vmatprep.subr.mxu0 %v290_v20  ;;  %1140 = vmatprep.subr.mxu1 %v292_v21  ;;  %v272_v32 = vld [vmem:[#allocation7 + $0x158] sm:$0xff]  ;;  %v274_v33 = vld [vmem:[#allocation7 + $0x168] sm:$0xff]  ;;  %v271_v34 = vld [vmem:[#allocation7 + $0x150] sm:$0xff] }
  0x9d   :  { %1052 = vmatpush1.msra.mxu0 %v289_v22  ;;  %1141 = vmatpush1.msra.mxu1 %v291_v23  ;;  %v273_v35 = vld [vmem:[#allocation7 + $0x160] sm:$0xff]  ;;  %v266_v36 = vld [vmem:[#allocation7 + $0x128] sm:$0xff]  ;;  %v268_v37 = vld [vmem:[#allocation7 + $0x138] sm:$0xff] }
  0x9e   :  { %1053 = vmatprep.subr.mxu0 %v284_v24  ;;  %1142 = vmatprep.subr.mxu1 %v286_v25  ;;  %v265_v38 = vld [vmem:[#allocation7 + $0x120] sm:$0xff]  ;;  %v267_v39 = vld [vmem:[#allocation7 + $0x130] sm:$0xff]  ;;  %v260_v40 = vld [vmem:[#allocation7 + $0xf8] sm:$0xff] }
  0x9f   :  { %1054 = vmatpush1.msra.mxu0 %v283_v26  ;;  %1143 = vmatpush1.msra.mxu1 %v285_v27  ;;  %v262_v41 = vld [vmem:[#allocation7 + $0x108] sm:$0xff]  ;;  %v259_v42 = vld [vmem:[#allocation7 + $0xf0] sm:$0xff]  ;;  %v261_v43 = vld [vmem:[#allocation7 + $0x100] sm:$0xff] }
  0xa0   :  { %1055 = vmatprep.subr.mxu0 %v278_v28  ;;  %1144 = vmatprep.subr.mxu1 %v280_v29  ;;  %v254_v44 = vld [vmem:[#allocation7 + $0xc8] sm:$0xff]  ;;  %v256_v45 = vld [vmem:[#allocation7 + $0xd8] sm:$0xff]  ;;  %v253_v46 = vld [vmem:[#allocation7 + $0xc0] sm:$0xff] }
  0xa1   :  { %1056 = vmatpush1.msra.mxu0 %v277_v30  ;;  %1145 = vmatpush1.msra.mxu1 %v279_v31  ;;  %v255_v47 = vld [vmem:[#allocation7 + $0xd0] sm:$0xff]  ;;  %v248_v48 = vld [vmem:[#allocation7 + $0x98] sm:$0xff]  ;;  %v250_v49 = vld [vmem:[#allocation7 + $0xa8] sm:$0xff] }
  0xa2   :  { %1057 = vmatprep.subr.mxu0 %v272_v32  ;;  %1146 = vmatprep.subr.mxu1 %v274_v33  ;;  %v247_v50 = vld [vmem:[#allocation7 + $0x90] sm:$0xff]  ;;  %v249_v51 = vld [vmem:[#allocation7 + $0xa0] sm:$0xff]  ;;  %v242_v52 = vld [vmem:[#allocation7 + $0x68] sm:$0xff] }
  0xa3   :  { %1058 = vmatpush1.msra.mxu0 %v271_v34  ;;  %1147 = vmatpush1.msra.mxu1 %v273_v35  ;;  %v244_v53 = vld [vmem:[#allocation7 + $0x78] sm:$0xff]  ;;  %v241_v54 = vld [vmem:[#allocation7 + $0x60] sm:$0xff]  ;;  %v243_v55 = vld [vmem:[#allocation7 + $0x70] sm:$0xff] }
  0xa4   :  { %1059 = vmatprep.subr.mxu0 %v266_v36  ;;  %1148 = vmatprep.subr.mxu1 %v268_v37  ;;  %v236_v56 = vld [vmem:[#allocation7 + $0x38] sm:$0xff]  ;;  %v238_v57 = vld [vmem:[#allocation7 + $0x48] sm:$0xff]  ;;  %v235_v58 = vld [vmem:[#allocation7 + $0x30] sm:$0xff] }
  0xa5   :  { %1060 = vmatpush1.msra.mxu0 %v265_v38  ;;  %1149 = vmatpush1.msra.mxu1 %v267_v39  ;;  %v237_v59 = vld [vmem:[#allocation7 + $0x40] sm:$0xff]  ;;  %v230_v60 = vld [vmem:[#allocation7 + $0x8] sm:$0xff]  ;;  %v232_v61 = vld [vmem:[#allocation7 + $0x18] sm:$0xff] }
  0xa6   :  { %1061 = vmatprep.subr.mxu0 %v260_v40  ;;  %1150 = vmatprep.subr.mxu1 %v262_v41  ;;  %v229_v62 = vld [vmem:[#allocation7] sm:$0xff]  ;;  %v231_v63 = vld [vmem:[#allocation7 + $0x10] sm:$0xff]  ;;  %v416_v0 = vld [vmem:[#allocation7 + $0x5d8] sm:$0xff] }
  0xa7   :  { %1062 = vmatpush1.msra.mxu0 %v259_v42  ;;  %1151 = vmatpush1.msra.mxu1 %v261_v43  ;;  %v418_v1 = vld [vmem:[#allocation7 + $0x5e8] sm:$0xff]  ;;  %v415_v2 = vld [vmem:[#allocation7 + $0x5d0] sm:$0xff]  ;;  %v417_v3 = vld [vmem:[#allocation7 + $0x5e0] sm:$0xff] }
  0xa8   :  { %1063 = vmatprep.subr.mxu0 %v254_v44  ;;  %1152 = vmatprep.subr.mxu1 %v256_v45  ;;  %v410_v4 = vld [vmem:[#allocation7 + $0x5a8] sm:$0xff]  ;;  %v412_v5 = vld [vmem:[#allocation7 + $0x5b8] sm:$0xff]  ;;  %v409_v6 = vld [vmem:[#allocation7 + $0x5a0] sm:$0xff] }
  0xa9   :  { %1064 = vmatpush1.msra.mxu0 %v253_v46  ;;  %1153 = vmatpush1.msra.mxu1 %v255_v47  ;;  %v411_v7 = vld [vmem:[#allocation7 + $0x5b0] sm:$0xff]  ;;  %v404_v8 = vld [vmem:[#allocation7 + $0x578] sm:$0xff]  ;;  %v406_v9 = vld [vmem:[#allocation7 + $0x588] sm:$0xff] }
  0xaa   :  { %1065 = vmatprep.subr.mxu0 %v248_v48  ;;  %1154 = vmatprep.subr.mxu1 %v250_v49  ;;  %v403_v10 = vld [vmem:[#allocation7 + $0x570] sm:$0xff]  ;;  %v405_v11 = vld [vmem:[#allocation7 + $0x580] sm:$0xff]  ;;  %v398_v12 = vld [vmem:[#allocation7 + $0x548] sm:$0xff] }
  0xab   :  { %1066 = vmatpush1.msra.mxu0 %v247_v50  ;;  %1155 = vmatpush1.msra.mxu1 %v249_v51  ;;  %v400_v13 = vld [vmem:[#allocation7 + $0x558] sm:$0xff]  ;;  %v397_v14 = vld [vmem:[#allocation7 + $0x540] sm:$0xff]  ;;  %v399_v15 = vld [vmem:[#allocation7 + $0x550] sm:$0xff] }
  0xac   :  { %1067 = vmatprep.subr.mxu0 %v242_v52  ;;  %1156 = vmatprep.subr.mxu1 %v244_v53  ;;  %v392_v16 = vld [vmem:[#allocation7 + $0x518] sm:$0xff]  ;;  %v394_v17 = vld [vmem:[#allocation7 + $0x528] sm:$0xff]  ;;  %v391_v18 = vld [vmem:[#allocation7 + $0x510] sm:$0xff] }
  0xad   :  { %1068 = vmatpush1.msra.mxu0 %v241_v54  ;;  %1157 = vmatpush1.msra.mxu1 %v243_v55  ;;  %v393_v19 = vld [vmem:[#allocation7 + $0x520] sm:$0xff]  ;;  %v386_v20 = vld [vmem:[#allocation7 + $0x4e8] sm:$0xff]  ;;  %v388_v21 = vld [vmem:[#allocation7 + $0x4f8] sm:$0xff] }
  0xae   :  { %1069 = vmatprep.subr.mxu0 %v236_v56  ;;  %1158 = vmatprep.subr.mxu1 %v238_v57  ;;  %v385_v22 = vld [vmem:[#allocation7 + $0x4e0] sm:$0xff]  ;;  %v387_v23 = vld [vmem:[#allocation7 + $0x4f0] sm:$0xff]  ;;  %v380_v24 = vld [vmem:[#allocation7 + $0x4b8] sm:$0xff] }
  0xaf   :  { %1070 = vmatpush1.msra.mxu0 %v235_v58  ;;  %1159 = vmatpush1.msra.mxu1 %v237_v59  ;;  %v382_v25 = vld [vmem:[#allocation7 + $0x4c8] sm:$0xff]  ;;  %v379_v26 = vld [vmem:[#allocation7 + $0x4b0] sm:$0xff]  ;;  %v381_v27 = vld [vmem:[#allocation7 + $0x4c0] sm:$0xff] }
  0xb0   :  { %1071 = vmatprep.subr.mxu0 %v230_v60  ;;  %1160 = vmatprep.subr.mxu1 %v232_v61  ;;  %v374_v28 = vld [vmem:[#allocation7 + $0x488] sm:$0xff]  ;;  %v376_v29 = vld [vmem:[#allocation7 + $0x498] sm:$0xff]  ;;  %v373_v30 = vld [vmem:[#allocation7 + $0x480] sm:$0xff] }
  0xb1   :  { %1072 = vmatpush1.msra.mxu0 %v229_v62  ;;  %1161 = vmatpush1.msra.mxu1 %v231_v63  ;;  %v375_v31 = vld [vmem:[#allocation7 + $0x490] sm:$0xff]  ;;  %v368_v32 = vld [vmem:[#allocation7 + $0x458] sm:$0xff]  ;;  %v370_v33 = vld [vmem:[#allocation7 + $0x468] sm:$0xff] }
  0xb2   :  { %1073 = vmatprep.subr.mxu0 %v416_v0  ;;  %1162 = vmatprep.subr.mxu1 %v418_v1  ;;  %v367_v34 = vld [vmem:[#allocation7 + $0x450] sm:$0xff]  ;;  %v369_v35 = vld [vmem:[#allocation7 + $0x460] sm:$0xff]  ;;  %v362_v36 = vld [vmem:[#allocation7 + $0x428] sm:$0xff] }
  0xb3   :  { %1074 = vmatpush2.msra.mxu0 %v415_v2  ;;  %1163 = vmatpush2.msra.mxu1 %v417_v3  ;;  %v364_v37 = vld [vmem:[#allocation7 + $0x438] sm:$0xff]  ;;  %v361_v38 = vld [vmem:[#allocation7 + $0x420] sm:$0xff]  ;;  %v363_v39 = vld [vmem:[#allocation7 + $0x430] sm:$0xff] }
  0xb4   :  { %1075 = vmatprep.subr.mxu0 %v410_v4  ;;  %1164 = vmatprep.subr.mxu1 %v412_v5  ;;  %v356_v40 = vld [vmem:[#allocation7 + $0x3f8] sm:$0xff]  ;;  %v358_v41 = vld [vmem:[#allocation7 + $0x408] sm:$0xff]  ;;  %v355_v42 = vld [vmem:[#allocation7 + $0x3f0] sm:$0xff] }
  0xb5   :  { %1076 = vmatpush2.msra.mxu0 %v409_v6  ;;  %1165 = vmatpush2.msra.mxu1 %v411_v7  ;;  %v357_v43 = vld [vmem:[#allocation7 + $0x400] sm:$0xff]  ;;  %v350_v44 = vld [vmem:[#allocation7 + $0x3c8] sm:$0xff]  ;;  %v352_v45 = vld [vmem:[#allocation7 + $0x3d8] sm:$0xff] }
  0xb6   :  { %1077 = vmatprep.subr.mxu0 %v404_v8  ;;  %1166 = vmatprep.subr.mxu1 %v406_v9  ;;  %v349_v46 = vld [vmem:[#allocation7 + $0x3c0] sm:$0xff]  ;;  %v351_v47 = vld [vmem:[#allocation7 + $0x3d0] sm:$0xff]  ;;  %v344_v48 = vld [vmem:[#allocation7 + $0x398] sm:$0xff] }
  0xb7   :  { %1078 = vmatpush2.msra.mxu0 %v403_v10  ;;  %1167 = vmatpush2.msra.mxu1 %v405_v11  ;;  %v346_v49 = vld [vmem:[#allocation7 + $0x3a8] sm:$0xff]  ;;  %v343_v50 = vld [vmem:[#allocation7 + $0x390] sm:$0xff]  ;;  %v345_v51 = vld [vmem:[#allocation7 + $0x3a0] sm:$0xff] }
  0xb8   :  { %1079 = vmatprep.subr.mxu0 %v398_v12  ;;  %1168 = vmatprep.subr.mxu1 %v400_v13  ;;  %v338_v52 = vld [vmem:[#allocation7 + $0x368] sm:$0xff]  ;;  %v340_v53 = vld [vmem:[#allocation7 + $0x378] sm:$0xff]  ;;  %v337_v54 = vld [vmem:[#allocation7 + $0x360] sm:$0xff] }
  0xb9   :  { %1080 = vmatpush2.msra.mxu0 %v397_v14  ;;  %1169 = vmatpush2.msra.mxu1 %v399_v15  ;;  %v339_v55 = vld [vmem:[#allocation7 + $0x370] sm:$0xff]  ;;  %v332_v56 = vld [vmem:[#allocation7 + $0x338] sm:$0xff]  ;;  %v334_v57 = vld [vmem:[#allocation7 + $0x348] sm:$0xff] }
  0xba   :  { %1081 = vmatprep.subr.mxu0 %v392_v16  ;;  %1170 = vmatprep.subr.mxu1 %v394_v17  ;;  %v331_v58 = vld [vmem:[#allocation7 + $0x330] sm:$0xff]  ;;  %v333_v59 = vld [vmem:[#allocation7 + $0x340] sm:$0xff]  ;;  %v326_v60 = vld [vmem:[#allocation7 + $0x308] sm:$0xff] }
  0xbb   :  { %1082 = vmatpush2.msra.mxu0 %v391_v18  ;;  %1171 = vmatpush2.msra.mxu1 %v393_v19  ;;  %v328_v61 = vld [vmem:[#allocation7 + $0x318] sm:$0xff]  ;;  %v325_v62 = vld [vmem:[#allocation7 + $0x300] sm:$0xff]  ;;  %v327_v63 = vld [vmem:[#allocation7 + $0x310] sm:$0xff] }
  0xbc   :  { %1083 = vmatprep.subr.mxu0 %v386_v20  ;;  %1172 = vmatprep.subr.mxu1 %v388_v21  ;;  %v218_v0 = vld [vmem:[#allocation2 + $0x8] sm:$0xff]  ;;  %v4781_v1 = vld [vmem:[#allocation2] sm:$0xff]  ;;  %v324_v2 = vld [vmem:[#allocation7 + $0x2f8] sm:$0xff] }
  0xbd   :  { %1084 = vmatpush2.msra.mxu0 %v385_v22  ;;  %1173 = vmatpush2.msra.mxu1 %v387_v23  ;;  %v4783_v3 = vld [vmem:[#allocation2 + $0x18] sm:$0xff]  ;;  %v323_v4 = vld [vmem:[#allocation7 + $0x2f0] sm:$0xff]  ;;  %v318_v5 = vld [vmem:[#allocation7 + $0x2c8] sm:$0xff] }
  0xbe   :  { %1085 = vmatprep.subr.mxu0 %v380_v24  ;;  %1174 = vmatprep.subr.mxu1 %v382_v25  ;;  %v317_v6 = vld [vmem:[#allocation7 + $0x2c0] sm:$0xff]  ;;  %v4788_v7 = vld [vmem:[#allocation2 + $0x10] sm:$0xff]  ;;  %v312_v8 = vld [vmem:[#allocation7 + $0x298] sm:$0xff] }
  0xbf   :  { %1086 = vmatpush2.msra.mxu0 %v379_v26  ;;  %1175 = vmatpush2.msra.mxu1 %v381_v27  ;;  %v311_v9 = vld [vmem:[#allocation7 + $0x290] sm:$0xff]  ;;  %v4791_v10 = vld [vmem:[#allocation2 + $0x28] sm:$0xff]  ;;  %v305_v12 = vld [vmem:[#allocation7 + $0x260] sm:$0xff] }
  0xc0   :  { %1087 = vmatprep.subr.mxu0 %v374_v28  ;;  %1176 = vmatprep.subr.mxu1 %v376_v29  ;;  %v306_v11 = vld [vmem:[#allocation7 + $0x268] sm:$0xff]  ;;  %v300_v13 = vld [vmem:[#allocation7 + $0x238] sm:$0xff]  ;;  %v4796_v14 = vld [vmem:[#allocation2 + $0x20] sm:$0xff] }
  0xc1   :  { %1088 = vmatpush2.msra.mxu0 %v373_v30  ;;  %1177 = vmatpush2.msra.mxu1 %v375_v31  ;;  %v299_v15 = vld [vmem:[#allocation7 + $0x230] sm:$0xff]  ;;  %v4798_v16 = vld [vmem:[#allocation2 + $0x38] sm:$0xff]  ;;  %v294_v17 = vld [vmem:[#allocation7 + $0x208] sm:$0xff] }
  0xc2   :  { %1089 = vmatprep.subr.mxu0 %v368_v32  ;;  %1178 = vmatprep.subr.mxu1 %v370_v33  ;;  %v293_v18 = vld [vmem:[#allocation7 + $0x200] sm:$0xff]  ;;  %v288_v19 = vld [vmem:[#allocation7 + $0x1d8] sm:$0xff]  ;;  %v4804_v20 = vld [vmem:[#allocation2 + $0x30] sm:$0xff] }
  0xc3   :  { %1090 = vmatpush2.msra.mxu0 %v367_v34  ;;  %1179 = vmatpush2.msra.mxu1 %v369_v35  ;;  %v287_v21 = vld [vmem:[#allocation7 + $0x1d0] sm:$0xff]  ;;  %v282_v22 = vld [vmem:[#allocation7 + $0x1a8] sm:$0xff]  ;;  %v281_v23 = vld [vmem:[#allocation7 + $0x1a0] sm:$0xff] }
  0xc4   :  { %1091 = vmatprep.subr.mxu0 %v362_v36  ;;  %1180 = vmatprep.subr.mxu1 %v364_v37  ;;  %v276_v24 = vld [vmem:[#allocation7 + $0x178] sm:$0xff]  ;;  %v275_v25 = vld [vmem:[#allocation7 + $0x170] sm:$0xff]  ;;  %v270_v26 = vld [vmem:[#allocation7 + $0x148] sm:$0xff] }
  0xc5   :  { %1092 = vmatpush2.msra.mxu0 %v361_v38  ;;  %1181 = vmatpush2.msra.mxu1 %v363_v39  ;;  %v269_v27 = vld [vmem:[#allocation7 + $0x140] sm:$0xff]  ;;  %v264_v28 = vld [vmem:[#allocation7 + $0x118] sm:$0xff]  ;;  %v263_v29 = vld [vmem:[#allocation7 + $0x110] sm:$0xff] }
  0xc6   :  { %1093 = vmatprep.subr.mxu0 %v356_v40  ;;  %1182 = vmatprep.subr.mxu1 %v358_v41  ;;  %v258_v30 = vld [vmem:[#allocation7 + $0xe8] sm:$0xff]  ;;  %v257_v31 = vld [vmem:[#allocation7 + $0xe0] sm:$0xff]  ;;  %v252_v32 = vld [vmem:[#allocation7 + $0xb8] sm:$0xff] }
  0xc7   :  { %1094 = vmatpush2.msra.mxu0 %v355_v42  ;;  %1183 = vmatpush2.msra.mxu1 %v357_v43  ;;  %v251_v33 = vld [vmem:[#allocation7 + $0xb0] sm:$0xff]  ;;  %v246_v34 = vld [vmem:[#allocation7 + $0x88] sm:$0xff]  ;;  %v245_v35 = vld [vmem:[#allocation7 + $0x80] sm:$0xff] }
  0xc8   :  { %1095 = vmatprep.subr.mxu0 %v350_v44  ;;  %1184 = vmatprep.subr.mxu1 %v352_v45  ;;  %v240_v36 = vld [vmem:[#allocation7 + $0x58] sm:$0xff]  ;;  %v239_v37 = vld [vmem:[#allocation7 + $0x50] sm:$0xff]  ;;  %v234_v38 = vld [vmem:[#allocation7 + $0x28] sm:$0xff] }
  0xc9   :  { %1096 = vmatpush2.msra.mxu0 %v349_v46  ;;  %1185 = vmatpush2.msra.mxu1 %v351_v47  ;;  %v233_v39 = vld [vmem:[#allocation7 + $0x20] sm:$0xff]  ;;  %v420_v40 = vld [vmem:[#allocation7 + $0x5f8] sm:$0xff]  ;;  %v419_v41 = vld [vmem:[#allocation7 + $0x5f0] sm:$0xff] }
  0xca   :  { %1097 = vmatprep.subr.mxu0 %v344_v48  ;;  %1186 = vmatprep.subr.mxu1 %v346_v49  ;;  %v414_v42 = vld [vmem:[#allocation7 + $0x5c8] sm:$0xff]  ;;  %v413_v43 = vld [vmem:[#allocation7 + $0x5c0] sm:$0xff]  ;;  %v408_v44 = vld [vmem:[#allocation7 + $0x598] sm:$0xff] }
  0xcb   :  { %1098 = vmatpush2.msra.mxu0 %v343_v50  ;;  %1187 = vmatpush2.msra.mxu1 %v345_v51  ;;  %v407_v45 = vld [vmem:[#allocation7 + $0x590] sm:$0xff]  ;;  %v402_v46 = vld [vmem:[#allocation7 + $0x568] sm:$0xff]  ;;  %v401_v47 = vld [vmem:[#allocation7 + $0x560] sm:$0xff] }
  0xcc   :  { %1099 = vmatprep.subr.mxu0 %v338_v52  ;;  %1188 = vmatprep.subr.mxu1 %v340_v53  ;;  %v396_v48 = vld [vmem:[#allocation7 + $0x538] sm:$0xff]  ;;  %v395_v49 = vld [vmem:[#allocation7 + $0x530] sm:$0xff]  ;;  %v390_v50 = vld [vmem:[#allocation7 + $0x508] sm:$0xff] }
  0xcd   :  { %1100 = vmatpush2.msra.mxu0 %v337_v54  ;;  %1189 = vmatpush2.msra.mxu1 %v339_v55  ;;  %v389_v51 = vld [vmem:[#allocation7 + $0x500] sm:$0xff]  ;;  %v384_v52 = vld [vmem:[#allocation7 + $0x4d8] sm:$0xff]  ;;  %v383_v53 = vld [vmem:[#allocation7 + $0x4d0] sm:$0xff] }
  0xce   :  { %1101 = vmatprep.subr.mxu0 %v332_v56  ;;  %1190 = vmatprep.subr.mxu1 %v334_v57  ;;  %v378_v54 = vld [vmem:[#allocation7 + $0x4a8] sm:$0xff]  ;;  %v377_v55 = vld [vmem:[#allocation7 + $0x4a0] sm:$0xff]  ;;  %v372_v56 = vld [vmem:[#allocation7 + $0x478] sm:$0xff] }
  0xcf   :  { %1102 = vmatpush2.msra.mxu0 %v331_v58  ;;  %1191 = vmatpush2.msra.mxu1 %v333_v59  ;;  %v371_v57 = vld [vmem:[#allocation7 + $0x470] sm:$0xff]  ;;  %v366_v58 = vld [vmem:[#allocation7 + $0x448] sm:$0xff]  ;;  %v365_v59 = vld [vmem:[#allocation7 + $0x440] sm:$0xff] }
  0xd0   :  { %1103 = vmatprep.subr.mxu0 %v326_v60  ;;  %1192 = vmatprep.subr.mxu1 %v328_v61  ;;  %v360_v60 = vld [vmem:[#allocation7 + $0x418] sm:$0xff]  ;;  %v359_v61 = vld [vmem:[#allocation7 + $0x410] sm:$0xff] }
  0xd1   :  { %1104 = vmatpush2.msra.mxu0 %v325_v62  ;;  %1193 = vmatpush2.msra.mxu1 %v327_v63  ;;  %v354_v62 = vld [vmem:[#allocation7 + $0x3e8] sm:$0xff]  ;;  %v353_v63 = vld [vmem:[#allocation7 + $0x3e0] sm:$0xff] }
  0xd2   :  { %1194 = vmatprep.mubr.f32.mxu1 %v218_v0  ;;  %1105 = vmatprep.mubr.f32.mxu0 %v218_v0 }
  0xd3   :  { %1195 = vmatmul.mubr.f32.vlgmr.msra.gmra.mxu1 %v4781_v1  ;;  %1219 = vmatprep.subr.mxu0 %v324_v2  ;;  %v347_v2 = vld [vmem:[#allocation7 + $0x3b0] sm:$0xff] }
  0xd4   :  { %1106 = vmatmul.mubr.f32.vlgmr.msra.gmra.mxu0 %v4781_v1  ;;  %1200 = vmatprep.mubr.f32.mxu1 %v4783_v3 }
  0xd5   :  { %1220 = vmatpush1.msra.mxu0 %v323_v4  ;;  %1111 = vmatprep.mubr.f32.mxu0 %v4783_v3  ;;  %v342_v4 = vld [vmem:[#allocation7 + $0x388] sm:$0xff] }
  0xd6   :  { %1221 = vmatprep.subr.mxu0 %v318_v5  ;;  %v341_v5 = vld [vmem:[#allocation7 + $0x380] sm:$0xff] }
  0xd7   :  { %1222 = vmatpush1.msra.mxu0 %v317_v6  ;;  %1201 = vmatmul.mubr.f32.gmra.mxu1 %v4788_v7  ;;  %v336_v6 = vld [vmem:[#allocation7 + $0x358] sm:$0xff] }
  0xd8   :  { %1223 = vmatprep.subr.mxu0 %v312_v8  ;;  %1112 = vmatmul.mubr.f32.gmra.mxu0 %v4788_v7  ;;  %v335_v8 = vld [vmem:[#allocation7 + $0x350] sm:$0xff] }
  0xd9   :  { %1224 = vmatpush1.msra.mxu0 %v311_v9  ;;  %1117 = vmatprep.mubr.f32.mxu0 %v4791_v10  ;;  %v330_v9 = vld [vmem:[#allocation7 + $0x328] sm:$0xff] }
  0xda   :  { %1225 = vmatprep.subr.mxu0 %v306_v11  ;;  %1206 = vmatprep.mubr.f32.mxu1 %v4791_v10  ;;  %v329_v11 = vld [vmem:[#allocation7 + $0x320] sm:$0xff] }
  0xdb   :  { %1226 = vmatpush1.msra.mxu0 %v305_v12  ;;  %1207 = vmatmul.mubr.f32.gmra.mxu1 %v4796_v14  ;;  %v1011_v12 = vlaneseq }
  0xdc   :  { %1227 = vmatprep.subr.mxu0 %v300_v13  ;;  %1118 = vmatmul.mubr.f32.gmra.mxu0 %v4796_v14 }
  0xdd   :  { %1228 = vmatpush1.msra.mxu0 %v299_v15  ;;  %1123 = vmatprep.mubr.f32.mxu0 %v4798_v16  ;;  %v4816_v13 = vshrl.u32 %v1011_v12, 7 }
  0xde   :  { %1229 = vmatprep.subr.mxu0 %v294_v17  ;;  %1212 = vmatprep.mubr.f32.mxu1 %v4798_v16 }
  0xdf   :  { %1230 = vmatpush1.msra.mxu0 %v293_v18  ;;  %1213 = vmatmul.mubr.f32.gmra.mxu1 %v4804_v20  ;;  %v4819_v15 = vsub.s32 0, %v4816_v13 }
  0xe0   :  { %1231 = vmatprep.subr.mxu0 %v288_v19  ;;  %1124 = vmatmul.mubr.f32.gmra.mxu0 %v4804_v20 }
  0xe1   :  { %1232 = vmatpush1.msra.mxu0 %v287_v21  ;;  %1283 = vmatprep.mubr.f32.mxu0 %v218_v0  ;;  %v348_v0 = vld [vmem:[#allocation7 + $0x3b8] sm:$0xff] }
  0xe2   :  { %1233 = vmatprep.subr.mxu0 %v282_v22 }
  0xe3   :  { %1234 = vmatpush1.msra.mxu0 %v281_v23 }
  0xe4   :  { %1235 = vmatprep.subr.mxu0 %v276_v24 }
  0xe5   :  { %1236 = vmatpush1.msra.mxu0 %v275_v25 }
  0xe6   :  { %1237 = vmatprep.subr.mxu0 %v270_v26  ;;  %v4843_v26 = vsub.s32 1, %v4816_v13 }
  0xe7   :  { %1238 = vmatpush1.msra.mxu0 %v269_v27 }
  0xe8   :  { %1239 = vmatprep.subr.mxu0 %v264_v28 }
  0xe9   :  { %1240 = vmatpush1.msra.mxu0 %v263_v29 }
  0xea   :  { %1241 = vmatprep.subr.mxu0 %v258_v30 }
  0xeb   :  { %1242 = vmatpush1.msra.mxu0 %v257_v31 }
  0xec   :  { %1243 = vmatprep.subr.mxu0 %v252_v32 }
  0xed   :  { %1244 = vmatpush1.msra.mxu0 %v251_v33 }
  0xee   :  { %1245 = vmatprep.subr.mxu0 %v246_v34 }
  0xef   :  { %1246 = vmatpush1.msra.mxu0 %v245_v35 }
  0xf0   :  { %1247 = vmatprep.subr.mxu0 %v240_v36 }
  0xf1   :  { %1248 = vmatpush1.msra.mxu0 %v239_v37 }
  0xf2   :  { %1249 = vmatprep.subr.mxu0 %v234_v38 }
  0xf3   :  { %1250 = vmatpush1.msra.mxu0 %v233_v39 }
  0xf4   :  { %1251 = vmatprep.subr.mxu0 %v420_v40 }
  0xf5   :  { %1252 = vmatpush2.msra.mxu0 %v419_v41 }
  0xf6   :  { %1253 = vmatprep.subr.mxu0 %v414_v42 }
  0xf7   :  { %1254 = vmatpush2.msra.mxu0 %v413_v43 }
  0xf8   :  { %1255 = vmatprep.subr.mxu0 %v408_v44 }
  0xf9   :  { %1256 = vmatpush2.msra.mxu0 %v407_v45 }
  0xfa   :  { %1257 = vmatprep.subr.mxu0 %v402_v46  ;;  %v1029_v46 = vsub.s32 4, %v4816_v13 }
  0xfb   :  { %1258 = vmatpush2.msra.mxu0 %v401_v47 }
  0xfc   :  { %1259 = vmatprep.subr.mxu0 %v396_v48 }
  0xfd   :  { %1260 = vmatpush2.msra.mxu0 %v395_v49 }
  0xfe   :  { %1261 = vmatprep.subr.mxu0 %v390_v50 }
  0xff   :  { %1262 = vmatpush2.msra.mxu0 %v389_v51 }
 0x100   :  { %1263 = vmatprep.subr.mxu0 %v384_v52 }
 0x101   :  { %1264 = vmatpush2.msra.mxu0 %v383_v53 }
 0x102   :  { %1265 = vmatprep.subr.mxu0 %v378_v54 }
 0x103   :  { %1266 = vmatpush2.msra.mxu0 %v377_v55 }
 0x104   :  { %1267 = vmatprep.subr.mxu0 %v372_v56 }
 0x105   :  { %1268 = vmatpush2.msra.mxu0 %v371_v57 }
 0x106   :  { %1269 = vmatprep.subr.mxu0 %v366_v58 }
 0x107   :  { %1270 = vmatpush2.msra.mxu0 %v365_v59 }
 0x108   :  { %1271 = vmatprep.subr.mxu0 %v360_v60 }
 0x109   :  { %1272 = vmatpush2.msra.mxu0 %v359_v61 }
 0x10a   :  { %1273 = vmatprep.subr.mxu0 %v354_v62 }
 0x10b   :  { %1274 = vmatpush2.msra.mxu0 %v353_v63 }
 0x10c   :  { %1275 = vmatprep.subr.mxu0 %v348_v0 }
 0x10d   :  { %1276 = vmatpush2.msra.mxu0 %v347_v2 }
 0x10e   :  { %1277 = vmatprep.subr.mxu0 %v342_v4 }
 0x10f   :  { %1278 = vmatpush2.msra.mxu0 %v341_v5 }
 0x110   :  { %1279 = vmatprep.subr.mxu0 %v336_v6 }
 0x111   :  { %1280 = vmatpush2.msra.mxu0 %v335_v8 }
 0x112   :  { %1281 = vmatprep.subr.mxu0 %v330_v9 }
 0x113   :  { %1282 = vmatpush2.msra.mxu0 %v329_v11 }
 0x114   :  { %1284 = vmatmul.mubr.f32.vlgmr.msra.gmra.mxu0 %v4781_v1  ;;  %v4822_v1 = vsub.s32 3, %v4816_v13 }
 0x115   :  { %1289 = vmatprep.mubr.f32.mxu0 %v4783_v3  ;;  %v4824_v3 = vld [vmem:[#allocation8] sm:$0x3f] }
 0x116   :  { %v4851_v33 = vrot.slane %v4824_v3, %v4843_v26  ;;  %v4870_v48 = vrot.slane %v4824_v3, %v1029_v46 }
 0x118   :  { %1290 = vmatmul.mubr.f32.gmra.mxu0 %v4788_v7  ;;  %v1014_v7 = vrot.slane %v4824_v3, %v4819_v15 }
 0x119   :  { %1295 = vmatprep.mubr.f32.mxu0 %v4791_v10  ;;  %v4829_v10 = vsub.s32 2, %v4816_v13 }
 0x11c   :  { %1296 = vmatmul.mubr.f32.gmra.mxu0 %v4796_v14  ;;  %v4833_v14 = vrot.slane %v4824_v3, %v4822_v1 }
 0x11d   :  { %1301 = vmatprep.mubr.f32.mxu0 %v4798_v16 }
 0x120   :  { %1302 = vmatmul.mubr.f32.gmra.mxu0 %v4804_v20  ;;  %v1022_v20 = vrot.slane %v4824_v3, %v4829_v10 }
 0x193   :  { %v1196_v16 = vpop.f32.mrf.mxu1 }
 0x194   :  { %v1107_v17 = vpop.f32.mrf.mxu0  ;;  %v1197_v28 = vadd.f32 %v1196_v16, %v1022_v20  ;;  %v1033_v16 = vsub.s32 5, %v4816_v13 }
 0x195   :  { %v1198_v18 = vpop.f32.mrf.mxu1  ;;  %v1108_v19 = vadd.f32 %v1107_v17, %v1014_v7 }
 0x196   :  { %v4838_v21 = vadd.f32 %v1198_v18, %v4833_v14  ;;  %v4840_v22 = vpop.f32.mrf.mxu0 }
 0x197   :  { %v1202_v23 = vpop.f32.mrf.mxu1  ;;  %4073 = vmatprep.mubr.f32.mxu1 %v1108_v19  ;;  %v1110_v18 = vadd.f32 %v4840_v22, %v4851_v33 }
 0x198   :  { %v1203_v24 = vadd.f32 %v1202_v23, %v1022_v20  ;;  %v1113_v25 = vpop.f32.mrf.mxu0 }
 0x199   :  { %v1204_v27 = vpop.f32.mrf.mxu1  ;;  %v1114_v36 = vadd.f32 %v1113_v25, %v1014_v7 }
 0x19a   :  { %4069 = vmatprep.subr.mxu1 %v1203_v24  ;;  %v4845_v29 = vpop.f32.mrf.mxu0  ;;  %v1205_v53 = vadd.f32 %v1204_v27, %v4833_v14 }
 0x19b   :  { %4070 = vmatpush3.xpose.msra.mxu1 %v1203_v24  ;;  %v1208_v30 = vpop.f32.mrf.mxu1  ;;  %v1116_v13 = vadd.f32 %v4845_v29, %v4851_v33 }
 0x19c   :  { %4071 = vmatprep.subr.mxu1 %v1197_v28  ;;  %v1119_v31 = vpop.f32.mrf.mxu0  ;;  %v4847_v32 = vadd.f32 %v1208_v30, %v1022_v20 }
 0x19d   :  { %v4853_v34 = vadd.f32 %v1119_v31, %v1014_v7  ;;  %v1210_v35 = vpop.f32.mrf.mxu1 }
 0x19e   :  { %v1121_v37 = vpop.f32.mrf.mxu0  ;;  %v4856_v38 = vadd.f32 %v1210_v35, %v4833_v14 }
 0x19f   :  { %4072 = vmatpush3.xpose.msra.mxu1 %v1197_v28  ;;  %v4859_v39 = vadd.f32 %v1121_v37, %v4851_v33  ;;  %v1214_v40 = vpop.f32.mrf.mxu1 }
 0x1a0   :  { %v1125_v41 = vpop.f32.mrf.mxu0  ;;  %v4861_v42 = vadd.f32 %v1214_v40, %v1022_v20  ;;  %v4887_v20 = vrot.slane %v4824_v3, %v1033_v16 }
 0x1a1   :  { %v4863_v43 = vadd.f32 %v1125_v41, %v1014_v7  ;;  %v4875_v54 = vpop.f32.mrf.mxu1 }
 0x1a2   :  { %4074 = vmatmul.mubr.f32.vlgmr.msra.gmra.mxu1 %v1114_v36  ;;  %v1127_v44 = vpop.f32.mrf.mxu0 }
 0x1a3   :  { %v4866_v45 = vadd.f32 %v1127_v44, %v4851_v33 }
 0x1d4   :  { %v1285_v47 = vpop.f32.mrf.mxu0 }
 0x1d5   :  { %v1286_v51 = vadd.f32 %v1285_v47, %v4870_v48 }
 0x1d6   :  { %v1287_v49 = vpop.f32.mrf.mxu0 }
 0x1d7   :  { %v1288_v22 = vadd.f32 %v1287_v49, %v4887_v20 }
 0x1d8   :  { %v1291_v50 = vpop.f32.mrf.mxu0 }
 0x1d9   :  { %v1292_v52 = vadd.f32 %v1291_v50, %v4870_v48 }
 0x1da   :  { %v1293_v19 = vpop.f32.mrf.mxu0 }
 0x1db   :  { %4076 = vmatprep.subr.mxu1 %v1292_v52  ;;  %v1294_v23 = vadd.f32 %v1293_v19, %v4887_v20 }
 0x1dc   :  { %4077 = vmatpush3.msra.mxu1 %v1292_v52  ;;  %v1297_v49 = vpop.f32.mrf.mxu0 }
 0x1dd   :  { %4078 = vmatprep.subr.mxu1 %v1286_v51 }
 0x1de   :  { %4079 = vmatpush3.msra.mxu1 %v1286_v51  ;;  %v1299_v51 = vpop.f32.mrf.mxu0 }
 0x1df   :  { %4083 = vmatprep.subr.mxu1 %v1205_v53  ;;  %v1300_v19 = vadd.f32 %v1299_v51, %v4887_v20  ;;  %v450_v51 = vld [vmem:[#allocation10 + $0xe0] sm:$0xff] }
 0x262   :  { %v4075_v55 = vpop.f32.mrf.mxu1 }
 0x263   :  { %v1387_v58 = vsel %vm1383_vm0, %v4075_v55, -inf }
 0x264   :  { %v1374_v56 = vpop.f32.mrf.mxu1 }
 0x265   :  { %v1384_v57 = vsel %vm1383_vm0, %v1374_v56, -inf }
 0x266   :  { %1385 = vmax.xlane.f32.xlu0 %v1384_v57 }
 0x26a   :  { %1388 = vmax.xlane.f32.xlu0 %v1387_v58  ;;  %v1298_v58 = vadd.f32 %v1297_v49, %v4870_v48  ;;  %v452_v49 = vld [vmem:[#allocation10 + $0xf0] sm:$0xff] }
 0x2ef   :  { %v1386_v59 = vpop.xlane.xlu0 %1385 }
 0x2f0   :  { %v1390_v60 = vsub.f32 %v1374_v56, %v1386_v59  ;;  %v1303_v56 = vpop.f32.mrf.mxu0  ;;  %v1217_v59 = vadd.f32 %v4875_v54, %v4833_v14 }
 0x2f1   :  { %v1304_v57 = vadd.f32 %v1303_v56, %v4870_v48  ;;  %v446_v56 = vld [vmem:[#allocation10 + $0xc0] sm:$0xff] }
 0x2f2   :  { %v1392_v61 = vmul.f32 1.442695, %v1390_v60 }
 0x2f3   :  { %v1389_v62 = vpop.xlane.xlu0 %1388 }
 0x2f4   :  { %4247 = vpow2.f32 %v1392_v61  ;;  %v1391_v63 = vsub.f32 %v4075_v55, %v1389_v62 }
 0x2f6   :  { %v1394_v0 = vmul.f32 1.442695, %v1391_v63 }
 0x2f8   :  { %4249 = vpow2.f32 %v1394_v0 }
 0x301   :  { %v4248_v2 = vpop.eup %4247 }
 0x302   :  { %v1396_v4 = vsel %vm1383_vm0, %v4248_v2, 0.0 }
 0x303   :  { %1397 = vadd.xlane.f32.xlu1 %v1396_v4 }
 0x305   :  { %v4250_v5 = vpop.eup %4249 }
 0x306   :  { %v1399_v6 = vsel %vm1383_vm0, %v4250_v5, 0.0 }
 0x307   :  { %1400 = vadd.xlane.f32.xlu1 %v1399_v6 }
 0x38c   :  { %v1398_v8 = vpop.xlane.xlu1 %1397 }
 0x38d   :  { %4251 = vrcp.f32 %v1398_v8 }
 0x390   :  { %v1401_v9 = vpop.xlane.xlu1 %1400 }
 0x391   :  { %4253 = vrcp.f32 %v1401_v9 }
 0x39a   :  { %v4252_v11 = vpop.eup %4251 }
 0x39b   :  { %v1404_v12 = vmul.f32 %v4252_v11, %v4248_v2 }
 0x39d   :  { %4080 = vmatprep.mubr.msk.f32.mxu1 %vm1383_vm0, %v1404_v12 }
 0x39e   :  { %v4254_v7 = vpop.eup %4253 }
 0x39f   :  { %v1405_v17 = vmul.f32 %v4254_v7, %v4250_v5 }
 0x3a1   :  { %4081 = vmatmul.mubr.msk.f32.vlgmr.msra.gmra.mxu1 %vm1383_vm0, %v1405_v17  ;;  %v1305_v17 = vpop.f32.mrf.mxu0 }
 0x3a2   :  { %4084 = vmatpush3.xpose.msra.mxu1 %v1205_v53  ;;  %4087 = vmatprep.mubr.f32.mxu1 %v1110_v18  ;;  %v1306_v18 = vadd.f32 %v1305_v17, %v4887_v20  ;;  %v485_v17 = vld [vmem:[#allocation10 + $0x1f8] sm:$0xff] }
 0x3a3   :  { %4085 = vmatprep.subr.mxu1 %v4838_v21 }
 0x3a6   :  { %4086 = vmatpush3.xpose.msra.mxu1 %v4838_v21 }
 0x3a7   :  { %4090 = vmatprep.subr.mxu1 %v1294_v23 }
 0x3a9   :  { %4088 = vmatmul.mubr.f32.vlgmr.msra.gmra.mxu1 %v1116_v13 }
 0x3aa   :  { %4091 = vmatpush3.msra.mxu1 %v1294_v23 }
 0x3ab   :  { %4092 = vmatprep.subr.mxu1 %v1288_v22 }
 0x3ac   :  { %4093 = vmatpush3.msra.mxu1 %v1288_v22 }
 0x3ad   :  { %4097 = vmatprep.subr.mxu1 %v4861_v42 }
 0x461   :  { %v4896_v3 = vpop.f32.mrf.mxu1 }
 0x463   :  { %v4898_v24 = vpop.f32.mrf.mxu1 }
 0x469   :  { %v4089_v25 = vpop.f32.mrf.mxu1 }
 0x46a   :  { %v1565_v27 = vsel %vm1383_vm0, %v4089_v25, -inf }
 0x46b   :  { %1566 = vmax.xlane.f32.xlu1 %v1565_v27  ;;  %v1553_v21 = vpop.f32.mrf.mxu1 }
 0x46c   :  { %v1562_v28 = vsel %vm1383_vm0, %v1553_v21, -inf }
 0x46d   :  { %1563 = vmax.xlane.f32.xlu0 %v1562_v28 }
 0x4f4   :  { %v1567_v29 = vpop.xlane.xlu1 %1566 }
 0x4f5   :  { %v1569_v30 = vsub.f32 %v4089_v25, %v1567_v29 }
 0x4f6   :  { %v1564_v31 = vpop.xlane.xlu0 %1563 }
 0x4f7   :  { %v1572_v33 = vmul.f32 1.442695, %v1569_v30  ;;  %v1568_v35 = vsub.f32 %v1553_v21, %v1564_v31 }
 0x4f9   :  { %4255 = vpow2.f32 %v1572_v33  ;;  %v1570_v36 = vmul.f32 1.442695, %v1568_v35 }
 0x4fb   :  { %4257 = vpow2.f32 %v1570_v36  ;;  %v453_v36 = vld [vmem:[#allocation10 + $0xf8] sm:$0xff] }
 0x506   :  { %v4256_v37 = vpop.eup %4255 }
 0x507   :  { %v1577_v40 = vsel %vm1383_vm0, %v4256_v37, 0.0 }
 0x508   :  { %v4258_v41 = vpop.eup %4257  ;;  %1578 = vadd.xlane.f32.xlu1 %v1577_v40 }
 0x509   :  { %v1574_v44 = vsel %vm1383_vm0, %v4258_v41, 0.0 }
 0x50a   :  { %1575 = vadd.xlane.f32.xlu0 %v1574_v44 }
 0x591   :  { %v1579_v46 = vpop.xlane.xlu1 %1578 }
 0x592   :  { %4259 = vrcp.f32 %v1579_v46 }
 0x593   :  { %v1576_v47 = vpop.xlane.xlu0 %1575 }
 0x594   :  { %4261 = vrcp.f32 %v1576_v47 }
 0x59f   :  { %v4260_v50 = vpop.eup %4259 }
 0x5a0   :  { %v1583_v55 = vmul.f32 %v4260_v50, %v4256_v37  ;;  %v451_v50 = vld [vmem:[#allocation10 + $0xe8] sm:$0xff] }
 0x5a1   :  { %v4262_v52 = vpop.eup %4261 }
 0x5a2   :  { %v1582_v53 = vmul.f32 %v4262_v52, %v4258_v41  ;;  %v449_v52 = vld [vmem:[#allocation10 + $0xd8] sm:$0xff] }
 0x5a4   :  { %4094 = vmatprep.mubr.msk.f32.mxu1 %vm1383_vm0, %v1582_v53  ;;  %v448_v53 = vld [vmem:[#allocation10 + $0xd0] sm:$0xff] }
 0x5a5   :  { %4095 = vmatmul.mubr.msk.f32.vlgmr.msra.gmra.mxu1 %vm1383_vm0, %v1583_v55  ;;  %v447_v55 = vld [vmem:[#allocation10 + $0xc8] sm:$0xff] }
 0x5a6   :  { %4098 = vmatpush3.xpose.msra.mxu1 %v4861_v42  ;;  %4101 = vmatprep.mubr.f32.mxu1 %v4853_v34 }
 0x5a7   :  { %4099 = vmatprep.subr.mxu1 %v4847_v32 }
 0x5aa   :  { %4100 = vmatpush3.xpose.msra.mxu1 %v4847_v32 }
 0x5ab   :  { %4104 = vmatprep.subr.mxu1 %v1304_v57 }
 0x5ad   :  { %4102 = vmatmul.mubr.f32.vlgmr.msra.gmra.mxu1 %v4863_v43 }
 0x5ae   :  { %4105 = vmatpush3.msra.mxu1 %v1304_v57  ;;  %v445_v57 = vld [vmem:[#allocation10 + $0xb8] sm:$0xff] }
 0x5af   :  { %4106 = vmatprep.subr.mxu1 %v1298_v58 }
 0x5b0   :  { %4107 = vmatpush3.msra.mxu1 %v1298_v58  ;;  %v444_v58 = vld [vmem:[#allocation10 + $0xb0] sm:$0xff] }
 0x5b1   :  { %4111 = vmatprep.subr.mxu1 %v1217_v59 }
 0x665   :  { %v4915_v42 = vpop.f32.mrf.mxu1 }
 0x667   :  { %v4917_v34 = vpop.f32.mrf.mxu1 }
 0x66d   :  { %v4103_v60 = vpop.f32.mrf.mxu1 }
 0x66e   :  { %v1743_v61 = vsel %vm1383_vm0, %v4103_v60, -inf }
 0x66f   :  { %1744 = vmax.xlane.f32.xlu1 %v1743_v61  ;;  %v1731_v32 = vpop.f32.mrf.mxu1  ;;  %v441_v61 = vld [vmem:[#allocation10 + $0x98] sm:$0xff] }
 0x670   :  { %v1740_v48 = vsel %vm1383_vm0, %v1731_v32, -inf }
 0x671   :  { %1741 = vmax.xlane.f32.xlu0 %v1740_v48  ;;  %v438_v48 = vld [vmem:[#allocation10 + $0x80] sm:$0xff] }
 0x6f8   :  { %v1745_v43 = vpop.xlane.xlu1 %1744 }
 0x6f9   :  { %v1747_v62 = vsub.f32 %v4103_v60, %v1745_v43  ;;  %v442_v60 = vld [vmem:[#allocation10 + $0xa0] sm:$0xff]  ;;  %v437_v43 = vld [vmem:[#allocation10 + $0x78] sm:$0xff] }
 0x6fa   :  { %v1742_v63 = vpop.xlane.xlu0 %1741 }
 0x6fb   :  { %v1750_v0 = vmul.f32 1.442695, %v1747_v62  ;;  %v1746_v14 = vsub.f32 %v1731_v32, %v1742_v63  ;;  %v440_v32 = vld [vmem:[#allocation10 + $0x90] sm:$0xff]  ;;  %v435_v63 = vld [vmem:[#allocation10 + $0x68] sm:$0xff] }
 0x6fc   :  { %v436_v62 = vld [vmem:[#allocation10 + $0x70] sm:$0xff] }
 0x6fd   :  { %4263 = vpow2.f32 %v1750_v0  ;;  %v1748_v54 = vmul.f32 1.442695, %v1746_v14  ;;  %v434_v0 = vld [vmem:[#allocation10 + $0x60] sm:$0xff]  ;;  %v433_v14 = vld [vmem:[#allocation10 + $0x58] sm:$0xff] }
 0x6ff   :  { %4265 = vpow2.f32 %v1748_v54  ;;  %v432_v54 = vld [vmem:[#allocation10 + $0x50] sm:$0xff] }
 0x70a   :  { %v4264_v2 = vpop.eup %4263 }
 0x70b   :  { %v1755_v4 = vsel %vm1383_vm0, %v4264_v2, 0.0 }
 0x70c   :  { %v4266_v5 = vpop.eup %4265  ;;  %1756 = vadd.xlane.f32.xlu1 %v1755_v4  ;;  %v430_v4 = vld [vmem:[#allocation10 + $0x40] sm:$0xff] }
 0x70d   :  { %v1752_v6 = vsel %vm1383_vm0, %v4266_v5, 0.0 }
 0x70e   :  { %1753 = vadd.xlane.f32.xlu0 %v1752_v6  ;;  %v428_v6 = vld [vmem:[#allocation10 + $0x30] sm:$0xff] }
 0x795   :  { %v1757_v8 = vpop.xlane.xlu1 %1756 }
 0x796   :  { %4267 = vrcp.f32 %v1757_v8  ;;  %v427_v8 = vld [vmem:[#allocation10 + $0x28] sm:$0xff] }
 0x797   :  { %v1754_v9 = vpop.xlane.xlu0 %1753 }
 0x798   :  { %4269 = vrcp.f32 %v1754_v9  ;;  %v426_v9 = vld [vmem:[#allocation10 + $0x20] sm:$0xff] }
 0x7a3   :  { %v4268_v11 = vpop.eup %4267 }
 0x7a4   :  { %v1761_v16 = vmul.f32 %v4268_v11, %v4264_v2  ;;  %v431_v2 = vld [vmem:[#allocation10 + $0x48] sm:$0xff]  ;;  %v425_v11 = vld [vmem:[#allocation10 + $0x18] sm:$0xff] }
 0x7a5   :  { %v4270_v12 = vpop.eup %4269 }
 0x7a6   :  { %v1760_v7 = vmul.f32 %v4270_v12, %v4266_v5  ;;  %v429_v5 = vld [vmem:[#allocation10 + $0x38] sm:$0xff]  ;;  %v424_v12 = vld [vmem:[#allocation10 + $0x10] sm:$0xff] }
 0x7a8   :  { %4108 = vmatprep.mubr.msk.f32.mxu1 %vm1383_vm0, %v1760_v7  ;;  %v423_v7 = vld [vmem:[#allocation10 + $0x8] sm:$0xff] }
 0x7a9   :  { %4109 = vmatmul.mubr.msk.f32.vlgmr.msra.gmra.mxu1 %vm1383_vm0, %v1761_v16  ;;  %v422_v16 = vld [vmem:[#allocation10] sm:$0xff] }
 0x7aa   :  { %4112 = vmatpush3.xpose.msra.mxu1 %v1217_v59  ;;  %4115 = vmatprep.mubr.f32.mxu1 %v4859_v39  ;;  %v443_v59 = vld [vmem:[#allocation10 + $0xa8] sm:$0xff] }
 0x7ab   :  { %4113 = vmatprep.subr.mxu1 %v4856_v38 }
 0x7ae   :  { %4114 = vmatpush3.xpose.msra.mxu1 %v4856_v38 }
 0x7af   :  { %4118 = vmatprep.subr.mxu1 %v1306_v18 }
 0x7b1   :  { %4116 = vmatmul.mubr.f32.vlgmr.msra.gmra.mxu1 %v4866_v45 }
 0x7b2   :  { %4119 = vmatpush3.msra.mxu1 %v1306_v18  ;;  %v484_v18 = vld [vmem:[#allocation10 + $0x1f0] sm:$0xff] }
 0x7b3   :  { %4120 = vmatprep.subr.mxu1 %v1300_v19 }
 0x7b4   :  { %4121 = vmatpush3.msra.mxu1 %v1300_v19  ;;  %v483_v19 = vld [vmem:[#allocation10 + $0x1e8] sm:$0xff] }
 0x7b5   :  { %2032 = vmatprep.subr.mxu1 %v453_v36  ;;  %v468_v36 = vld [vmem:[#allocation10 + $0x170] sm:$0xff] }
 0x869   :  { %v4931_v23 = vpop.f32.mrf.mxu1 }
 0x86b   :  { %v4933_v13 = vpop.f32.mrf.mxu1 }
 0x871   :  { %v4117_v22 = vpop.f32.mrf.mxu1 }
 0x872   :  { %v1921_v39 = vsel %vm1383_vm0, %v4117_v22, -inf }
 0x873   :  { %1922 = vmax.xlane.f32.xlu1 %v1921_v39  ;;  %v1909_v25 = vpop.f32.mrf.mxu1  ;;  %v481_v39 = vld [vmem:[#allocation10 + $0x1d8] sm:$0xff] }
 0x874   :  { %v1918_v27 = vsel %vm1383_vm0, %v1909_v25, -inf }
 0x875   :  { %1919 = vmax.xlane.f32.xlu0 %v1918_v27  ;;  %v479_v27 = vld [vmem:[#allocation10 + $0x1c8] sm:$0xff] }
 0x8fc   :  { %v1923_v38 = vpop.xlane.xlu1 %1922 }
 0x8fd   :  { %v1925_v21 = vsub.f32 %v4117_v22, %v1923_v38  ;;  %v482_v22 = vld [vmem:[#allocation10 + $0x1e0] sm:$0xff] }
 0x8fe   :  { %v1920_v20 = vpop.xlane.xlu0 %1919  ;;  %v478_v38 = vld [vmem:[#allocation10 + $0x1c0] sm:$0xff] }
 0x8ff   :  { %v1928_v28 = vmul.f32 1.442695, %v1925_v21  ;;  %v1924_v45 = vsub.f32 %v1909_v25, %v1920_v20  ;;  %v480_v25 = vld [vmem:[#allocation10 + $0x1d0] sm:$0xff]  ;;  %v477_v21 = vld [vmem:[#allocation10 + $0x1b8] sm:$0xff] }
 0x900   :  { %v476_v20 = vld [vmem:[#allocation10 + $0x1b0] sm:$0xff] }
 0x901   :  { %4271 = vpow2.f32 %v1928_v28  ;;  %v1926_v29 = vmul.f32 1.442695, %v1924_v45  ;;  %v475_v28 = vld [vmem:[#allocation10 + $0x1a8] sm:$0xff]  ;;  %v474_v45 = vld [vmem:[#allocation10 + $0x1a0] sm:$0xff] }
 0x903   :  { %4273 = vpow2.f32 %v1926_v29  ;;  %v473_v29 = vld [vmem:[#allocation10 + $0x198] sm:$0xff] }
 0x90e   :  { %v4272_v30 = vpop.eup %4271 }
 0x90f   :  { %v1933_v31 = vsel %vm1383_vm0, %v4272_v30, 0.0 }
 0x910   :  { %v4274_v33 = vpop.eup %4273  ;;  %1934 = vadd.xlane.f32.xlu1 %v1933_v31  ;;  %v471_v31 = vld [vmem:[#allocation10 + $0x188] sm:$0xff] }
 0x911   :  { %v1930_v35 = vsel %vm1383_vm0, %v4274_v33, 0.0 }
 0x912   :  { %1931 = vadd.xlane.f32.xlu0 %v1930_v35  ;;  %v469_v35 = vld [vmem:[#allocation10 + $0x178] sm:$0xff] }
 0x999   :  { %v1935_v37 = vpop.xlane.xlu1 %1934 }
 0x99a   :  { %4275 = vrcp.f32 %v1935_v37  ;;  %v467_v37 = vld [vmem:[#allocation10 + $0x168] sm:$0xff] }
 0x99b   :  { %v1932_v40 = vpop.xlane.xlu0 %1931 }
 0x99c   :  { %4277 = vrcp.f32 %v1932_v40  ;;  %v466_v40 = vld [vmem:[#allocation10 + $0x160] sm:$0xff] }
 0x9a7   :  { %v4276_v41 = vpop.eup %4275 }
 0x9a8   :  { %v1939_v47 = vmul.f32 %v4276_v41, %v4272_v30  ;;  %v472_v30 = vld [vmem:[#allocation10 + $0x190] sm:$0xff]  ;;  %v465_v41 = vld [vmem:[#allocation10 + $0x158] sm:$0xff] }
 0x9a9   :  { %v4278_v44 = vpop.eup %4277 }
 0x9aa   :  { %v1938_v46 = vmul.f32 %v4278_v44, %v4274_v33  ;;  %v470_v33 = vld [vmem:[#allocation10 + $0x180] sm:$0xff]  ;;  %v464_v44 = vld [vmem:[#allocation10 + $0x150] sm:$0xff] }
 0x9ac   :  { %4122 = vmatprep.mubr.msk.f32.mxu1 %vm1383_vm0, %v1938_v46  ;;  %v463_v46 = vld [vmem:[#allocation10 + $0x148] sm:$0xff] }
 0x9ad   :  { %4123 = vmatmul.mubr.msk.f32.vlgmr.msra.gmra.mxu1 %vm1383_vm0, %v1939_v47  ;;  %v462_v47 = vld [vmem:[#allocation10 + $0x140] sm:$0xff] }
 0x9ae   :  { %2033 = vmatpush1.msra.mxu1 %v452_v49  ;;  %2096 = vmatprep.mubr.f32.mxu1 %v4917_v34  ;;  %v439_v34 = vld [vmem:[#allocation10 + $0x88] sm:$0xff]  ;;  %v461_v49 = vld [vmem:[#allocation10 + $0x138] sm:$0xff] }
 0x9af   :  { %2034 = vmatprep.subr.mxu1 %v451_v50  ;;  %v460_v50 = vld [vmem:[#allocation10 + $0x130] sm:$0xff] }
 0x9b0   :  { %2035 = vmatpush1.msra.mxu1 %v450_v51  ;;  %v459_v51 = vld [vmem:[#allocation10 + $0x128] sm:$0xff] }
 0x9b1   :  { %2036 = vmatprep.subr.mxu1 %v449_v52  ;;  %v458_v52 = vld [vmem:[#allocation10 + $0x120] sm:$0xff] }
 0x9b2   :  { %2037 = vmatpush1.msra.mxu1 %v448_v53  ;;  %v457_v53 = vld [vmem:[#allocation10 + $0x118] sm:$0xff] }
 0x9b3   :  { %2038 = vmatprep.subr.mxu1 %v447_v55  ;;  %v456_v55 = vld [vmem:[#allocation10 + $0x110] sm:$0xff] }
 0x9b4   :  { %2039 = vmatpush1.msra.mxu1 %v446_v56  ;;  %v455_v56 = vld [vmem:[#allocation10 + $0x108] sm:$0xff] }
 0x9b5   :  { %2040 = vmatprep.subr.mxu1 %v445_v57  ;;  %v454_v57 = vld [vmem:[#allocation10 + $0x100] sm:$0xff] }
 0x9b6   :  { %2041 = vmatpush1.msra.mxu1 %v444_v58  ;;  %v518_v58 = vld [vmem:[#allocation13 + $0xf8] sm:$0xff] }
 0x9b7   :  { %2042 = vmatprep.subr.mxu1 %v443_v59  ;;  %v613_v59 = vld [vmem:[#allocation14 + $0x1e8] sm:$0xff]  ;;  %2250 = vmatprep.subr.mxu0 %v518_v58 }
 0x9b8   :  { %2043 = vmatpush1.msra.mxu1 %v442_v60  ;;  %v517_v60 = vld [vmem:[#allocation13 + $0xf0] sm:$0xff]  ;;  %v569_v58 = vld [vmem:[#allocation14 + $0x88] sm:$0xff] }
 0x9b9   :  { %2044 = vmatprep.subr.mxu1 %v441_v61  ;;  %v612_v61 = vld [vmem:[#allocation14 + $0x1e0] sm:$0xff]  ;;  %2251 = vmatpush1.msra.mxu0 %v517_v60 }
 0x9ba   :  { %2045 = vmatpush1.msra.mxu1 %v440_v32  ;;  %v516_v32 = vld [vmem:[#allocation13 + $0xe8] sm:$0xff] }
 0x9bb   :  { %2046 = vmatprep.subr.mxu1 %v439_v34  ;;  %v609_v34 = vld [vmem:[#allocation14 + $0x1c8] sm:$0xff]  ;;  %2252 = vmatprep.subr.mxu0 %v516_v32  ;;  %v568_v32 = vld [vmem:[#allocation14 + $0x80] sm:$0xff] }
 0x9bc   :  { %2047 = vmatpush1.msra.mxu1 %v438_v48  ;;  %v515_v48 = vld [vmem:[#allocation13 + $0xe0] sm:$0xff] }
 0x9bd   :  { %2048 = vmatprep.subr.mxu1 %v437_v43  ;;  %v608_v43 = vld [vmem:[#allocation14 + $0x1c0] sm:$0xff]  ;;  %2253 = vmatpush1.msra.mxu0 %v515_v48 }
 0x9be   :  { %2049 = vmatpush1.msra.mxu1 %v436_v62  ;;  %v514_v62 = vld [vmem:[#allocation13 + $0xd8] sm:$0xff] }
 0x9bf   :  { %2050 = vmatprep.subr.mxu1 %v435_v63  ;;  %v513_v63 = vld [vmem:[#allocation13 + $0xd0] sm:$0xff]  ;;  %2254 = vmatprep.subr.mxu0 %v514_v62 }
 0x9c0   :  { %2051 = vmatpush1.msra.mxu1 %v434_v0  ;;  %v601_v0 = vld [vmem:[#allocation14 + $0x188] sm:$0xff]  ;;  %2255 = vmatpush1.msra.mxu0 %v513_v63  ;;  %v494_v63 = vld [vmem:[#allocation13 + $0x38] sm:$0xff] }
 0x9c1   :  { %2052 = vmatprep.subr.mxu1 %v433_v14  ;;  %v511_v14 = vld [vmem:[#allocation13 + $0xc0] sm:$0xff] }
 0x9c2   :  { %2053 = vmatpush1.msra.mxu1 %v432_v54  ;;  %v600_v54 = vld [vmem:[#allocation14 + $0x180] sm:$0xff] }
 0x9c3   :  { %2054 = vmatprep.subr.mxu1 %v431_v2  ;;  %v510_v2 = vld [vmem:[#allocation13 + $0xb8] sm:$0xff] }
 0x9c4   :  { %2055 = vmatpush1.msra.mxu1 %v430_v4  ;;  %v597_v4 = vld [vmem:[#allocation14 + $0x168] sm:$0xff] }
 0x9c5   :  { %2056 = vmatprep.subr.mxu1 %v429_v5  ;;  %v509_v5 = vld [vmem:[#allocation13 + $0xb0] sm:$0xff] }
 0x9c6   :  { %2057 = vmatpush1.msra.mxu1 %v428_v6  ;;  %v596_v6 = vld [vmem:[#allocation14 + $0x160] sm:$0xff] }
 0x9c7   :  { %2058 = vmatprep.subr.mxu1 %v427_v8  ;;  %v508_v8 = vld [vmem:[#allocation13 + $0xa8] sm:$0xff] }
 0x9c8   :  { %2059 = vmatpush1.msra.mxu1 %v426_v9  ;;  %v593_v9 = vld [vmem:[#allocation14 + $0x148] sm:$0xff] }
 0x9c9   :  { %2060 = vmatprep.subr.mxu1 %v425_v11  ;;  %v507_v11 = vld [vmem:[#allocation13 + $0xa0] sm:$0xff] }
 0x9ca   :  { %2061 = vmatpush1.msra.mxu1 %v424_v12  ;;  %v592_v12 = vld [vmem:[#allocation14 + $0x140] sm:$0xff] }
 0x9cb   :  { %2062 = vmatprep.subr.mxu1 %v423_v7  ;;  %v506_v7 = vld [vmem:[#allocation13 + $0x98] sm:$0xff] }
 0x9cc   :  { %2063 = vmatpush1.msra.mxu1 %v422_v16  ;;  %v589_v16 = vld [vmem:[#allocation14 + $0x128] sm:$0xff] }
 0x9cd   :  { %2064 = vmatprep.subr.mxu1 %v485_v17  ;;  %v505_v17 = vld [vmem:[#allocation13 + $0x90] sm:$0xff] }
 0x9ce   :  { %2065 = vmatpush2.msra.mxu1 %v484_v18  ;;  %v588_v18 = vld [vmem:[#allocation14 + $0x120] sm:$0xff] }
 0x9cf   :  { %2066 = vmatprep.subr.mxu1 %v483_v19  ;;  %v504_v19 = vld [vmem:[#allocation13 + $0x88] sm:$0xff] }
 0x9d0   :  { %2067 = vmatpush2.msra.mxu1 %v482_v22  ;;  %v585_v22 = vld [vmem:[#allocation14 + $0x108] sm:$0xff] }
 0x9d1   :  { %2068 = vmatprep.subr.mxu1 %v481_v39  ;;  %v503_v39 = vld [vmem:[#allocation13 + $0x80] sm:$0xff] }
 0x9d2   :  { %2069 = vmatpush2.msra.mxu1 %v480_v25  ;;  %v584_v25 = vld [vmem:[#allocation14 + $0x100] sm:$0xff] }
 0x9d3   :  { %2070 = vmatprep.subr.mxu1 %v479_v27  ;;  %v502_v27 = vld [vmem:[#allocation13 + $0x78] sm:$0xff] }
 0x9d4   :  { %2071 = vmatpush2.msra.mxu1 %v478_v38  ;;  %v581_v38 = vld [vmem:[#allocation14 + $0xe8] sm:$0xff] }
 0x9d5   :  { %2072 = vmatprep.subr.mxu1 %v477_v21  ;;  %v501_v21 = vld [vmem:[#allocation13 + $0x70] sm:$0xff] }
 0x9d6   :  { %2073 = vmatpush2.msra.mxu1 %v476_v20  ;;  %v580_v20 = vld [vmem:[#allocation14 + $0xe0] sm:$0xff] }
 0x9d7   :  { %2074 = vmatprep.subr.mxu1 %v475_v28  ;;  %v500_v28 = vld [vmem:[#allocation13 + $0x68] sm:$0xff] }
 0x9d8   :  { %2075 = vmatpush2.msra.mxu1 %v474_v45  ;;  %v577_v45 = vld [vmem:[#allocation14 + $0xc8] sm:$0xff] }
 0x9d9   :  { %2076 = vmatprep.subr.mxu1 %v473_v29  ;;  %v499_v29 = vld [vmem:[#allocation13 + $0x60] sm:$0xff] }
 0x9da   :  { %2077 = vmatpush2.msra.mxu1 %v472_v30  ;;  %v576_v30 = vld [vmem:[#allocation14 + $0xc0] sm:$0xff] }
 0x9db   :  { %2078 = vmatprep.subr.mxu1 %v471_v31  ;;  %v498_v31 = vld [vmem:[#allocation13 + $0x58] sm:$0xff] }
 0x9dc   :  { %2079 = vmatpush2.msra.mxu1 %v470_v33  ;;  %v573_v33 = vld [vmem:[#allocation14 + $0xa8] sm:$0xff] }
 0x9dd   :  { %2080 = vmatprep.subr.mxu1 %v469_v35 }
 0x9de   :  { %2081 = vmatpush2.msra.mxu1 %v468_v36 }
 0x9df   :  { %2082 = vmatprep.subr.mxu1 %v467_v37  ;;  %v486_v37 = vld [vmem:[#allocation11] sm:$0x3] }
 0x9e0   :  { %2083 = vmatpush2.msra.mxu1 %v466_v40  ;;  %v4948_v40 = vrot.slane %v486_v37, %v4819_v15 }
 0x9e1   :  { %2084 = vmatprep.subr.mxu1 %v465_v41  ;;  %v4951_v41 = vrot.slane %v486_v37, %v4843_v26  ;;  %v668_v37 = vld [vmem:[#allocation14 + $0x3a0] sm:$0xff] }
 0x9e2   :  { %2085 = vmatpush2.msra.mxu1 %v464_v44 }
 0x9e3   :  { %2086 = vmatprep.subr.mxu1 %v463_v46 }
 0x9e4   :  { %2087 = vmatpush2.msra.mxu1 %v462_v47 }
 0x9e5   :  { %2088 = vmatprep.subr.mxu1 %v461_v49  ;;  %v4335_v49 = vld [vmem:[#allocation2] sm:$0xff] }
 0x9e6   :  { %2089 = vmatpush2.msra.mxu1 %v460_v50 }
 0x9e7   :  { %2090 = vmatprep.subr.mxu1 %v459_v51 }
 0x9e8   :  { %2091 = vmatpush2.msra.mxu1 %v458_v52  ;;  %v497_v52 = vld [vmem:[#allocation13 + $0x50] sm:$0xff] }
 0x9e9   :  { %2092 = vmatprep.subr.mxu1 %v457_v53  ;;  %v572_v53 = vld [vmem:[#allocation14 + $0xa0] sm:$0xff] }
 0x9ea   :  { %2093 = vmatpush2.msra.mxu1 %v456_v55 }
 0x9eb   :  { %2094 = vmatprep.subr.mxu1 %v455_v56 }
 0x9ec   :  { %2095 = vmatpush2.msra.mxu1 %v454_v57  ;;  %v496_v57 = vld [vmem:[#allocation13 + $0x48] sm:$0xff] }
 0x9ed   :  { %2097 = vmatmul.mubr.f32.vlgmr.msra.gmra.mxu1 %v4898_v24  ;;  %2360 = vmatprep.subr.mxu1 %v613_v59  ;;  %v605_v24 = vld [vmem:[#allocation14 + $0x1a8] sm:$0xff] }
 0x9ee   :  { %2102 = vmatprep.mubr.f32.mxu1 %v4915_v42  ;;  %2361 = vmatpush1.msra.mxu1 %v612_v61  ;;  %v604_v42 = vld [vmem:[#allocation14 + $0x1a0] sm:$0xff] }
 0x9ef   :  { %2362 = vmatprep.subr.mxu1 %v609_v34  ;;  %v495_v61 = vld [vmem:[#allocation13 + $0x40] sm:$0xff]  ;;  %v4337_v34 = vld [vmem:[#allocation2 + $0x10] sm:$0xff] }
 0x9f0   :  { %2363 = vmatpush1.msra.mxu1 %v608_v43 }
 0x9f1   :  { %2103 = vmatmul.mubr.f32.gmra.mxu1 %v4896_v3  ;;  %v512_v3 = vld [vmem:[#allocation13 + $0xc8] sm:$0xff]  ;;  %2364 = vmatprep.subr.mxu1 %v605_v24 }
 0x9f2   :  { %2365 = vmatpush1.msra.mxu1 %v604_v42  ;;  %2256 = vmatprep.subr.mxu0 %v512_v3  ;;  %v565_v42 = vld [vmem:[#allocation14 + $0x68] sm:$0xff]  ;;  %v493_v3 = vld [vmem:[#allocation13 + $0x30] sm:$0xff] }
 0x9f3   :  { %2366 = vmatprep.subr.mxu1 %v601_v0  ;;  %2257 = vmatpush1.msra.mxu0 %v511_v14  ;;  %v564_v0 = vld [vmem:[#allocation14 + $0x60] sm:$0xff]  ;;  %v4338_v14 = vld [vmem:[#allocation2 + $0x18] sm:$0xff] }
 0x9f4   :  { %2367 = vmatpush1.msra.mxu1 %v600_v54  ;;  %2258 = vmatprep.subr.mxu0 %v510_v2 }
 0x9f5   :  { %2368 = vmatprep.subr.mxu1 %v597_v4  ;;  %2259 = vmatpush1.msra.mxu0 %v509_v5  ;;  %v492_v4 = vld [vmem:[#allocation13 + $0x28] sm:$0xff] }
 0x9f6   :  { %2369 = vmatpush1.msra.mxu1 %v596_v6  ;;  %2260 = vmatprep.subr.mxu0 %v508_v8  ;;  %v561_v5 = vld [vmem:[#allocation14 + $0x48] sm:$0xff]  ;;  %v491_v6 = vld [vmem:[#allocation13 + $0x20] sm:$0xff] }
 0x9f7   :  { %2370 = vmatprep.subr.mxu1 %v593_v9  ;;  %2261 = vmatpush1.msra.mxu0 %v507_v11  ;;  %v560_v8 = vld [vmem:[#allocation14 + $0x40] sm:$0xff] }
 0x9f8   :  { %2371 = vmatpush1.msra.mxu1 %v592_v12  ;;  %2262 = vmatprep.subr.mxu0 %v506_v7  ;;  %v490_v7 = vld [vmem:[#allocation13 + $0x18] sm:$0xff] }
 0x9f9   :  { %2372 = vmatprep.subr.mxu1 %v589_v16  ;;  %2263 = vmatpush1.msra.mxu0 %v505_v17  ;;  %v557_v16 = vld [vmem:[#allocation14 + $0x28] sm:$0xff]  ;;  %v489_v17 = vld [vmem:[#allocation13 + $0x10] sm:$0xff] }
 0x9fa   :  { %2373 = vmatpush1.msra.mxu1 %v588_v18  ;;  %2264 = vmatprep.subr.mxu0 %v504_v19  ;;  %v556_v19 = vld [vmem:[#allocation14 + $0x20] sm:$0xff] }
 0x9fb   :  { %2374 = vmatprep.subr.mxu1 %v585_v22  ;;  %2265 = vmatpush1.msra.mxu0 %v503_v39  ;;  %v488_v22 = vld [vmem:[#allocation13 + $0x8] sm:$0xff] }
 0x9fc   :  { %2375 = vmatpush1.msra.mxu1 %v584_v25  ;;  %2266 = vmatprep.subr.mxu0 %v502_v27  ;;  %v553_v39 = vld [vmem:[#allocation14 + $0x8] sm:$0xff]  ;;  %v487_v25 = vld [vmem:[#allocation13] sm:$0xff] }
 0x9fd   :  { %2376 = vmatprep.subr.mxu1 %v581_v38  ;;  %2267 = vmatpush1.msra.mxu0 %v501_v21  ;;  %v552_v27 = vld [vmem:[#allocation14] sm:$0xff]  ;;  %v550_v38 = vld [vmem:[#allocation13 + $0x1f8] sm:$0xff]  ;;  %v677_v21 = vld [vmem:[#allocation14 + $0x3e8] sm:$0xff] }
 0x9fe   :  { %2377 = vmatpush1.msra.mxu1 %v580_v20  ;;  %2268 = vmatprep.subr.mxu0 %v500_v28  ;;  %v549_v20 = vld [vmem:[#allocation13 + $0x1f0] sm:$0xff]  ;;  %v676_v28 = vld [vmem:[#allocation14 + $0x3e0] sm:$0xff] }
 0x9ff   :  { %2378 = vmatprep.subr.mxu1 %v577_v45  ;;  %2269 = vmatpush1.msra.mxu0 %v499_v29  ;;  %v548_v45 = vld [vmem:[#allocation13 + $0x1e8] sm:$0xff] }
 0xa00   :  { %2379 = vmatpush1.msra.mxu1 %v576_v30  ;;  %2270 = vmatprep.subr.mxu0 %v498_v31  ;;  %v673_v29 = vld [vmem:[#allocation14 + $0x3c8] sm:$0xff]  ;;  %v547_v30 = vld [vmem:[#allocation13 + $0x1e0] sm:$0xff] }
 0xa01   :  { %2380 = vmatprep.subr.mxu1 %v573_v33  ;;  %2271 = vmatpush1.msra.mxu0 %v497_v52  ;;  %v672_v31 = vld [vmem:[#allocation14 + $0x3c0] sm:$0xff]  ;;  %v546_v33 = vld [vmem:[#allocation13 + $0x1d8] sm:$0xff]  ;;  %v541_v52 = vld [vmem:[#allocation13 + $0x1b0] sm:$0xff] }
 0xa02   :  { %2381 = vmatpush1.msra.mxu1 %v572_v53  ;;  %2272 = vmatprep.subr.mxu0 %v496_v57  ;;  %v660_v53 = vld [vmem:[#allocation14 + $0x360] sm:$0xff] }
 0xa03   :  { %2382 = vmatprep.subr.mxu1 %v569_v58  ;;  %2273 = vmatpush1.msra.mxu0 %v495_v61  ;;  %v539_v57 = vld [vmem:[#allocation13 + $0x1a0] sm:$0xff]  ;;  %v537_v61 = vld [vmem:[#allocation13 + $0x190] sm:$0xff] }
 0xa04   :  { %2383 = vmatpush1.msra.mxu1 %v568_v32  ;;  %2274 = vmatprep.subr.mxu0 %v494_v63  ;;  %v656_v58 = vld [vmem:[#allocation14 + $0x340] sm:$0xff]  ;;  %v534_v63 = vld [vmem:[#allocation13 + $0x178] sm:$0xff] }
 0xa05   :  { %2384 = vmatprep.subr.mxu1 %v565_v42  ;;  %2275 = vmatpush1.msra.mxu0 %v493_v3  ;;  %v652_v32 = vld [vmem:[#allocation14 + $0x320] sm:$0xff]  ;;  %v645_v42 = vld [vmem:[#allocation14 + $0x2e8] sm:$0xff]  ;;  %v533_v3 = vld [vmem:[#allocation13 + $0x170] sm:$0xff] }
 0xa06   :  { %2385 = vmatpush1.msra.mxu1 %v564_v0  ;;  %2276 = vmatprep.subr.mxu0 %v492_v4  ;;  %v644_v0 = vld [vmem:[#allocation14 + $0x2e0] sm:$0xff] }
 0xa07   :  { %2386 = vmatprep.subr.mxu1 %v561_v5  ;;  %2277 = vmatpush1.msra.mxu0 %v491_v6  ;;  %v531_v4 = vld [vmem:[#allocation13 + $0x160] sm:$0xff]  ;;  %v530_v6 = vld [vmem:[#allocation13 + $0x158] sm:$0xff] }
 0xa08   :  { %2387 = vmatpush1.msra.mxu1 %v560_v8  ;;  %2278 = vmatprep.subr.mxu0 %v490_v7  ;;  %v640_v5 = vld [vmem:[#allocation14 + $0x2c0] sm:$0xff]  ;;  %v637_v8 = vld [vmem:[#allocation14 + $0x2a8] sm:$0xff] }
 0xa09   :  { %2388 = vmatprep.subr.mxu1 %v557_v16  ;;  %2279 = vmatpush1.msra.mxu0 %v489_v17  ;;  %v633_v7 = vld [vmem:[#allocation14 + $0x288] sm:$0xff]  ;;  %v527_v16 = vld [vmem:[#allocation13 + $0x140] sm:$0xff] }
 0xa0a   :  { %2389 = vmatpush1.msra.mxu1 %v556_v19  ;;  %2280 = vmatprep.subr.mxu0 %v488_v22  ;;  %v632_v17 = vld [vmem:[#allocation14 + $0x280] sm:$0xff]  ;;  %v629_v19 = vld [vmem:[#allocation14 + $0x268] sm:$0xff]  ;;  %v525_v22 = vld [vmem:[#allocation13 + $0x130] sm:$0xff] }
 0xa0b   :  { %2390 = vmatprep.subr.mxu1 %v553_v39  ;;  %2281 = vmatpush1.msra.mxu0 %v487_v25  ;;  %v628_v39 = vld [vmem:[#allocation14 + $0x260] sm:$0xff]  ;;  %v524_v25 = vld [vmem:[#allocation13 + $0x128] sm:$0xff] }
 0xa0c   :  { %2391 = vmatpush1.msra.mxu1 %v552_v27  ;;  %2282 = vmatprep.subr.mxu0 %v550_v38  ;;  %v625_v27 = vld [vmem:[#allocation14 + $0x248] sm:$0xff]  ;;  %v523_v38 = vld [vmem:[#allocation13 + $0x120] sm:$0xff] }
 0xa0d   :  { %2392 = vmatprep.subr.mxu1 %v677_v21  ;;  %2283 = vmatpush2.msra.mxu0 %v549_v20  ;;  %v624_v21 = vld [vmem:[#allocation14 + $0x240] sm:$0xff]  ;;  %v522_v20 = vld [vmem:[#allocation13 + $0x118] sm:$0xff] }
 0xa0e   :  { %2393 = vmatpush2.msra.mxu1 %v676_v28  ;;  %2284 = vmatprep.subr.mxu0 %v548_v45  ;;  %v621_v28 = vld [vmem:[#allocation14 + $0x228] sm:$0xff]  ;;  %v521_v45 = vld [vmem:[#allocation13 + $0x110] sm:$0xff] }
 0xa0f   :  { %2394 = vmatprep.subr.mxu1 %v673_v29  ;;  %2285 = vmatpush2.msra.mxu0 %v547_v30  ;;  %v620_v29 = vld [vmem:[#allocation14 + $0x220] sm:$0xff]  ;;  %v520_v30 = vld [vmem:[#allocation13 + $0x108] sm:$0xff] }
 0xa10   :  { %2395 = vmatpush2.msra.mxu1 %v672_v31  ;;  %2286 = vmatprep.subr.mxu0 %v546_v33  ;;  %v617_v31 = vld [vmem:[#allocation14 + $0x208] sm:$0xff]  ;;  %v519_v33 = vld [vmem:[#allocation13 + $0x100] sm:$0xff] }
 0xa6d   :  { %v4124_v35 = vpop.f32.mrf.mxu1 }
 0xa6f   :  { %v2012_v36 = vpop.f32.mrf.mxu1 }
 0xa70   :  { %2108 = vmatprep.mubr.f32.mxu1 %v2012_v36  ;;  %v545_v36 = vld [vmem:[#allocation13 + $0x1d0] sm:$0xff] }
 0xa71   :  { %2109 = vmatmul.mubr.f32.gmra.mxu1 %v4933_v13  ;;  %2287 = vmatpush2.msra.mxu0 %v545_v36  ;;  %v4977_v36 = vld [vmem:[#allocation5 + $0x8] sm:$0xff] }
 0xa72   :  { %2114 = vmatprep.mubr.f32.mxu1 %v4124_v35  ;;  %v669_v35 = vld [vmem:[#allocation14 + $0x3a8] sm:$0xff] }
 0xa73   :  { %2396 = vmatprep.subr.mxu1 %v669_v35  ;;  %v616_v35 = vld [vmem:[#allocation14 + $0x200] sm:$0xff] }
 0xa74   :  { %2397 = vmatpush2.msra.mxu1 %v668_v37  ;;  %v4979_v37 = vld [vmem:[#allocation5] sm:$0xff] }
 0xa75   :  { %2115 = vmatmul.mubr.f32.gmra.mxu1 %v4931_v23  ;;  %v4336_v23 = vld [vmem:[#allocation2 + $0x8] sm:$0xff] }
 0xa76   :  { %2424 = vmatprep.mubr.f32.mxu1 %v4977_v36 }
 0xaad   :  { %v2098_v44 = vpop.f32.mrf.mxu1 }
 0xaae   :  { %v2099_v46 = vadd.f32 %v2098_v44, %v4948_v40  ;;  %v544_v44 = vld [vmem:[#allocation13 + $0x1c8] sm:$0xff] }
 0xaaf   :  { %v2100_v47 = vpop.f32.mrf.mxu1  ;;  %2288 = vmatprep.subr.mxu0 %v544_v44 }
 0xab0   :  { %v4954_v50 = vadd.f32 %v4335_v49, %v2099_v46  ;;  %v2101_v51 = vadd.f32 %v2100_v47, %v4951_v41  ;;  %v665_v46 = vld [vmem:[#allocation14 + $0x388] sm:$0xff]  ;;  %v543_v47 = vld [vmem:[#allocation13 + $0x1c0] sm:$0xff] }
 0xab1   :  { %v2104_v13 = vpop.f32.mrf.mxu1  ;;  %v664_v49 = vld [vmem:[#allocation14 + $0x380] sm:$0xff]  ;;  %2398 = vmatprep.subr.mxu1 %v665_v46  ;;  %2289 = vmatpush2.msra.mxu0 %v543_v47 }
 0xab2   :  { %v4957_v55 = vadd.f32 %v4336_v23, %v2101_v51  ;;  %v2105_v56 = vadd.f32 %v2104_v13, %v4948_v40  ;;  %v2145_v60 = vmul.f32 %v4954_v50, %v4954_v50  ;;  %v542_v51 = vld [vmem:[#allocation13 + $0x1b8] sm:$0xff]  ;;  %v661_v13 = vld [vmem:[#allocation14 + $0x368] sm:$0xff]  ;;  %2399 = vmatpush2.msra.mxu1 %v664_v49 }
 0xab3   :  { %v2106_v59 = vpop.f32.mrf.mxu1  ;;  %2290 = vmatprep.subr.mxu0 %v542_v51  ;;  %v540_v23 = vld [vmem:[#allocation13 + $0x1a8] sm:$0xff]  ;;  %2400 = vmatprep.subr.mxu1 %v661_v13  ;;  %v4339_v49 = vld [vmem:[#allocation2 + $0x20] sm:$0xff] }
 0xab4   :  { %v4962_v48 = vadd.f32 %v4337_v34, %v2105_v56  ;;  %v2107_v43 = vadd.f32 %v2106_v59, %v4951_v41  ;;  %v2129_v62 = vadd.f32 %v4957_v55, %v4954_v50  ;;  %v2146_v24 = vmul.f32 %v4957_v55, %v4957_v55  ;;  %v657_v56 = vld [vmem:[#allocation14 + $0x348] sm:$0xff]  ;;  %2291 = vmatpush2.msra.mxu0 %v541_v52  ;;  %v538_v59 = vld [vmem:[#allocation13 + $0x198] sm:$0xff] }
 0xab5   :  { %2401 = vmatpush2.msra.mxu1 %v660_v53  ;;  %2292 = vmatprep.subr.mxu0 %v540_v23  ;;  %v536_v34 = vld [vmem:[#allocation13 + $0x188] sm:$0xff]  ;;  %v4340_v53 = vld [vmem:[#allocation2 + $0x28] sm:$0xff] }
 0xab6   :  { %v4969_v54 = vadd.f32 %v4338_v14, %v2107_v43  ;;  %2130 = vadd.xlane.f32.xlu0 %v2129_v62  ;;  %v2153_v2 = vadd.f32 %v2146_v24, %v2145_v60  ;;  %v2147_v11 = vmul.f32 %v4962_v48, %v4962_v48  ;;  %v653_v60 = vld [vmem:[#allocation14 + $0x328] sm:$0xff]  ;;  %2402 = vmatprep.subr.mxu1 %v657_v56  ;;  %v535_v62 = vld [vmem:[#allocation13 + $0x180] sm:$0xff] }
 0xab7   :  { %2293 = vmatpush2.msra.mxu0 %v539_v57  ;;  %2403 = vmatpush2.msra.mxu1 %v656_v58  ;;  %v649_v43 = vld [vmem:[#allocation14 + $0x308] sm:$0xff]  ;;  %v648_v24 = vld [vmem:[#allocation14 + $0x300] sm:$0xff] }
 0xab8   :  { %2154 = vadd.xlane.f32.xlu1 %v2153_v2  ;;  %v2132_v9 = vadd.f32 %v4969_v54, %v4962_v48  ;;  %v2148_v12 = vmul.f32 %v4969_v54, %v4969_v54  ;;  %2294 = vmatprep.subr.mxu0 %v538_v59  ;;  %v532_v14 = vld [vmem:[#allocation13 + $0x168] sm:$0xff] }
 0xab9   :  { %2404 = vmatprep.subr.mxu1 %v653_v60  ;;  %2295 = vmatpush2.msra.mxu0 %v537_v61  ;;  %v641_v2 = vld [vmem:[#allocation14 + $0x2c8] sm:$0xff] }
 0xaba   :  { %2133 = vadd.xlane.f32.xlu0 %v2132_v9  ;;  %v2156_v18 = vadd.f32 %v2148_v12, %v2147_v11  ;;  %2405 = vmatpush2.msra.mxu1 %v652_v32  ;;  %v529_v9 = vld [vmem:[#allocation13 + $0x150] sm:$0xff]  ;;  %v636_v11 = vld [vmem:[#allocation14 + $0x2a0] sm:$0xff]  ;;  %v528_v12 = vld [vmem:[#allocation13 + $0x148] sm:$0xff] }
 0xabb   :  { %2296 = vmatprep.subr.mxu0 %v536_v34  ;;  %2406 = vmatprep.subr.mxu1 %v649_v43  ;;  %v4341_v59 = vld [vmem:[#allocation2 + $0x30] sm:$0xff]  ;;  %v4342_v43 = vld [vmem:[#allocation2 + $0x38] sm:$0xff] }
 0xabc   :  { %2157 = vadd.xlane.f32.xlu1 %v2156_v18  ;;  %2297 = vmatpush2.msra.mxu0 %v535_v62  ;;  %v526_v18 = vld [vmem:[#allocation13 + $0x138] sm:$0xff] }
 0xabd   :  { %2407 = vmatpush2.msra.mxu1 %v648_v24  ;;  %2298 = vmatprep.subr.mxu0 %v534_v63 }
 0xabe   :  { %2408 = vmatprep.subr.mxu1 %v645_v42  ;;  %2299 = vmatpush2.msra.mxu0 %v533_v3 }
 0xabf   :  { %2409 = vmatpush2.msra.mxu1 %v644_v0  ;;  %2300 = vmatprep.subr.mxu0 %v532_v14 }
 0xac0   :  { %2410 = vmatprep.subr.mxu1 %v641_v2  ;;  %2301 = vmatpush2.msra.mxu0 %v531_v4 }
 0xac1   :  { %2411 = vmatpush2.msra.mxu1 %v640_v5  ;;  %2302 = vmatprep.subr.mxu0 %v530_v6 }
 0xac2   :  { %2412 = vmatprep.subr.mxu1 %v637_v8  ;;  %2303 = vmatpush2.msra.mxu0 %v529_v9 }
 0xac3   :  { %2413 = vmatpush2.msra.mxu1 %v636_v11  ;;  %2304 = vmatprep.subr.mxu0 %v528_v12 }
 0xac4   :  { %2414 = vmatprep.subr.mxu1 %v633_v7  ;;  %2305 = vmatpush2.msra.mxu0 %v527_v16 }
 0xac5   :  { %2415 = vmatpush2.msra.mxu1 %v632_v17  ;;  %2306 = vmatprep.subr.mxu0 %v526_v18  ;;  %v746_v18 = vld [vmem:[%s5676_s12] sm:$0x3] }
 0xac6   :  { %2416 = vmatprep.subr.mxu1 %v629_v19  ;;  %2307 = vmatpush2.msra.mxu0 %v525_v22  ;;  %v615_v19 = vld [vmem:[#allocation14 + $0x1f8] sm:$0xff] }
 0xac7   :  { %2417 = vmatpush2.msra.mxu1 %v628_v39  ;;  %2308 = vmatprep.subr.mxu0 %v524_v25  ;;  %v747_v22 = vld [vmem:[%s5677_s13] sm:$0x3] }
 0xac8   :  { %2418 = vmatprep.subr.mxu1 %v625_v27  ;;  %2309 = vmatpush2.msra.mxu0 %v523_v38  ;;  %v5016_v27 = vrot.slane %v746_v18, %v4819_v15  ;;  %v5019_v38 = vrot.slane %v746_v18, %v4843_v26  ;;  %v559_v18 = vld [vmem:[#allocation14 + $0x38] sm:$0xff] }
 0xac9   :  { %2419 = vmatpush2.msra.mxu1 %v624_v21  ;;  %2310 = vmatprep.subr.mxu0 %v522_v20 }
 0xaca   :  { %2420 = vmatprep.subr.mxu1 %v621_v28  ;;  %2311 = vmatpush2.msra.mxu0 %v521_v45  ;;  %v5022_v28 = vrot.slane %v747_v22, %v4819_v15  ;;  %v5025_v45 = vrot.slane %v747_v22, %v4843_v26  ;;  %v555_v22 = vld [vmem:[#allocation14 + $0x18] sm:$0xff] }
 0xacb   :  { %2421 = vmatpush2.msra.mxu1 %v620_v29  ;;  %2312 = vmatprep.subr.mxu0 %v520_v30 }
 0xacc   :  { %2422 = vmatprep.subr.mxu1 %v617_v31  ;;  %2313 = vmatpush2.msra.mxu0 %v519_v33 }
 0xacd   :  { %2423 = vmatpush2.msra.mxu1 %v616_v35  ;;  %2437 = vmatprep.subr.mxu0 %v615_v19  ;;  %v558_v19 = vld [vmem:[#allocation14 + $0x30] sm:$0xff] }
 0xace   :  { %2425 = vmatmul.mubr.f32.vlgmr.msra.gmra.mxu1 %v4979_v37 }
 0xb31   :  { %v2110_v44 = vpop.f32.mrf.mxu1 }
 0xb32   :  { %v2111_v46 = vadd.f32 %v2110_v44, %v4948_v40 }
 0xb33   :  { %v2112_v47 = vpop.f32.mrf.mxu1 }
 0xb34   :  { %v4984_v51 = vadd.f32 %v4339_v49, %v2111_v46  ;;  %v2113_v13 = vadd.f32 %v2112_v47, %v4951_v41  ;;  %v614_v49 = vld [vmem:[#allocation14 + $0x1f0] sm:$0xff] }
 0xb35   :  { %v2116_v52 = vpop.f32.mrf.mxu1 }
 0xb36   :  { %v4987_v23 = vadd.f32 %v4340_v53, %v2113_v13  ;;  %v2117_v56 = vadd.f32 %v2116_v52, %v4948_v40  ;;  %v2149_v58 = vmul.f32 %v4984_v51, %v4984_v51  ;;  %v611_v13 = vld [vmem:[#allocation14 + $0x1d8] sm:$0xff] }
 0xb37   :  { %v2118_v57 = vpop.f32.mrf.mxu1 }
 0xb38   :  { %v4992_v60 = vadd.f32 %v4341_v59, %v2117_v56  ;;  %v2119_v61 = vadd.f32 %v2118_v57, %v4951_v41  ;;  %v2135_v32 = vadd.f32 %v4987_v23, %v4984_v51  ;;  %v2150_v34 = vmul.f32 %v4987_v23, %v4987_v23  ;;  %v5047_v57 = vld [vmem:[#allocation5 + $0x18] sm:$0xff]  ;;  %v5050_v59 = vld [vmem:[#allocation5 + $0x10] sm:$0xff] }
 0xb39   :  { %2430 = vmatprep.mubr.f32.mxu1 %v5047_v57 }
 0xb3a   :  { %v4999_v62 = vadd.f32 %v4342_v43, %v2119_v61  ;;  %2136 = vadd.xlane.f32.xlu0 %v2135_v32  ;;  %v2159_v40 = vadd.f32 %v2150_v34, %v2149_v58  ;;  %v2151_v63 = vmul.f32 %v4992_v60, %v4992_v60  ;;  %v607_v58 = vld [vmem:[#allocation14 + $0x1b8] sm:$0xff]  ;;  %v606_v61 = vld [vmem:[#allocation14 + $0x1b0] sm:$0xff]  ;;  %2431 = vmatmul.mubr.f32.gmra.mxu1 %v5050_v59 }
 0xb3b   :  { %v603_v32 = vld [vmem:[#allocation14 + $0x198] sm:$0xff]  ;;  %v602_v34 = vld [vmem:[#allocation14 + $0x190] sm:$0xff] }
 0xb3c   :  { %2160 = vadd.xlane.f32.xlu1 %v2159_v40  ;;  %v2138_v24 = vadd.f32 %v4999_v62, %v4992_v60  ;;  %v2152_v41 = vmul.f32 %v4999_v62, %v4999_v62  ;;  %v599_v43 = vld [vmem:[#allocation14 + $0x178] sm:$0xff]  ;;  %v598_v40 = vld [vmem:[#allocation14 + $0x170] sm:$0xff] }
 0xb3e   :  { %2139 = vadd.xlane.f32.xlu0 %v2138_v24  ;;  %v2162_v42 = vadd.f32 %v2152_v41, %v2151_v63  ;;  %v595_v24 = vld [vmem:[#allocation14 + $0x158] sm:$0xff]  ;;  %v594_v63 = vld [vmem:[#allocation14 + $0x150] sm:$0xff] }
 0xb3f   :  { %v2131_v3 = vpop.xlane.xlu0 %2130  ;;  %v591_v41 = vld [vmem:[#allocation14 + $0x138] sm:$0xff] }
 0xb40   :  { %v2141_v0 = vmul.f32 0.00390625, %v2131_v3  ;;  %2163 = vadd.xlane.f32.xlu1 %v2162_v42  ;;  %v590_v42 = vld [vmem:[#allocation14 + $0x130] sm:$0xff]  ;;  %v587_v3 = vld [vmem:[#allocation14 + $0x118] sm:$0xff] }
 0xb41   :  { %v2155_v14 = vpop.xlane.xlu1 %2154 }
 0xb42   :  { %v2165_v2 = vmul.f32 0.00390625, %v2155_v14  ;;  %v2169_v4 = vmul.f32 %v2141_v0, %v2141_v0  ;;  %v2177_v39 = vsub.f32 %v4954_v50, %v2141_v0  ;;  %v2178_v25 = vsub.f32 %v4957_v55, %v2141_v0  ;;  %v586_v0 = vld [vmem:[#allocation14 + $0x110] sm:$0xff]  ;;  %v583_v14 = vld [vmem:[#allocation14 + $0xf8] sm:$0xff] }
 0xb43   :  { %v2134_v5 = vpop.xlane.xlu0 %2133 }
 0xb44   :  { %v2173_v6 = vsub.f32 %v2165_v2, %v2169_v4  ;;  %v2142_v8 = vmul.f32 0.00390625, %v2134_v5  ;;  %v582_v2 = vld [vmem:[#allocation14 + $0xf0] sm:$0xff]  ;;  %v579_v4 = vld [vmem:[#allocation14 + $0xd8] sm:$0xff] }
 0xb45   :  { %v2158_v9 = vpop.xlane.xlu1 %2157  ;;  %v578_v5 = vld [vmem:[#allocation14 + $0xd0] sm:$0xff] }
 0xb46   :  { %v2185_v11 = vadd.f32 1e-05, %v2173_v6  ;;  %v2166_v12 = vmul.f32 0.00390625, %v2158_v9  ;;  %v2170_v7 = vmul.f32 %v2142_v8, %v2142_v8  ;;  %v2179_v55 = vsub.f32 %v4962_v48, %v2142_v8  ;;  %v575_v6 = vld [vmem:[#allocation14 + $0xb8] sm:$0xff] }
 0xb47   :  { %v2180_v31 = vsub.f32 %v4969_v54, %v2142_v8  ;;  %v610_v54 = vld [vmem:[#allocation14 + $0x1d0] sm:$0xff]  ;;  %v571_v9 = vld [vmem:[#allocation14 + $0x98] sm:$0xff] }
 0xb48   :  { %4279 = vrsqrt.f32 %v2185_v11  ;;  %v2174_v16 = vsub.f32 %v2166_v12, %v2170_v7  ;;  %v574_v8 = vld [vmem:[#allocation14 + $0xb0] sm:$0xff]  ;;  %v567_v12 = vld [vmem:[#allocation14 + $0x78] sm:$0xff] }
 0xb49   :  { %v570_v11 = vld [vmem:[#allocation14 + $0x90] sm:$0xff] }
 0xb4a   :  { %v2186_v17 = vadd.f32 1e-05, %v2174_v16  ;;  %v566_v7 = vld [vmem:[#allocation14 + $0x70] sm:$0xff]  ;;  %v563_v16 = vld [vmem:[#allocation14 + $0x58] sm:$0xff] }
 0xb4c   :  { %4281 = vrsqrt.f32 %v2186_v17  ;;  %v562_v17 = vld [vmem:[#allocation14 + $0x50] sm:$0xff] }
 0xb55   :  { %v4280_v21 = vpop.eup %4279 }
 0xb56   :  { %v2194_v20 = vmul.f32 %v4280_v21, %v2178_v25  ;;  %v2193_v29 = vmul.f32 %v4280_v21, %v2177_v39  ;;  %v554_v39 = vld [vmem:[#allocation14 + $0x10] sm:$0xff]  ;;  %v679_v25 = vld [vmem:[#allocation14 + $0x3f8] sm:$0xff] }
 0xb57   :  { %v678_v21 = vld [vmem:[#allocation14 + $0x3f0] sm:$0xff] }
 0xb58   :  { %v2213_v30 = vmul.f32 %v5019_v38, %v2194_v20  ;;  %v2212_v50 = vmul.f32 %v5016_v27, %v2193_v29  ;;  %v675_v20 = vld [vmem:[#allocation14 + $0x3d8] sm:$0xff]  ;;  %v674_v29 = vld [vmem:[#allocation14 + $0x3d0] sm:$0xff] }
 0xb59   :  { %v4282_v33 = vpop.eup %4281 }
 0xb5a   :  { %v5032_v35 = vadd.f32 %v5025_v45, %v2213_v30  ;;  %v5035_v44 = vadd.f32 %v5022_v28, %v2212_v50  ;;  %v2196_v46 = vmul.f32 %v4282_v33, %v2180_v31  ;;  %v2195_v47 = vmul.f32 %v4282_v33, %v2179_v55  ;;  %v671_v30 = vld [vmem:[#allocation14 + $0x3b8] sm:$0xff]  ;;  %v670_v50 = vld [vmem:[#allocation14 + $0x3b0] sm:$0xff] }
 0xb5b   :  { %v667_v55 = vld [vmem:[#allocation14 + $0x398] sm:$0xff]  ;;  %v666_v31 = vld [vmem:[#allocation14 + $0x390] sm:$0xff] }
 0xb5c   :  { %2314 = vmatprep.mubr.f32.mxu0 %v5032_v35  ;;  %v2215_v52 = vmul.f32 %v5019_v38, %v2196_v46  ;;  %v2214_v48 = vmul.f32 %v5016_v27, %v2195_v47  ;;  %v663_v33 = vld [vmem:[#allocation14 + $0x378] sm:$0xff]  ;;  %v662_v46 = vld [vmem:[#allocation14 + $0x370] sm:$0xff] }
 0xb5d   :  { %2315 = vmatmul.mubr.f32.vlgmr.msra.gmra.mxu0 %v5035_v44  ;;  %v659_v47 = vld [vmem:[#allocation14 + $0x358] sm:$0xff] }
 0xb5e   :  { %2438 = vmatpush1.msra.mxu0 %v614_v49  ;;  %v5042_v53 = vadd.f32 %v5025_v45, %v2215_v52  ;;  %v5045_v56 = vadd.f32 %v5022_v28, %v2214_v48  ;;  %v658_v49 = vld [vmem:[#allocation14 + $0x350] sm:$0xff]  ;;  %v651_v48 = vld [vmem:[#allocation14 + $0x318] sm:$0xff] }
 0xb5f   :  { %2439 = vmatprep.subr.mxu0 %v611_v13  ;;  %v655_v13 = vld [vmem:[#allocation14 + $0x338] sm:$0xff]  ;;  %v654_v52 = vld [vmem:[#allocation14 + $0x330] sm:$0xff] }
 0xb60   :  { %2440 = vmatpush1.msra.mxu0 %v610_v54  ;;  %2320 = vmatprep.mubr.f32.mxu0 %v5042_v53  ;;  %v650_v54 = vld [vmem:[#allocation14 + $0x310] sm:$0xff] }
 0xb61   :  { %2441 = vmatprep.subr.mxu0 %v607_v58  ;;  %2321 = vmatmul.mubr.f32.gmra.mxu0 %v5045_v56  ;;  %v647_v58 = vld [vmem:[#allocation14 + $0x2f8] sm:$0xff] }
 0xb62   :  { %2442 = vmatpush1.msra.mxu0 %v606_v61  ;;  %v646_v61 = vld [vmem:[#allocation14 + $0x2f0] sm:$0xff] }
 0xb63   :  { %2443 = vmatprep.subr.mxu0 %v603_v32  ;;  %v643_v32 = vld [vmem:[#allocation14 + $0x2d8] sm:$0xff] }
 0xb64   :  { %2444 = vmatpush1.msra.mxu0 %v602_v34  ;;  %v642_v34 = vld [vmem:[#allocation14 + $0x2d0] sm:$0xff] }
 0xb65   :  { %2445 = vmatprep.subr.mxu0 %v599_v43  ;;  %v639_v43 = vld [vmem:[#allocation14 + $0x2b8] sm:$0xff] }
 0xb66   :  { %2446 = vmatpush1.msra.mxu0 %v598_v40  ;;  %v638_v40 = vld [vmem:[#allocation14 + $0x2b0] sm:$0xff] }
 0xb67   :  { %2447 = vmatprep.subr.mxu0 %v595_v24  ;;  %v635_v24 = vld [vmem:[#allocation14 + $0x298] sm:$0xff] }
 0xb68   :  { %2448 = vmatpush1.msra.mxu0 %v594_v63  ;;  %v634_v63 = vld [vmem:[#allocation14 + $0x290] sm:$0xff] }
 0xb69   :  { %2449 = vmatprep.subr.mxu0 %v591_v41  ;;  %v631_v41 = vld [vmem:[#allocation14 + $0x278] sm:$0xff] }
 0xb6a   :  { %2450 = vmatpush1.msra.mxu0 %v590_v42  ;;  %v630_v42 = vld [vmem:[#allocation14 + $0x270] sm:$0xff] }
 0xb6b   :  { %2451 = vmatprep.subr.mxu0 %v587_v3  ;;  %v627_v3 = vld [vmem:[#allocation14 + $0x258] sm:$0xff] }
 0xb6c   :  { %2452 = vmatpush1.msra.mxu0 %v586_v0  ;;  %v626_v0 = vld [vmem:[#allocation14 + $0x250] sm:$0xff] }
 0xb6d   :  { %2453 = vmatprep.subr.mxu0 %v583_v14  ;;  %v623_v14 = vld [vmem:[#allocation14 + $0x238] sm:$0xff] }
 0xb6e   :  { %2454 = vmatpush1.msra.mxu0 %v582_v2  ;;  %v622_v2 = vld [vmem:[#allocation14 + $0x230] sm:$0xff] }
 0xb6f   :  { %2455 = vmatprep.subr.mxu0 %v579_v4  ;;  %v619_v4 = vld [vmem:[#allocation14 + $0x218] sm:$0xff] }
 0xb70   :  { %2456 = vmatpush1.msra.mxu0 %v578_v5  ;;  %v618_v5 = vld [vmem:[#allocation14 + $0x210] sm:$0xff] }
 0xb71   :  { %2457 = vmatprep.subr.mxu0 %v575_v6  ;;  %v5058_v6 = vld [vmem:[%s5673_s9] sm:$0xf] }
 0xb72   :  { %2458 = vmatpush1.msra.mxu0 %v574_v8  ;;  %v5062_v8 = vrot.slane %v5058_v6, %v4819_v15 }
 0xb73   :  { %2459 = vmatprep.subr.mxu0 %v571_v9  ;;  %v5066_v9 = vrot.slane %v5058_v6, %v4843_v26 }
 0xb74   :  { %2460 = vmatpush1.msra.mxu0 %v570_v11 }
 0xb75   :  { %2461 = vmatprep.subr.mxu0 %v567_v12 }
 0xb76   :  { %2462 = vmatpush1.msra.mxu0 %v566_v7 }
 0xb77   :  { %2463 = vmatprep.subr.mxu0 %v563_v16 }
 0xb78   :  { %2464 = vmatpush1.msra.mxu0 %v562_v17 }
 0xb79   :  { %2465 = vmatprep.subr.mxu0 %v559_v18 }
 0xb7a   :  { %2466 = vmatpush1.msra.mxu0 %v558_v19 }
 0xb7b   :  { %2467 = vmatprep.subr.mxu0 %v555_v22 }
 0xb7c   :  { %2468 = vmatpush1.msra.mxu0 %v554_v39 }
 0xb7d   :  { %2469 = vmatprep.subr.mxu0 %v679_v25 }
 0xb7e   :  { %2470 = vmatpush2.msra.mxu0 %v678_v21 }
 0xb7f   :  { %2471 = vmatprep.subr.mxu0 %v675_v20 }
 0xb80   :  { %2472 = vmatpush2.msra.mxu0 %v674_v29 }
 0xb81   :  { %2473 = vmatprep.subr.mxu0 %v671_v30 }
 0xb82   :  { %2474 = vmatpush2.msra.mxu0 %v670_v50 }
 0xb83   :  { %2475 = vmatprep.subr.mxu0 %v667_v55 }
 0xb84   :  { %2476 = vmatpush2.msra.mxu0 %v666_v31 }
 0xb85   :  { %2477 = vmatprep.subr.mxu0 %v663_v33 }
 0xb86   :  { %2478 = vmatpush2.msra.mxu0 %v662_v46 }
 0xb87   :  { %2479 = vmatprep.subr.mxu0 %v659_v47 }
 0xb88   :  { %2480 = vmatpush2.msra.mxu0 %v658_v49 }
 0xb89   :  { %2481 = vmatprep.subr.mxu0 %v655_v13 }
 0xb8a   :  { %2482 = vmatpush2.msra.mxu0 %v654_v52 }
 0xb8b   :  { %2483 = vmatprep.subr.mxu0 %v651_v48 }
 0xb8c   :  { %2484 = vmatpush2.msra.mxu0 %v650_v54 }
 0xb8d   :  { %2485 = vmatprep.subr.mxu0 %v647_v58 }
 0xb8e   :  { %2486 = vmatpush2.msra.mxu0 %v646_v61  ;;  %v2426_v11 = vpop.f32.mrf.mxu1 }
 0xb8f   :  { %2487 = vmatprep.subr.mxu0 %v643_v32  ;;  %v2427_v12 = vadd.f32 %v2426_v11, %v5062_v8 }
 0xb90   :  { %2488 = vmatpush2.msra.mxu0 %v642_v34  ;;  %v2428_v7 = vpop.f32.mrf.mxu1 }
 0xb91   :  { %2489 = vmatprep.subr.mxu0 %v639_v43  ;;  %v2429_v16 = vadd.f32 %v2428_v7, %v5066_v9  ;;  %4125 = vmatprep.subr.mxu1 %v2427_v12 }
 0xb92   :  { %2490 = vmatpush2.msra.mxu0 %v638_v40  ;;  %4126 = vmatpush3.xpose.msra.mxu1 %v2427_v12 }
 0xb93   :  { %2491 = vmatprep.subr.mxu0 %v635_v24 }
 0xb94   :  { %2492 = vmatpush2.msra.mxu0 %v634_v63 }
 0xb95   :  { %2493 = vmatprep.subr.mxu0 %v631_v41 }
 0xb96   :  { %2494 = vmatpush2.msra.mxu0 %v630_v42 }
 0xb97   :  { %2495 = vmatprep.subr.mxu0 %v627_v3 }
 0xb98   :  { %2496 = vmatpush2.msra.mxu0 %v626_v0 }
 0xb99   :  { %2497 = vmatprep.subr.mxu0 %v623_v14 }
 0xb9a   :  { %2498 = vmatpush2.msra.mxu0 %v622_v2 }
 0xb9b   :  { %2499 = vmatprep.subr.mxu0 %v619_v4 }
 0xb9c   :  { %2500 = vmatpush2.msra.mxu0 %v618_v5 }
 0xb9d   :  { %4135 = vmatprep.subr.mxu0 %v2429_v16 }
 0xbc3   :  { %v2137_v17 = vpop.xlane.xlu0 %2136 }
 0xbc4   :  { %v2143_v18 = vmul.f32 0.00390625, %v2137_v17 }
 0xbc5   :  { %v2161_v19 = vpop.xlane.xlu1 %2160 }
 0xbc6   :  { %v2167_v22 = vmul.f32 0.00390625, %v2161_v19  ;;  %v2171_v39 = vmul.f32 %v2143_v18, %v2143_v18  ;;  %v2181_v46 = vsub.f32 %v4984_v51, %v2143_v18  ;;  %v2182_v47 = vsub.f32 %v4987_v23, %v2143_v18 }
 0xbc7   :  { %v2140_v25 = vpop.xlane.xlu0 %2139  ;;  %v2355_v18 = vrot.slane %v5058_v6, %v4822_v1 }
 0xbc8   :  { %v2175_v21 = vsub.f32 %v2167_v22, %v2171_v39  ;;  %v2144_v20 = vmul.f32 0.00390625, %v2140_v25 }
 0xbc9   :  { %v2164_v29 = vpop.xlane.xlu1 %2163 }
 0xbca   :  { %v2187_v30 = vadd.f32 1e-05, %v2175_v21  ;;  %v2168_v50 = vmul.f32 0.00390625, %v2164_v29  ;;  %v2172_v55 = vmul.f32 %v2144_v20, %v2144_v20  ;;  %v2183_v58 = vsub.f32 %v4992_v60, %v2144_v20 }
 0xbcb   :  { %v2184_v61 = vsub.f32 %v4999_v62, %v2144_v20 }
 0xbcc   :  { %4283 = vrsqrt.f32 %v2187_v30  ;;  %v2176_v31 = vsub.f32 %v2168_v50, %v2172_v55 }
 0xbce   :  { %v2188_v33 = vadd.f32 1e-05, %v2176_v31 }
 0xbd0   :  { %4285 = vrsqrt.f32 %v2188_v33 }
 0xbd9   :  { %v4284_v49 = vpop.eup %4283 }
 0xbda   :  { %v2198_v13 = vmul.f32 %v4284_v49, %v2182_v47  ;;  %v2197_v52 = vmul.f32 %v4284_v49, %v2181_v46 }
 0xbdc   :  { %v2217_v48 = vmul.f32 %v5019_v38, %v2198_v13  ;;  %v2216_v54 = vmul.f32 %v5016_v27, %v2197_v52 }
 0xbdd   :  { %v4286_v32 = vpop.eup %4285 }
 0xbde   :  { %v5077_v34 = vadd.f32 %v5025_v45, %v2217_v48  ;;  %v5080_v43 = vadd.f32 %v5022_v28, %v2216_v54  ;;  %v2200_v51 = vmul.f32 %v4286_v32, %v2184_v61  ;;  %v2199_v23 = vmul.f32 %v4286_v32, %v2183_v58 }
 0xbe0   :  { %2326 = vmatprep.mubr.f32.mxu0 %v5077_v34  ;;  %v2219_v40 = vmul.f32 %v5019_v38, %v2200_v51  ;;  %v2218_v24 = vmul.f32 %v5016_v27, %v2199_v23  ;;  %v551_v27 = vld [vmem:[%s5671_s7] sm:$0x3] }
 0xbe1   :  { %2327 = vmatmul.mubr.f32.gmra.mxu0 %v5080_v43  ;;  %v2243_v38 = vrot.slane %v551_v27, %v4819_v15 }
 0xbe2   :  { %v5087_v60 = vadd.f32 %v5025_v45, %v2219_v40  ;;  %v5090_v62 = vadd.f32 %v5022_v28, %v2218_v24  ;;  %v2247_v28 = vrot.slane %v551_v27, %v4843_v26 }
 0xbe4   :  { %2332 = vmatprep.mubr.f32.mxu0 %v5087_v60 }
 0xbe5   :  { %2333 = vmatmul.mubr.f32.gmra.mxu0 %v5090_v62 }
 0xbe6   :  { %2501 = vmatprep.mubr.f32.mxu0 %v4977_v36 }
 0xbe9   :  { %2502 = vmatmul.mubr.f32.vlgmr.msra.gmra.mxu0 %v4979_v37 }
 0xbea   :  { %2507 = vmatprep.mubr.f32.mxu0 %v5047_v57  ;;  %4136 = vmatpush3.xpose.msra.mxu0 %v2429_v16  ;;  %v2351_v16 = vrot.slane %v5058_v6, %v4829_v10 }
 0xbed   :  { %2508 = vmatmul.mubr.f32.gmra.mxu0 %v5050_v59 }
 0xbfa   :  { %v2432_v37 = vpop.f32.mrf.mxu1 }
 0xbfb   :  { %v2433_v3 = vadd.f32 %v2432_v37, %v5062_v8 }
 0xbfc   :  { %v2434_v0 = vpop.f32.mrf.mxu1 }
 0xbfd   :  { %4145 = vmatprep.subr.mxu0 %v2433_v3  ;;  %v2435_v2 = vadd.f32 %v2434_v0, %v5066_v9 }
 0xc1d   :  { %v2316_v45 = vpop.f32.mrf.mxu0 }
 0xc1e   :  { %v2317_v63 = vadd.f32 %v2316_v45, %v2243_v38 }
 0xc1f   :  { %v2318_v41 = vpop.f32.mrf.mxu0 }
 0xc20   :  { %v2319_v42 = vadd.f32 %v2318_v41, %v2247_v28  ;;  %4127 = vmatprep.mubr.f32.mxu1 %v2317_v63 }
 0xc21   :  { %v2322_v36 = vpop.f32.mrf.mxu0 }
 0xc22   :  { %4137 = vmatprep.mubr.f32.mxu0 %v2319_v42  ;;  %v2323_v57 = vadd.f32 %v2322_v36, %v2243_v38 }
 0xc23   :  { %v2324_v59 = vpop.f32.mrf.mxu0 }
 0xc24   :  { %v2325_v14 = vadd.f32 %v2324_v59, %v2247_v28  ;;  %4128 = vmatmul.mubr.f32.vlgmr.msra.gmra.mxu1 %v2323_v57 }
 0xc26   :  { %4138 = vmatmul.mubr.f32.vlgmr.msra.gmra.mxu0 %v2325_v14 }
 0xc27   :  { %4146 = vmatpush3.xpose.msra.mxu0 %v2433_v3 }
 0xc28   :  { %4155 = vmatprep.subr.mxu0 %v2435_v2 }
 0xca1   :  { %v2328_v4 = vpop.f32.mrf.mxu0 }
 0xca2   :  { %v2329_v5 = vadd.f32 %v2328_v4, %v2243_v38 }
 0xca3   :  { %v2330_v11 = vpop.f32.mrf.mxu0 }
 0xca4   :  { %4147 = vmatprep.mubr.f32.mxu0 %v2329_v5  ;;  %v2331_v8 = vadd.f32 %v2330_v11, %v2247_v28 }
 0xca5   :  { %v2334_v12 = vpop.f32.mrf.mxu0 }
 0xca6   :  { %v2335_v7 = vadd.f32 %v2334_v12, %v2243_v38 }
 0xca7   :  { %v2336_v17 = vpop.f32.mrf.mxu0 }
 0xca8   :  { %4148 = vmatmul.mubr.f32.vlgmr.msra.gmra.mxu0 %v2335_v7  ;;  %v2337_v19 = vadd.f32 %v2336_v17, %v2247_v28 }
 0xca9   :  { %4156 = vmatpush3.xpose.msra.mxu0 %v2435_v2  ;;  %4157 = vmatprep.mubr.f32.mxu0 %v2331_v8  ;;  %v2503_v9 = vpop.f32.mrf.mxu0 }
 0xcaa   :  { %v2504_v22 = vadd.f32 %v2503_v9, %v2351_v16 }
 0xcab   :  { %v2505_v39 = vpop.f32.mrf.mxu0 }
 0xcac   :  { %4158 = vmatmul.mubr.f32.vlgmr.msra.gmra.mxu0 %v2337_v19  ;;  %v5109_v25 = vadd.f32 %v2505_v39, %v2355_v18  ;;  %4130 = vmatprep.subr.mxu1 %v2504_v22 }
 0xcad   :  { %v2509_v21 = vpop.f32.mrf.mxu0  ;;  %4131 = vmatpush3.msra.mxu1 %v2504_v22 }
 0xcae   :  { %v5111_v20 = vadd.f32 %v2509_v21, %v2351_v16  ;;  %4140 = vmatprep.subr.mxu1 %v5109_v25 }
 0xcaf   :  { %v2511_v29 = vpop.f32.mrf.mxu0 }
 0xcb0   :  { %v5114_v30 = vadd.f32 %v2511_v29, %v2355_v18 }
 0xce4   :  { %v4129_v6 = vpop.f32.mrf.mxu1 }
 0xce5   :  { %v2593_v50 = vsel %vm2589_vm1, %v4129_v6, -inf }
 0xce6   :  { %2594 = vmax.xlane.f32.xlu1 %v2593_v50  ;;  %v2580_v55 = vpop.f32.mrf.mxu1  ;;  %v4139_v31 = vpop.f32.mrf.mxu0 }
 0xce7   :  { %v2590_v33 = vsel %vm2589_vm1, %v2580_v55, -inf  ;;  %v2771_v47 = vsel %vm2589_vm1, %v4139_v31, -inf }
 0xce8   :  { %2591 = vmax.xlane.f32.xlu0 %v2590_v33  ;;  %v2759_v46 = vpop.f32.mrf.mxu0 }
 0xce9   :  { %v2768_v49 = vsel %vm2589_vm1, %v2759_v46, -inf }
 0xcea   :  { %2772 = vmax.xlane.f32.xlu1 %v2771_v47 }
 0xcec   :  { %2769 = vmax.xlane.f32.xlu0 %v2768_v49 }
 0xd68   :  { %v4149_v13 = vpop.f32.mrf.mxu0 }
 0xd69   :  { %v2949_v52 = vsel %vm2589_vm1, %v4149_v13, -inf }
 0xd6a   :  { %2950 = vmax.xlane.f32.xlu1 %v2949_v52  ;;  %v2937_v48 = vpop.f32.mrf.mxu0 }
 0xd6b   :  { %v2946_v54 = vsel %vm2589_vm1, %v2937_v48, -inf }
 0xd6c   :  { %v4159_v58 = vpop.f32.mrf.mxu0  ;;  %2947 = vmax.xlane.f32.xlu0 %v2946_v54 }
 0xd6d   :  { %v3127_v61 = vsel %vm2589_vm1, %v4159_v58, -inf }
 0xd6e   :  { %3128 = vmax.xlane.f32.xlu1 %v3127_v61  ;;  %v3115_v32 = vpop.f32.mrf.mxu0 }
 0xd6f   :  { %v2595_v51 = vpop.xlane.xlu1 %2594  ;;  %v3124_v23 = vsel %vm2589_vm1, %v3115_v32, -inf }
 0xd70   :  { %v2597_v40 = vsub.f32 %v4129_v6, %v2595_v51  ;;  %3125 = vmax.xlane.f32.xlu0 %v3124_v23 }
 0xd71   :  { %v2592_v24 = vpop.xlane.xlu0 %2591 }
 0xd72   :  { %v2600_v27 = vmul.f32 1.442695, %v2597_v40  ;;  %v2596_v38 = vsub.f32 %v2580_v55, %v2592_v24 }
 0xd73   :  { %v2773_v28 = vpop.xlane.xlu1 %2772 }
 0xd74   :  { %4287 = vpow2.f32 %v2600_v27  ;;  %v2598_v45 = vmul.f32 1.442695, %v2596_v38  ;;  %v2775_v63 = vsub.f32 %v4139_v31, %v2773_v28  ;;  %v712_v27 = vld [vmem:[#allocation16 + $0xf8] sm:$0xff]  ;;  %v711_v38 = vld [vmem:[#allocation16 + $0xf0] sm:$0xff]  ;;  %v710_v28 = vld [vmem:[#allocation16 + $0xe8] sm:$0xff] }
 0xd75   :  { %v2770_v41 = vpop.xlane.xlu0 %2769  ;;  %3238 = vmatprep.subr.mxu0 %v712_v27  ;;  %v729_v27 = vld [vmem:[#allocation16 + $0x180] sm:$0xff] }
 0xd76   :  { %4289 = vpow2.f32 %v2598_v45  ;;  %v2778_v42 = vmul.f32 1.442695, %v2775_v63  ;;  %v2774_v36 = vsub.f32 %v2759_v46, %v2770_v41  ;;  %v709_v45 = vld [vmem:[#allocation16 + $0xe0] sm:$0xff]  ;;  %3239 = vmatpush1.msra.mxu0 %v711_v38  ;;  %v708_v63 = vld [vmem:[#allocation16 + $0xd8] sm:$0xff]  ;;  %v706_v41 = vld [vmem:[#allocation16 + $0xc8] sm:$0xff] }
 0xd77   :  { %3240 = vmatprep.subr.mxu0 %v710_v28  ;;  %v728_v38 = vld [vmem:[#allocation16 + $0x178] sm:$0xff]  ;;  %v727_v28 = vld [vmem:[#allocation16 + $0x170] sm:$0xff] }
 0xd78   :  { %4291 = vpow2.f32 %v2778_v42  ;;  %v2776_v37 = vmul.f32 1.442695, %v2774_v36  ;;  %3241 = vmatpush1.msra.mxu0 %v709_v45  ;;  %v705_v42 = vld [vmem:[#allocation16 + $0xc0] sm:$0xff]  ;;  %v704_v36 = vld [vmem:[#allocation16 + $0xb8] sm:$0xff]  ;;  %v726_v45 = vld [vmem:[#allocation16 + $0x168] sm:$0xff] }
 0xd79   :  { %3242 = vmatprep.subr.mxu0 %v708_v63  ;;  %v725_v63 = vld [vmem:[#allocation16 + $0x160] sm:$0xff] }
 0xd7a   :  { %4293 = vpow2.f32 %v2776_v37  ;;  %v703_v37 = vld [vmem:[#allocation16 + $0xb0] sm:$0xff] }
 0xd81   :  { %v4288_v57 = vpop.eup %4287 }
 0xd82   :  { %v2605_v3 = vsel %vm2589_vm1, %v4288_v57, 0.0 }
 0xd83   :  { %v4290_v59 = vpop.eup %4289  ;;  %2606 = vadd.xlane.f32.xlu1 %v2605_v3  ;;  %v700_v3 = vld [vmem:[#allocation16 + $0x98] sm:$0xff] }
 0xd84   :  { %v2602_v0 = vsel %vm2589_vm1, %v4290_v59, 0.0 }
 0xd85   :  { %v4292_v14 = vpop.eup %4291  ;;  %2603 = vadd.xlane.f32.xlu0 %v2602_v0  ;;  %v698_v0 = vld [vmem:[#allocation16 + $0x88] sm:$0xff] }
 0xd86   :  { %v2783_v2 = vsel %vm2589_vm1, %v4292_v14, 0.0 }
 0xd87   :  { %v4294_v4 = vpop.eup %4293  ;;  %2784 = vadd.xlane.f32.xlu1 %v2783_v2  ;;  %v696_v2 = vld [vmem:[#allocation16 + $0x78] sm:$0xff] }
 0xd88   :  { %v2780_v5 = vsel %vm2589_vm1, %v4294_v4, 0.0 }
 0xd89   :  { %2781 = vadd.xlane.f32.xlu0 %v2780_v5  ;;  %v694_v5 = vld [vmem:[#allocation16 + $0x68] sm:$0xff] }
 0xdf3   :  { %v2951_v11 = vpop.xlane.xlu1 %2950 }
 0xdf4   :  { %v2953_v12 = vsub.f32 %v4149_v13, %v2951_v11  ;;  %v693_v11 = vld [vmem:[#allocation16 + $0x60] sm:$0xff] }
 0xdf5   :  { %v2948_v7 = vpop.xlane.xlu0 %2947 }
 0xdf6   :  { %v2956_v16 = vmul.f32 1.442695, %v2953_v12  ;;  %v2952_v8 = vsub.f32 %v2937_v48, %v2948_v7  ;;  %v692_v12 = vld [vmem:[#allocation16 + $0x58] sm:$0xff]  ;;  %v691_v7 = vld [vmem:[#allocation16 + $0x50] sm:$0xff] }
 0xdf7   :  { %v3129_v17 = vpop.xlane.xlu1 %3128 }
 0xdf8   :  { %4295 = vpow2.f32 %v2956_v16  ;;  %v2954_v18 = vmul.f32 1.442695, %v2952_v8  ;;  %v3131_v9 = vsub.f32 %v4159_v58, %v3129_v17  ;;  %v690_v16 = vld [vmem:[#allocation16 + $0x48] sm:$0xff]  ;;  %v689_v8 = vld [vmem:[#allocation16 + $0x40] sm:$0xff]  ;;  %v688_v17 = vld [vmem:[#allocation16 + $0x38] sm:$0xff] }
 0xdf9   :  { %v3126_v19 = vpop.xlane.xlu0 %3125 }
 0xdfa   :  { %4297 = vpow2.f32 %v2954_v18  ;;  %v3134_v22 = vmul.f32 1.442695, %v3131_v9  ;;  %v3130_v39 = vsub.f32 %v3115_v32, %v3126_v19  ;;  %v687_v18 = vld [vmem:[#allocation16 + $0x30] sm:$0xff]  ;;  %v686_v9 = vld [vmem:[#allocation16 + $0x28] sm:$0xff]  ;;  %v685_v19 = vld [vmem:[#allocation16 + $0x20] sm:$0xff] }
 0xdfc   :  { %4299 = vpow2.f32 %v3134_v22  ;;  %v3132_v21 = vmul.f32 1.442695, %v3130_v39  ;;  %v684_v22 = vld [vmem:[#allocation16 + $0x18] sm:$0xff]  ;;  %v683_v39 = vld [vmem:[#allocation16 + $0x10] sm:$0xff] }
 0xdfe   :  { %4301 = vpow2.f32 %v3132_v21  ;;  %v682_v21 = vld [vmem:[#allocation16 + $0x8] sm:$0xff] }
 0xe05   :  { %v5128_v29 = vpop.eup %4295 }
 0xe06   :  { %v2961_v6 = vsel %vm2589_vm1, %v5128_v29, 0.0 }
 0xe07   :  { %v5132_v50 = vpop.eup %4297  ;;  %2962 = vadd.xlane.f32.xlu1 %v2961_v6  ;;  %v681_v6 = vld [vmem:[#allocation16] sm:$0xff] }
 0xe08   :  { %v2958_v55 = vsel %vm2589_vm1, %v5132_v50, 0.0 }
 0xe09   :  { %v5136_v31 = vpop.eup %4299  ;;  %2959 = vadd.xlane.f32.xlu0 %v2958_v55  ;;  %v744_v55 = vld [vmem:[#allocation16 + $0x1f8] sm:$0xff] }
 0xe0a   :  { %v3139_v33 = vsel %vm2589_vm1, %v5136_v31, 0.0 }
 0xe0b   :  { %v5140_v46 = vpop.eup %4301  ;;  %3140 = vadd.xlane.f32.xlu1 %v3139_v33  ;;  %v743_v33 = vld [vmem:[#allocation16 + $0x1f0] sm:$0xff] }
 0xe0c   :  { %v2607_v47 = vpop.xlane.xlu1 %2606  ;;  %v3136_v49 = vsel %vm2589_vm1, %v5140_v46, 0.0 }
 0xe0d   :  { %3137 = vadd.xlane.f32.xlu0 %v3136_v49  ;;  %4303 = vrcp.f32 %v2607_v47  ;;  %v742_v47 = vld [vmem:[#allocation16 + $0x1e8] sm:$0xff]  ;;  %v741_v49 = vld [vmem:[#allocation16 + $0x1e0] sm:$0xff] }
 0xe0e   :  { %v2604_v13 = vpop.xlane.xlu0 %2603 }
 0xe0f   :  { %4305 = vrcp.f32 %v2604_v13  ;;  %v740_v13 = vld [vmem:[#allocation16 + $0x1d8] sm:$0xff] }
 0xe10   :  { %v2785_v52 = vpop.xlane.xlu1 %2784 }
 0xe11   :  { %4307 = vrcp.f32 %v2785_v52  ;;  %v739_v52 = vld [vmem:[#allocation16 + $0x1d0] sm:$0xff] }
 0xe12   :  { %v2782_v48 = vpop.xlane.xlu0 %2781 }
 0xe13   :  { %4309 = vrcp.f32 %v2782_v48  ;;  %v738_v48 = vld [vmem:[#allocation16 + $0x1c8] sm:$0xff] }
 0xe1a   :  { %v4304_v54 = vpop.eup %4303 }
 0xe1b   :  { %v2611_v32 = vmul.f32 %v4304_v54, %v4288_v57  ;;  %v701_v57 = vld [vmem:[#allocation16 + $0xa0] sm:$0xff] }
 0xe1c   :  { %v4306_v58 = vpop.eup %4305  ;;  %v737_v54 = vld [vmem:[#allocation16 + $0x1c0] sm:$0xff] }
 0xe1d   :  { %v2610_v61 = vmul.f32 %v4306_v58, %v4290_v59  ;;  %v699_v59 = vld [vmem:[#allocation16 + $0x90] sm:$0xff]  ;;  %v736_v58 = vld [vmem:[#allocation16 + $0x1b8] sm:$0xff] }
 0xe1e   :  { %v4308_v51 = vpop.eup %4307 }
 0xe1f   :  { %4132 = vmatprep.mubr.msk.f32.mxu1 %vm2589_vm1, %v2610_v61  ;;  %v2789_v24 = vmul.f32 %v4308_v51, %v4292_v14  ;;  %v697_v14 = vld [vmem:[#allocation16 + $0x80] sm:$0xff]  ;;  %v735_v61 = vld [vmem:[#allocation16 + $0x1b0] sm:$0xff] }
 0xe20   :  { %v4310_v23 = vpop.eup %4309  ;;  %4133 = vmatmul.mubr.msk.f32.vlgmr.msra.gmra.mxu1 %vm2589_vm1, %v2611_v32  ;;  %v734_v32 = vld [vmem:[#allocation16 + $0x1a8] sm:$0xff]  ;;  %v733_v51 = vld [vmem:[#allocation16 + $0x1a0] sm:$0xff] }
 0xe21   :  { %4141 = vmatpush3.msra.mxu1 %v5109_v25  ;;  %v2788_v40 = vmul.f32 %v4310_v23, %v4294_v4  ;;  %v707_v25 = vld [vmem:[#allocation16 + $0xd0] sm:$0xff]  ;;  %v732_v23 = vld [vmem:[#allocation16 + $0x198] sm:$0xff] }
 0xe22   :  { %4150 = vmatprep.subr.mxu1 %v5111_v20  ;;  %3243 = vmatpush1.msra.mxu0 %v707_v25  ;;  %v695_v4 = vld [vmem:[#allocation16 + $0x70] sm:$0xff]  ;;  %v724_v25 = vld [vmem:[#allocation16 + $0x158] sm:$0xff] }
 0xe23   :  { %4142 = vmatprep.mubr.msk.f32.mxu1 %vm2589_vm1, %v2788_v40  ;;  %3244 = vmatprep.subr.mxu0 %v706_v41  ;;  %v731_v40 = vld [vmem:[#allocation16 + $0x190] sm:$0xff] }
 0xe24   :  { %4143 = vmatmul.mubr.msk.f32.vlgmr.msra.gmra.mxu1 %vm2589_vm1, %v2789_v24  ;;  %3245 = vmatpush1.msra.mxu0 %v705_v42  ;;  %v730_v24 = vld [vmem:[#allocation16 + $0x188] sm:$0xff]  ;;  %v723_v41 = vld [vmem:[#allocation16 + $0x150] sm:$0xff] }
 0xe25   :  { %4151 = vmatpush3.msra.mxu1 %v5111_v20  ;;  %v702_v20 = vld [vmem:[#allocation16 + $0xa8] sm:$0xff]  ;;  %3246 = vmatprep.subr.mxu0 %v704_v36  ;;  %v721_v36 = vld [vmem:[#allocation16 + $0x140] sm:$0xff] }
 0xe26   :  { %4160 = vmatprep.subr.mxu1 %v5114_v30  ;;  %3247 = vmatpush1.msra.mxu0 %v703_v37  ;;  %v722_v42 = vld [vmem:[#allocation16 + $0x148] sm:$0xff]  ;;  %v720_v37 = vld [vmem:[#allocation16 + $0x138] sm:$0xff] }
 0xe27   :  { %3248 = vmatprep.subr.mxu0 %v702_v20  ;;  %v719_v20 = vld [vmem:[#allocation16 + $0x130] sm:$0xff] }
 0xe28   :  { %3249 = vmatpush1.msra.mxu0 %v701_v57  ;;  %v718_v57 = vld [vmem:[#allocation16 + $0x128] sm:$0xff] }
 0xe29   :  { %3250 = vmatprep.subr.mxu0 %v700_v3  ;;  %v717_v3 = vld [vmem:[#allocation16 + $0x120] sm:$0xff] }
 0xe2a   :  { %3251 = vmatpush1.msra.mxu0 %v699_v59  ;;  %v716_v59 = vld [vmem:[#allocation16 + $0x118] sm:$0xff] }
 0xe2b   :  { %3252 = vmatprep.subr.mxu0 %v698_v0  ;;  %v715_v0 = vld [vmem:[#allocation16 + $0x110] sm:$0xff] }
 0xe2c   :  { %3253 = vmatpush1.msra.mxu0 %v697_v14  ;;  %v714_v14 = vld [vmem:[#allocation16 + $0x108] sm:$0xff] }
 0xe2d   :  { %3254 = vmatprep.subr.mxu0 %v696_v2  ;;  %v713_v2 = vld [vmem:[#allocation16 + $0x100] sm:$0xff] }
 0xe2e   :  { %3255 = vmatpush1.msra.mxu0 %v695_v4 }
 0xe2f   :  { %3256 = vmatprep.subr.mxu0 %v694_v5 }
 0xe30   :  { %3257 = vmatpush1.msra.mxu0 %v693_v11 }
 0xe31   :  { %3258 = vmatprep.subr.mxu0 %v692_v12 }
 0xe32   :  { %3259 = vmatpush1.msra.mxu0 %v691_v7 }
 0xe33   :  { %3260 = vmatprep.subr.mxu0 %v690_v16 }
 0xe34   :  { %3261 = vmatpush1.msra.mxu0 %v689_v8 }
 0xe35   :  { %3262 = vmatprep.subr.mxu0 %v688_v17 }
 0xe36   :  { %3263 = vmatpush1.msra.mxu0 %v687_v18 }
 0xe37   :  { %3264 = vmatprep.subr.mxu0 %v686_v9 }
 0xe38   :  { %3265 = vmatpush1.msra.mxu0 %v685_v19 }
 0xe39   :  { %3266 = vmatprep.subr.mxu0 %v684_v22 }
 0xe3a   :  { %3267 = vmatpush1.msra.mxu0 %v683_v39 }
 0xe3b   :  { %3268 = vmatprep.subr.mxu0 %v682_v21 }
 0xe3c   :  { %3269 = vmatpush1.msra.mxu0 %v681_v6  ;;  %v813_v6 = vld [vmem:[#allocation17 + $0x1e8] sm:$0xff] }
 0xe3d   :  { %3270 = vmatprep.subr.mxu0 %v744_v55  ;;  %v815_v55 = vld [vmem:[#allocation17 + $0x1f8] sm:$0xff] }
 0xe3e   :  { %3271 = vmatpush2.msra.mxu0 %v743_v33  ;;  %v812_v33 = vld [vmem:[#allocation17 + $0x1e0] sm:$0xff] }
 0xe3f   :  { %3272 = vmatprep.subr.mxu0 %v742_v47  ;;  %v808_v47 = vld [vmem:[#allocation17 + $0x1c0] sm:$0xff] }
 0xe40   :  { %3273 = vmatpush2.msra.mxu0 %v741_v49  ;;  %v810_v49 = vld [vmem:[#allocation17 + $0x1d0] sm:$0xff] }
 0xe41   :  { %3274 = vmatprep.subr.mxu0 %v740_v13  ;;  %v805_v13 = vld [vmem:[#allocation17 + $0x1a8] sm:$0xff] }
 0xe42   :  { %3275 = vmatpush2.msra.mxu0 %v739_v52  ;;  %v807_v52 = vld [vmem:[#allocation17 + $0x1b8] sm:$0xff] }
 0xe43   :  { %3276 = vmatprep.subr.mxu0 %v738_v48  ;;  %v804_v48 = vld [vmem:[#allocation17 + $0x1a0] sm:$0xff] }
 0xe44   :  { %3277 = vmatpush2.msra.mxu0 %v737_v54  ;;  %v806_v54 = vld [vmem:[#allocation17 + $0x1b0] sm:$0xff] }
 0xe45   :  { %3278 = vmatprep.subr.mxu0 %v736_v58  ;;  %v801_v58 = vld [vmem:[#allocation17 + $0x188] sm:$0xff] }
 0xe46   :  { %3279 = vmatpush2.msra.mxu0 %v735_v61  ;;  %v803_v61 = vld [vmem:[#allocation17 + $0x198] sm:$0xff] }
 0xe47   :  { %3280 = vmatprep.subr.mxu0 %v734_v32  ;;  %v800_v32 = vld [vmem:[#allocation17 + $0x180] sm:$0xff] }
 0xe48   :  { %3281 = vmatpush2.msra.mxu0 %v733_v51  ;;  %v802_v51 = vld [vmem:[#allocation17 + $0x190] sm:$0xff] }
 0xe49   :  { %3282 = vmatprep.subr.mxu0 %v732_v23  ;;  %v797_v23 = vld [vmem:[#allocation17 + $0x168] sm:$0xff] }
 0xe4a   :  { %3283 = vmatpush2.msra.mxu0 %v731_v40  ;;  %v799_v40 = vld [vmem:[#allocation17 + $0x178] sm:$0xff] }
 0xe4b   :  { %3284 = vmatprep.subr.mxu0 %v730_v24  ;;  %v796_v24 = vld [vmem:[#allocation17 + $0x160] sm:$0xff] }
 0xe4c   :  { %3285 = vmatpush2.msra.mxu0 %v729_v27  ;;  %v798_v27 = vld [vmem:[#allocation17 + $0x170] sm:$0xff] }
 0xe4d   :  { %3286 = vmatprep.subr.mxu0 %v728_v38  ;;  %v793_v38 = vld [vmem:[#allocation17 + $0x148] sm:$0xff] }
 0xe4e   :  { %3287 = vmatpush2.msra.mxu0 %v727_v28  ;;  %v795_v28 = vld [vmem:[#allocation17 + $0x158] sm:$0xff] }
 0xe4f   :  { %3288 = vmatprep.subr.mxu0 %v726_v45  ;;  %v792_v45 = vld [vmem:[#allocation17 + $0x140] sm:$0xff] }
 0xe50   :  { %3289 = vmatpush2.msra.mxu0 %v725_v63  ;;  %v794_v63 = vld [vmem:[#allocation17 + $0x150] sm:$0xff] }
 0xe51   :  { %3290 = vmatprep.subr.mxu0 %v724_v25  ;;  %v789_v25 = vld [vmem:[#allocation17 + $0x128] sm:$0xff] }
 0xe52   :  { %3291 = vmatpush2.msra.mxu0 %v723_v41  ;;  %v791_v41 = vld [vmem:[#allocation17 + $0x138] sm:$0xff] }
 0xe53   :  { %3292 = vmatprep.subr.mxu0 %v722_v42  ;;  %v788_v42 = vld [vmem:[#allocation17 + $0x120] sm:$0xff] }
 0xe54   :  { %3293 = vmatpush2.msra.mxu0 %v721_v36  ;;  %v790_v36 = vld [vmem:[#allocation17 + $0x130] sm:$0xff] }
 0xe55   :  { %3294 = vmatprep.subr.mxu0 %v720_v37  ;;  %v785_v37 = vld [vmem:[#allocation17 + $0x108] sm:$0xff] }
 0xe56   :  { %3295 = vmatpush2.msra.mxu0 %v719_v20  ;;  %v787_v20 = vld [vmem:[#allocation17 + $0x118] sm:$0xff] }
 0xe57   :  { %3296 = vmatprep.subr.mxu0 %v718_v57  ;;  %v784_v57 = vld [vmem:[#allocation17 + $0x100] sm:$0xff] }
 0xe58   :  { %3297 = vmatpush2.msra.mxu0 %v717_v3  ;;  %v786_v3 = vld [vmem:[#allocation17 + $0x110] sm:$0xff] }
 0xe59   :  { %3298 = vmatprep.subr.mxu0 %v716_v59  ;;  %v781_v59 = vld [vmem:[#allocation17 + $0xe8] sm:$0xff] }
 0xe5a   :  { %3299 = vmatpush2.msra.mxu0 %v715_v0  ;;  %v783_v0 = vld [vmem:[#allocation17 + $0xf8] sm:$0xff] }
 0xe5b   :  { %3300 = vmatprep.subr.mxu0 %v714_v14  ;;  %v780_v14 = vld [vmem:[#allocation17 + $0xe0] sm:$0xff] }
 0xe5c   :  { %3301 = vmatpush2.msra.mxu0 %v713_v2  ;;  %v782_v2 = vld [vmem:[#allocation17 + $0xf0] sm:$0xff] }
 0xe5d   :  { %3555 = vmatprep.subr.mxu0 %v815_v55 }
 0xe90   :  { %v2963_v4 = vpop.xlane.xlu1 %2962 }
 0xe91   :  { %4311 = vrcp.f32 %v2963_v4  ;;  %v777_v4 = vld [vmem:[#allocation17 + $0xc8] sm:$0xff] }
 0xe92   :  { %v2960_v5 = vpop.xlane.xlu0 %2959 }
 0xe93   :  { %4313 = vrcp.f32 %v2960_v5  ;;  %v779_v5 = vld [vmem:[#allocation17 + $0xd8] sm:$0xff] }
 0xe94   :  { %v3141_v11 = vpop.xlane.xlu1 %3140 }
 0xe95   :  { %4315 = vrcp.f32 %v3141_v11  ;;  %v776_v11 = vld [vmem:[#allocation17 + $0xc0] sm:$0xff] }
 0xe96   :  { %v3138_v12 = vpop.xlane.xlu0 %3137 }
 0xe97   :  { %4317 = vrcp.f32 %v3138_v12  ;;  %v778_v12 = vld [vmem:[#allocation17 + $0xd0] sm:$0xff] }
 0xe9e   :  { %v4312_v7 = vpop.eup %4311 }
 0xe9f   :  { %v2967_v17 = vmul.f32 %v4312_v7, %v5128_v29  ;;  %v773_v7 = vld [vmem:[#allocation17 + $0xa8] sm:$0xff] }
 0xea0   :  { %v4314_v16 = vpop.eup %4313 }
 0xea1   :  { %v2966_v8 = vmul.f32 %v4314_v16, %v5132_v50  ;;  %v775_v16 = vld [vmem:[#allocation17 + $0xb8] sm:$0xff] }
 0xea2   :  { %v4316_v18 = vpop.eup %4315 }
 0xea3   :  { %4152 = vmatprep.mubr.msk.f32.mxu1 %vm2589_vm1, %v2966_v8  ;;  %v3145_v22 = vmul.f32 %v4316_v18, %v5136_v31  ;;  %v811_v31 = vld [vmem:[#allocation17 + $0x1d8] sm:$0xff] }
 0xea4   :  { %v4318_v9 = vpop.eup %4317  ;;  %4153 = vmatmul.mubr.msk.f32.vlgmr.msra.gmra.mxu1 %vm2589_vm1, %v2967_v17 }
 0xea5   :  { %4161 = vmatpush3.msra.mxu1 %v5114_v30  ;;  %v3144_v19 = vmul.f32 %v4318_v9, %v5140_v46  ;;  %v814_v30 = vld [vmem:[#allocation17 + $0x1f0] sm:$0xff]  ;;  %v809_v46 = vld [vmem:[#allocation17 + $0x1c8] sm:$0xff] }
 0xea6   :  { %3466 = vmatprep.subr.mxu1 %v813_v6 }
 0xea7   :  { %4162 = vmatprep.mubr.msk.f32.mxu1 %vm2589_vm1, %v3144_v19  ;;  %v745_v19 = vld [vmem:[%s5675_s11] sm:$0x3] }
 0xea8   :  { %4163 = vmatmul.mubr.msk.f32.vlgmr.msra.gmra.mxu1 %vm2589_vm1, %v3145_v22  ;;  %v5165_v22 = vrot.slane %v745_v19, %v4819_v15 }
 0xea9   :  { %3467 = vmatpush1.msra.mxu1 %v812_v33 }
 0xeaa   :  { %3468 = vmatprep.subr.mxu1 %v809_v46 }
 0xeab   :  { %3469 = vmatpush1.msra.mxu1 %v808_v47  ;;  %v774_v47 = vld [vmem:[#allocation17 + $0xb0] sm:$0xff] }
 0xeac   :  { %3470 = vmatprep.subr.mxu1 %v805_v13 }
 0xead   :  { %3471 = vmatpush1.msra.mxu1 %v804_v48  ;;  %v771_v48 = vld [vmem:[#allocation17 + $0x98] sm:$0xff] }
 0xeae   :  { %3472 = vmatprep.subr.mxu1 %v801_v58 }
 0xeaf   :  { %3473 = vmatpush1.msra.mxu1 %v800_v32  ;;  %v770_v32 = vld [vmem:[#allocation17 + $0x90] sm:$0xff] }
 0xeb0   :  { %3474 = vmatprep.subr.mxu1 %v797_v23  ;;  %v767_v23 = vld [vmem:[#allocation17 + $0x78] sm:$0xff] }
 0xeb1   :  { %3475 = vmatpush1.msra.mxu1 %v796_v24  ;;  %v764_v24 = vld [vmem:[#allocation17 + $0x60] sm:$0xff] }
 0xeb2   :  { %3476 = vmatprep.subr.mxu1 %v793_v38  ;;  %v761_v38 = vld [vmem:[#allocation17 + $0x48] sm:$0xff] }
 0xeb3   :  { %3477 = vmatpush1.msra.mxu1 %v792_v45 }
 0xeb4   :  { %3478 = vmatprep.subr.mxu1 %v789_v25  ;;  %v760_v25 = vld [vmem:[#allocation17 + $0x40] sm:$0xff] }
 0xeb5   :  { %3479 = vmatpush1.msra.mxu1 %v788_v42  ;;  %v757_v42 = vld [vmem:[#allocation17 + $0x28] sm:$0xff] }
 0xeb6   :  { %3480 = vmatprep.subr.mxu1 %v785_v37  ;;  %v759_v37 = vld [vmem:[#allocation17 + $0x38] sm:$0xff] }
 0xeb7   :  { %3481 = vmatpush1.msra.mxu1 %v784_v57  ;;  %v758_v57 = vld [vmem:[#allocation17 + $0x30] sm:$0xff] }
 0xeb8   :  { %3482 = vmatprep.subr.mxu1 %v781_v59  ;;  %v755_v59 = vld [vmem:[#allocation17 + $0x18] sm:$0xff] }
 0xeb9   :  { %3483 = vmatpush1.msra.mxu1 %v780_v14  ;;  %v754_v14 = vld [vmem:[#allocation17 + $0x10] sm:$0xff] }
 0xeba   :  { %3484 = vmatprep.subr.mxu1 %v777_v4  ;;  %v879_v4 = vld [vmem:[#allocation17 + $0x3f8] sm:$0xff] }
 0xebb   :  { %3485 = vmatpush1.msra.mxu1 %v776_v11  ;;  %v878_v11 = vld [vmem:[#allocation17 + $0x3f0] sm:$0xff] }
 0xebc   :  { %3486 = vmatprep.subr.mxu1 %v773_v7  ;;  %v875_v7 = vld [vmem:[#allocation17 + $0x3d8] sm:$0xff] }
 0xee0   :  { %v4134_v39 = vpop.f32.mrf.mxu1 }
 0xee2   :  { %v2684_v50 = vpop.f32.mrf.mxu1 }
 0xee4   :  { %v4144_v21 = vpop.f32.mrf.mxu1 }
 0xee6   :  { %v2862_v29 = vpop.f32.mrf.mxu1 }
 0xee7   :  { %3302 = vmatprep.mubr.f32.mxu0 %v2862_v29 }
 0xee8   :  { %3303 = vmatmul.mubr.f32.vlgmr.msra.gmra.mxu0 %v2684_v50 }
 0xee9   :  { %3308 = vmatprep.mubr.f32.mxu0 %v4144_v21  ;;  %3556 = vmatpush1.msra.mxu0 %v814_v30 }
 0xeea   :  { %3557 = vmatprep.subr.mxu0 %v811_v31  ;;  %v772_v31 = vld [vmem:[#allocation17 + $0xa0] sm:$0xff] }
 0xeeb   :  { %3558 = vmatpush1.msra.mxu0 %v810_v49  ;;  %3487 = vmatpush1.msra.mxu1 %v772_v31  ;;  %v860_v31 = vld [vmem:[#allocation17 + $0x360] sm:$0xff] }
 0xeec   :  { %3309 = vmatmul.mubr.f32.gmra.mxu0 %v4134_v39  ;;  %3559 = vmatprep.subr.mxu0 %v807_v52  ;;  %v5168_v39 = vrot.slane %v745_v19, %v4843_v26  ;;  %v769_v52 = vld [vmem:[#allocation17 + $0x88] sm:$0xff]  ;;  %v870_v19 = vld [vmem:[#allocation17 + $0x3b0] sm:$0xff] }
 0xeed   :  { %3560 = vmatpush1.msra.mxu0 %v806_v54  ;;  %3488 = vmatprep.subr.mxu1 %v769_v52  ;;  %v856_v52 = vld [vmem:[#allocation17 + $0x340] sm:$0xff] }
 0xeee   :  { %3561 = vmatprep.subr.mxu0 %v803_v61  ;;  %v768_v61 = vld [vmem:[#allocation17 + $0x80] sm:$0xff] }
 0xeef   :  { %3562 = vmatpush1.msra.mxu0 %v802_v51  ;;  %3489 = vmatpush1.msra.mxu1 %v768_v61  ;;  %v765_v51 = vld [vmem:[#allocation17 + $0x68] sm:$0xff]  ;;  %v854_v61 = vld [vmem:[#allocation17 + $0x330] sm:$0xff] }
 0xef0   :  { %3563 = vmatprep.subr.mxu0 %v799_v40  ;;  %3490 = vmatprep.subr.mxu1 %v765_v51  ;;  %v851_v51 = vld [vmem:[#allocation17 + $0x318] sm:$0xff] }
 0xef1   :  { %3564 = vmatpush1.msra.mxu0 %v798_v27  ;;  %v766_v27 = vld [vmem:[#allocation17 + $0x70] sm:$0xff]  ;;  %3491 = vmatpush1.msra.mxu1 %v764_v24  ;;  %v845_v24 = vld [vmem:[#allocation17 + $0x2e8] sm:$0xff] }
 0xef2   :  { %3565 = vmatprep.subr.mxu0 %v795_v28  ;;  %v763_v28 = vld [vmem:[#allocation17 + $0x58] sm:$0xff]  ;;  %3492 = vmatprep.subr.mxu1 %v761_v38  ;;  %v844_v38 = vld [vmem:[#allocation17 + $0x2e0] sm:$0xff] }
 0xef3   :  { %3566 = vmatpush1.msra.mxu0 %v794_v63  ;;  %3493 = vmatpush1.msra.mxu1 %v760_v25  ;;  %v842_v25 = vld [vmem:[#allocation17 + $0x2d0] sm:$0xff] }
 0xef4   :  { %3567 = vmatprep.subr.mxu0 %v791_v41  ;;  %v762_v41 = vld [vmem:[#allocation17 + $0x50] sm:$0xff]  ;;  %3494 = vmatprep.subr.mxu1 %v757_v42  ;;  %v839_v42 = vld [vmem:[#allocation17 + $0x2b8] sm:$0xff] }
 0xef5   :  { %3568 = vmatpush1.msra.mxu0 %v790_v36 }
 0xef6   :  { %3569 = vmatprep.subr.mxu0 %v787_v20  ;;  %v756_v20 = vld [vmem:[#allocation17 + $0x20] sm:$0xff] }
 0xef7   :  { %3570 = vmatpush1.msra.mxu0 %v786_v3  ;;  %v753_v3 = vld [vmem:[#allocation17 + $0x8] sm:$0xff]  ;;  %3495 = vmatpush1.msra.mxu1 %v756_v20 }
 0xef8   :  { %3571 = vmatprep.subr.mxu0 %v783_v0  ;;  %v752_v0 = vld [vmem:[#allocation17] sm:$0xff]  ;;  %3496 = vmatprep.subr.mxu1 %v753_v3  ;;  %v833_v20 = vld [vmem:[#allocation17 + $0x288] sm:$0xff] }
 0xef9   :  { %3572 = vmatpush1.msra.mxu0 %v782_v2  ;;  %v877_v2 = vld [vmem:[#allocation17 + $0x3e8] sm:$0xff]  ;;  %3497 = vmatpush1.msra.mxu1 %v752_v0  ;;  %v832_v3 = vld [vmem:[#allocation17 + $0x280] sm:$0xff] }
 0xefa   :  { %3573 = vmatprep.subr.mxu0 %v779_v5  ;;  %v876_v5 = vld [vmem:[#allocation17 + $0x3e0] sm:$0xff]  ;;  %3498 = vmatprep.subr.mxu1 %v877_v2  ;;  %v829_v0 = vld [vmem:[#allocation17 + $0x268] sm:$0xff] }
 0xefb   :  { %3574 = vmatpush1.msra.mxu0 %v778_v12  ;;  %v873_v12 = vld [vmem:[#allocation17 + $0x3c8] sm:$0xff]  ;;  %3499 = vmatpush2.msra.mxu1 %v876_v5  ;;  %v828_v2 = vld [vmem:[#allocation17 + $0x260] sm:$0xff] }
 0xefc   :  { %3575 = vmatprep.subr.mxu0 %v775_v16  ;;  %v872_v16 = vld [vmem:[#allocation17 + $0x3c0] sm:$0xff]  ;;  %3500 = vmatprep.subr.mxu1 %v873_v12  ;;  %v825_v5 = vld [vmem:[#allocation17 + $0x248] sm:$0xff] }
 0xefd   :  { %3576 = vmatpush1.msra.mxu0 %v774_v47  ;;  %3501 = vmatpush2.msra.mxu1 %v872_v16  ;;  %v862_v47 = vld [vmem:[#allocation17 + $0x370] sm:$0xff]  ;;  %v824_v12 = vld [vmem:[#allocation17 + $0x240] sm:$0xff]  ;;  %v821_v16 = vld [vmem:[#allocation17 + $0x228] sm:$0xff] }
 0xefe   :  { %3577 = vmatprep.subr.mxu0 %v771_v48  ;;  %v858_v48 = vld [vmem:[#allocation17 + $0x350] sm:$0xff] }
 0xeff   :  { %3578 = vmatpush1.msra.mxu0 %v770_v32  ;;  %v849_v32 = vld [vmem:[#allocation17 + $0x308] sm:$0xff] }
 0xf00   :  { %3579 = vmatprep.subr.mxu0 %v767_v23  ;;  %v848_v23 = vld [vmem:[#allocation17 + $0x300] sm:$0xff] }
 0xf01   :  { %3580 = vmatpush1.msra.mxu0 %v766_v27  ;;  %v847_v27 = vld [vmem:[#allocation17 + $0x2f8] sm:$0xff] }
 0xf02   :  { %3581 = vmatprep.subr.mxu0 %v763_v28  ;;  %v846_v28 = vld [vmem:[#allocation17 + $0x2f0] sm:$0xff] }
 0xf03   :  { %3582 = vmatpush1.msra.mxu0 %v762_v41  ;;  %v837_v41 = vld [vmem:[#allocation17 + $0x2a8] sm:$0xff] }
 0xf04   :  { %3583 = vmatprep.subr.mxu0 %v759_v37  ;;  %v838_v37 = vld [vmem:[#allocation17 + $0x2b0] sm:$0xff] }
 0xf05   :  { %3584 = vmatpush1.msra.mxu0 %v758_v57  ;;  %v835_v57 = vld [vmem:[#allocation17 + $0x298] sm:$0xff] }
 0xf06   :  { %3585 = vmatprep.subr.mxu0 %v755_v59  ;;  %v834_v59 = vld [vmem:[#allocation17 + $0x290] sm:$0xff] }
 0xf07   :  { %3586 = vmatpush1.msra.mxu0 %v754_v14  ;;  %v831_v14 = vld [vmem:[#allocation17 + $0x278] sm:$0xff] }
 0xf08   :  { %3587 = vmatprep.subr.mxu0 %v879_v4  ;;  %v830_v4 = vld [vmem:[#allocation17 + $0x270] sm:$0xff] }
 0xf09   :  { %3588 = vmatpush2.msra.mxu0 %v878_v11  ;;  %v827_v11 = vld [vmem:[#allocation17 + $0x258] sm:$0xff] }
 0xf0a   :  { %3589 = vmatprep.subr.mxu0 %v875_v7  ;;  %v826_v7 = vld [vmem:[#allocation17 + $0x250] sm:$0xff] }
 0xf64   :  { %v4154_v8 = vpop.f32.mrf.mxu1 }
 0xf66   :  { %v3040_v17 = vpop.f32.mrf.mxu1 }
 0xf68   :  { %v4164_v18 = vpop.f32.mrf.mxu1 }
 0xf6a   :  { %v3218_v9 = vpop.f32.mrf.mxu1 }
 0xf6b   :  { %3314 = vmatprep.mubr.f32.mxu0 %v3218_v9  ;;  %v868_v9 = vld [vmem:[#allocation17 + $0x3a0] sm:$0xff] }
 0xf6c   :  { %3315 = vmatmul.mubr.f32.gmra.mxu0 %v3040_v17  ;;  %v869_v17 = vld [vmem:[#allocation17 + $0x3a8] sm:$0xff] }
 0xf6d   :  { %3320 = vmatprep.mubr.f32.mxu0 %v4164_v18  ;;  %v871_v18 = vld [vmem:[#allocation17 + $0x3b8] sm:$0xff]  ;;  %3502 = vmatprep.subr.mxu1 %v869_v17  ;;  %v820_v17 = vld [vmem:[#allocation17 + $0x220] sm:$0xff] }
 0xf6e   :  { %3503 = vmatpush2.msra.mxu1 %v868_v9  ;;  %v817_v9 = vld [vmem:[#allocation17 + $0x208] sm:$0xff] }
 0xf70   :  { %3321 = vmatmul.mubr.f32.gmra.mxu0 %v4154_v8  ;;  %v874_v8 = vld [vmem:[#allocation17 + $0x3d0] sm:$0xff] }
 0xf71   :  { %3590 = vmatpush2.msra.mxu0 %v874_v8  ;;  %v823_v8 = vld [vmem:[#allocation17 + $0x238] sm:$0xff] }
 0xf72   :  { %3591 = vmatprep.subr.mxu0 %v871_v18  ;;  %v822_v18 = vld [vmem:[#allocation17 + $0x230] sm:$0xff] }
 0xf73   :  { %3592 = vmatpush2.msra.mxu0 %v870_v19  ;;  %v819_v19 = vld [vmem:[#allocation17 + $0x218] sm:$0xff] }
 0xfa8   :  { %v3304_v50 = vpop.f32.mrf.mxu0 }
 0xfa9   :  { %v3305_v21 = vadd.f32 %v3304_v50, %v5165_v22  ;;  %v865_v50 = vld [vmem:[#allocation17 + $0x388] sm:$0xff] }
 0xfaa   :  { %v3306_v29 = vpop.f32.mrf.mxu0  ;;  %3504 = vmatprep.subr.mxu1 %v865_v50  ;;  %v816_v50 = vld [vmem:[#allocation17 + $0x200] sm:$0xff] }
 0xfab   :  { %v5172_v6 = vadd.f32 %v3305_v21, %v5035_v44  ;;  %v3307_v55 = vadd.f32 %v3306_v29, %v5168_v39  ;;  %v867_v21 = vld [vmem:[#allocation17 + $0x398] sm:$0xff]  ;;  %v864_v29 = vld [vmem:[#allocation17 + $0x380] sm:$0xff] }
 0xfac   :  { %v3310_v33 = vpop.f32.mrf.mxu0  ;;  %3593 = vmatprep.subr.mxu0 %v867_v21  ;;  %3505 = vmatpush2.msra.mxu1 %v864_v29  ;;  %v818_v21 = vld [vmem:[#allocation17 + $0x210] sm:$0xff] }
 0xfad   :  { %v5176_v30 = vadd.f32 %v3307_v55, %v5032_v35  ;;  %v3311_v46 = vadd.f32 %v3310_v33, %v5165_v22  ;;  %v3351_v13 = vmul.f32 %v5172_v6, %v5172_v6  ;;  %v866_v55 = vld [vmem:[#allocation17 + $0x390] sm:$0xff]  ;;  %v861_v33 = vld [vmem:[#allocation17 + $0x368] sm:$0xff] }
 0xfae   :  { %v3312_v49 = vpop.f32.mrf.mxu0  ;;  %3594 = vmatpush2.msra.mxu0 %v866_v55  ;;  %3506 = vmatprep.subr.mxu1 %v861_v33 }
 0xfaf   :  { %v5182_v44 = vadd.f32 %v3311_v46, %v5045_v56  ;;  %v3313_v54 = vadd.f32 %v3312_v49, %v5168_v39  ;;  %v3335_v35 = vadd.f32 %v5176_v30, %v5172_v6  ;;  %v3352_v58 = vmul.f32 %v5176_v30, %v5176_v30  ;;  %v863_v46 = vld [vmem:[#allocation17 + $0x378] sm:$0xff]  ;;  %v857_v49 = vld [vmem:[#allocation17 + $0x348] sm:$0xff]  ;;  %3507 = vmatpush2.msra.mxu1 %v860_v31 }
 0xfb0   :  { %3595 = vmatprep.subr.mxu0 %v863_v46  ;;  %3508 = vmatprep.subr.mxu1 %v857_v49 }
 0xfb1   :  { %v5190_v40 = vadd.f32 %v3313_v54, %v5042_v53  ;;  %3336 = vadd.xlane.f32.xlu0 %v3335_v35  ;;  %v3359_v56 = vadd.f32 %v3352_v58, %v3351_v13  ;;  %v3353_v63 = vmul.f32 %v5182_v44, %v5182_v44  ;;  %v859_v13 = vld [vmem:[#allocation17 + $0x358] sm:$0xff]  ;;  %v853_v54 = vld [vmem:[#allocation17 + $0x328] sm:$0xff]  ;;  %3596 = vmatpush2.msra.mxu0 %v862_v47  ;;  %v852_v58 = vld [vmem:[#allocation17 + $0x320] sm:$0xff] }
 0xfb2   :  { %v855_v35 = vld [vmem:[#allocation17 + $0x338] sm:$0xff]  ;;  %3597 = vmatprep.subr.mxu0 %v859_v13  ;;  %3509 = vmatpush2.msra.mxu1 %v856_v52 }
 0xfb3   :  { %3360 = vadd.xlane.f32.xlu1 %v3359_v56  ;;  %v3338_v45 = vadd.f32 %v5190_v40, %v5182_v44  ;;  %v3354_v53 = vmul.f32 %v5190_v40, %v5190_v40  ;;  %3598 = vmatpush2.msra.mxu0 %v858_v48  ;;  %v850_v56 = vld [vmem:[#allocation17 + $0x310] sm:$0xff] }
 0xfb4   :  { %3510 = vmatprep.subr.mxu1 %v853_v54  ;;  %3599 = vmatprep.subr.mxu0 %v855_v35 }
 0xfb5   :  { %3339 = vadd.xlane.f32.xlu0 %v3338_v45  ;;  %v3362_v36 = vadd.f32 %v3354_v53, %v3353_v63  ;;  %3511 = vmatpush2.msra.mxu1 %v852_v58  ;;  %v841_v45 = vld [vmem:[#allocation17 + $0x2c8] sm:$0xff]  ;;  %v843_v63 = vld [vmem:[#allocation17 + $0x2d8] sm:$0xff]  ;;  %v840_v53 = vld [vmem:[#allocation17 + $0x2c0] sm:$0xff] }
 0xfb6   :  { %3600 = vmatpush2.msra.mxu0 %v854_v61  ;;  %3512 = vmatprep.subr.mxu1 %v849_v32 }
 0xfb7   :  { %3363 = vadd.xlane.f32.xlu1 %v3362_v36  ;;  %3601 = vmatprep.subr.mxu0 %v851_v51  ;;  %v836_v36 = vld [vmem:[#allocation17 + $0x2a0] sm:$0xff] }
 0xfb8   :  { %3513 = vmatpush2.msra.mxu1 %v848_v23  ;;  %3602 = vmatpush2.msra.mxu0 %v850_v56 }
 0xfb9   :  { %3514 = vmatprep.subr.mxu1 %v845_v24  ;;  %3603 = vmatprep.subr.mxu0 %v847_v27 }
 0xfba   :  { %3515 = vmatpush2.msra.mxu1 %v844_v38  ;;  %3604 = vmatpush2.msra.mxu0 %v846_v28 }
 0xfbb   :  { %3516 = vmatprep.subr.mxu1 %v841_v45  ;;  %3605 = vmatprep.subr.mxu0 %v843_v63 }
 0xfbc   :  { %3517 = vmatpush2.msra.mxu1 %v840_v53  ;;  %3606 = vmatpush2.msra.mxu0 %v842_v25 }
 0xfbd   :  { %3518 = vmatprep.subr.mxu1 %v837_v41  ;;  %3607 = vmatprep.subr.mxu0 %v839_v42 }
 0xfbe   :  { %3519 = vmatpush2.msra.mxu1 %v836_v36  ;;  %3608 = vmatpush2.msra.mxu0 %v838_v37  ;;  %v748_v36 = vld [vmem:[%s5678_s14] sm:$0x3] }
 0xfbf   :  { %3520 = vmatprep.subr.mxu1 %v833_v20  ;;  %3609 = vmatprep.subr.mxu0 %v835_v57  ;;  %v749_v37 = vld [vmem:[%s5679_s15] sm:$0x3] }
 0xfc0   :  { %3521 = vmatpush2.msra.mxu1 %v832_v3  ;;  %3610 = vmatpush2.msra.mxu0 %v834_v59  ;;  %v5235_v3 = vrot.slane %v748_v36, %v4819_v15  ;;  %v5238_v59 = vrot.slane %v748_v36, %v4843_v26  ;;  %v896_v36 = vld [vmem:[#allocation19 + $0x78] sm:$0xff] }
 0xfc1   :  { %3522 = vmatprep.subr.mxu1 %v829_v0  ;;  %3611 = vmatprep.subr.mxu0 %v831_v14 }
 0xfc2   :  { %3523 = vmatpush2.msra.mxu1 %v828_v2  ;;  %3612 = vmatpush2.msra.mxu0 %v830_v4  ;;  %v5241_v2 = vrot.slane %v749_v37, %v4819_v15  ;;  %v5244_v4 = vrot.slane %v749_v37, %v4843_v26  ;;  %v5318_v37 = vld [vmem:[#allocation19 + $0x278] sm:$0xff] }
 0xfc3   :  { %3524 = vmatprep.subr.mxu1 %v825_v5  ;;  %3613 = vmatprep.subr.mxu0 %v827_v11 }
 0xfc4   :  { %3525 = vmatpush2.msra.mxu1 %v824_v12  ;;  %3614 = vmatpush2.msra.mxu0 %v826_v7 }
 0xfc5   :  { %3526 = vmatprep.subr.mxu1 %v821_v16  ;;  %3615 = vmatprep.subr.mxu0 %v823_v8 }
 0xfc6   :  { %3527 = vmatpush2.msra.mxu1 %v820_v17  ;;  %3616 = vmatpush2.msra.mxu0 %v822_v18 }
 0xfc7   :  { %3528 = vmatprep.subr.mxu1 %v817_v9  ;;  %3617 = vmatprep.subr.mxu0 %v819_v19 }
 0xfc8   :  { %3529 = vmatpush2.msra.mxu1 %v816_v50  ;;  %3618 = vmatpush2.msra.mxu0 %v818_v21  ;;  %v912_v50 = vld [vmem:[#allocation19 + $0xf8] sm:$0xff] }
 0xfc9   :  { %v5272_v21 = vld [vmem:[#allocation19 + $0x2f8] sm:$0xff]  ;;  %3671 = vmatprep.subr.mxu1 %v912_v50 }
 0xfca   :  { %3760 = vmatprep.subr.mxu0 %v5272_v21  ;;  %v888_v50 = vld [vmem:[#allocation19 + $0x38] sm:$0xff] }
0x102c   :  { %v3316_v29 = vpop.f32.mrf.mxu0 }
0x102d   :  { %v3317_v55 = vadd.f32 %v3316_v29, %v5165_v22  ;;  %v911_v29 = vld [vmem:[#allocation19 + $0xf0] sm:$0xff] }
0x102e   :  { %v3318_v33 = vpop.f32.mrf.mxu0 }
0x102f   :  { %v5200_v46 = vadd.f32 %v3317_v55, %v5080_v43  ;;  %v3319_v31 = vadd.f32 %v3318_v33, %v5168_v39  ;;  %v5275_v55 = vld [vmem:[#allocation19 + $0x2f0] sm:$0xff]  ;;  %v910_v33 = vld [vmem:[#allocation19 + $0xe8] sm:$0xff] }
0x1030   :  { %v3322_v47 = vpop.f32.mrf.mxu0 }
0x1031   :  { %v5204_v49 = vadd.f32 %v3319_v31, %v5077_v34  ;;  %v3323_v13 = vadd.f32 %v3322_v47, %v5165_v22  ;;  %v3355_v48 = vmul.f32 %v5200_v46, %v5200_v46  ;;  %v5278_v31 = vld [vmem:[#allocation19 + $0x2e8] sm:$0xff]  ;;  %v909_v47 = vld [vmem:[#allocation19 + $0xe0] sm:$0xff] }
0x1032   :  { %v3324_v52 = vpop.f32.mrf.mxu0 }
0x1033   :  { %v5210_v54 = vadd.f32 %v3323_v13, %v5090_v62  ;;  %v3325_v35 = vadd.f32 %v3324_v52, %v5168_v39  ;;  %v3341_v43 = vadd.f32 %v5204_v49, %v5200_v46  ;;  %v3356_v58 = vmul.f32 %v5204_v49, %v5204_v49  ;;  %v5280_v13 = vld [vmem:[#allocation19 + $0x2e0] sm:$0xff]  ;;  %v908_v52 = vld [vmem:[#allocation19 + $0xd8] sm:$0xff] }
0x1035   :  { %v5218_v34 = vadd.f32 %v3325_v35, %v5087_v60  ;;  %3342 = vadd.xlane.f32.xlu0 %v3341_v43  ;;  %v3365_v22 = vadd.f32 %v3356_v58, %v3355_v48  ;;  %v3357_v62 = vmul.f32 %v5210_v54, %v5210_v54  ;;  %v5283_v48 = vld [vmem:[#allocation19 + $0x2d8] sm:$0xff]  ;;  %v907_v35 = vld [vmem:[#allocation19 + $0xd0] sm:$0xff]  ;;  %v906_v58 = vld [vmem:[#allocation19 + $0xc8] sm:$0xff] }
0x1036   :  { %v5286_v43 = vld [vmem:[#allocation19 + $0x2d0] sm:$0xff] }
0x1037   :  { %3366 = vadd.xlane.f32.xlu1 %v3365_v22  ;;  %v3344_v61 = vadd.f32 %v5218_v34, %v5210_v54  ;;  %v3358_v39 = vmul.f32 %v5218_v34, %v5218_v34  ;;  %v5288_v22 = vld [vmem:[#allocation19 + $0x2c8] sm:$0xff] }
0x1039   :  { %3345 = vadd.xlane.f32.xlu0 %v3344_v61  ;;  %v3368_v32 = vadd.f32 %v3358_v39, %v3357_v62  ;;  %v905_v61 = vld [vmem:[#allocation19 + $0xc0] sm:$0xff]  ;;  %v904_v39 = vld [vmem:[#allocation19 + $0xb8] sm:$0xff] }
0x103a   :  { %v3337_v51 = vpop.xlane.xlu0 %3336  ;;  %v5291_v62 = vld [vmem:[#allocation19 + $0x2c0] sm:$0xff] }
0x103b   :  { %v3347_v23 = vmul.f32 0.00390625, %v3337_v51  ;;  %3369 = vadd.xlane.f32.xlu1 %v3368_v32  ;;  %v5294_v32 = vld [vmem:[#allocation19 + $0x2b8] sm:$0xff]  ;;  %v903_v51 = vld [vmem:[#allocation19 + $0xb0] sm:$0xff] }
0x103c   :  { %v3361_v56 = vpop.xlane.xlu1 %3360 }
0x103d   :  { %v3371_v60 = vmul.f32 0.00390625, %v3361_v56  ;;  %v3375_v24 = vmul.f32 %v3347_v23, %v3347_v23  ;;  %v3383_v20 = vsub.f32 %v5172_v6, %v3347_v23  ;;  %v3384_v57 = vsub.f32 %v5176_v30, %v3347_v23  ;;  %v5297_v23 = vld [vmem:[#allocation19 + $0x2b0] sm:$0xff]  ;;  %v902_v56 = vld [vmem:[#allocation19 + $0xa8] sm:$0xff] }
0x103e   :  { %v3340_v27 = vpop.xlane.xlu0 %3339 }
0x103f   :  { %v3379_v38 = vsub.f32 %v3371_v60, %v3375_v24  ;;  %v3348_v28 = vmul.f32 0.00390625, %v3340_v27  ;;  %v5300_v60 = vld [vmem:[#allocation19 + $0x2a8] sm:$0xff]  ;;  %v901_v24 = vld [vmem:[#allocation19 + $0xa0] sm:$0xff] }
0x1040   :  { %v3364_v45 = vpop.xlane.xlu1 %3363  ;;  %v5303_v27 = vld [vmem:[#allocation19 + $0x2a0] sm:$0xff] }
0x1041   :  { %v3391_v63 = vadd.f32 1e-05, %v3379_v38  ;;  %v3372_v53 = vmul.f32 0.00390625, %v3364_v45  ;;  %v3376_v25 = vmul.f32 %v3348_v28, %v3348_v28  ;;  %v3385_v30 = vsub.f32 %v5182_v44, %v3348_v28  ;;  %v900_v38 = vld [vmem:[#allocation19 + $0x98] sm:$0xff]  ;;  %v899_v45 = vld [vmem:[#allocation19 + $0x90] sm:$0xff] }
0x1042   :  { %v3386_v12 = vsub.f32 %v5190_v40, %v3348_v28  ;;  %v5306_v28 = vld [vmem:[#allocation19 + $0x298] sm:$0xff] }
0x1043   :  { %4319 = vrsqrt.f32 %v3391_v63  ;;  %v3380_v41 = vsub.f32 %v3372_v53, %v3376_v25  ;;  %v5309_v63 = vld [vmem:[#allocation19 + $0x290] sm:$0xff]  ;;  %v898_v53 = vld [vmem:[#allocation19 + $0x88] sm:$0xff] }
0x1044   :  { %v5312_v25 = vld [vmem:[#allocation19 + $0x288] sm:$0xff] }
0x1045   :  { %v3392_v42 = vadd.f32 1e-05, %v3380_v41  ;;  %v897_v41 = vld [vmem:[#allocation19 + $0x80] sm:$0xff] }
0x1047   :  { %4321 = vrsqrt.f32 %v3392_v42  ;;  %v5315_v42 = vld [vmem:[#allocation19 + $0x280] sm:$0xff] }
0x1050   :  { %v4320_v0 = vpop.eup %4319 }
0x1051   :  { %v3400_v14 = vmul.f32 %v4320_v0, %v3384_v57  ;;  %v3399_v5 = vmul.f32 %v4320_v0, %v3383_v20  ;;  %v895_v20 = vld [vmem:[#allocation19 + $0x70] sm:$0xff]  ;;  %v894_v0 = vld [vmem:[#allocation19 + $0x68] sm:$0xff] }
0x1052   :  { %v5321_v57 = vld [vmem:[#allocation19 + $0x270] sm:$0xff] }
0x1053   :  { %v3419_v11 = vmul.f32 %v5238_v59, %v3400_v14  ;;  %v3418_v6 = vmul.f32 %v5235_v3, %v3399_v5  ;;  %v5324_v14 = vld [vmem:[#allocation19 + $0x268] sm:$0xff]  ;;  %v893_v5 = vld [vmem:[#allocation19 + $0x60] sm:$0xff] }
0x1054   :  { %v4322_v7 = vpop.eup %4321 }
0x1055   :  { %v5251_v16 = vadd.f32 %v5244_v4, %v3419_v11  ;;  %v5254_v8 = vadd.f32 %v5241_v2, %v3418_v6  ;;  %v3402_v17 = vmul.f32 %v4322_v7, %v3386_v12  ;;  %v3401_v18 = vmul.f32 %v4322_v7, %v3385_v30  ;;  %v5327_v11 = vld [vmem:[#allocation19 + $0x260] sm:$0xff]  ;;  %v892_v6 = vld [vmem:[#allocation19 + $0x58] sm:$0xff]  ;;  %v891_v12 = vld [vmem:[#allocation19 + $0x50] sm:$0xff] }
0x1056   :  { %v5330_v30 = vld [vmem:[#allocation19 + $0x258] sm:$0xff]  ;;  %v5333_v7 = vld [vmem:[#allocation19 + $0x250] sm:$0xff] }
0x1057   :  { %5735 = vst [vmem:[#allocation28_spill] sm:$0xff] %v5251_v16  ;;  %5736 = vst [vmem:[#allocation29_spill] sm:$0xff] %v5254_v8  ;;  %3530 = vmatprep.mubr.f32.mxu1 %v5251_v16  ;;  %3619 = vmatprep.mubr.f32.mxu0 %v5251_v16  ;;  %v3421_v44 = vmul.f32 %v5238_v59, %v3402_v17  ;;  %v3420_v40 = vmul.f32 %v5235_v3, %v3401_v18  ;;  %v890_v17 = vld [vmem:[#allocation19 + $0x48] sm:$0xff]  ;;  %v5402_v16 = vld [vmem:[#allocation19 + $0x398] sm:$0xff] }
0x1058   :  { %3531 = vmatmul.mubr.f32.vlgmr.msra.gmra.mxu1 %v5254_v8  ;;  %3620 = vmatmul.mubr.f32.vlgmr.msra.gmra.mxu0 %v5254_v8  ;;  %v5336_v18 = vld [vmem:[#allocation19 + $0x248] sm:$0xff]  ;;  %5748 = vst [vmem:[#allocation41_spill] sm:$0xff] %v5402_v16  ;;  %v5405_v8 = vld [vmem:[#allocation19 + $0x390] sm:$0xff] }
0x1059   :  { %v5263_v9 = vadd.f32 %v5244_v4, %v3421_v44  ;;  %v5266_v19 = vadd.f32 %v5241_v2, %v3420_v40  ;;  %3672 = vmatpush1.msra.mxu1 %v911_v29  ;;  %3761 = vmatpush1.msra.mxu0 %v5275_v55  ;;  %v889_v44 = vld [vmem:[#allocation19 + $0x40] sm:$0xff]  ;;  %v5342_v29 = vld [vmem:[#allocation19 + $0x238] sm:$0xff]  ;;  %5749 = vst [vmem:[#allocation42_spill] sm:$0xff] %v5405_v8 }
0x105a   :  { %3673 = vmatprep.subr.mxu1 %v910_v33  ;;  %3762 = vmatprep.subr.mxu0 %v5278_v31  ;;  %v5339_v40 = vld [vmem:[#allocation19 + $0x240] sm:$0xff]  ;;  %v887_v33 = vld [vmem:[#allocation19 + $0x30] sm:$0xff] }
0x105b   :  { %5737 = vst [vmem:[#allocation30_spill] sm:$0xff] %v5263_v9  ;;  %5738 = vst [vmem:[#allocation31_spill] sm:$0xff] %v5266_v19  ;;  %3536 = vmatprep.mubr.f32.mxu1 %v5263_v9  ;;  %3625 = vmatprep.mubr.f32.mxu0 %v5263_v9  ;;  %v5396_v9 = vld [vmem:[#allocation19 + $0x3a8] sm:$0xff] }
0x105c   :  { %3537 = vmatmul.mubr.f32.gmra.mxu1 %v5266_v19  ;;  %3626 = vmatmul.mubr.f32.gmra.mxu0 %v5266_v19  ;;  %5746 = vst [vmem:[#allocation39_spill] sm:$0xff] %v5396_v9  ;;  %v5399_v19 = vld [vmem:[#allocation19 + $0x3a0] sm:$0xff] }
0x105d   :  { %3674 = vmatpush1.msra.mxu1 %v909_v47  ;;  %3763 = vmatpush1.msra.mxu0 %v5280_v13  ;;  %v5345_v47 = vld [vmem:[#allocation19 + $0x230] sm:$0xff]  ;;  %5747 = vst [vmem:[#allocation40_spill] sm:$0xff] %v5399_v19 }
0x105e   :  { %3675 = vmatprep.subr.mxu1 %v908_v52  ;;  %3764 = vmatprep.subr.mxu0 %v5283_v48  ;;  %v886_v52 = vld [vmem:[#allocation19 + $0x28] sm:$0xff] }
0x105f   :  { %3676 = vmatpush1.msra.mxu1 %v907_v35  ;;  %3765 = vmatpush1.msra.mxu0 %v5286_v43  ;;  %v5348_v35 = vld [vmem:[#allocation19 + $0x228] sm:$0xff] }
0x1060   :  { %3677 = vmatprep.subr.mxu1 %v906_v58  ;;  %3766 = vmatprep.subr.mxu0 %v5288_v22  ;;  %v885_v58 = vld [vmem:[#allocation19 + $0x20] sm:$0xff] }
0x1061   :  { %3678 = vmatpush1.msra.mxu1 %v905_v61  ;;  %3767 = vmatpush1.msra.mxu0 %v5291_v62  ;;  %v5351_v61 = vld [vmem:[#allocation19 + $0x220] sm:$0xff] }
0x1062   :  { %3679 = vmatprep.subr.mxu1 %v904_v39  ;;  %3768 = vmatprep.subr.mxu0 %v5294_v32  ;;  %v884_v39 = vld [vmem:[#allocation19 + $0x18] sm:$0xff] }
0x1063   :  { %3680 = vmatpush1.msra.mxu1 %v903_v51  ;;  %3769 = vmatpush1.msra.mxu0 %v5297_v23  ;;  %v5354_v51 = vld [vmem:[#allocation19 + $0x218] sm:$0xff] }
0x1064   :  { %3681 = vmatprep.subr.mxu1 %v902_v56  ;;  %3770 = vmatprep.subr.mxu0 %v5300_v60  ;;  %v883_v56 = vld [vmem:[#allocation19 + $0x10] sm:$0xff] }
0x1065   :  { %3682 = vmatpush1.msra.mxu1 %v901_v24  ;;  %3771 = vmatpush1.msra.mxu0 %v5303_v27  ;;  %v5357_v24 = vld [vmem:[#allocation19 + $0x210] sm:$0xff] }
0x1066   :  { %3683 = vmatprep.subr.mxu1 %v900_v38  ;;  %3772 = vmatprep.subr.mxu0 %v5306_v28  ;;  %v882_v38 = vld [vmem:[#allocation19 + $0x8] sm:$0xff] }
0x1067   :  { %3684 = vmatpush1.msra.mxu1 %v899_v45  ;;  %3773 = vmatpush1.msra.mxu0 %v5309_v63  ;;  %v5360_v45 = vld [vmem:[#allocation19 + $0x208] sm:$0xff] }
0x1068   :  { %3685 = vmatprep.subr.mxu1 %v898_v53  ;;  %3774 = vmatprep.subr.mxu0 %v5312_v25  ;;  %v881_v53 = vld [vmem:[#allocation19] sm:$0xff] }
0x1069   :  { %3686 = vmatpush1.msra.mxu1 %v897_v41  ;;  %3775 = vmatpush1.msra.mxu0 %v5315_v42  ;;  %v5363_v41 = vld [vmem:[#allocation19 + $0x200] sm:$0xff] }
0x106a   :  { %3687 = vmatprep.subr.mxu1 %v896_v36  ;;  %3776 = vmatprep.subr.mxu0 %v5318_v37  ;;  %v944_v36 = vld [vmem:[#allocation19 + $0x1f8] sm:$0xff] }
0x106b   :  { %3688 = vmatpush1.msra.mxu1 %v895_v20  ;;  %3777 = vmatpush1.msra.mxu0 %v5321_v57  ;;  %v5366_v20 = vld [vmem:[#allocation19 + $0x3f8] sm:$0xff] }
0x106c   :  { %3689 = vmatprep.subr.mxu1 %v894_v0  ;;  %3778 = vmatprep.subr.mxu0 %v5324_v14  ;;  %v943_v0 = vld [vmem:[#allocation19 + $0x1f0] sm:$0xff] }
0x106d   :  { %3690 = vmatpush1.msra.mxu1 %v893_v5  ;;  %3779 = vmatpush1.msra.mxu0 %v5327_v11  ;;  %v5369_v5 = vld [vmem:[#allocation19 + $0x3f0] sm:$0xff] }
0x106e   :  { %3691 = vmatprep.subr.mxu1 %v892_v6  ;;  %3780 = vmatprep.subr.mxu0 %v5330_v30  ;;  %v942_v6 = vld [vmem:[#allocation19 + $0x1e8] sm:$0xff] }
0x106f   :  { %3692 = vmatpush1.msra.mxu1 %v891_v12  ;;  %3781 = vmatpush1.msra.mxu0 %v5333_v7  ;;  %v5372_v12 = vld [vmem:[#allocation19 + $0x3e8] sm:$0xff] }
0x1070   :  { %3693 = vmatprep.subr.mxu1 %v890_v17  ;;  %3782 = vmatprep.subr.mxu0 %v5336_v18  ;;  %v941_v17 = vld [vmem:[#allocation19 + $0x1e0] sm:$0xff] }
0x1071   :  { %3694 = vmatpush1.msra.mxu1 %v889_v44  ;;  %3783 = vmatpush1.msra.mxu0 %v5339_v40  ;;  %v5375_v44 = vld [vmem:[#allocation19 + $0x3e0] sm:$0xff] }
0x1072   :  { %3695 = vmatprep.subr.mxu1 %v888_v50  ;;  %3784 = vmatprep.subr.mxu0 %v5342_v29  ;;  %5739 = vst [vmem:[#allocation32_spill] sm:$0xff] %v5375_v44  ;;  %v940_v50 = vld [vmem:[#allocation19 + $0x1d8] sm:$0xff] }
0x1073   :  { %3696 = vmatpush1.msra.mxu1 %v887_v33  ;;  %3785 = vmatpush1.msra.mxu0 %v5345_v47  ;;  %v5378_v33 = vld [vmem:[#allocation19 + $0x3d8] sm:$0xff] }
0x1074   :  { %3697 = vmatprep.subr.mxu1 %v886_v52  ;;  %3786 = vmatprep.subr.mxu0 %v5348_v35  ;;  %5740 = vst [vmem:[#allocation33_spill] sm:$0xff] %v5378_v33  ;;  %v939_v52 = vld [vmem:[#allocation19 + $0x1d0] sm:$0xff] }
0x1075   :  { %3698 = vmatpush1.msra.mxu1 %v885_v58  ;;  %3787 = vmatpush1.msra.mxu0 %v5351_v61  ;;  %v5381_v58 = vld [vmem:[#allocation19 + $0x3d0] sm:$0xff] }
0x1076   :  { %3699 = vmatprep.subr.mxu1 %v884_v39  ;;  %3788 = vmatprep.subr.mxu0 %v5354_v51  ;;  %5741 = vst [vmem:[#allocation34_spill] sm:$0xff] %v5381_v58  ;;  %v938_v39 = vld [vmem:[#allocation19 + $0x1c8] sm:$0xff] }
0x1077   :  { %3700 = vmatpush1.msra.mxu1 %v883_v56  ;;  %3789 = vmatpush1.msra.mxu0 %v5357_v24  ;;  %v5384_v56 = vld [vmem:[#allocation19 + $0x3c8] sm:$0xff] }
0x1078   :  { %3701 = vmatprep.subr.mxu1 %v882_v38  ;;  %3790 = vmatprep.subr.mxu0 %v5360_v45  ;;  %5742 = vst [vmem:[#allocation35_spill] sm:$0xff] %v5384_v56  ;;  %v937_v38 = vld [vmem:[#allocation19 + $0x1c0] sm:$0xff] }
0x1079   :  { %3702 = vmatpush1.msra.mxu1 %v881_v53  ;;  %3791 = vmatpush1.msra.mxu0 %v5363_v41  ;;  %v5387_v53 = vld [vmem:[#allocation19 + $0x3c0] sm:$0xff] }
0x107a   :  { %3703 = vmatprep.subr.mxu1 %v944_v36  ;;  %3792 = vmatprep.subr.mxu0 %v5366_v20  ;;  %5743 = vst [vmem:[#allocation36_spill] sm:$0xff] %v5387_v53  ;;  %v936_v36 = vld [vmem:[#allocation19 + $0x1b8] sm:$0xff] }
0x107b   :  { %3704 = vmatpush2.msra.mxu1 %v943_v0  ;;  %3793 = vmatpush2.msra.mxu0 %v5369_v5  ;;  %v5390_v0 = vld [vmem:[#allocation19 + $0x3b8] sm:$0xff] }
0x107c   :  { %3705 = vmatprep.subr.mxu1 %v942_v6  ;;  %3794 = vmatprep.subr.mxu0 %v5372_v12  ;;  %5744 = vst [vmem:[#allocation37_spill] sm:$0xff] %v5390_v0  ;;  %v935_v6 = vld [vmem:[#allocation19 + $0x1b0] sm:$0xff] }
0x107d   :  { %3706 = vmatpush2.msra.mxu1 %v941_v17  ;;  %3795 = vmatpush2.msra.mxu0 %v5375_v44  ;;  %v5393_v17 = vld [vmem:[#allocation19 + $0x3b0] sm:$0xff] }
0x107e   :  { %3707 = vmatprep.subr.mxu1 %v940_v50  ;;  %3796 = vmatprep.subr.mxu0 %v5378_v33  ;;  %5745 = vst [vmem:[#allocation38_spill] sm:$0xff] %v5393_v17  ;;  %v934_v50 = vld [vmem:[#allocation19 + $0x1a8] sm:$0xff] }
0x107f   :  { %3708 = vmatpush2.msra.mxu1 %v939_v52  ;;  %3797 = vmatpush2.msra.mxu0 %v5381_v58  ;;  %v933_v52 = vld [vmem:[#allocation19 + $0x1a0] sm:$0xff] }
0x1080   :  { %3709 = vmatprep.subr.mxu1 %v938_v39  ;;  %3798 = vmatprep.subr.mxu0 %v5384_v56  ;;  %v932_v39 = vld [vmem:[#allocation19 + $0x198] sm:$0xff] }
0x1081   :  { %3710 = vmatpush2.msra.mxu1 %v937_v38  ;;  %3799 = vmatpush2.msra.mxu0 %v5387_v53  ;;  %v931_v38 = vld [vmem:[#allocation19 + $0x190] sm:$0xff] }
0x1082   :  { %3711 = vmatprep.subr.mxu1 %v936_v36  ;;  %3800 = vmatprep.subr.mxu0 %v5390_v0  ;;  %v930_v36 = vld [vmem:[#allocation19 + $0x188] sm:$0xff] }
0x1083   :  { %3712 = vmatpush2.msra.mxu1 %v935_v6  ;;  %3801 = vmatpush2.msra.mxu0 %v5393_v17  ;;  %v5408_v0 = vld [vmem:[#allocation19 + $0x388] sm:$0xff]  ;;  %v929_v6 = vld [vmem:[#allocation19 + $0x180] sm:$0xff] }
0x1084   :  { %3713 = vmatprep.subr.mxu1 %v934_v50  ;;  %3802 = vmatprep.subr.mxu0 %v5396_v9  ;;  %5750 = vst [vmem:[#allocation43_spill] sm:$0xff] %v5408_v0  ;;  %v5411_v17 = vld [vmem:[#allocation19 + $0x380] sm:$0xff]  ;;  %v928_v50 = vld [vmem:[#allocation19 + $0x178] sm:$0xff] }
0x1085   :  { %3714 = vmatpush2.msra.mxu1 %v933_v52  ;;  %3803 = vmatpush2.msra.mxu0 %v5399_v19  ;;  %5751 = vst [vmem:[#allocation44_spill] sm:$0xff] %v5411_v17  ;;  %v5414_v9 = vld [vmem:[#allocation19 + $0x378] sm:$0xff]  ;;  %v927_v52 = vld [vmem:[#allocation19 + $0x170] sm:$0xff] }
0x1086   :  { %3715 = vmatprep.subr.mxu1 %v932_v39  ;;  %3804 = vmatprep.subr.mxu0 %v5402_v16  ;;  %5752 = vst [vmem:[#allocation45_spill] sm:$0xff] %v5414_v9  ;;  %v5417_v19 = vld [vmem:[#allocation19 + $0x370] sm:$0xff]  ;;  %v926_v39 = vld [vmem:[#allocation19 + $0x168] sm:$0xff] }
0x1087   :  { %3716 = vmatpush2.msra.mxu1 %v931_v38  ;;  %3805 = vmatpush2.msra.mxu0 %v5405_v8  ;;  %5753 = vst [vmem:[#allocation46_spill] sm:$0xff] %v5417_v19  ;;  %v5420_v16 = vld [vmem:[#allocation19 + $0x368] sm:$0xff]  ;;  %v925_v38 = vld [vmem:[#allocation19 + $0x160] sm:$0xff] }
0x1088   :  { %3717 = vmatprep.subr.mxu1 %v930_v36  ;;  %3806 = vmatprep.subr.mxu0 %v5408_v0  ;;  %5754 = vst [vmem:[#allocation47_spill] sm:$0xff] %v5420_v16  ;;  %v5423_v8 = vld [vmem:[#allocation19 + $0x360] sm:$0xff]  ;;  %v924_v36 = vld [vmem:[#allocation19 + $0x158] sm:$0xff] }
0x1089   :  { %3718 = vmatpush2.msra.mxu1 %v929_v6  ;;  %3807 = vmatpush2.msra.mxu0 %v5411_v17  ;;  %5755 = vst [vmem:[#allocation48_spill] sm:$0xff] %v5423_v8  ;;  %v5426_v0 = vld [vmem:[#allocation19 + $0x358] sm:$0xff]  ;;  %v923_v6 = vld [vmem:[#allocation19 + $0x150] sm:$0xff] }
0x108a   :  { %3719 = vmatprep.subr.mxu1 %v928_v50  ;;  %3808 = vmatprep.subr.mxu0 %v5414_v9  ;;  %5756 = vst [vmem:[#allocation49_spill] sm:$0xff] %v5426_v0  ;;  %v5429_v17 = vld [vmem:[#allocation19 + $0x350] sm:$0xff]  ;;  %v922_v50 = vld [vmem:[#allocation19 + $0x148] sm:$0xff] }
0x108b   :  { %3720 = vmatpush2.msra.mxu1 %v927_v52  ;;  %3809 = vmatpush2.msra.mxu0 %v5417_v19  ;;  %5757 = vst [vmem:[#allocation50_spill] sm:$0xff] %v5429_v17  ;;  %v5432_v9 = vld [vmem:[#allocation19 + $0x348] sm:$0xff]  ;;  %v921_v52 = vld [vmem:[#allocation19 + $0x140] sm:$0xff] }
0x108c   :  { %3721 = vmatprep.subr.mxu1 %v926_v39  ;;  %3810 = vmatprep.subr.mxu0 %v5420_v16  ;;  %5758 = vst [vmem:[#allocation51_spill] sm:$0xff] %v5432_v9  ;;  %v5435_v19 = vld [vmem:[#allocation19 + $0x340] sm:$0xff]  ;;  %v920_v39 = vld [vmem:[#allocation19 + $0x138] sm:$0xff] }
0x108d   :  { %3722 = vmatpush2.msra.mxu1 %v925_v38  ;;  %3811 = vmatpush2.msra.mxu0 %v5423_v8  ;;  %5759 = vst [vmem:[#allocation52_spill] sm:$0xff] %v5435_v19  ;;  %v5440_v38 = vld [vmem:[#allocation19 + $0x338] sm:$0xff] }
0x108e   :  { %3723 = vmatprep.subr.mxu1 %v924_v36  ;;  %3812 = vmatprep.subr.mxu0 %v5426_v0  ;;  %5760 = vst [vmem:[#allocation53_spill] sm:$0xff] %v5440_v38  ;;  %v919_v36 = vld [vmem:[#allocation19 + $0x130] sm:$0xff] }
0x108f   :  { %3724 = vmatpush2.msra.mxu1 %v923_v6  ;;  %3813 = vmatpush2.msra.mxu0 %v5429_v17  ;;  %v5443_v0 = vld [vmem:[#allocation19 + $0x330] sm:$0xff]  ;;  %v918_v6 = vld [vmem:[#allocation19 + $0x128] sm:$0xff] }
0x1090   :  { %3725 = vmatprep.subr.mxu1 %v922_v50  ;;  %3814 = vmatprep.subr.mxu0 %v5432_v9  ;;  %5761 = vst [vmem:[#allocation54_spill] sm:$0xff] %v5443_v0  ;;  %v5446_v17 = vld [vmem:[#allocation19 + $0x328] sm:$0xff]  ;;  %v917_v50 = vld [vmem:[#allocation19 + $0x120] sm:$0xff] }
0x1091   :  { %3726 = vmatpush2.msra.mxu1 %v921_v52  ;;  %3815 = vmatpush2.msra.mxu0 %v5435_v19  ;;  %5762 = vst [vmem:[#allocation55_spill] sm:$0xff] %v5446_v17  ;;  %v5449_v52 = vld [vmem:[#allocation19 + $0x320] sm:$0xff] }
0x1092   :  { %3727 = vmatprep.subr.mxu1 %v920_v39  ;;  %3816 = vmatprep.subr.mxu0 %v5440_v38  ;;  %5763 = vst [vmem:[#allocation56_spill] sm:$0xff] %v5449_v52  ;;  %v916_v39 = vld [vmem:[#allocation19 + $0x118] sm:$0xff] }
0x1093   :  { %3728 = vmatpush2.msra.mxu1 %v919_v36  ;;  %3817 = vmatpush2.msra.mxu0 %v5443_v0  ;;  %v5452_v38 = vld [vmem:[#allocation19 + $0x318] sm:$0xff]  ;;  %v915_v36 = vld [vmem:[#allocation19 + $0x110] sm:$0xff] }
0x1094   :  { %3729 = vmatprep.subr.mxu1 %v918_v6  ;;  %3818 = vmatprep.subr.mxu0 %v5446_v17  ;;  %5764 = vst [vmem:[#allocation57_spill] sm:$0xff] %v5452_v38  ;;  %v5455_v0 = vld [vmem:[#allocation19 + $0x310] sm:$0xff]  ;;  %v914_v6 = vld [vmem:[#allocation19 + $0x108] sm:$0xff] }
0x1095   :  { %3730 = vmatpush2.msra.mxu1 %v917_v50  ;;  %3819 = vmatpush2.msra.mxu0 %v5449_v52  ;;  %5765 = vst [vmem:[#allocation58_spill] sm:$0xff] %v5455_v0  ;;  %v5458_v17 = vld [vmem:[#allocation19 + $0x308] sm:$0xff]  ;;  %v913_v50 = vld [vmem:[#allocation19 + $0x100] sm:$0xff] }
0x1096   :  { %3731 = vmatprep.subr.mxu1 %v916_v39  ;;  %3820 = vmatprep.subr.mxu0 %v5452_v38  ;;  %5766 = vst [vmem:[#allocation59_spill] sm:$0xff] %v5458_v17  ;;  %v5461_v52 = vld [vmem:[#allocation19 + $0x300] sm:$0xff] }
0x1097   :  { %3732 = vmatpush2.msra.mxu1 %v915_v36  ;;  %3821 = vmatpush2.msra.mxu0 %v5455_v0  ;;  %5767 = vst [vmem:[#allocation60_spill] sm:$0xff] %v5461_v52 }
0x1098   :  { %3733 = vmatprep.subr.mxu1 %v914_v6  ;;  %3822 = vmatprep.subr.mxu0 %v5458_v17 }
0x1099   :  { %3734 = vmatpush2.msra.mxu1 %v913_v50  ;;  %3823 = vmatpush2.msra.mxu0 %v5461_v52 }
0x109a   :  { %4165 = vmatprep.subr.mxu1 %v5272_v21 }
0x10be   :  { %v3343_v39 = vpop.xlane.xlu0 %3342 }
0x10bf   :  { %v3349_v38 = vmul.f32 0.00390625, %v3343_v39 }
0x10c0   :  { %v3367_v19 = vpop.xlane.xlu1 %3366 }
0x10c1   :  { %v3373_v36 = vmul.f32 0.00390625, %v3367_v19  ;;  %v3377_v9 = vmul.f32 %v3349_v38, %v3349_v38  ;;  %v3387_v50 = vsub.f32 %v5200_v46, %v3349_v38  ;;  %v3388_v21 = vsub.f32 %v5204_v49, %v3349_v38 }
0x10c2   :  { %v3346_v0 = vpop.xlane.xlu0 %3345 }
0x10c3   :  { %v3381_v8 = vsub.f32 %v3373_v36, %v3377_v9  ;;  %v3350_v16 = vmul.f32 0.00390625, %v3346_v0 }
0x10c4   :  { %v3370_v53 = vpop.xlane.xlu1 %3369 }
0x10c5   :  { %v3393_v6 = vadd.f32 1e-05, %v3381_v8  ;;  %v3374_v56 = vmul.f32 0.00390625, %v3370_v53  ;;  %v3378_v17 = vmul.f32 %v3350_v16, %v3350_v16  ;;  %v3389_v0 = vsub.f32 %v5210_v54, %v3350_v16 }
0x10c6   :  { %v3390_v8 = vsub.f32 %v5218_v34, %v3350_v16 }
0x10c7   :  { %4323 = vrsqrt.f32 %v3393_v6  ;;  %v3382_v58 = vsub.f32 %v3374_v56, %v3378_v17 }
0x10c9   :  { %v3394_v33 = vadd.f32 1e-05, %v3382_v58 }
0x10cb   :  { %4325 = vrsqrt.f32 %v3394_v33 }
0x10d4   :  { %v4324_v52 = vpop.eup %4323 }
0x10d5   :  { %v3404_v39 = vmul.f32 %v4324_v52, %v3388_v21  ;;  %v3403_v44 = vmul.f32 %v4324_v52, %v3387_v50 }
0x10d7   :  { %v3423_v19 = vmul.f32 %v5238_v59, %v3404_v39  ;;  %v3422_v9 = vmul.f32 %v5235_v3, %v3403_v44 }
0x10d8   :  { %v4326_v53 = vpop.eup %4325 }
0x10d9   :  { %v5472_v56 = vadd.f32 %v5244_v4, %v3423_v19  ;;  %v5475_v33 = vadd.f32 %v5241_v2, %v3422_v9  ;;  %v3406_v46 = vmul.f32 %v4326_v53, %v3390_v8  ;;  %v3405_v49 = vmul.f32 %v4326_v53, %v3389_v0 }
0x10db   :  { %3542 = vmatprep.mubr.f32.mxu1 %v5472_v56  ;;  %3631 = vmatprep.mubr.f32.mxu0 %v5472_v56  ;;  %v3425_v54 = vmul.f32 %v5238_v59, %v3406_v46  ;;  %v3424_v34 = vmul.f32 %v5235_v3, %v3405_v49  ;;  %v880_v59 = vld [vmem:[%s5683_s19] sm:$0xf] }
0x10dc   :  { %3543 = vmatmul.mubr.f32.gmra.mxu1 %v5475_v33  ;;  %3632 = vmatmul.mubr.f32.gmra.mxu0 %v5475_v33  ;;  %v5497_v3 = vrot.slane %v880_v59, %v4819_v15  ;;  %v5506_v58 = vrot.slane %v880_v59, %v4822_v1 }
0x10dd   :  { %v5484_v16 = vadd.f32 %v5244_v4, %v3425_v54  ;;  %v5487_v44 = vadd.f32 %v5241_v2, %v3424_v34  ;;  %v5500_v4 = vrot.slane %v880_v59, %v4829_v10  ;;  %v5503_v2 = vrot.slane %v880_v59, %v4843_v26 }
0x10df   :  { %3548 = vmatprep.mubr.f32.mxu1 %v5484_v16  ;;  %3637 = vmatprep.mubr.f32.mxu0 %v5484_v16 }
0x10e0   :  { %3549 = vmatmul.mubr.f32.gmra.mxu1 %v5487_v44  ;;  %3638 = vmatmul.mubr.f32.gmra.mxu0 %v5487_v44 }
0x1118   :  { %v3532_v17 = vpop.f32.mrf.mxu1  ;;  %v3621_v38 = vpop.f32.mrf.mxu0 }
0x1119   :  { %v3533_v52 = vadd.f32 %v3532_v17, %v5497_v3  ;;  %v3622_v36 = vadd.f32 %v3621_v38, %v5500_v4 }
0x111a   :  { %v3534_v6 = vpop.f32.mrf.mxu1  ;;  %v3623_v50 = vpop.f32.mrf.mxu0 }
0x111b   :  { %v3535_v21 = vadd.f32 %v3534_v6, %v5503_v2  ;;  %v3624_v39 = vadd.f32 %v3623_v50, %v5506_v58  ;;  %v3644_v8 = vmax.f32 %v3533_v52, 0.0  ;;  %v3646_v53 = vmax.f32 %v3622_v36, 0.0 }
0x111c   :  { %v3538_v9 = vpop.f32.mrf.mxu1  ;;  %v3627_v0 = vpop.f32.mrf.mxu0 }
0x111d   :  { %v3645_v10 = vmax.f32 %v3535_v21, 0.0  ;;  %v3647_v19 = vmax.f32 %v3624_v39, 0.0  ;;  %v3539_v1 = vadd.f32 %v3538_v9, %v5497_v3  ;;  %v3628_v46 = vadd.f32 %v3627_v0, %v5500_v4 }
0x111e   :  { %v3540_v49 = vpop.f32.mrf.mxu1  ;;  %v3629_v54 = vpop.f32.mrf.mxu0 }
0x111f   :  { %3735 = vmatprep.mubr.f32.mxu1 %v3645_v10  ;;  %3824 = vmatprep.mubr.f32.mxu0 %v3647_v19  ;;  %v3541_v34 = vadd.f32 %v3540_v49, %v5503_v2  ;;  %v3630_v59 = vadd.f32 %v3629_v54, %v5506_v58  ;;  %v3648_v52 = vmax.f32 %v3539_v1, 0.0  ;;  %v3650_v36 = vmax.f32 %v3628_v46, 0.0 }
0x1120   :  { %3736 = vmatmul.mubr.f32.vlgmr.msra.gmra.mxu1 %v3644_v8  ;;  %3825 = vmatmul.mubr.f32.vlgmr.msra.gmra.mxu0 %v3646_v53 }
0x1121   :  { %4197 = vmatpush1.msra.mxu1 %v5275_v55  ;;  %v3649_v17 = vmax.f32 %v3541_v34, 0.0  ;;  %v3651_v38 = vmax.f32 %v3630_v59, 0.0  ;;  %v5768_v55 = vld [vmem:[#allocation32_spill] sm:$0xff] }
0x1122   :  { %4166 = vmatprep.subr.mxu1 %v5278_v31  ;;  %v5769_v31 = vld [vmem:[#allocation33_spill] sm:$0xff] }
0x1123   :  { %4198 = vmatpush1.msra.mxu1 %v5280_v13  ;;  %3741 = vmatprep.mubr.f32.mxu1 %v3649_v17  ;;  %v5770_v13 = vld [vmem:[#allocation34_spill] sm:$0xff] }
0x1124   :  { %3830 = vmatprep.mubr.f32.mxu0 %v3651_v38  ;;  %3742 = vmatmul.mubr.f32.gmra.mxu1 %v3648_v52 }
0x1125   :  { %3831 = vmatmul.mubr.f32.gmra.mxu0 %v3650_v36  ;;  %4167 = vmatprep.subr.mxu1 %v5283_v48  ;;  %v5771_v48 = vld [vmem:[#allocation35_spill] sm:$0xff] }
0x1126   :  { %4199 = vmatpush1.msra.mxu1 %v5286_v43  ;;  %v5772_v43 = vld [vmem:[#allocation36_spill] sm:$0xff] }
0x1127   :  { %4168 = vmatprep.subr.mxu1 %v5288_v22  ;;  %v5773_v22 = vld [vmem:[#allocation37_spill] sm:$0xff] }
0x1128   :  { %4200 = vmatpush1.msra.mxu1 %v5291_v62  ;;  %v5774_v62 = vld [vmem:[#allocation38_spill] sm:$0xff] }
0x1129   :  { %4169 = vmatprep.subr.mxu1 %v5294_v32  ;;  %v5775_v32 = vld [vmem:[#allocation39_spill] sm:$0xff] }
0x112a   :  { %4201 = vmatpush1.msra.mxu1 %v5297_v23  ;;  %v5776_v23 = vld [vmem:[#allocation40_spill] sm:$0xff] }
0x112b   :  { %4170 = vmatprep.subr.mxu1 %v5300_v60  ;;  %v5777_v60 = vld [vmem:[#allocation41_spill] sm:$0xff] }
0x112c   :  { %4202 = vmatpush1.msra.mxu1 %v5303_v27  ;;  %v5778_v27 = vld [vmem:[#allocation42_spill] sm:$0xff] }
0x112d   :  { %4171 = vmatprep.subr.mxu1 %v5306_v28  ;;  %v5779_v28 = vld [vmem:[#allocation43_spill] sm:$0xff] }
0x112e   :  { %4203 = vmatpush1.msra.mxu1 %v5309_v63  ;;  %v5780_v63 = vld [vmem:[#allocation44_spill] sm:$0xff] }
0x112f   :  { %4172 = vmatprep.subr.mxu1 %v5312_v25  ;;  %v5781_v25 = vld [vmem:[#allocation45_spill] sm:$0xff] }
0x1130   :  { %4204 = vmatpush1.msra.mxu1 %v5315_v42  ;;  %v5782_v42 = vld [vmem:[#allocation46_spill] sm:$0xff] }
0x1131   :  { %4173 = vmatprep.subr.mxu1 %v5318_v37  ;;  %v5783_v37 = vld [vmem:[#allocation47_spill] sm:$0xff] }
0x1132   :  { %4205 = vmatpush1.msra.mxu1 %v5321_v57  ;;  %v5784_v57 = vld [vmem:[#allocation48_spill] sm:$0xff] }
0x1133   :  { %4174 = vmatprep.subr.mxu1 %v5324_v14  ;;  %v5785_v14 = vld [vmem:[#allocation49_spill] sm:$0xff] }
0x1134   :  { %4206 = vmatpush1.msra.mxu1 %v5327_v11  ;;  %v5786_v11 = vld [vmem:[#allocation50_spill] sm:$0xff] }
0x1135   :  { %4175 = vmatprep.subr.mxu1 %v5330_v30  ;;  %v5787_v30 = vld [vmem:[#allocation51_spill] sm:$0xff] }
0x1136   :  { %4207 = vmatpush1.msra.mxu1 %v5333_v7  ;;  %v5788_v7 = vld [vmem:[#allocation52_spill] sm:$0xff] }
0x1137   :  { %4176 = vmatprep.subr.mxu1 %v5336_v18  ;;  %v5789_v18 = vld [vmem:[#allocation53_spill] sm:$0xff] }
0x1138   :  { %4208 = vmatpush1.msra.mxu1 %v5339_v40  ;;  %v5790_v40 = vld [vmem:[#allocation54_spill] sm:$0xff] }
0x1139   :  { %4177 = vmatprep.subr.mxu1 %v5342_v29  ;;  %v5791_v29 = vld [vmem:[#allocation55_spill] sm:$0xff] }
0x113a   :  { %4209 = vmatpush1.msra.mxu1 %v5345_v47  ;;  %v5792_v47 = vld [vmem:[#allocation56_spill] sm:$0xff] }
0x113b   :  { %4178 = vmatprep.subr.mxu1 %v5348_v35  ;;  %v5793_v35 = vld [vmem:[#allocation57_spill] sm:$0xff] }
0x113c   :  { %4210 = vmatpush1.msra.mxu1 %v5351_v61  ;;  %v5794_v61 = vld [vmem:[#allocation58_spill] sm:$0xff] }
0x113d   :  { %4179 = vmatprep.subr.mxu1 %v5354_v51  ;;  %v5795_v51 = vld [vmem:[#allocation59_spill] sm:$0xff] }
0x113e   :  { %4211 = vmatpush1.msra.mxu1 %v5357_v24  ;;  %v5796_v24 = vld [vmem:[#allocation60_spill] sm:$0xff] }
0x113f   :  { %4180 = vmatprep.subr.mxu1 %v5360_v45 }
0x1140   :  { %4212 = vmatpush1.msra.mxu1 %v5363_v41 }
0x1141   :  { %4181 = vmatprep.subr.mxu1 %v5366_v20 }
0x1142   :  { %4213 = vmatpush2.msra.mxu1 %v5369_v5 }
0x1143   :  { %4182 = vmatprep.subr.mxu1 %v5372_v12 }
0x1144   :  { %4214 = vmatpush2.msra.mxu1 %v5768_v55 }
0x1145   :  { %4183 = vmatprep.subr.mxu1 %v5769_v31 }
0x1146   :  { %4215 = vmatpush2.msra.mxu1 %v5770_v13 }
0x1147   :  { %4184 = vmatprep.subr.mxu1 %v5771_v48 }
0x1148   :  { %4216 = vmatpush2.msra.mxu1 %v5772_v43 }
0x1149   :  { %4185 = vmatprep.subr.mxu1 %v5773_v22 }
0x114a   :  { %4217 = vmatpush2.msra.mxu1 %v5774_v62 }
0x114b   :  { %4186 = vmatprep.subr.mxu1 %v5775_v32 }
0x114c   :  { %4218 = vmatpush2.msra.mxu1 %v5776_v23 }
0x114d   :  { %4187 = vmatprep.subr.mxu1 %v5777_v60  ;;  %v5797_v60 = vld [vmem:[#allocation29_spill] sm:$0xff] }
0x114e   :  { %4219 = vmatpush2.msra.mxu1 %v5778_v27 }
0x114f   :  { %4188 = vmatprep.subr.mxu1 %v5779_v28  ;;  %v5798_v28 = vld [vmem:[#allocation28_spill] sm:$0xff] }
0x1150   :  { %4220 = vmatpush2.msra.mxu1 %v5780_v63 }
0x1151   :  { %4189 = vmatprep.subr.mxu1 %v5781_v25 }
0x1152   :  { %4221 = vmatpush2.msra.mxu1 %v5782_v42 }
0x1153   :  { %4190 = vmatprep.subr.mxu1 %v5783_v37 }
0x1154   :  { %4222 = vmatpush2.msra.mxu1 %v5784_v57 }
0x1155   :  { %4191 = vmatprep.subr.mxu1 %v5785_v14 }
0x1156   :  { %4223 = vmatpush2.msra.mxu1 %v5786_v11 }
0x1157   :  { %4192 = vmatprep.subr.mxu1 %v5787_v30 }
0x1158   :  { %4224 = vmatpush2.msra.mxu1 %v5788_v7 }
0x1159   :  { %4193 = vmatprep.subr.mxu1 %v5789_v18  ;;  %v5799_v18 = vld [vmem:[#allocation31_spill] sm:$0xff] }
0x115a   :  { %4225 = vmatpush2.msra.mxu1 %v5790_v40 }
0x115b   :  { %4194 = vmatprep.subr.mxu1 %v5791_v29  ;;  %v5800_v29 = vld [vmem:[#allocation30_spill] sm:$0xff] }
0x115c   :  { %4226 = vmatpush2.msra.mxu1 %v5792_v47 }
0x115d   :  { %4195 = vmatprep.subr.mxu1 %v5793_v35 }
0x115e   :  { %4227 = vmatpush2.msra.mxu1 %v5794_v61 }
0x115f   :  { %4196 = vmatprep.subr.mxu1 %v5795_v51 }
0x1160   :  { %4228 = vmatpush2.msra.mxu1 %v5796_v24 }
0x119c   :  { %v3544_v45 = vpop.f32.mrf.mxu1  ;;  %v3633_v41 = vpop.f32.mrf.mxu0 }
0x119d   :  { %v3545_v20 = vadd.f32 %v3544_v45, %v5497_v3  ;;  %v3634_v46 = vadd.f32 %v3633_v41, %v5500_v4 }
0x119e   :  { %v3546_v5 = vpop.f32.mrf.mxu1  ;;  %v3635_v12 = vpop.f32.mrf.mxu0 }
0x119f   :  { %v3547_v6 = vadd.f32 %v3546_v5, %v5503_v2  ;;  %v3652_v10 = vmax.f32 %v3545_v20, 0.0  ;;  %v3636_v0 = vadd.f32 %v3635_v12, %v5506_v58  ;;  %v3654_v59 = vmax.f32 %v3634_v46, 0.0 }
0x11a0   :  { %v3550_v21 = vpop.f32.mrf.mxu1  ;;  %v3639_v39 = vpop.f32.mrf.mxu0 }
0x11a1   :  { %v3653_v50 = vmax.f32 %v3547_v6, 0.0  ;;  %v3551_v19 = vadd.f32 %v3550_v21, %v5497_v3  ;;  %v3655_v54 = vmax.f32 %v3636_v0, 0.0  ;;  %v3640_v3 = vadd.f32 %v3639_v39, %v5500_v4 }
0x11a2   :  { %v3552_v9 = vpop.f32.mrf.mxu1  ;;  %v3641_v53 = vpop.f32.mrf.mxu0 }
0x11a3   :  { %3747 = vmatprep.mubr.f32.mxu1 %v3653_v50  ;;  %v3553_v8 = vadd.f32 %v3552_v9, %v5503_v2  ;;  %v3656_v49 = vmax.f32 %v3551_v19, 0.0  ;;  %v3642_v34 = vadd.f32 %v3641_v53, %v5506_v58  ;;  %v3658_v38 = vmax.f32 %v3640_v3, 0.0  ;;  %v1009_v2 = vld [vmem:[%s5685_s21] sm:$0x3] }
0x11a4   :  { %3748 = vmatmul.mubr.f32.gmra.mxu1 %v3652_v10  ;;  %v3664_v52 = vrot.slane %v1009_v2, %v4819_v15  ;;  %v3668_v36 = vrot.slane %v1009_v2, %v4843_v26 }
0x11a5   :  { %v3657_v1 = vmax.f32 %v3553_v8, 0.0  ;;  %v3659_v17 = vmax.f32 %v3642_v34, 0.0 }
0x11a7   :  { %3753 = vmatprep.mubr.f32.mxu1 %v3657_v1 }
0x11a8   :  { %3754 = vmatmul.mubr.f32.gmra.mxu1 %v3656_v49 }
0x11a9   :  { %3836 = vmatprep.mubr.f32.mxu1 %v3655_v54 }
0x11ac   :  { %3837 = vmatmul.mubr.f32.vlgmr.msra.gmra.mxu1 %v3654_v59 }
0x11ad   :  { %3842 = vmatprep.mubr.f32.mxu1 %v3659_v17 }
0x11b0   :  { %3843 = vmatmul.mubr.f32.gmra.mxu1 %v3658_v38 }
0x11e0   :  { %v3737_v58 = vpop.f32.mrf.mxu1  ;;  %v3826_v55 = vpop.f32.mrf.mxu0 }
0x11e1   :  { %v3738_v31 = vadd.f32 %v3737_v58, %v3664_v52 }
0x11e2   :  { %v3739_v13 = vpop.f32.mrf.mxu1  ;;  %v3828_v48 = vpop.f32.mrf.mxu0 }
0x11e3   :  { %v3827_v43 = vadd.f32 %v3826_v55, %v3738_v31  ;;  %v3740_v4 = vadd.f32 %v3739_v13, %v3668_v36 }
0x11e4   :  { %v3743_v62 = vpop.f32.mrf.mxu1 }
0x11e5   :  { %v3829_v22 = vadd.f32 %v3828_v48, %v3740_v4  ;;  %v3832_v32 = vpop.f32.mrf.mxu0  ;;  %v3744_v23 = vadd.f32 %v3743_v62, %v3664_v52  ;;  %v5593_v27 = vadd.f32 %v3827_v43, %v5797_v60 }
0x11e6   :  { %v3745_v25 = vpop.f32.mrf.mxu1 }
0x11e7   :  { %v5596_v63 = vadd.f32 %v3829_v22, %v5798_v28  ;;  %v3833_v42 = vadd.f32 %v3832_v32, %v3744_v23  ;;  %v3746_v37 = vadd.f32 %v3745_v25, %v3668_v36  ;;  %v3834_v57 = vpop.f32.mrf.mxu0  ;;  %v3873_v7 = vmul.f32 %v5593_v27, %v5593_v27  ;;  %v750_v28 = vld [vmem:[%s5680_s16] sm:$0x3]  ;;  %s4614_s16 = smov [#allocation20]  }
0x11e8   :  { %v751_v25 = vld [vmem:[%s5681_s17] sm:$0x3]  ;;  %s3980_s17 = sshll.u32 %s4614_s16, 4  ;;  %s3981_s17 = int_to_ptr.vmem [resolvable:$true] %s3980_s17 }
0x11e9   :  { %v3857_v14 = vadd.f32 %v5596_v63, %v5593_v27  ;;  %v3874_v11 = vmul.f32 %v5596_v63, %v5596_v63  ;;  %v3835_v30 = vadd.f32 %v3834_v57, %v3746_v37  ;;  %v5605_v40 = vadd.f32 %v3833_v42, %v5799_v18  ;;  %s4563_s28 = scalar_lea.vmem %s3981_s17, 1024  ;;  %p4568_p0 = scmp.lt.s32.totalorder %s3981_s17, %s3981_s17 }
0x11ea   :  { %v3933_v57 = vrot.slane %v750_v28, %v4819_v15  ;;  %p4564_p13 = scmp.ne.s32.totalorder %s3981_s17, %s4563_s28  ;;  %p4569_p1 = scmp.lt.s32.totalorder %s4563_s28, %s4563_s28 }
0x11eb   :  { %3858 = vadd.xlane.f32.xlu0 %v3857_v14  ;;  %v5608_v47 = vadd.f32 %v3835_v30, %v5800_v29  ;;  %v3881_v35 = vadd.f32 %v3874_v11, %v3873_v7  ;;  %v3875_v24 = vmul.f32 %v5605_v40, %v5605_v40  ;;  %v3937_v14 = vrot.slane %v750_v28, %v4843_v26 }
0x11ec   :  { %v3952_v30 = vrot.slane %v751_v25, %v4819_v15  ;;  %v3956_v7 = vrot.slane %v751_v25, %v4843_v26  ;;  %p4570_p2 = por %p4569_p1, %p4568_p0 }
0x11ed   :  { %v3860_v61 = vadd.f32 %v5608_v47, %v5605_v40  ;;  %v3876_v51 = vmul.f32 %v5608_v47, %v5608_v47 }
0x11ee   :  { %p4571_p3 = pnand %p4570_p2, %p4564_p13 }
0x11ef   :  { %3882 = vadd.xlane.f32.xlu0 %v3881_v35  ;;  %3861 = vadd.xlane.f32.xlu1 %v3860_v61  ;;  %v3884_v45 = vadd.f32 %v3876_v51, %v3875_v24 }
0x11f3   :  { %3885 = vadd.xlane.f32.xlu1 %v3884_v45 }
0x1264   :  { %v3749_v41 = vpop.f32.mrf.mxu1 }
0x1265   :  { %v3750_v6 = vadd.f32 %v3749_v41, %v3664_v52 }
0x1266   :  { %v3751_v20 = vpop.f32.mrf.mxu1 }
0x1267   :  { %v3752_v21 = vadd.f32 %v3751_v20, %v3668_v36 }
0x1268   :  { %v3755_v5 = vpop.f32.mrf.mxu1 }
0x1269   :  { %v3756_v19 = vadd.f32 %v3755_v5, %v3664_v52 }
0x126a   :  { %v3757_v12 = vpop.f32.mrf.mxu1 }
0x126b   :  { %v3758_v8 = vadd.f32 %v3757_v12, %v3668_v36 }
0x126c   :  { %v3838_v50 = vpop.f32.mrf.mxu1 }
0x126d   :  { %v3839_v39 = vadd.f32 %v3838_v50, %v3750_v6 }
0x126e   :  { %v3840_v10 = vpop.f32.mrf.mxu1 }
0x126f   :  { %v3841_v9 = vadd.f32 %v3840_v10, %v3752_v21  ;;  %v5617_v53 = vadd.f32 %v3839_v39, %v5475_v33 }
0x1270   :  { %v3844_v0 = vpop.f32.mrf.mxu1 }
0x1271   :  { %v5620_v1 = vadd.f32 %v3841_v9, %v5472_v56  ;;  %v3845_v46 = vadd.f32 %v3844_v0, %v3756_v19  ;;  %v3877_v56 = vmul.f32 %v5617_v53, %v5617_v53 }
0x1272   :  { %v3846_v49 = vpop.f32.mrf.mxu1 }
0x1273   :  { %v3847_v54 = vadd.f32 %v3846_v49, %v3758_v8  ;;  %v3863_v59 = vadd.f32 %v5620_v1, %v5617_v53  ;;  %v3878_v3 = vmul.f32 %v5620_v1, %v5620_v1  ;;  %v5627_v38 = vadd.f32 %v3845_v46, %v5487_v44 }
0x1274   :  { %v3859_v34 = vpop.xlane.xlu0 %3858 }
0x1275   :  { %v3869_v17 = vmul.f32 0.00390625, %v3859_v34  ;;  %v5630_v33 = vadd.f32 %v3847_v54, %v5484_v16  ;;  %3864 = vadd.xlane.f32.xlu0 %v3863_v59  ;;  %v3887_v52 = vadd.f32 %v3878_v3, %v3877_v56  ;;  %v3879_v16 = vmul.f32 %v5627_v38, %v5627_v38 }
0x1277   :  { %v3866_v36 = vadd.f32 %v5630_v33, %v5627_v38  ;;  %v3880_v58 = vmul.f32 %v5630_v33, %v5630_v33  ;;  %v3897_v31 = vmul.f32 %v3869_v17, %v3869_v17  ;;  %v3905_v42 = vsub.f32 %v5593_v27, %v3869_v17 }
0x1278   :  { %v3883_v2 = vpop.xlane.xlu0 %3882  ;;  %v3862_v55 = vpop.xlane.xlu1 %3861  ;;  %v3906_v37 = vsub.f32 %v5596_v63, %v3869_v17 }
0x1279   :  { %v3893_v13 = vmul.f32 0.00390625, %v3883_v2  ;;  %v3870_v44 = vmul.f32 0.00390625, %v3862_v55  ;;  %3888 = vadd.xlane.f32.xlu0 %v3887_v52  ;;  %3867 = vadd.xlane.f32.xlu1 %v3866_v36  ;;  %v3890_v43 = vadd.f32 %v3880_v58, %v3879_v16 }
0x127b   :  { %v3901_v48 = vsub.f32 %v3893_v13, %v3897_v31  ;;  %v3898_v62 = vmul.f32 %v3870_v44, %v3870_v44  ;;  %v3907_v51 = vsub.f32 %v5605_v40, %v3870_v44  ;;  %v3908_v24 = vsub.f32 %v5608_v47, %v3870_v44 }
0x127c   :  { %v3886_v22 = vpop.xlane.xlu1 %3885 }
0x127d   :  { %v3913_v4 = vadd.f32 1e-05, %v3901_v48  ;;  %v3894_v32 = vmul.f32 0.00390625, %v3886_v22  ;;  %3891 = vadd.xlane.f32.xlu1 %v3890_v43 }
0x127f   :  { %4327 = vrsqrt.f32 %v3913_v4  ;;  %v3902_v23 = vsub.f32 %v3894_v32, %v3898_v62 }
0x1281   :  { %v3914_v60 = vadd.f32 1e-05, %v3902_v23 }
0x1283   :  { %4329 = vrsqrt.f32 %v3914_v60 }
0x128c   :  { %v4328_v11 = vpop.eup %4327 }
0x128d   :  { %v3921_v18 = vmul.f32 %v4328_v11, %v3905_v42  ;;  %v3922_v29 = vmul.f32 %v4328_v11, %v3906_v37 }
0x128f   :  { %v3940_v35 = vmul.f32 %v3933_v57, %v3921_v18  ;;  %v3941_v61 = vmul.f32 %v3937_v14, %v3922_v29 }
0x1290   :  { %v4330_v27 = vpop.eup %4329 }
0x1291   :  { %v3959_v45 = vadd.f32 %v3952_v30, %v3940_v35  ;;  %v3960_v63 = vadd.f32 %v3956_v7, %v3941_v61  ;;  %v3923_v41 = vmul.f32 %v4330_v27, %v3907_v51  ;;  %v3924_v20 = vmul.f32 %v4330_v27, %v3908_v24 }
0x1293   :  { %3967 = vst [vmem:[#allocation20] sm:$0xff] %v3959_v45  ;;  %3968 = vst [vmem:[#allocation20 + $0x8] sm:$0xff] %v3960_v63  ;;  %v3942_v5 = vmul.f32 %v3933_v57, %v3923_v41  ;;  %v3943_v12 = vmul.f32 %v3937_v14, %v3924_v20 }
0x1295   :  { %v3961_v15 = vadd.f32 %v3952_v30, %v3942_v5  ;;  %v3962_v6 = vadd.f32 %v3956_v7, %v3943_v12 }
0x1297   :  { %3969 = vst [vmem:[#allocation20 + $0x10] sm:$0xff] %v3961_v15  ;;  %3970 = vst [vmem:[#allocation20 + $0x18] sm:$0xff] %v3962_v6 }
0x12fe   :  { %v3865_v26 = vpop.xlane.xlu0 %3864 }
0x12ff   :  { %v3871_v50 = vmul.f32 0.00390625, %v3865_v26 }
0x1301   :  { %v3899_v40 = vmul.f32 %v3871_v50, %v3871_v50  ;;  %v3909_v34 = vsub.f32 %v5617_v53, %v3871_v50  ;;  %v3910_v59 = vsub.f32 %v5620_v1, %v3871_v50 }
0x1302   :  { %v3889_v21 = vpop.xlane.xlu0 %3888  ;;  %v3868_v39 = vpop.xlane.xlu1 %3867 }
0x1303   :  { %v3895_v10 = vmul.f32 0.00390625, %v3889_v21  ;;  %v3872_v47 = vmul.f32 0.00390625, %v3868_v39 }
0x1305   :  { %v3903_v19 = vsub.f32 %v3895_v10, %v3899_v40  ;;  %v3900_v8 = vmul.f32 %v3872_v47, %v3872_v47  ;;  %v3911_v36 = vsub.f32 %v5627_v38, %v3872_v47  ;;  %v3912_v58 = vsub.f32 %v5630_v33, %v3872_v47 }
0x1306   :  { %v3892_v9 = vpop.xlane.xlu1 %3891 }
0x1307   :  { %v3915_v0 = vadd.f32 1e-05, %v3903_v19  ;;  %v3896_v46 = vmul.f32 0.00390625, %v3892_v9 }
0x1309   :  { %4331 = vrsqrt.f32 %v3915_v0  ;;  %v3904_v49 = vsub.f32 %v3896_v46, %v3900_v8 }
0x130b   :  { %v3916_v54 = vadd.f32 1e-05, %v3904_v49 }
0x130d   :  { %4333 = vrsqrt.f32 %v3916_v54 }
0x1316   :  { %v4332_v3 = vpop.eup %4331 }
0x1317   :  { %v3925_v17 = vmul.f32 %v4332_v3, %v3909_v34  ;;  %v3926_v56 = vmul.f32 %v4332_v3, %v3910_v59 }
0x1319   :  { %v3944_v2 = vmul.f32 %v3933_v57, %v3925_v17  ;;  %v3945_v52 = vmul.f32 %v3937_v14, %v3926_v56 }
0x131a   :  { %v4334_v55 = vpop.eup %4333 }
0x131b   :  { %v3963_v31 = vadd.f32 %v3952_v30, %v3944_v2  ;;  %v3964_v13 = vadd.f32 %v3956_v7, %v3945_v52  ;;  %v3927_v44 = vmul.f32 %v4334_v55, %v3911_v36  ;;  %v3928_v16 = vmul.f32 %v4334_v55, %v3912_v58 }
0x131d   :  { %3971 = vst [vmem:[#allocation20 + $0x20] sm:$0xff] %v3963_v31  ;;  %3972 = vst [vmem:[#allocation20 + $0x28] sm:$0xff] %v3964_v13  ;;  %v3946_v53 = vmul.f32 %v3933_v57, %v3927_v44  ;;  %v3947_v1 = vmul.f32 %v3937_v14, %v3928_v16 }
0x131f   :  { %v3965_v48 = vadd.f32 %v3952_v30, %v3946_v53  ;;  %v3966_v43 = vadd.f32 %v3956_v7, %v3947_v1 }
0x1321   :  { %3973 = vst [vmem:[#allocation20 + $0x30] sm:$0xff] %v3965_v48  ;;  %3974 = vst [vmem:[#allocation20 + $0x38] sm:$0xff] %v3966_v43 }
0x1322   :  { %4574 = shalt.err (!%p4571_p3)
}
0x1323   :  { %s5801_s5 = sld [smem:[#allocation68_spill]] }
0x1329   :  { %3986 = dma.vmem_to_hbm [thread:$0]  %s3981_s17, 1024, %s5801_s5, [#allocation4], %s4599_s0, %s4599_s0, %s4600_s23  }
0x132a   :  { %4595 = dma.done.wait [#allocation4], 1024  }
0x132b   :  { %4596 = vsyncadd [#allocation4], 4294966272 }
0x132c   :  { %3990 = vsyncpa [#allocation3], 1 }
0x132d   :  { %3991 = vsyncpa [#allocation6], 1 }
0x132e   :  { %3992 = vsyncpa [#allocation9], 1 }
0x132f   :  { %3993 = vsyncpa [#allocation12], 1 }
0x1330   :  { %3994 = vsyncpa [#allocation15], 1 }
0x1331   :  { %3995 = vsyncpa [#allocation18], 1 }
0x1332   :  { %3996 = vsyncpa [#allocation4], 1 }

// kernel: tpu_custom_call.1
= control target key start
LH: loop header
LB: loop body
LE: loop exit
PB: predicated region body
PF: predicated region fallthrough
CT: control target
= control target key end

     0   :  { %s5664_s0 = inlined_call_operand.hbm [shape: f32[2,16,256], index: 0, kind: input, shape index: {}]   ;;  %s5665_s1 = inlined_call_operand.hbm [shape: f32[2,8,256], index: 1, kind: input, shape index: {}]   ;;  %s5666_s2 = inlined_call_operand.hbm [shape: f32[256,768], index: 2, kind: input, shape index: {}]   ;;  %s5667_s3 = inlined_call_operand.hbm [shape: f32[1,768], index: 3, kind: input, shape index: {}]   ;;  %s5668_s4 = inlined_call_operand.hbm [shape: f32[256,256], index: 4, kind: input, shape index: {}]   ;;  %s5669_s5 = inlined_call_operand.hbm [shape: f32[1,256], index: 5, kind: input, shape index: {}]   ;;  %s5670_s6 = inlined_call_operand.hbm [shape: f32[256,256], index: 6, kind: input, shape index: {}]   ;;  %s5671_s7 = inlined_call_operand.vmem [shape: f32[1,256], index: 7, kind: input, shape index: {}]   ;;  %s5672_s8 = inlined_call_operand.hbm [shape: f32[256,512], index: 8, kind: input, shape index: {}]   ;;  %s5673_s9 = inlined_call_operand.vmem [shape: f32[1,512], index: 9, kind: input, shape index: {}]   ;;  %s5674_s10 = inlined_call_operand.hbm [shape: f32[256,256], index: 10, kind: input, shape index: {}]   ;;  %s5675_s11 = inlined_call_operand.vmem [shape: f32[1,256], index: 11, kind: input, shape index: {}]   ;;  %s5676_s12 = inlined_call_operand.vmem [shape: f32[1,256], index: 12, kind: input, shape index: {}]   ;;  %s5677_s13 = inlined_call_operand.vmem [shape: f32[1,256], index: 13, kind: input, shape index: {}]   ;;  %s5678_s14 = inlined_call_operand.vmem [shape: f32[1,256], index: 14, kind: input, shape index: {}]   ;;  %s5679_s15 = inlined_call_operand.vmem [shape: f32[1,256], index: 15, kind: input, shape index: {}]   ;;  %s5680_s16 = inlined_call_operand.vmem [shape: f32[1,256], index: 16, kind: input, shape index: {}]   ;;  %s5681_s17 = inlined_call_operand.vmem [shape: f32[1,256], index: 17, kind: input, shape index: {}]   ;;  %s5682_s18 = inlined_call_operand.hbm [shape: f32[256,512], index: 18, kind: input, shape index: {}]   ;;  %s5683_s19 = inlined_call_operand.vmem [shape: f32[1,512], index: 19, kind: input, shape index: {}]   ;;  %s5684_s20 = inlined_call_operand.hbm [shape: f32[512,256], index: 20, kind: input, shape index: {}]   ;;  %s5685_s21 = inlined_call_operand.vmem [shape: f32[1,256], index: 21, kind: input, shape index: {}]   ;;  %s5686_s22 = inlined_call_operand.hbm [shape: f32[2,16,256], index: 22, kind: output, shape index: {}]  }
   0x1   :  { %5720 = sst [smem:[#allocation61_spill]] %s5664_s0 }
   0x2   :  { %5721 = sst [smem:[#allocation62_spill]] %s5665_s1 }
   0x3   :  { %5722 = sst [smem:[#allocation63_spill]] %s5666_s2 }
   0x4   :  { %5723 = sst [smem:[#allocation64_spill]] %s5667_s3 }
   0x5   :  { %5724 = sst [smem:[#allocation65_spill]] %s5668_s4 }
   0x6   :  { %5725 = sst [smem:[#allocation66_spill]] %s5669_s5 }
   0x7   :  { %5726 = sst [smem:[#allocation67_spill]] %s5670_s6 }
   0x8   :  { %5727 = sst [smem:[#allocation68_spill]] %s5686_s22 }
   0x9   :  { %27 = vsyncpa [#allocation3], 0 }
   0xa   :  { %28 = vsyncpa [#allocation6], 0 }
   0xb   :  { %29 = vsyncpa [#allocation9], 0 }
   0xc   :  { %30 = vsyncpa [#allocation12], 0 }
   0xd   :  { %31 = vsyncpa [#allocation15], 0 }
   0xe   :  { %32 = vsyncpa [#allocation18], 0 }
   0xf   :  { %33 = vsyncpa [#allocation4], 0  ;;  %s4597_s3 = smov [#allocation5]   ;;  %s4598_s29 = smov [#allocation8]  }
  0x10   :  { %s51_s28 = sshll.u32 %s4597_s3, 4  ;;  %s76_s30 = sshll.u32 %s4598_s29, 4  ;;  %s52_s28 = int_to_ptr.vmem [resolvable:$true] %s51_s28  ;;  %s77_s30 = int_to_ptr.vmem [resolvable:$true] %s76_s30 }
  0x11   :  { %s4351_s4 = scalar_lea.vmem %s52_s28, 512  ;;  %p4356_p1 = scmp.lt.s32.totalorder %s52_s28, %s52_s28 }
  0x12   :  { %p4352_p0 = scmp.ne.s32.totalorder %s52_s28, %s4351_s4  ;;  %p4357_p2 = scmp.lt.s32.totalorder %s4351_s4, %s4351_s4 }
  0x14   :  { %p4358_p3 = por %p4357_p2, %p4356_p1 }
  0x16   :  { %p4359_p4 = pnand %p4358_p3, %p4352_p0 }
  0x18   :  { %4362 = shalt.err (!%p4359_p4)
}
  0x19   :  { %s4599_s0 = smov 256   ;;  %s4600_s23 = smov 16  }
  0x1a   :  { %s5728_s24 = sld [smem:[#allocation62_spill]]  ;;  %s4371_s6 = scalar_lea.vmem %s77_s30, 96 }
  0x1b   :  { %p4372_p5 = scmp.ne.s32.totalorder %s77_s30, %s4371_s6  ;;  %p4376_p6 = scmp.lt.s32.totalorder %s77_s30, %s77_s30 }
  0x1c   :  { %p4377_p7 = scmp.lt.s32.totalorder %s4371_s6, %s4371_s6 }
  0x1e   :  { %p4378_p8 = por %p4377_p7, %p4376_p6 }
  0x20   :  { %57 = dma.hbm_to_vmem [thread:$0]  %s5728_s24, 512, %s52_s28, [#allocation6], %s4599_s0, %s4599_s0, %s4600_s23  }
  0x21   :  { %p4379_p9 = pnand %p4378_p8, %p4372_p5 }
  0x23   :  { %4382 = shalt.err (!%p4379_p9)
}
  0x24   :  { %s5729_s2 = sld [smem:[#allocation64_spill]]  ;;  %s4601_s27 = smov [#allocation11]  }
  0x25   :  { %s98_s3 = sshll.u32 %s4601_s27, 4  ;;  %s4602_s29 = smov [#allocation14]   ;;  %s99_s3 = int_to_ptr.vmem [resolvable:$true] %s98_s3 }
  0x26   :  { %s121_s4 = sshll.u32 %s4602_s29, 4  ;;  %s4391_s22 = scalar_lea.vmem %s99_s3, 32  ;;  %s122_s4 = int_to_ptr.vmem [resolvable:$true] %s121_s4 }
  0x27   :  { %p4392_p10 = scmp.ne.s32.totalorder %s99_s3, %s4391_s22  ;;  %p4396_p11 = scmp.lt.s32.totalorder %s99_s3, %s99_s3 }
  0x28   :  { %p4397_p12 = scmp.lt.s32.totalorder %s4391_s22, %s4391_s22 }
  0x2a   :  { %79 = dma.hbm_to_vmem [thread:$0]  %s5729_s2, 96, %s77_s30, [#allocation9]  }
  0x2b   :  { %p4398_p13 = por %p4397_p12, %p4396_p11 }
  0x2d   :  { %p4399_p0 = pnand %p4398_p13, %p4392_p10 }
  0x2f   :  { %4402 = shalt.err (!%p4399_p0)
}
  0x30   :  { %s5730_s5 = sld [smem:[#allocation66_spill]]  ;;  %s4411_s24 = scalar_lea.vmem %s122_s4, 16384 }
  0x31   :  { %p4412_p1 = scmp.ne.s32.totalorder %s122_s4, %s4411_s24  ;;  %p4416_p2 = scmp.lt.s32.totalorder %s122_s4, %s122_s4 }
  0x32   :  { %p4417_p3 = scmp.lt.s32.totalorder %s4411_s24, %s4411_s24 }
  0x34   :  { %p4418_p4 = por %p4417_p3, %p4416_p2 }
  0x36   :  { %101 = dma.hbm_to_vmem [thread:$0]  %s5730_s5, 32, %s99_s3, [#allocation12]  }
  0x37   :  { %p4419_p5 = pnand %p4418_p4, %p4412_p1 }
  0x39   :  { %4422 = shalt.err (!%p4419_p5)
}
  0x3a   :  { %s4603_s30 = smov 512   ;;  %s4604_s6 = smov 32  }
  0x3b   :  { %127 = dma.hbm_to_vmem [thread:$0]  %s5672_s8, 16384, %s122_s4, [#allocation15], %s4603_s30, %s4603_s30, %s4604_s6  }
  0x3c   :  { %s4605_s22 = smov [#allocation17]   ;;  %s4606_s27 = smov [#allocation2]  }
  0x3d   :  { %s161_s2 = sshll.u32 %s4605_s22, 4  ;;  %s39_s29 = sshll.u32 %s4606_s27, 4  ;;  %s162_s2 = int_to_ptr.vmem [resolvable:$true] %s161_s2  ;;  %s40_s29 = int_to_ptr.vmem [resolvable:$true] %s39_s29 }
  0x3e   :  { %s4431_s3 = scalar_lea.vmem %s162_s2, 16384  ;;  %p4436_p7 = scmp.lt.s32.totalorder %s162_s2, %s162_s2 }
  0x3f   :  { %p4432_p6 = scmp.ne.s32.totalorder %s162_s2, %s4431_s3  ;;  %p4437_p8 = scmp.lt.s32.totalorder %s4431_s3, %s4431_s3 }
  0x41   :  { %p4438_p9 = por %p4437_p8, %p4436_p7 }
  0x43   :  { %p4439_p10 = pnand %p4438_p9, %p4432_p6 }
  0x45   :  { %4442 = shalt.err (!%p4439_p10)
}
  0x46   :  { %167 = dma.hbm_to_vmem [thread:$0]  %s5682_s18, 16384, %s162_s2, [#allocation18], %s4603_s30, %s4603_s30, %s4604_s6  }
  0x47   :  { %s4451_s5 = scalar_lea.vmem %s40_s29, 1024  ;;  %p4456_p12 = scmp.lt.s32.totalorder %s40_s29, %s40_s29 }
  0x48   :  { %p4452_p11 = scmp.ne.s32.totalorder %s40_s29, %s4451_s5  ;;  %p4457_p13 = scmp.lt.s32.totalorder %s4451_s5, %s4451_s5 }
  0x4a   :  { %p4458_p0 = por %p4457_p13, %p4456_p12 }
  0x4c   :  { %p4459_p1 = pnand %p4458_p0, %p4452_p11 }
  0x4e   :  { %4462 = shalt.err (!%p4459_p1)
}
  0x4f   :  { %s5731_s24 = sld [smem:[#allocation61_spill]]  ;;  %s4607_s25 = smov [#allocation7]  }
  0x50   :  { %s63_s26 = sshll.u32 %s4607_s25, 4  ;;  %s64_s26 = int_to_ptr.vmem [resolvable:$true] %s63_s26 }
  0x51   :  { %s4471_s22 = scalar_lea.vmem %s64_s26, 24576  ;;  %p4476_p3 = scmp.lt.s32.totalorder %s64_s26, %s64_s26 }
  0x52   :  { %p4472_p2 = scmp.ne.s32.totalorder %s64_s26, %s4471_s22  ;;  %p4477_p4 = scmp.lt.s32.totalorder %s4471_s22, %s4471_s22 }
  0x54   :  { %p4478_p5 = por %p4477_p4, %p4476_p3 }
  0x55   :  { %45 = dma.hbm_to_vmem [thread:$0]  %s5731_s24, 1024, %s40_s29, [#allocation3], %s4599_s0, %s4599_s0, %s4600_s23  }
  0x56   :  { %p4479_p6 = pnand %p4478_p5, %p4472_p2 }
  0x58   :  { %4482 = shalt.err (!%p4479_p6)
}
  0x59   :  { %s4608_s18 = smov 768   ;;  %s4609_s30 = smov 48  }
  0x5a   :  { %s5732_s27 = sld [smem:[#allocation63_spill]]  ;;  %s4610_s3 = smov [#allocation10]  }
  0x5b   :  { %s85_s28 = sshll.u32 %s4610_s3, 4  ;;  %s4611_s29 = smov [#allocation13]   ;;  %s86_s28 = int_to_ptr.vmem [resolvable:$true] %s85_s28 }
  0x5c   :  { %s107_s1 = sshll.u32 %s4611_s29, 4  ;;  %s4491_s5 = scalar_lea.vmem %s86_s28, 8192  ;;  %s108_s1 = int_to_ptr.vmem [resolvable:$true] %s107_s1 }
  0x5d   :  { %p4492_p7 = scmp.ne.s32.totalorder %s86_s28, %s4491_s5  ;;  %p4496_p8 = scmp.lt.s32.totalorder %s86_s28, %s86_s28 }
  0x5e   :  { %p4497_p9 = scmp.lt.s32.totalorder %s4491_s5, %s4491_s5 }
  0x60   :  { %69 = dma.hbm_to_vmem [thread:$0]  %s5732_s27, 24576, %s64_s26, [#allocation6], %s4608_s18, %s4608_s18, %s4609_s30  }
  0x61   :  { %p4498_p10 = por %p4497_p9, %p4496_p8 }
  0x63   :  { %p4499_p11 = pnand %p4498_p10, %p4492_p7 }
  0x65   :  { %4502 = shalt.err (!%p4499_p11)
}
  0x66   :  { %s5733_s24 = sld [smem:[#allocation65_spill]]  ;;  %s4511_s25 = scalar_lea.vmem %s108_s1, 8192 }
  0x67   :  { %p4512_p12 = scmp.ne.s32.totalorder %s108_s1, %s4511_s25  ;;  %p4516_p13 = scmp.lt.s32.totalorder %s108_s1, %s108_s1 }
  0x68   :  { %p4517_p0 = scmp.lt.s32.totalorder %s4511_s25, %s4511_s25 }
  0x6a   :  { %p4518_p1 = por %p4517_p0, %p4516_p13 }
  0x6c   :  { %91 = dma.hbm_to_vmem [thread:$0]  %s5733_s24, 8192, %s86_s28, [#allocation9], %s4599_s0, %s4599_s0, %s4600_s23  }
  0x6d   :  { %p4519_p2 = pnand %p4518_p1, %p4512_p12 }
  0x6f   :  { %4522 = shalt.err (!%p4519_p2)
}
  0x70   :  { %s5734_s18 = sld [smem:[#allocation67_spill]]  ;;  %s4612_s30 = smov [#allocation16]  }
  0x71   :  { %s135_s6 = sshll.u32 %s4612_s30, 4  ;;  %s4613_s2 = smov [#allocation19]   ;;  %s136_s6 = int_to_ptr.vmem [resolvable:$true] %s135_s6 }
  0x72   :  { %s175_s27 = sshll.u32 %s4613_s2, 4  ;;  %s4531_s3 = scalar_lea.vmem %s136_s6, 8192  ;;  %s176_s27 = int_to_ptr.vmem [resolvable:$true] %s175_s27 }
  0x73   :  { %p4532_p3 = scmp.ne.s32.totalorder %s136_s6, %s4531_s3  ;;  %p4536_p4 = scmp.lt.s32.totalorder %s136_s6, %s136_s6 }
  0x74   :  { %p4537_p5 = scmp.lt.s32.totalorder %s4531_s3, %s4531_s3 }
  0x76   :  { %113 = dma.hbm_to_vmem [thread:$0]  %s5734_s18, 8192, %s108_s1, [#allocation12], %s4599_s0, %s4599_s0, %s4600_s23  }
  0x77   :  { %p4538_p6 = por %p4537_p5, %p4536_p4 }
  0x79   :  { %p4539_p7 = pnand %p4538_p6, %p4532_p3 }
  0x7b   :  { %4542 = shalt.err (!%p4539_p7)
}
  0x7c   :  { %141 = dma.hbm_to_vmem [thread:$0]  %s5674_s10, 8192, %s136_s6, [#allocation15], %s4599_s0, %s4599_s0, %s4600_s23  }
  0x7d   :  { %s4551_s1 = scalar_lea.vmem %s176_s27, 16384  ;;  %p4556_p9 = scmp.lt.s32.totalorder %s176_s27, %s176_s27 }
  0x7e   :  { %p4552_p8 = scmp.ne.s32.totalorder %s176_s27, %s4551_s1  ;;  %p4557_p10 = scmp.lt.s32.totalorder %s4551_s1, %s4551_s1 }
  0x80   :  { %p4558_p11 = por %p4557_p10, %p4556_p9 }
  0x82   :  { %p4559_p12 = pnand %p4558_p11, %p4552_p8 }
  0x84   :  { %4562 = shalt.err (!%p4559_p12)
}
  0x85   :  { %181 = dma.hbm_to_vmem [thread:$0]  %s5684_s20, 16384, %s176_s27, [#allocation18], %s4599_s0, %s4599_s0, %s4600_s23  }
  0x86   :  { %4583 = dma.done.wait [#allocation3], 1024  }
  0x87   :  { %4584 = vsyncadd [#allocation3], 4294966272 }
  0x88   :  { %4585 = dma.done.wait [#allocation6], 25088  }
  0x89   :  { %4586 = vsyncadd [#allocation6], 4294942208 }
  0x8a   :  { %4587 = dma.done.wait [#allocation9], 8288  }
  0x8b   :  { %4588 = vsyncadd [#allocation9], 4294959008 }
  0x8c   :  { %4589 = dma.done.wait [#allocation12], 8224  }
  0x8d   :  { %4590 = vsyncadd [#allocation12], 4294959072 }
  0x8e   :  { %4591 = dma.done.wait [#allocation15], 24576  }
  0x8f   :  { %4592 = vsyncadd [#allocation15], 4294942720 }
  0x90   :  { %4593 = dma.done.wait [#allocation18], 32768  }
  0x91   :  { %4594 = vsyncadd [#allocation18], 4294934528  ;;  %v320_v0 = vld [vmem:[#allocation7 + $0x2d8] sm:$0xff]  ;;  %v322_v1 = vld [vmem:[#allocation7 + $0x2e8] sm:$0xff]  ;;  %vm1383_vm0 = vcmask 130048   ;;  %vm2589_vm1 = vcmask 64512  }
  0x92   :  { %v319_v2 = vld [vmem:[#allocation7 + $0x2d0] sm:$0xff]  ;;  %1041 = vmatprep.subr.mxu0 %v320_v0  ;;  %1130 = vmatprep.subr.mxu1 %v322_v1  ;;  %v321_v3 = vld [vmem:[#allocation7 + $0x2e0] sm:$0xff]  ;;  %v314_v4 = vld [vmem:[#allocation7 + $0x2a8] sm:$0xff] }
  0x93   :  { %v316_v5 = vld [vmem:[#allocation7 + $0x2b8] sm:$0xff]  ;;  %1042 = vmatpush1.msra.mxu0 %v319_v2  ;;  %1131 = vmatpush1.msra.mxu1 %v321_v3  ;;  %v313_v6 = vld [vmem:[#allocation7 + $0x2a0] sm:$0xff]  ;;  %v315_v7 = vld [vmem:[#allocation7 + $0x2b0] sm:$0xff] }
  0x94   :  { %v308_v8 = vld [vmem:[#allocation7 + $0x278] sm:$0xff]  ;;  %1043 = vmatprep.subr.mxu0 %v314_v4  ;;  %1132 = vmatprep.subr.mxu1 %v316_v5  ;;  %v310_v9 = vld [vmem:[#allocation7 + $0x288] sm:$0xff]  ;;  %v307_v10 = vld [vmem:[#allocation7 + $0x270] sm:$0xff] }
  0x95   :  { %v309_v11 = vld [vmem:[#allocation7 + $0x280] sm:$0xff]  ;;  %1044 = vmatpush1.msra.mxu0 %v313_v6  ;;  %1133 = vmatpush1.msra.mxu1 %v315_v7  ;;  %v302_v12 = vld [vmem:[#allocation7 + $0x248] sm:$0xff]  ;;  %v304_v13 = vld [vmem:[#allocation7 + $0x258] sm:$0xff] }
  0x96   :  { %1045 = vmatprep.subr.mxu0 %v308_v8  ;;  %1134 = vmatprep.subr.mxu1 %v310_v9  ;;  %v301_v14 = vld [vmem:[#allocation7 + $0x240] sm:$0xff]  ;;  %v303_v15 = vld [vmem:[#allocation7 + $0x250] sm:$0xff]  ;;  %v296_v16 = vld [vmem:[#allocation7 + $0x218] sm:$0xff] }
  0x97   :  { %1046 = vmatpush1.msra.mxu0 %v307_v10  ;;  %1135 = vmatpush1.msra.mxu1 %v309_v11  ;;  %v298_v17 = vld [vmem:[#allocation7 + $0x228] sm:$0xff]  ;;  %v295_v18 = vld [vmem:[#allocation7 + $0x210] sm:$0xff]  ;;  %v297_v19 = vld [vmem:[#allocation7 + $0x220] sm:$0xff] }
  0x98   :  { %1047 = vmatprep.subr.mxu0 %v302_v12  ;;  %1136 = vmatprep.subr.mxu1 %v304_v13  ;;  %v290_v20 = vld [vmem:[#allocation7 + $0x1e8] sm:$0xff]  ;;  %v292_v21 = vld [vmem:[#allocation7 + $0x1f8] sm:$0xff]  ;;  %v289_v22 = vld [vmem:[#allocation7 + $0x1e0] sm:$0xff] }
  0x99   :  { %1048 = vmatpush1.msra.mxu0 %v301_v14  ;;  %1137 = vmatpush1.msra.mxu1 %v303_v15  ;;  %v291_v23 = vld [vmem:[#allocation7 + $0x1f0] sm:$0xff]  ;;  %v284_v24 = vld [vmem:[#allocation7 + $0x1b8] sm:$0xff]  ;;  %v286_v25 = vld [vmem:[#allocation7 + $0x1c8] sm:$0xff] }
  0x9a   :  { %1049 = vmatprep.subr.mxu0 %v296_v16  ;;  %1138 = vmatprep.subr.mxu1 %v298_v17  ;;  %v283_v26 = vld [vmem:[#allocation7 + $0x1b0] sm:$0xff]  ;;  %v285_v27 = vld [vmem:[#allocation7 + $0x1c0] sm:$0xff]  ;;  %v278_v28 = vld [vmem:[#allocation7 + $0x188] sm:$0xff] }
  0x9b   :  { %1050 = vmatpush1.msra.mxu0 %v295_v18  ;;  %1139 = vmatpush1.msra.mxu1 %v297_v19  ;;  %v280_v29 = vld [vmem:[#allocation7 + $0x198] sm:$0xff]  ;;  %v277_v30 = vld [vmem:[#allocation7 + $0x180] sm:$0xff]  ;;  %v279_v31 = vld [vmem:[#allocation7 + $0x190] sm:$0xff] }
  0x9c   :  { %1051 = vmatprep.subr.mxu0 %v290_v20  ;;  %1140 = vmatprep.subr.mxu1 %v292_v21  ;;  %v272_v32 = vld [vmem:[#allocation7 + $0x158] sm:$0xff]  ;;  %v274_v33 = vld [vmem:[#allocation7 + $0x168] sm:$0xff]  ;;  %v271_v34 = vld [vmem:[#allocation7 + $0x150] sm:$0xff] }
  0x9d   :  { %1052 = vmatpush1.msra.mxu0 %v289_v22  ;;  %1141 = vmatpush1.msra.mxu1 %v291_v23  ;;  %v273_v35 = vld [vmem:[#allocation7 + $0x160] sm:$0xff]  ;;  %v266_v36 = vld [vmem:[#allocation7 + $0x128] sm:$0xff]  ;;  %v268_v37 = vld [vmem:[#allocation7 + $0x138] sm:$0xff] }
  0x9e   :  { %1053 = vmatprep.subr.mxu0 %v284_v24  ;;  %1142 = vmatprep.subr.mxu1 %v286_v25  ;;  %v265_v38 = vld [vmem:[#allocation7 + $0x120] sm:$0xff]  ;;  %v267_v39 = vld [vmem:[#allocation7 + $0x130] sm:$0xff]  ;;  %v260_v40 = vld [vmem:[#allocation7 + $0xf8] sm:$0xff] }
  0x9f   :  { %1054 = vmatpush1.msra.mxu0 %v283_v26  ;;  %1143 = vmatpush1.msra.mxu1 %v285_v27  ;;  %v262_v41 = vld [vmem:[#allocation7 + $0x108] sm:$0xff]  ;;  %v259_v42 = vld [vmem:[#allocation7 + $0xf0] sm:$0xff]  ;;  %v261_v43 = vld [vmem:[#allocation7 + $0x100] sm:$0xff] }
  0xa0   :  { %1055 = vmatprep.subr.mxu0 %v278_v28  ;;  %1144 = vmatprep.subr.mxu1 %v280_v29  ;;  %v254_v44 = vld [vmem:[#allocation7 + $0xc8] sm:$0xff]  ;;  %v256_v45 = vld [vmem:[#allocation7 + $0xd8] sm:$0xff]  ;;  %v253_v46 = vld [vmem:[#allocation7 + $0xc0] sm:$0xff] }
  0xa1   :  { %1056 = vmatpush1.msra.mxu0 %v277_v30  ;;  %1145 = vmatpush1.msra.mxu1 %v279_v31  ;;  %v255_v47 = vld [vmem:[#allocation7 + $0xd0] sm:$0xff]  ;;  %v248_v48 = vld [vmem:[#allocation7 + $0x98] sm:$0xff]  ;;  %v250_v49 = vld [vmem:[#allocation7 + $0xa8] sm:$0xff] }
  0xa2   :  { %1057 = vmatprep.subr.mxu0 %v272_v32  ;;  %1146 = vmatprep.subr.mxu1 %v274_v33  ;;  %v247_v50 = vld [vmem:[#allocation7 + $0x90] sm:$0xff]  ;;  %v249_v51 = vld [vmem:[#allocation7 + $0xa0] sm:$0xff]  ;;  %v242_v52 = vld [vmem:[#allocation7 + $0x68] sm:$0xff] }
  0xa3   :  { %1058 = vmatpush1.msra.mxu0 %v271_v34  ;;  %1147 = vmatpush1.msra.mxu1 %v273_v35  ;;  %v244_v53 = vld [vmem:[#allocation7 + $0x78] sm:$0xff]  ;;  %v241_v54 = vld [vmem:[#allocation7 + $0x60] sm:$0xff]  ;;  %v243_v55 = vld [vmem:[#allocation7 + $0x70] sm:$0xff] }
  0xa4   :  { %1059 = vmatprep.subr.mxu0 %v266_v36  ;;  %1148 = vmatprep.subr.mxu1 %v268_v37  ;;  %v236_v56 = vld [vmem:[#allocation7 + $0x38] sm:$0xff]  ;;  %v238_v57 = vld [vmem:[#allocation7 + $0x48] sm:$0xff]  ;;  %v235_v58 = vld [vmem:[#allocation7 + $0x30] sm:$0xff] }
  0xa5   :  { %1060 = vmatpush1.msra.mxu0 %v265_v38  ;;  %1149 = vmatpush1.msra.mxu1 %v267_v39  ;;  %v237_v59 = vld [vmem:[#allocation7 + $0x40] sm:$0xff]  ;;  %v230_v60 = vld [vmem:[#allocation7 + $0x8] sm:$0xff]  ;;  %v232_v61 = vld [vmem:[#allocation7 + $0x18] sm:$0xff] }
  0xa6   :  { %1061 = vmatprep.subr.mxu0 %v260_v40  ;;  %1150 = vmatprep.subr.mxu1 %v262_v41  ;;  %v229_v62 = vld [vmem:[#allocation7] sm:$0xff]  ;;  %v231_v63 = vld [vmem:[#allocation7 + $0x10] sm:$0xff]  ;;  %v416_v0 = vld [vmem:[#allocation7 + $0x5d8] sm:$0xff] }
  0xa7   :  { %1062 = vmatpush1.msra.mxu0 %v259_v42  ;;  %1151 = vmatpush1.msra.mxu1 %v261_v43  ;;  %v418_v1 = vld [vmem:[#allocation7 + $0x5e8] sm:$0xff]  ;;  %v415_v2 = vld [vmem:[#allocation7 + $0x5d0] sm:$0xff]  ;;  %v417_v3 = vld [vmem:[#allocation7 + $0x5e0] sm:$0xff] }
  0xa8   :  { %1063 = vmatprep.subr.mxu0 %v254_v44  ;;  %1152 = vmatprep.subr.mxu1 %v256_v45  ;;  %v410_v4 = vld [vmem:[#allocation7 + $0x5a8] sm:$0xff]  ;;  %v412_v5 = vld [vmem:[#allocation7 + $0x5b8] sm:$0xff]  ;;  %v409_v6 = vld [vmem:[#allocation7 + $0x5a0] sm:$0xff] }
  0xa9   :  { %1064 = vmatpush1.msra.mxu0 %v253_v46  ;;  %1153 = vmatpush1.msra.mxu1 %v255_v47  ;;  %v411_v7 = vld [vmem:[#allocation7 + $0x5b0] sm:$0xff]  ;;  %v404_v8 = vld [vmem:[#allocation7 + $0x578] sm:$0xff]  ;;  %v406_v9 = vld [vmem:[#allocation7 + $0x588] sm:$0xff] }
  0xaa   :  { %1065 = vmatprep.subr.mxu0 %v248_v48  ;;  %1154 = vmatprep.subr.mxu1 %v250_v49  ;;  %v403_v10 = vld [vmem:[#allocation7 + $0x570] sm:$0xff]  ;;  %v405_v11 = vld [vmem:[#allocation7 + $0x580] sm:$0xff]  ;;  %v398_v12 = vld [vmem:[#allocation7 + $0x548] sm:$0xff] }
  0xab   :  { %1066 = vmatpush1.msra.mxu0 %v247_v50  ;;  %1155 = vmatpush1.msra.mxu1 %v249_v51  ;;  %v400_v13 = vld [vmem:[#allocation7 + $0x558] sm:$0xff]  ;;  %v397_v14 = vld [vmem:[#allocation7 + $0x540] sm:$0xff]  ;;  %v399_v15 = vld [vmem:[#allocation7 + $0x550] sm:$0xff] }
  0xac   :  { %1067 = vmatprep.subr.mxu0 %v242_v52  ;;  %1156 = vmatprep.subr.mxu1 %v244_v53  ;;  %v392_v16 = vld [vmem:[#allocation7 + $0x518] sm:$0xff]  ;;  %v394_v17 = vld [vmem:[#allocation7 + $0x528] sm:$0xff]  ;;  %v391_v18 = vld [vmem:[#allocation7 + $0x510] sm:$0xff] }
  0xad   :  { %1068 = vmatpush1.msra.mxu0 %v241_v54  ;;  %1157 = vmatpush1.msra.mxu1 %v243_v55  ;;  %v393_v19 = vld [vmem:[#allocation7 + $0x520] sm:$0xff]  ;;  %v386_v20 = vld [vmem:[#allocation7 + $0x4e8] sm:$0xff]  ;;  %v388_v21 = vld [vmem:[#allocation7 + $0x4f8] sm:$0xff] }
  0xae   :  { %1069 = vmatprep.subr.mxu0 %v236_v56  ;;  %1158 = vmatprep.subr.mxu1 %v238_v57  ;;  %v385_v22 = vld [vmem:[#allocation7 + $0x4e0] sm:$0xff]  ;;  %v387_v23 = vld [vmem:[#allocation7 + $0x4f0] sm:$0xff]  ;;  %v380_v24 = vld [vmem:[#allocation7 + $0x4b8] sm:$0xff] }
  0xaf   :  { %1070 = vmatpush1.msra.mxu0 %v235_v58  ;;  %1159 = vmatpush1.msra.mxu1 %v237_v59  ;;  %v382_v25 = vld [vmem:[#allocation7 + $0x4c8] sm:$0xff]  ;;  %v379_v26 = vld [vmem:[#allocation7 + $0x4b0] sm:$0xff]  ;;  %v381_v27 = vld [vmem:[#allocation7 + $0x4c0] sm:$0xff] }
  0xb0   :  { %1071 = vmatprep.subr.mxu0 %v230_v60  ;;  %1160 = vmatprep.subr.mxu1 %v232_v61  ;;  %v374_v28 = vld [vmem:[#allocation7 + $0x488] sm:$0xff]  ;;  %v376_v29 = vld [vmem:[#allocation7 + $0x498] sm:$0xff]  ;;  %v373_v30 = vld [vmem:[#allocation7 + $0x480] sm:$0xff] }
  0xb1   :  { %1072 = vmatpush1.msra.mxu0 %v229_v62  ;;  %1161 = vmatpush1.msra.mxu1 %v231_v63  ;;  %v375_v31 = vld [vmem:[#allocation7 + $0x490] sm:$0xff]  ;;  %v368_v32 = vld [vmem:[#allocation7 + $0x458] sm:$0xff]  ;;  %v370_v33 = vld [vmem:[#allocation7 + $0x468] sm:$0xff] }
  0xb2   :  { %1073 = vmatprep.subr.mxu0 %v416_v0  ;;  %1162 = vmatprep.subr.mxu1 %v418_v1  ;;  %v367_v34 = vld [vmem:[#allocation7 + $0x450] sm:$0xff]  ;;  %v369_v35 = vld [vmem:[#allocation7 + $0x460] sm:$0xff]  ;;  %v362_v36 = vld [vmem:[#allocation7 + $0x428] sm:$0xff] }
  0xb3   :  { %1074 = vmatpush2.msra.mxu0 %v415_v2  ;;  %1163 = vmatpush2.msra.mxu1 %v417_v3  ;;  %v364_v37 = vld [vmem:[#allocation7 + $0x438] sm:$0xff]  ;;  %v361_v38 = vld [vmem:[#allocation7 + $0x420] sm:$0xff]  ;;  %v363_v39 = vld [vmem:[#allocation7 + $0x430] sm:$0xff] }
  0xb4   :  { %1075 = vmatprep.subr.mxu0 %v410_v4  ;;  %1164 = vmatprep.subr.mxu1 %v412_v5  ;;  %v356_v40 = vld [vmem:[#allocation7 + $0x3f8] sm:$0xff]  ;;  %v358_v41 = vld [vmem:[#allocation7 + $0x408] sm:$0xff]  ;;  %v355_v42 = vld [vmem:[#allocation7 + $0x3f0] sm:$0xff] }
  0xb5   :  { %1076 = vmatpush2.msra.mxu0 %v409_v6  ;;  %1165 = vmatpush2.msra.mxu1 %v411_v7  ;;  %v357_v43 = vld [vmem:[#allocation7 + $0x400] sm:$0xff]  ;;  %v350_v44 = vld [vmem:[#allocation7 + $0x3c8] sm:$0xff]  ;;  %v352_v45 = vld [vmem:[#allocation7 + $0x3d8] sm:$0xff] }
  0xb6   :  { %1077 = vmatprep.subr.mxu0 %v404_v8  ;;  %1166 = vmatprep.subr.mxu1 %v406_v9  ;;  %v349_v46 = vld [vmem:[#allocation7 + $0x3c0] sm:$0xff]  ;;  %v351_v47 = vld [vmem:[#allocation7 + $0x3d0] sm:$0xff]  ;;  %v344_v48 = vld [vmem:[#allocation7 + $0x398] sm:$0xff] }
  0xb7   :  { %1078 = vmatpush2.msra.mxu0 %v403_v10  ;;  %1167 = vmatpush2.msra.mxu1 %v405_v11  ;;  %v346_v49 = vld [vmem:[#allocation7 + $0x3a8] sm:$0xff]  ;;  %v343_v50 = vld [vmem:[#allocation7 + $0x390] sm:$0xff]  ;;  %v345_v51 = vld [vmem:[#allocation7 + $0x3a0] sm:$0xff] }
  0xb8   :  { %1079 = vmatprep.subr.mxu0 %v398_v12  ;;  %1168 = vmatprep.subr.mxu1 %v400_v13  ;;  %v338_v52 = vld [vmem:[#allocation7 + $0x368] sm:$0xff]  ;;  %v340_v53 = vld [vmem:[#allocation7 + $0x378] sm:$0xff]  ;;  %v337_v54 = vld [vmem:[#allocation7 + $0x360] sm:$0xff] }
  0xb9   :  { %1080 = vmatpush2.msra.mxu0 %v397_v14  ;;  %1169 = vmatpush2.msra.mxu1 %v399_v15  ;;  %v339_v55 = vld [vmem:[#allocation7 + $0x370] sm:$0xff]  ;;  %v332_v56 = vld [vmem:[#allocation7 + $0x338] sm:$0xff]  ;;  %v334_v57 = vld [vmem:[#allocation7 + $0x348] sm:$0xff] }
  0xba   :  { %1081 = vmatprep.subr.mxu0 %v392_v16  ;;  %1170 = vmatprep.subr.mxu1 %v394_v17  ;;  %v331_v58 = vld [vmem:[#allocation7 + $0x330] sm:$0xff]  ;;  %v333_v59 = vld [vmem:[#allocation7 + $0x340] sm:$0xff]  ;;  %v326_v60 = vld [vmem:[#allocation7 + $0x308] sm:$0xff] }
  0xbb   :  { %1082 = vmatpush2.msra.mxu0 %v391_v18  ;;  %1171 = vmatpush2.msra.mxu1 %v393_v19  ;;  %v328_v61 = vld [vmem:[#allocation7 + $0x318] sm:$0xff]  ;;  %v325_v62 = vld [vmem:[#allocation7 + $0x300] sm:$0xff]  ;;  %v327_v63 = vld [vmem:[#allocation7 + $0x310] sm:$0xff] }
  0xbc   :  { %1083 = vmatprep.subr.mxu0 %v386_v20  ;;  %1172 = vmatprep.subr.mxu1 %v388_v21  ;;  %v218_v0 = vld [vmem:[#allocation2 + $0x8] sm:$0xff]  ;;  %v4781_v1 = vld [vmem:[#allocation2] sm:$0xff]  ;;  %v324_v2 = vld [vmem:[#allocation7 + $0x2f8] sm:$0xff] }
  0xbd   :  { %1084 = vmatpush2.msra.mxu0 %v385_v22  ;;  %1173 = vmatpush2.msra.mxu1 %v387_v23  ;;  %v4783_v3 = vld [vmem:[#allocation2 + $0x18] sm:$0xff]  ;;  %v323_v4 = vld [vmem:[#allocation7 + $0x2f0] sm:$0xff]  ;;  %v318_v5 = vld [vmem:[#allocation7 + $0x2c8] sm:$0xff] }
  0xbe   :  { %1085 = vmatprep.subr.mxu0 %v380_v24  ;;  %1174 = vmatprep.subr.mxu1 %v382_v25  ;;  %v317_v6 = vld [vmem:[#allocation7 + $0x2c0] sm:$0xff]  ;;  %v4788_v7 = vld [vmem:[#allocation2 + $0x10] sm:$0xff]  ;;  %v312_v8 = vld [vmem:[#allocation7 + $0x298] sm:$0xff] }
  0xbf   :  { %1086 = vmatpush2.msra.mxu0 %v379_v26  ;;  %1175 = vmatpush2.msra.mxu1 %v381_v27  ;;  %v311_v9 = vld [vmem:[#allocation7 + $0x290] sm:$0xff]  ;;  %v4791_v10 = vld [vmem:[#allocation2 + $0x28] sm:$0xff]  ;;  %v305_v12 = vld [vmem:[#allocation7 + $0x260] sm:$0xff] }
  0xc0   :  { %1087 = vmatprep.subr.mxu0 %v374_v28  ;;  %1176 = vmatprep.subr.mxu1 %v376_v29  ;;  %v306_v11 = vld [vmem:[#allocation7 + $0x268] sm:$0xff]  ;;  %v300_v13 = vld [vmem:[#allocation7 + $0x238] sm:$0xff]  ;;  %v4796_v14 = vld [vmem:[#allocation2 + $0x20] sm:$0xff] }
  0xc1   :  { %1088 = vmatpush2.msra.mxu0 %v373_v30  ;;  %1177 = vmatpush2.msra.mxu1 %v375_v31  ;;  %v299_v15 = vld [vmem:[#allocation7 + $0x230] sm:$0xff]  ;;  %v4798_v16 = vld [vmem:[#allocation2 + $0x38] sm:$0xff]  ;;  %v294_v17 = vld [vmem:[#allocation7 + $0x208] sm:$0xff] }
  0xc2   :  { %1089 = vmatprep.subr.mxu0 %v368_v32  ;;  %1178 = vmatprep.subr.mxu1 %v370_v33  ;;  %v293_v18 = vld [vmem:[#allocation7 + $0x200] sm:$0xff]  ;;  %v288_v19 = vld [vmem:[#allocation7 + $0x1d8] sm:$0xff]  ;;  %v4804_v20 = vld [vmem:[#allocation2 + $0x30] sm:$0xff] }
  0xc3   :  { %1090 = vmatpush2.msra.mxu0 %v367_v34  ;;  %1179 = vmatpush2.msra.mxu1 %v369_v35  ;;  %v287_v21 = vld [vmem:[#allocation7 + $0x1d0] sm:$0xff]  ;;  %v282_v22 = vld [vmem:[#allocation7 + $0x1a8] sm:$0xff]  ;;  %v281_v23 = vld [vmem:[#allocation7 + $0x1a0] sm:$0xff] }
  0xc4   :  { %1091 = vmatprep.subr.mxu0 %v362_v36  ;;  %1180 = vmatprep.subr.mxu1 %v364_v37  ;;  %v276_v24 = vld [vmem:[#allocation7 + $0x178] sm:$0xff]  ;;  %v275_v25 = vld [vmem:[#allocation7 + $0x170] sm:$0xff]  ;;  %v270_v26 = vld [vmem:[#allocation7 + $0x148] sm:$0xff] }
  0xc5   :  { %1092 = vmatpush2.msra.mxu0 %v361_v38  ;;  %1181 = vmatpush2.msra.mxu1 %v363_v39  ;;  %v269_v27 = vld [vmem:[#allocation7 + $0x140] sm:$0xff]  ;;  %v264_v28 = vld [vmem:[#allocation7 + $0x118] sm:$0xff]  ;;  %v263_v29 = vld [vmem:[#allocation7 + $0x110] sm:$0xff] }
  0xc6   :  { %1093 = vmatprep.subr.mxu0 %v356_v40  ;;  %1182 = vmatprep.subr.mxu1 %v358_v41  ;;  %v258_v30 = vld [vmem:[#allocation7 + $0xe8] sm:$0xff]  ;;  %v257_v31 = vld [vmem:[#allocation7 + $0xe0] sm:$0xff]  ;;  %v252_v32 = vld [vmem:[#allocation7 + $0xb8] sm:$0xff] }
  0xc7   :  { %1094 = vmatpush2.msra.mxu0 %v355_v42  ;;  %1183 = vmatpush2.msra.mxu1 %v357_v43  ;;  %v251_v33 = vld [vmem:[#allocation7 + $0xb0] sm:$0xff]  ;;  %v246_v34 = vld [vmem:[#allocation7 + $0x88] sm:$0xff]  ;;  %v245_v35 = vld [vmem:[#allocation7 + $0x80] sm:$0xff] }
  0xc8   :  { %1095 = vmatprep.subr.mxu0 %v350_v44  ;;  %1184 = vmatprep.subr.mxu1 %v352_v45  ;;  %v240_v36 = vld [vmem:[#allocation7 + $0x58] sm:$0xff]  ;;  %v239_v37 = vld [vmem:[#allocation7 + $0x50] sm:$0xff]  ;;  %v234_v38 = vld [vmem:[#allocation7 + $0x28] sm:$0xff] }
  0xc9   :  { %1096 = vmatpush2.msra.mxu0 %v349_v46  ;;  %1185 = vmatpush2.msra.mxu1 %v351_v47  ;;  %v233_v39 = vld [vmem:[#allocation7 + $0x20] sm:$0xff]  ;;  %v420_v40 = vld [vmem:[#allocation7 + $0x5f8] sm:$0xff]  ;;  %v419_v41 = vld [vmem:[#allocation7 + $0x5f0] sm:$0xff] }
  0xca   :  { %1097 = vmatprep.subr.mxu0 %v344_v48  ;;  %1186 = vmatprep.subr.mxu1 %v346_v49  ;;  %v414_v42 = vld [vmem:[#allocation7 + $0x5c8] sm:$0xff]  ;;  %v413_v43 = vld [vmem:[#allocation7 + $0x5c0] sm:$0xff]  ;;  %v408_v44 = vld [vmem:[#allocation7 + $0x598] sm:$0xff] }
  0xcb   :  { %1098 = vmatpush2.msra.mxu0 %v343_v50  ;;  %1187 = vmatpush2.msra.mxu1 %v345_v51  ;;  %v407_v45 = vld [vmem:[#allocation7 + $0x590] sm:$0xff]  ;;  %v402_v46 = vld [vmem:[#allocation7 + $0x568] sm:$0xff]  ;;  %v401_v47 = vld [vmem:[#allocation7 + $0x560] sm:$0xff] }
  0xcc   :  { %1099 = vmatprep.subr.mxu0 %v338_v52  ;;  %1188 = vmatprep.subr.mxu1 %v340_v53  ;;  %v396_v48 = vld [vmem:[#allocation7 + $0x538] sm:$0xff]  ;;  %v395_v49 = vld [vmem:[#allocation7 + $0x530] sm:$0xff]  ;;  %v390_v50 = vld [vmem:[#allocation7 + $0x508] sm:$0xff] }
  0xcd   :  { %1100 = vmatpush2.msra.mxu0 %v337_v54  ;;  %1189 = vmatpush2.msra.mxu1 %v339_v55  ;;  %v389_v51 = vld [vmem:[#allocation7 + $0x500] sm:$0xff]  ;;  %v384_v52 = vld [vmem:[#allocation7 + $0x4d8] sm:$0xff]  ;;  %v383_v53 = vld [vmem:[#allocation7 + $0x4d0] sm:$0xff] }
  0xce   :  { %1101 = vmatprep.subr.mxu0 %v332_v56  ;;  %1190 = vmatprep.subr.mxu1 %v334_v57  ;;  %v378_v54 = vld [vmem:[#allocation7 + $0x4a8] sm:$0xff]  ;;  %v377_v55 = vld [vmem:[#allocation7 + $0x4a0] sm:$0xff]  ;;  %v372_v56 = vld [vmem:[#allocation7 + $0x478] sm:$0xff] }
  0xcf   :  { %1102 = vmatpush2.msra.mxu0 %v331_v58  ;;  %1191 = vmatpush2.msra.mxu1 %v333_v59  ;;  %v371_v57 = vld [vmem:[#allocation7 + $0x470] sm:$0xff]  ;;  %v366_v58 = vld [vmem:[#allocation7 + $0x448] sm:$0xff]  ;;  %v365_v59 = vld [vmem:[#allocation7 + $0x440] sm:$0xff] }
  0xd0   :  { %1103 = vmatprep.subr.mxu0 %v326_v60  ;;  %1192 = vmatprep.subr.mxu1 %v328_v61  ;;  %v360_v60 = vld [vmem:[#allocation7 + $0x418] sm:$0xff]  ;;  %v359_v61 = vld [vmem:[#allocation7 + $0x410] sm:$0xff] }
  0xd1   :  { %1104 = vmatpush2.msra.mxu0 %v325_v62  ;;  %1193 = vmatpush2.msra.mxu1 %v327_v63  ;;  %v354_v62 = vld [vmem:[#allocation7 + $0x3e8] sm:$0xff]  ;;  %v353_v63 = vld [vmem:[#allocation7 + $0x3e0] sm:$0xff] }
  0xd2   :  { %1194 = vmatprep.mubr.f32.mxu1 %v218_v0  ;;  %1105 = vmatprep.mubr.f32.mxu0 %v218_v0 }
  0xd3   :  { %1195 = vmatmul.mubr.f32.vlgmr.msra.gmra.mxu1 %v4781_v1  ;;  %1219 = vmatprep.subr.mxu0 %v324_v2  ;;  %v347_v2 = vld [vmem:[#allocation7 + $0x3b0] sm:$0xff] }
  0xd4   :  { %1106 = vmatmul.mubr.f32.vlgmr.msra.gmra.mxu0 %v4781_v1  ;;  %1200 = vmatprep.mubr.f32.mxu1 %v4783_v3 }
  0xd5   :  { %1220 = vmatpush1.msra.mxu0 %v323_v4  ;;  %1111 = vmatprep.mubr.f32.mxu0 %v4783_v3  ;;  %v342_v4 = vld [vmem:[#allocation7 + $0x388] sm:$0xff] }
  0xd6   :  { %1221 = vmatprep.subr.mxu0 %v318_v5  ;;  %v341_v5 = vld [vmem:[#allocation7 + $0x380] sm:$0xff] }
  0xd7   :  { %1222 = vmatpush1.msra.mxu0 %v317_v6  ;;  %1201 = vmatmul.mubr.f32.gmra.mxu1 %v4788_v7  ;;  %v336_v6 = vld [vmem:[#allocation7 + $0x358] sm:$0xff] }
  0xd8   :  { %1223 = vmatprep.subr.mxu0 %v312_v8  ;;  %1112 = vmatmul.mubr.f32.gmra.mxu0 %v4788_v7  ;;  %v335_v8 = vld [vmem:[#allocation7 + $0x350] sm:$0xff] }
  0xd9   :  { %1224 = vmatpush1.msra.mxu0 %v311_v9  ;;  %1117 = vmatprep.mubr.f32.mxu0 %v4791_v10  ;;  %v330_v9 = vld [vmem:[#allocation7 + $0x328] sm:$0xff] }
  0xda   :  { %1225 = vmatprep.subr.mxu0 %v306_v11  ;;  %1206 = vmatprep.mubr.f32.mxu1 %v4791_v10  ;;  %v329_v11 = vld [vmem:[#allocation7 + $0x320] sm:$0xff] }
  0xdb   :  { %1226 = vmatpush1.msra.mxu0 %v305_v12  ;;  %1207 = vmatmul.mubr.f32.gmra.mxu1 %v4796_v14  ;;  %v1011_v12 = vlaneseq }
  0xdc   :  { %1227 = vmatprep.subr.mxu0 %v300_v13  ;;  %1118 = vmatmul.mubr.f32.gmra.mxu0 %v4796_v14 }
  0xdd   :  { %1228 = vmatpush1.msra.mxu0 %v299_v15  ;;  %1123 = vmatprep.mubr.f32.mxu0 %v4798_v16  ;;  %v4816_v13 = vshrl.u32 %v1011_v12, 7 }
  0xde   :  { %1229 = vmatprep.subr.mxu0 %v294_v17  ;;  %1212 = vmatprep.mubr.f32.mxu1 %v4798_v16 }
  0xdf   :  { %1230 = vmatpush1.msra.mxu0 %v293_v18  ;;  %1213 = vmatmul.mubr.f32.gmra.mxu1 %v4804_v20  ;;  %v4819_v15 = vsub.s32 0, %v4816_v13 }
  0xe0   :  { %1231 = vmatprep.subr.mxu0 %v288_v19  ;;  %1124 = vmatmul.mubr.f32.gmra.mxu0 %v4804_v20 }
  0xe1   :  { %1232 = vmatpush1.msra.mxu0 %v287_v21  ;;  %1283 = vmatprep.mubr.f32.mxu0 %v218_v0  ;;  %v348_v0 = vld [vmem:[#allocation7 + $0x3b8] sm:$0xff] }
  0xe2   :  { %1233 = vmatprep.subr.mxu0 %v282_v22 }
  0xe3   :  { %1234 = vmatpush1.msra.mxu0 %v281_v23 }
  0xe4   :  { %1235 = vmatprep.subr.mxu0 %v276_v24 }
  0xe5   :  { %1236 = vmatpush1.msra.mxu0 %v275_v25 }
  0xe6   :  { %1237 = vmatprep.subr.mxu0 %v270_v26  ;;  %v4843_v26 = vsub.s32 1, %v4816_v13 }
  0xe7   :  { %1238 = vmatpush1.msra.mxu0 %v269_v27 }
  0xe8   :  { %1239 = vmatprep.subr.mxu0 %v264_v28 }
  0xe9   :  { %1240 = vmatpush1.msra.mxu0 %v263_v29 }
  0xea   :  { %1241 = vmatprep.subr.mxu0 %v258_v30 }
  0xeb   :  { %1242 = vmatpush1.msra.mxu0 %v257_v31 }
  0xec   :  { %1243 = vmatprep.subr.mxu0 %v252_v32 }
  0xed   :  { %1244 = vmatpush1.msra.mxu0 %v251_v33 }
  0xee   :  { %1245 = vmatprep.subr.mxu0 %v246_v34 }
  0xef   :  { %1246 = vmatpush1.msra.mxu0 %v245_v35 }
  0xf0   :  { %1247 = vmatprep.subr.mxu0 %v240_v36 }
  0xf1   :  { %1248 = vmatpush1.msra.mxu0 %v239_v37 }
  0xf2   :  { %1249 = vmatprep.subr.mxu0 %v234_v38 }
  0xf3   :  { %1250 = vmatpush1.msra.mxu0 %v233_v39 }
  0xf4   :  { %1251 = vmatprep.subr.mxu0 %v420_v40 }
  0xf5   :  { %1252 = vmatpush2.msra.mxu0 %v419_v41 }
  0xf6   :  { %1253 = vmatprep.subr.mxu0 %v414_v42 }
  0xf7   :  { %1254 = vmatpush2.msra.mxu0 %v413_v43 }
  0xf8   :  { %1255 = vmatprep.subr.mxu0 %v408_v44 }
  0xf9   :  { %1256 = vmatpush2.msra.mxu0 %v407_v45 }
  0xfa   :  { %1257 = vmatprep.subr.mxu0 %v402_v46  ;;  %v1029_v46 = vsub.s32 4, %v4816_v13 }
  0xfb   :  { %1258 = vmatpush2.msra.mxu0 %v401_v47 }
  0xfc   :  { %1259 = vmatprep.subr.mxu0 %v396_v48 }
  0xfd   :  { %1260 = vmatpush2.msra.mxu0 %v395_v49 }
  0xfe   :  { %1261 = vmatprep.subr.mxu0 %v390_v50 }
  0xff   :  { %1262 = vmatpush2.msra.mxu0 %v389_v51 }
 0x100   :  { %1263 = vmatprep.subr.mxu0 %v384_v52 }
 0x101   :  { %1264 = vmatpush2.msra.mxu0 %v383_v53 }
 0x102   :  { %1265 = vmatprep.subr.mxu0 %v378_v54 }
 0x103   :  { %1266 = vmatpush2.msra.mxu0 %v377_v55 }
 0x104   :  { %1267 = vmatprep.subr.mxu0 %v372_v56 }
 0x105   :  { %1268 = vmatpush2.msra.mxu0 %v371_v57 }
 0x106   :  { %1269 = vmatprep.subr.mxu0 %v366_v58 }
 0x107   :  { %1270 = vmatpush2.msra.mxu0 %v365_v59 }
 0x108   :  { %1271 = vmatprep.subr.mxu0 %v360_v60 }
 0x109   :  { %1272 = vmatpush2.msra.mxu0 %v359_v61 }
 0x10a   :  { %1273 = vmatprep.subr.mxu0 %v354_v62 }
 0x10b   :  { %1274 = vmatpush2.msra.mxu0 %v353_v63 }
 0x10c   :  { %1275 = vmatprep.subr.mxu0 %v348_v0 }
 0x10d   :  { %1276 = vmatpush2.msra.mxu0 %v347_v2 }
 0x10e   :  { %1277 = vmatprep.subr.mxu0 %v342_v4 }
 0x10f   :  { %1278 = vmatpush2.msra.mxu0 %v341_v5 }
 0x110   :  { %1279 = vmatprep.subr.mxu0 %v336_v6 }
 0x111   :  { %1280 = vmatpush2.msra.mxu0 %v335_v8 }
 0x112   :  { %1281 = vmatprep.subr.mxu0 %v330_v9 }
 0x113   :  { %1282 = vmatpush2.msra.mxu0 %v329_v11 }
 0x114   :  { %1284 = vmatmul.mubr.f32.vlgmr.msra.gmra.mxu0 %v4781_v1  ;;  %v4822_v1 = vsub.s32 3, %v4816_v13 }
 0x115   :  { %1289 = vmatprep.mubr.f32.mxu0 %v4783_v3  ;;  %v4824_v3 = vld [vmem:[#allocation8] sm:$0x3f] }
 0x116   :  { %v4851_v33 = vrot.slane %v4824_v3, %v4843_v26  ;;  %v4870_v48 = vrot.slane %v4824_v3, %v1029_v46 }
 0x118   :  { %1290 = vmatmul.mubr.f32.gmra.mxu0 %v4788_v7  ;;  %v1014_v7 = vrot.slane %v4824_v3, %v4819_v15 }
 0x119   :  { %1295 = vmatprep.mubr.f32.mxu0 %v4791_v10  ;;  %v4829_v10 = vsub.s32 2, %v4816_v13 }
 0x11c   :  { %1296 = vmatmul.mubr.f32.gmra.mxu0 %v4796_v14  ;;  %v4833_v14 = vrot.slane %v4824_v3, %v4822_v1 }
 0x11d   :  { %1301 = vmatprep.mubr.f32.mxu0 %v4798_v16 }
 0x120   :  { %1302 = vmatmul.mubr.f32.gmra.mxu0 %v4804_v20  ;;  %v1022_v20 = vrot.slane %v4824_v3, %v4829_v10 }
 0x193   :  { %v1196_v16 = vpop.f32.mrf.mxu1 }
 0x194   :  { %v1107_v17 = vpop.f32.mrf.mxu0  ;;  %v1197_v28 = vadd.f32 %v1196_v16, %v1022_v20  ;;  %v1033_v16 = vsub.s32 5, %v4816_v13 }
 0x195   :  { %v1198_v18 = vpop.f32.mrf.mxu1  ;;  %v1108_v19 = vadd.f32 %v1107_v17, %v1014_v7 }
 0x196   :  { %v4838_v21 = vadd.f32 %v1198_v18, %v4833_v14  ;;  %v4840_v22 = vpop.f32.mrf.mxu0 }
 0x197   :  { %v1202_v23 = vpop.f32.mrf.mxu1  ;;  %4073 = vmatprep.mubr.f32.mxu1 %v1108_v19  ;;  %v1110_v18 = vadd.f32 %v4840_v22, %v4851_v33 }
 0x198   :  { %v1203_v24 = vadd.f32 %v1202_v23, %v1022_v20  ;;  %v1113_v25 = vpop.f32.mrf.mxu0 }
 0x199   :  { %v1204_v27 = vpop.f32.mrf.mxu1  ;;  %v1114_v36 = vadd.f32 %v1113_v25, %v1014_v7 }
 0x19a   :  { %4069 = vmatprep.subr.mxu1 %v1203_v24  ;;  %v4845_v29 = vpop.f32.mrf.mxu0  ;;  %v1205_v53 = vadd.f32 %v1204_v27, %v4833_v14 }
 0x19b   :  { %4070 = vmatpush3.xpose.msra.mxu1 %v1203_v24  ;;  %v1208_v30 = vpop.f32.mrf.mxu1  ;;  %v1116_v13 = vadd.f32 %v4845_v29, %v4851_v33 }
 0x19c   :  { %4071 = vmatprep.subr.mxu1 %v1197_v28  ;;  %v1119_v31 = vpop.f32.mrf.mxu0  ;;  %v4847_v32 = vadd.f32 %v1208_v30, %v1022_v20 }
 0x19d   :  { %v4853_v34 = vadd.f32 %v1119_v31, %v1014_v7  ;;  %v1210_v35 = vpop.f32.mrf.mxu1 }
 0x19e   :  { %v1121_v37 = vpop.f32.mrf.mxu0  ;;  %v4856_v38 = vadd.f32 %v1210_v35, %v4833_v14 }
 0x19f   :  { %4072 = vmatpush3.xpose.msra.mxu1 %v1197_v28  ;;  %v4859_v39 = vadd.f32 %v1121_v37, %v4851_v33  ;;  %v1214_v40 = vpop.f32.mrf.mxu1 }
 0x1a0   :  { %v1125_v41 = vpop.f32.mrf.mxu0  ;;  %v4861_v42 = vadd.f32 %v1214_v40, %v1022_v20  ;;  %v4887_v20 = vrot.slane %v4824_v3, %v1033_v16 }
 0x1a1   :  { %v4863_v43 = vadd.f32 %v1125_v41, %v1014_v7  ;;  %v4875_v54 = vpop.f32.mrf.mxu1 }
 0x1a2   :  { %4074 = vmatmul.mubr.f32.vlgmr.msra.gmra.mxu1 %v1114_v36  ;;  %v1127_v44 = vpop.f32.mrf.mxu0 }
 0x1a3   :  { %v4866_v45 = vadd.f32 %v1127_v44, %v4851_v33 }
 0x1d4   :  { %v1285_v47 = vpop.f32.mrf.mxu0 }
 0x1d5   :  { %v1286_v51 = vadd.f32 %v1285_v47, %v4870_v48 }
 0x1d6   :  { %v1287_v49 = vpop.f32.mrf.mxu0 }
 0x1d7   :  { %v1288_v22 = vadd.f32 %v1287_v49, %v4887_v20 }
 0x1d8   :  { %v1291_v50 = vpop.f32.mrf.mxu0 }
 0x1d9   :  { %v1292_v52 = vadd.f32 %v1291_v50, %v4870_v48 }
 0x1da   :  { %v1293_v19 = vpop.f32.mrf.mxu0 }
 0x1db   :  { %4076 = vmatprep.subr.mxu1 %v1292_v52  ;;  %v1294_v23 = vadd.f32 %v1293_v19, %v4887_v20 }
 0x1dc   :  { %4077 = vmatpush3.msra.mxu1 %v1292_v52  ;;  %v1297_v49 = vpop.f32.mrf.mxu0 }
 0x1dd   :  { %4078 = vmatprep.subr.mxu1 %v1286_v51 }
 0x1de   :  { %4079 = vmatpush3.msra.mxu1 %v1286_v51  ;;  %v1299_v51 = vpop.f32.mrf.mxu0 }
 0x1df   :  { %4083 = vmatprep.subr.mxu1 %v1205_v53  ;;  %v1300_v19 = vadd.f32 %v1299_v51, %v4887_v20  ;;  %v450_v51 = vld [vmem:[#allocation10 + $0xe0] sm:$0xff] }
 0x262   :  { %v4075_v55 = vpop.f32.mrf.mxu1 }
 0x263   :  { %v1387_v58 = vsel %vm1383_vm0, %v4075_v55, -inf }
 0x264   :  { %v1374_v56 = vpop.f32.mrf.mxu1 }
 0x265   :  { %v1384_v57 = vsel %vm1383_vm0, %v1374_v56, -inf }
 0x266   :  { %1385 = vmax.xlane.f32.xlu0 %v1384_v57 }
 0x26a   :  { %1388 = vmax.xlane.f32.xlu0 %v1387_v58  ;;  %v1298_v58 = vadd.f32 %v1297_v49, %v4870_v48  ;;  %v452_v49 = vld [vmem:[#allocation10 + $0xf0] sm:$0xff] }
 0x2ef   :  { %v1386_v59 = vpop.xlane.xlu0 %1385 }
 0x2f0   :  { %v1390_v60 = vsub.f32 %v1374_v56, %v1386_v59  ;;  %v1303_v56 = vpop.f32.mrf.mxu0  ;;  %v1217_v59 = vadd.f32 %v4875_v54, %v4833_v14 }
 0x2f1   :  { %v1304_v57 = vadd.f32 %v1303_v56, %v4870_v48  ;;  %v446_v56 = vld [vmem:[#allocation10 + $0xc0] sm:$0xff] }
 0x2f2   :  { %v1392_v61 = vmul.f32 1.442695, %v1390_v60 }
 0x2f3   :  { %v1389_v62 = vpop.xlane.xlu0 %1388 }
 0x2f4   :  { %4247 = vpow2.f32 %v1392_v61  ;;  %v1391_v63 = vsub.f32 %v4075_v55, %v1389_v62 }
 0x2f6   :  { %v1394_v0 = vmul.f32 1.442695, %v1391_v63 }
 0x2f8   :  { %4249 = vpow2.f32 %v1394_v0 }
 0x301   :  { %v4248_v2 = vpop.eup %4247 }
 0x302   :  { %v1396_v4 = vsel %vm1383_vm0, %v4248_v2, 0.0 }
 0x303   :  { %1397 = vadd.xlane.f32.xlu1 %v1396_v4 }
 0x305   :  { %v4250_v5 = vpop.eup %4249 }
 0x306   :  { %v1399_v6 = vsel %vm1383_vm0, %v4250_v5, 0.0 }
 0x307   :  { %1400 = vadd.xlane.f32.xlu1 %v1399_v6 }
 0x38c   :  { %v1398_v8 = vpop.xlane.xlu1 %1397 }
 0x38d   :  { %4251 = vrcp.f32 %v1398_v8 }
 0x390   :  { %v1401_v9 = vpop.xlane.xlu1 %1400 }
 0x391   :  { %4253 = vrcp.f32 %v1401_v9 }
 0x39a   :  { %v4252_v11 = vpop.eup %4251 }
 0x39b   :  { %v1404_v12 = vmul.f32 %v4252_v11, %v4248_v2 }
 0x39d   :  { %4080 = vmatprep.mubr.msk.f32.mxu1 %vm1383_vm0, %v1404_v12 }
 0x39e   :  { %v4254_v7 = vpop.eup %4253 }
 0x39f   :  { %v1405_v17 = vmul.f32 %v4254_v7, %v4250_v5 }
 0x3a1   :  { %4081 = vmatmul.mubr.msk.f32.vlgmr.msra.gmra.mxu1 %vm1383_vm0, %v1405_v17  ;;  %v1305_v17 = vpop.f32.mrf.mxu0 }
 0x3a2   :  { %4084 = vmatpush3.xpose.msra.mxu1 %v1205_v53  ;;  %4087 = vmatprep.mubr.f32.mxu1 %v1110_v18  ;;  %v1306_v18 = vadd.f32 %v1305_v17, %v4887_v20  ;;  %v485_v17 = vld [vmem:[#allocation10 + $0x1f8] sm:$0xff] }
 0x3a3   :  { %4085 = vmatprep.subr.mxu1 %v4838_v21 }
 0x3a6   :  { %4086 = vmatpush3.xpose.msra.mxu1 %v4838_v21 }
 0x3a7   :  { %4090 = vmatprep.subr.mxu1 %v1294_v23 }
 0x3a9   :  { %4088 = vmatmul.mubr.f32.vlgmr.msra.gmra.mxu1 %v1116_v13 }
 0x3aa   :  { %4091 = vmatpush3.msra.mxu1 %v1294_v23 }
 0x3ab   :  { %4092 = vmatprep.subr.mxu1 %v1288_v22 }
 0x3ac   :  { %4093 = vmatpush3.msra.mxu1 %v1288_v22 }
 0x3ad   :  { %4097 = vmatprep.subr.mxu1 %v4861_v42 }
 0x461   :  { %v4896_v3 = vpop.f32.mrf.mxu1 }
 0x463   :  { %v4898_v24 = vpop.f32.mrf.mxu1 }
 0x469   :  { %v4089_v25 = vpop.f32.mrf.mxu1 }
 0x46a   :  { %v1565_v27 = vsel %vm1383_vm0, %v4089_v25, -inf }
 0x46b   :  { %1566 = vmax.xlane.f32.xlu1 %v1565_v27  ;;  %v1553_v21 = vpop.f32.mrf.mxu1 }
 0x46c   :  { %v1562_v28 = vsel %vm1383_vm0, %v1553_v21, -inf }
 0x46d   :  { %1563 = vmax.xlane.f32.xlu0 %v1562_v28 }
 0x4f4   :  { %v1567_v29 = vpop.xlane.xlu1 %1566 }
 0x4f5   :  { %v1569_v30 = vsub.f32 %v4089_v25, %v1567_v29 }
 0x4f6   :  { %v1564_v31 = vpop.xlane.xlu0 %1563 }
 0x4f7   :  { %v1572_v33 = vmul.f32 1.442695, %v1569_v30  ;;  %v1568_v35 = vsub.f32 %v1553_v21, %v1564_v31 }
 0x4f9   :  { %4255 = vpow2.f32 %v1572_v33  ;;  %v1570_v36 = vmul.f32 1.442695, %v1568_v35 }
 0x4fb   :  { %4257 = vpow2.f32 %v1570_v36  ;;  %v453_v36 = vld [vmem:[#allocation10 + $0xf8] sm:$0xff] }
 0x506   :  { %v4256_v37 = vpop.eup %4255 }
 0x507   :  { %v1577_v40 = vsel %vm1383_vm0, %v4256_v37, 0.0 }
 0x508   :  { %v4258_v41 = vpop.eup %4257  ;;  %1578 = vadd.xlane.f32.xlu1 %v1577_v40 }
 0x509   :  { %v1574_v44 = vsel %vm1383_vm0, %v4258_v41, 0.0 }
 0x50a   :  { %1575 = vadd.xlane.f32.xlu0 %v1574_v44 }
 0x591   :  { %v1579_v46 = vpop.xlane.xlu1 %1578 }
 0x592   :  { %4259 = vrcp.f32 %v1579_v46 }
 0x593   :  { %v1576_v47 = vpop.xlane.xlu0 %1575 }
 0x594   :  { %4261 = vrcp.f32 %v1576_v47 }
 0x59f   :  { %v4260_v50 = vpop.eup %4259 }
 0x5a0   :  { %v1583_v55 = vmul.f32 %v4260_v50, %v4256_v37  ;;  %v451_v50 = vld [vmem:[#allocation10 + $0xe8] sm:$0xff] }
 0x5a1   :  { %v4262_v52 = vpop.eup %4261 }
 0x5a2   :  { %v1582_v53 = vmul.f32 %v4262_v52, %v4258_v41  ;;  %v449_v52 = vld [vmem:[#allocation10 + $0xd8] sm:$0xff] }
 0x5a4   :  { %4094 = vmatprep.mubr.msk.f32.mxu1 %vm1383_vm0, %v1582_v53  ;;  %v448_v53 = vld [vmem:[#allocation10 + $0xd0] sm:$0xff] }
 0x5a5   :  { %4095 = vmatmul.mubr.msk.f32.vlgmr.msra.gmra.mxu1 %vm1383_vm0, %v1583_v55  ;;  %v447_v55 = vld [vmem:[#allocation10 + $0xc8] sm:$0xff] }
 0x5a6   :  { %4098 = vmatpush3.xpose.msra.mxu1 %v4861_v42  ;;  %4101 = vmatprep.mubr.f32.mxu1 %v4853_v34 }
 0x5a7   :  { %4099 = vmatprep.subr.mxu1 %v4847_v32 }
 0x5aa   :  { %4100 = vmatpush3.xpose.msra.mxu1 %v4847_v32 }
 0x5ab   :  { %4104 = vmatprep.subr.mxu1 %v1304_v57 }
 0x5ad   :  { %4102 = vmatmul.mubr.f32.vlgmr.msra.gmra.mxu1 %v4863_v43 }
 0x5ae   :  { %4105 = vmatpush3.msra.mxu1 %v1304_v57  ;;  %v445_v57 = vld [vmem:[#allocation10 + $0xb8] sm:$0xff] }
 0x5af   :  { %4106 = vmatprep.subr.mxu1 %v1298_v58 }
 0x5b0   :  { %4107 = vmatpush3.msra.mxu1 %v1298_v58  ;;  %v444_v58 = vld [vmem:[#allocation10 + $0xb0] sm:$0xff] }
 0x5b1   :  { %4111 = vmatprep.subr.mxu1 %v1217_v59 }
 0x665   :  { %v4915_v42 = vpop.f32.mrf.mxu1 }
 0x667   :  { %v4917_v34 = vpop.f32.mrf.mxu1 }
 0x66d   :  { %v4103_v60 = vpop.f32.mrf.mxu1 }
 0x66e   :  { %v1743_v61 = vsel %vm1383_vm0, %v4103_v60, -inf }
 0x66f   :  { %1744 = vmax.xlane.f32.xlu1 %v1743_v61  ;;  %v1731_v32 = vpop.f32.mrf.mxu1  ;;  %v441_v61 = vld [vmem:[#allocation10 + $0x98] sm:$0xff] }
 0x670   :  { %v1740_v48 = vsel %vm1383_vm0, %v1731_v32, -inf }
 0x671   :  { %1741 = vmax.xlane.f32.xlu0 %v1740_v48  ;;  %v438_v48 = vld [vmem:[#allocation10 + $0x80] sm:$0xff] }
 0x6f8   :  { %v1745_v43 = vpop.xlane.xlu1 %1744 }
 0x6f9   :  { %v1747_v62 = vsub.f32 %v4103_v60, %v1745_v43  ;;  %v442_v60 = vld [vmem:[#allocation10 + $0xa0] sm:$0xff]  ;;  %v437_v43 = vld [vmem:[#allocation10 + $0x78] sm:$0xff] }
 0x6fa   :  { %v1742_v63 = vpop.xlane.xlu0 %1741 }
 0x6fb   :  { %v1750_v0 = vmul.f32 1.442695, %v1747_v62  ;;  %v1746_v14 = vsub.f32 %v1731_v32, %v1742_v63  ;;  %v440_v32 = vld [vmem:[#allocation10 + $0x90] sm:$0xff]  ;;  %v435_v63 = vld [vmem:[#allocation10 + $0x68] sm:$0xff] }
 0x6fc   :  { %v436_v62 = vld [vmem:[#allocation10 + $0x70] sm:$0xff] }
 0x6fd   :  { %4263 = vpow2.f32 %v1750_v0  ;;  %v1748_v54 = vmul.f32 1.442695, %v1746_v14  ;;  %v434_v0 = vld [vmem:[#allocation10 + $0x60] sm:$0xff]  ;;  %v433_v14 = vld [vmem:[#allocation10 + $0x58] sm:$0xff] }
 0x6ff   :  { %4265 = vpow2.f32 %v1748_v54  ;;  %v432_v54 = vld [vmem:[#allocation10 + $0x50] sm:$0xff] }
 0x70a   :  { %v4264_v2 = vpop.eup %4263 }
 0x70b   :  { %v1755_v4 = vsel %vm1383_vm0, %v4264_v2, 0.0 }
 0x70c   :  { %v4266_v5 = vpop.eup %4265  ;;  %1756 = vadd.xlane.f32.xlu1 %v1755_v4  ;;  %v430_v4 = vld [vmem:[#allocation10 + $0x40] sm:$0xff] }
 0x70d   :  { %v1752_v6 = vsel %vm1383_vm0, %v4266_v5, 0.0 }
 0x70e   :  { %1753 = vadd.xlane.f32.xlu0 %v1752_v6  ;;  %v428_v6 = vld [vmem:[#allocation10 + $0x30] sm:$0xff] }
 0x795   :  { %v1757_v8 = vpop.xlane.xlu1 %1756 }
 0x796   :  { %4267 = vrcp.f32 %v1757_v8  ;;  %v427_v8 = vld [vmem:[#allocation10 + $0x28] sm:$0xff] }
 0x797   :  { %v1754_v9 = vpop.xlane.xlu0 %1753 }
 0x798   :  { %4269 = vrcp.f32 %v1754_v9  ;;  %v426_v9 = vld [vmem:[#allocation10 + $0x20] sm:$0xff] }
 0x7a3   :  { %v4268_v11 = vpop.eup %4267 }
 0x7a4   :  { %v1761_v16 = vmul.f32 %v4268_v11, %v4264_v2  ;;  %v431_v2 = vld [vmem:[#allocation10 + $0x48] sm:$0xff]  ;;  %v425_v11 = vld [vmem:[#allocation10 + $0x18] sm:$0xff] }
 0x7a5   :  { %v4270_v12 = vpop.eup %4269 }
 0x7a6   :  { %v1760_v7 = vmul.f32 %v4270_v12, %v4266_v5  ;;  %v429_v5 = vld [vmem:[#allocation10 + $0x38] sm:$0xff]  ;;  %v424_v12 = vld [vmem:[#allocation10 + $0x10] sm:$0xff] }
 0x7a8   :  { %4108 = vmatprep.mubr.msk.f32.mxu1 %vm1383_vm0, %v1760_v7  ;;  %v423_v7 = vld [vmem:[#allocation10 + $0x8] sm:$0xff] }
 0x7a9   :  { %4109 = vmatmul.mubr.msk.f32.vlgmr.msra.gmra.mxu1 %vm1383_vm0, %v1761_v16  ;;  %v422_v16 = vld [vmem:[#allocation10] sm:$0xff] }
 0x7aa   :  { %4112 = vmatpush3.xpose.msra.mxu1 %v1217_v59  ;;  %4115 = vmatprep.mubr.f32.mxu1 %v4859_v39  ;;  %v443_v59 = vld [vmem:[#allocation10 + $0xa8] sm:$0xff] }
 0x7ab   :  { %4113 = vmatprep.subr.mxu1 %v4856_v38 }
 0x7ae   :  { %4114 = vmatpush3.xpose.msra.mxu1 %v4856_v38 }
 0x7af   :  { %4118 = vmatprep.subr.mxu1 %v1306_v18 }
 0x7b1   :  { %4116 = vmatmul.mubr.f32.vlgmr.msra.gmra.mxu1 %v4866_v45 }
 0x7b2   :  { %4119 = vmatpush3.msra.mxu1 %v1306_v18  ;;  %v484_v18 = vld [vmem:[#allocation10 + $0x1f0] sm:$0xff] }
 0x7b3   :  { %4120 = vmatprep.subr.mxu1 %v1300_v19 }
 0x7b4   :  { %4121 = vmatpush3.msra.mxu1 %v1300_v19  ;;  %v483_v19 = vld [vmem:[#allocation10 + $0x1e8] sm:$0xff] }
 0x7b5   :  { %2032 = vmatprep.subr.mxu1 %v453_v36  ;;  %v468_v36 = vld [vmem:[#allocation10 + $0x170] sm:$0xff] }
 0x869   :  { %v4931_v23 = vpop.f32.mrf.mxu1 }
 0x86b   :  { %v4933_v13 = vpop.f32.mrf.mxu1 }
 0x871   :  { %v4117_v22 = vpop.f32.mrf.mxu1 }
 0x872   :  { %v1921_v39 = vsel %vm1383_vm0, %v4117_v22, -inf }
 0x873   :  { %1922 = vmax.xlane.f32.xlu1 %v1921_v39  ;;  %v1909_v25 = vpop.f32.mrf.mxu1  ;;  %v481_v39 = vld [vmem:[#allocation10 + $0x1d8] sm:$0xff] }
 0x874   :  { %v1918_v27 = vsel %vm1383_vm0, %v1909_v25, -inf }
 0x875   :  { %1919 = vmax.xlane.f32.xlu0 %v1918_v27  ;;  %v479_v27 = vld [vmem:[#allocation10 + $0x1c8] sm:$0xff] }
 0x8fc   :  { %v1923_v38 = vpop.xlane.xlu1 %1922 }
 0x8fd   :  { %v1925_v21 = vsub.f32 %v4117_v22, %v1923_v38  ;;  %v482_v22 = vld [vmem:[#allocation10 + $0x1e0] sm:$0xff] }
 0x8fe   :  { %v1920_v20 = vpop.xlane.xlu0 %1919  ;;  %v478_v38 = vld [vmem:[#allocation10 + $0x1c0] sm:$0xff] }
 0x8ff   :  { %v1928_v28 = vmul.f32 1.442695, %v1925_v21  ;;  %v1924_v45 = vsub.f32 %v1909_v25, %v1920_v20  ;;  %v480_v25 = vld [vmem:[#allocation10 + $0x1d0] sm:$0xff]  ;;  %v477_v21 = vld [vmem:[#allocation10 + $0x1b8] sm:$0xff] }
 0x900   :  { %v476_v20 = vld [vmem:[#allocation10 + $0x1b0] sm:$0xff] }
 0x901   :  { %4271 = vpow2.f32 %v1928_v28  ;;  %v1926_v29 = vmul.f32 1.442695, %v1924_v45  ;;  %v475_v28 = vld [vmem:[#allocation10 + $0x1a8] sm:$0xff]  ;;  %v474_v45 = vld [vmem:[#allocation10 + $0x1a0] sm:$0xff] }
 0x903   :  { %4273 = vpow2.f32 %v1926_v29  ;;  %v473_v29 = vld [vmem:[#allocation10 + $0x198] sm:$0xff] }
 0x90e   :  { %v4272_v30 = vpop.eup %4271 }
 0x90f   :  { %v1933_v31 = vsel %vm1383_vm0, %v4272_v30, 0.0 }
 0x910   :  { %v4274_v33 = vpop.eup %4273  ;;  %1934 = vadd.xlane.f32.xlu1 %v1933_v31  ;;  %v471_v31 = vld [vmem:[#allocation10 + $0x188] sm:$0xff] }
 0x911   :  { %v1930_v35 = vsel %vm1383_vm0, %v4274_v33, 0.0 }
 0x912   :  { %1931 = vadd.xlane.f32.xlu0 %v1930_v35  ;;  %v469_v35 = vld [vmem:[#allocation10 + $0x178] sm:$0xff] }
 0x999   :  { %v1935_v37 = vpop.xlane.xlu1 %1934 }
 0x99a   :  { %4275 = vrcp.f32 %v1935_v37  ;;  %v467_v37 = vld [vmem:[#allocation10 + $0x168] sm:$0xff] }
 0x99b   :  { %v1932_v40 = vpop.xlane.xlu0 %1931 }
 0x99c   :  { %4277 = vrcp.f32 %v1932_v40  ;;  %v466_v40 = vld [vmem:[#allocation10 + $0x160] sm:$0xff] }
 0x9a7   :  { %v4276_v41 = vpop.eup %4275 }
 0x9a8   :  { %v1939_v47 = vmul.f32 %v4276_v41, %v4272_v30  ;;  %v472_v30 = vld [vmem:[#allocation10 + $0x190] sm:$0xff]  ;;  %v465_v41 = vld [vmem:[#allocation10 + $0x158] sm:$0xff] }
 0x9a9   :  { %v4278_v44 = vpop.eup %4277 }
 0x9aa   :  { %v1938_v46 = vmul.f32 %v4278_v44, %v4274_v33  ;;  %v470_v33 = vld [vmem:[#allocation10 + $0x180] sm:$0xff]  ;;  %v464_v44 = vld [vmem:[#allocation10 + $0x150] sm:$0xff] }
 0x9ac   :  { %4122 = vmatprep.mubr.msk.f32.mxu1 %vm1383_vm0, %v1938_v46  ;;  %v463_v46 = vld [vmem:[#allocation10 + $0x148] sm:$0xff] }
 0x9ad   :  { %4123 = vmatmul.mubr.msk.f32.vlgmr.msra.gmra.mxu1 %vm1383_vm0, %v1939_v47  ;;  %v462_v47 = vld [vmem:[#allocation10 + $0x140] sm:$0xff] }
 0x9ae   :  { %2033 = vmatpush1.msra.mxu1 %v452_v49  ;;  %2096 = vmatprep.mubr.f32.mxu1 %v4917_v34  ;;  %v439_v34 = vld [vmem:[#allocation10 + $0x88] sm:$0xff]  ;;  %v461_v49 = vld [vmem:[#allocation10 + $0x138] sm:$0xff] }
 0x9af   :  { %2034 = vmatprep.subr.mxu1 %v451_v50  ;;  %v460_v50 = vld [vmem:[#allocation10 + $0x130] sm:$0xff] }
 0x9b0   :  { %2035 = vmatpush1.msra.mxu1 %v450_v51  ;;  %v459_v51 = vld [vmem:[#allocation10 + $0x128] sm:$0xff] }
 0x9b1   :  { %2036 = vmatprep.subr.mxu1 %v449_v52  ;;  %v458_v52 = vld [vmem:[#allocation10 + $0x120] sm:$0xff] }
 0x9b2   :  { %2037 = vmatpush1.msra.mxu1 %v448_v53  ;;  %v457_v53 = vld [vmem:[#allocation10 + $0x118] sm:$0xff] }
 0x9b3   :  { %2038 = vmatprep.subr.mxu1 %v447_v55  ;;  %v456_v55 = vld [vmem:[#allocation10 + $0x110] sm:$0xff] }
 0x9b4   :  { %2039 = vmatpush1.msra.mxu1 %v446_v56  ;;  %v455_v56 = vld [vmem:[#allocation10 + $0x108] sm:$0xff] }
 0x9b5   :  { %2040 = vmatprep.subr.mxu1 %v445_v57  ;;  %v454_v57 = vld [vmem:[#allocation10 + $0x100] sm:$0xff] }
 0x9b6   :  { %2041 = vmatpush1.msra.mxu1 %v444_v58  ;;  %v518_v58 = vld [vmem:[#allocation13 + $0xf8] sm:$0xff] }
 0x9b7   :  { %2042 = vmatprep.subr.mxu1 %v443_v59  ;;  %v613_v59 = vld [vmem:[#allocation14 + $0x1e8] sm:$0xff]  ;;  %2250 = vmatprep.subr.mxu0 %v518_v58 }
 0x9b8   :  { %2043 = vmatpush1.msra.mxu1 %v442_v60  ;;  %v517_v60 = vld [vmem:[#allocation13 + $0xf0] sm:$0xff]  ;;  %v569_v58 = vld [vmem:[#allocation14 + $0x88] sm:$0xff] }
 0x9b9   :  { %2044 = vmatprep.subr.mxu1 %v441_v61  ;;  %v612_v61 = vld [vmem:[#allocation14 + $0x1e0] sm:$0xff]  ;;  %2251 = vmatpush1.msra.mxu0 %v517_v60 }
 0x9ba   :  { %2045 = vmatpush1.msra.mxu1 %v440_v32  ;;  %v516_v32 = vld [vmem:[#allocation13 + $0xe8] sm:$0xff] }
 0x9bb   :  { %2046 = vmatprep.subr.mxu1 %v439_v34  ;;  %v609_v34 = vld [vmem:[#allocation14 + $0x1c8] sm:$0xff]  ;;  %2252 = vmatprep.subr.mxu0 %v516_v32  ;;  %v568_v32 = vld [vmem:[#allocation14 + $0x80] sm:$0xff] }
 0x9bc   :  { %2047 = vmatpush1.msra.mxu1 %v438_v48  ;;  %v515_v48 = vld [vmem:[#allocation13 + $0xe0] sm:$0xff] }
 0x9bd   :  { %2048 = vmatprep.subr.mxu1 %v437_v43  ;;  %v608_v43 = vld [vmem:[#allocation14 + $0x1c0] sm:$0xff]  ;;  %2253 = vmatpush1.msra.mxu0 %v515_v48 }
 0x9be   :  { %2049 = vmatpush1.msra.mxu1 %v436_v62  ;;  %v514_v62 = vld [vmem:[#allocation13 + $0xd8] sm:$0xff] }
 0x9bf   :  { %2050 = vmatprep.subr.mxu1 %v435_v63  ;;  %v513_v63 = vld [vmem:[#allocation13 + $0xd0] sm:$0xff]  ;;  %2254 = vmatprep.subr.mxu0 %v514_v62 }
 0x9c0   :  { %2051 = vmatpush1.msra.mxu1 %v434_v0  ;;  %v601_v0 = vld [vmem:[#allocation14 + $0x188] sm:$0xff]  ;;  %2255 = vmatpush1.msra.mxu0 %v513_v63  ;;  %v494_v63 = vld [vmem:[#allocation13 + $0x38] sm:$0xff] }
 0x9c1   :  { %2052 = vmatprep.subr.mxu1 %v433_v14  ;;  %v511_v14 = vld [vmem:[#allocation13 + $0xc0] sm:$0xff] }
 0x9c2   :  { %2053 = vmatpush1.msra.mxu1 %v432_v54  ;;  %v600_v54 = vld [vmem:[#allocation14 + $0x180] sm:$0xff] }
 0x9c3   :  { %2054 = vmatprep.subr.mxu1 %v431_v2  ;;  %v510_v2 = vld [vmem:[#allocation13 + $0xb8] sm:$0xff] }
 0x9c4   :  { %2055 = vmatpush1.msra.mxu1 %v430_v4  ;;  %v597_v4 = vld [vmem:[#allocation14 + $0x168] sm:$0xff] }
 0x9c5   :  { %2056 = vmatprep.subr.mxu1 %v429_v5  ;;  %v509_v5 = vld [vmem:[#allocation13 + $0xb0] sm:$0xff] }
 0x9c6   :  { %2057 = vmatpush1.msra.mxu1 %v428_v6  ;;  %v596_v6 = vld [vmem:[#allocation14 + $0x160] sm:$0xff] }
 0x9c7   :  { %2058 = vmatprep.subr.mxu1 %v427_v8  ;;  %v508_v8 = vld [vmem:[#allocation13 + $0xa8] sm:$0xff] }
 0x9c8   :  { %2059 = vmatpush1.msra.mxu1 %v426_v9  ;;  %v593_v9 = vld [vmem:[#allocation14 + $0x148] sm:$0xff] }
 0x9c9   :  { %2060 = vmatprep.subr.mxu1 %v425_v11  ;;  %v507_v11 = vld [vmem:[#allocation13 + $0xa0] sm:$0xff] }
 0x9ca   :  { %2061 = vmatpush1.msra.mxu1 %v424_v12  ;;  %v592_v12 = vld [vmem:[#allocation14 + $0x140] sm:$0xff] }
 0x9cb   :  { %2062 = vmatprep.subr.mxu1 %v423_v7  ;;  %v506_v7 = vld [vmem:[#allocation13 + $0x98] sm:$0xff] }
 0x9cc   :  { %2063 = vmatpush1.msra.mxu1 %v422_v16  ;;  %v589_v16 = vld [vmem:[#allocation14 + $0x128] sm:$0xff] }
 0x9cd   :  { %2064 = vmatprep.subr.mxu1 %v485_v17  ;;  %v505_v17 = vld [vmem:[#allocation13 + $0x90] sm:$0xff] }
 0x9ce   :  { %2065 = vmatpush2.msra.mxu1 %v484_v18  ;;  %v588_v18 = vld [vmem:[#allocation14 + $0x120] sm:$0xff] }
 0x9cf   :  { %2066 = vmatprep.subr.mxu1 %v483_v19  ;;  %v504_v19 = vld [vmem:[#allocation13 + $0x88] sm:$0xff] }
 0x9d0   :  { %2067 = vmatpush2.msra.mxu1 %v482_v22  ;;  %v585_v22 = vld [vmem:[#allocation14 + $0x108] sm:$0xff] }
 0x9d1   :  { %2068 = vmatprep.subr.mxu1 %v481_v39  ;;  %v503_v39 = vld [vmem:[#allocation13 + $0x80] sm:$0xff] }
 0x9d2   :  { %2069 = vmatpush2.msra.mxu1 %v480_v25  ;;  %v584_v25 = vld [vmem:[#allocation14 + $0x100] sm:$0xff] }
 0x9d3   :  { %2070 = vmatprep.subr.mxu1 %v479_v27  ;;  %v502_v27 = vld [vmem:[#allocation13 + $0x78] sm:$0xff] }
 0x9d4   :  { %2071 = vmatpush2.msra.mxu1 %v478_v38  ;;  %v581_v38 = vld [vmem:[#allocation14 + $0xe8] sm:$0xff] }
 0x9d5   :  { %2072 = vmatprep.subr.mxu1 %v477_v21  ;;  %v501_v21 = vld [vmem:[#allocation13 + $0x70] sm:$0xff] }
 0x9d6   :  { %2073 = vmatpush2.msra.mxu1 %v476_v20  ;;  %v580_v20 = vld [vmem:[#allocation14 + $0xe0] sm:$0xff] }
 0x9d7   :  { %2074 = vmatprep.subr.mxu1 %v475_v28  ;;  %v500_v28 = vld [vmem:[#allocation13 + $0x68] sm:$0xff] }
 0x9d8   :  { %2075 = vmatpush2.msra.mxu1 %v474_v45  ;;  %v577_v45 = vld [vmem:[#allocation14 + $0xc8] sm:$0xff] }
 0x9d9   :  { %2076 = vmatprep.subr.mxu1 %v473_v29  ;;  %v499_v29 = vld [vmem:[#allocation13 + $0x60] sm:$0xff] }
 0x9da   :  { %2077 = vmatpush2.msra.mxu1 %v472_v30  ;;  %v576_v30 = vld [vmem:[#allocation14 + $0xc0] sm:$0xff] }
 0x9db   :  { %2078 = vmatprep.subr.mxu1 %v471_v31  ;;  %v498_v31 = vld [vmem:[#allocation13 + $0x58] sm:$0xff] }
 0x9dc   :  { %2079 = vmatpush2.msra.mxu1 %v470_v33  ;;  %v573_v33 = vld [vmem:[#allocation14 + $0xa8] sm:$0xff] }
 0x9dd   :  { %2080 = vmatprep.subr.mxu1 %v469_v35 }
 0x9de   :  { %2081 = vmatpush2.msra.mxu1 %v468_v36 }
 0x9df   :  { %2082 = vmatprep.subr.mxu1 %v467_v37  ;;  %v486_v37 = vld [vmem:[#allocation11] sm:$0x3] }
 0x9e0   :  { %2083 = vmatpush2.msra.mxu1 %v466_v40  ;;  %v4948_v40 = vrot.slane %v486_v37, %v4819_v15 }
 0x9e1   :  { %2084 = vmatprep.subr.mxu1 %v465_v41  ;;  %v4951_v41 = vrot.slane %v486_v37, %v4843_v26  ;;  %v668_v37 = vld [vmem:[#allocation14 + $0x3a0] sm:$0xff] }
 0x9e2   :  { %2085 = vmatpush2.msra.mxu1 %v464_v44 }
 0x9e3   :  { %2086 = vmatprep.subr.mxu1 %v463_v46 }
 0x9e4   :  { %2087 = vmatpush2.msra.mxu1 %v462_v47 }
 0x9e5   :  { %2088 = vmatprep.subr.mxu1 %v461_v49  ;;  %v4335_v49 = vld [vmem:[#allocation2] sm:$0xff] }
 0x9e6   :  { %2089 = vmatpush2.msra.mxu1 %v460_v50 }
 0x9e7   :  { %2090 = vmatprep.subr.mxu1 %v459_v51 }
 0x9e8   :  { %2091 = vmatpush2.msra.mxu1 %v458_v52  ;;  %v497_v52 = vld [vmem:[#allocation13 + $0x50] sm:$0xff] }
 0x9e9   :  { %2092 = vmatprep.subr.mxu1 %v457_v53  ;;  %v572_v53 = vld [vmem:[#allocation14 + $0xa0] sm:$0xff] }
 0x9ea   :  { %2093 = vmatpush2.msra.mxu1 %v456_v55 }
 0x9eb   :  { %2094 = vmatprep.subr.mxu1 %v455_v56 }
 0x9ec   :  { %2095 = vmatpush2.msra.mxu1 %v454_v57  ;;  %v496_v57 = vld [vmem:[#allocation13 + $0x48] sm:$0xff] }
 0x9ed   :  { %2097 = vmatmul.mubr.f32.vlgmr.msra.gmra.mxu1 %v4898_v24  ;;  %2360 = vmatprep.subr.mxu1 %v613_v59  ;;  %v605_v24 = vld [vmem:[#allocation14 + $0x1a8] sm:$0xff] }
 0x9ee   :  { %2102 = vmatprep.mubr.f32.mxu1 %v4915_v42  ;;  %2361 = vmatpush1.msra.mxu1 %v612_v61  ;;  %v604_v42 = vld [vmem:[#allocation14 + $0x1a0] sm:$0xff] }
 0x9ef   :  { %2362 = vmatprep.subr.mxu1 %v609_v34  ;;  %v495_v61 = vld [vmem:[#allocation13 + $0x40] sm:$0xff]  ;;  %v4337_v34 = vld [vmem:[#allocation2 + $0x10] sm:$0xff] }
 0x9f0   :  { %2363 = vmatpush1.msra.mxu1 %v608_v43 }
 0x9f1   :  { %2103 = vmatmul.mubr.f32.gmra.mxu1 %v4896_v3  ;;  %v512_v3 = vld [vmem:[#allocation13 + $0xc8] sm:$0xff]  ;;  %2364 = vmatprep.subr.mxu1 %v605_v24 }
 0x9f2   :  { %2365 = vmatpush1.msra.mxu1 %v604_v42  ;;  %2256 = vmatprep.subr.mxu0 %v512_v3  ;;  %v565_v42 = vld [vmem:[#allocation14 + $0x68] sm:$0xff]  ;;  %v493_v3 = vld [vmem:[#allocation13 + $0x30] sm:$0xff] }
 0x9f3   :  { %2366 = vmatprep.subr.mxu1 %v601_v0  ;;  %2257 = vmatpush1.msra.mxu0 %v511_v14  ;;  %v564_v0 = vld [vmem:[#allocation14 + $0x60] sm:$0xff]  ;;  %v4338_v14 = vld [vmem:[#allocation2 + $0x18] sm:$0xff] }
 0x9f4   :  { %2367 = vmatpush1.msra.mxu1 %v600_v54  ;;  %2258 = vmatprep.subr.mxu0 %v510_v2 }
 0x9f5   :  { %2368 = vmatprep.subr.mxu1 %v597_v4  ;;  %2259 = vmatpush1.msra.mxu0 %v509_v5  ;;  %v492_v4 = vld [vmem:[#allocation13 + $0x28] sm:$0xff] }
 0x9f6   :  { %2369 = vmatpush1.msra.mxu1 %v596_v6  ;;  %2260 = vmatprep.subr.mxu0 %v508_v8  ;;  %v561_v5 = vld [vmem:[#allocation14 + $0x48] sm:$0xff]  ;;  %v491_v6 = vld [vmem:[#allocation13 + $0x20] sm:$0xff] }
 0x9f7   :  { %2370 = vmatprep.subr.mxu1 %v593_v9  ;;  %2261 = vmatpush1.msra.mxu0 %v507_v11  ;;  %v560_v8 = vld [vmem:[#allocation14 + $0x40] sm:$0xff] }
 0x9f8   :  { %2371 = vmatpush1.msra.mxu1 %v592_v12  ;;  %2262 = vmatprep.subr.mxu0 %v506_v7  ;;  %v490_v7 = vld [vmem:[#allocation13 + $0x18] sm:$0xff] }
 0x9f9   :  { %2372 = vmatprep.subr.mxu1 %v589_v16  ;;  %2263 = vmatpush1.msra.mxu0 %v505_v17  ;;  %v557_v16 = vld [vmem:[#allocation14 + $0x28] sm:$0xff]  ;;  %v489_v17 = vld [vmem:[#allocation13 + $0x10] sm:$0xff] }
 0x9fa   :  { %2373 = vmatpush1.msra.mxu1 %v588_v18  ;;  %2264 = vmatprep.subr.mxu0 %v504_v19  ;;  %v556_v19 = vld [vmem:[#allocation14 + $0x20] sm:$0xff] }
 0x9fb   :  { %2374 = vmatprep.subr.mxu1 %v585_v22  ;;  %2265 = vmatpush1.msra.mxu0 %v503_v39  ;;  %v488_v22 = vld [vmem:[#allocation13 + $0x8] sm:$0xff] }
 0x9fc   :  { %2375 = vmatpush1.msra.mxu1 %v584_v25  ;;  %2266 = vmatprep.subr.mxu0 %v502_v27  ;;  %v553_v39 = vld [vmem:[#allocation14 + $0x8] sm:$0xff]  ;;  %v487_v25 = vld [vmem:[#allocation13] sm:$0xff] }
 0x9fd   :  { %2376 = vmatprep.subr.mxu1 %v581_v38  ;;  %2267 = vmatpush1.msra.mxu0 %v501_v21  ;;  %v552_v27 = vld [vmem:[#allocation14] sm:$0xff]  ;;  %v550_v38 = vld [vmem:[#allocation13 + $0x1f8] sm:$0xff]  ;;  %v677_v21 = vld [vmem:[#allocation14 + $0x3e8] sm:$0xff] }
 0x9fe   :  { %2377 = vmatpush1.msra.mxu1 %v580_v20  ;;  %2268 = vmatprep.subr.mxu0 %v500_v28  ;;  %v549_v20 = vld [vmem:[#allocation13 + $0x1f0] sm:$0xff]  ;;  %v676_v28 = vld [vmem:[#allocation14 + $0x3e0] sm:$0xff] }
 0x9ff   :  { %2378 = vmatprep.subr.mxu1 %v577_v45  ;;  %2269 = vmatpush1.msra.mxu0 %v499_v29  ;;  %v548_v45 = vld [vmem:[#allocation13 + $0x1e8] sm:$0xff] }
 0xa00   :  { %2379 = vmatpush1.msra.mxu1 %v576_v30  ;;  %2270 = vmatprep.subr.mxu0 %v498_v31  ;;  %v673_v29 = vld [vmem:[#allocation14 + $0x3c8] sm:$0xff]  ;;  %v547_v30 = vld [vmem:[#allocation13 + $0x1e0] sm:$0xff] }
 0xa01   :  { %2380 = vmatprep.subr.mxu1 %v573_v33  ;;  %2271 = vmatpush1.msra.mxu0 %v497_v52  ;;  %v672_v31 = vld [vmem:[#allocation14 + $0x3c0] sm:$0xff]  ;;  %v546_v33 = vld [vmem:[#allocation13 + $0x1d8] sm:$0xff]  ;;  %v541_v52 = vld [vmem:[#allocation13 + $0x1b0] sm:$0xff] }
 0xa02   :  { %2381 = vmatpush1.msra.mxu1 %v572_v53  ;;  %2272 = vmatprep.subr.mxu0 %v496_v57  ;;  %v660_v53 = vld [vmem:[#allocation14 + $0x360] sm:$0xff] }
 0xa03   :  { %2382 = vmatprep.subr.mxu1 %v569_v58  ;;  %2273 = vmatpush1.msra.mxu0 %v495_v61  ;;  %v539_v57 = vld [vmem:[#allocation13 + $0x1a0] sm:$0xff]  ;;  %v537_v61 = vld [vmem:[#allocation13 + $0x190] sm:$0xff] }
 0xa04   :  { %2383 = vmatpush1.msra.mxu1 %v568_v32  ;;  %2274 = vmatprep.subr.mxu0 %v494_v63  ;;  %v656_v58 = vld [vmem:[#allocation14 + $0x340] sm:$0xff]  ;;  %v534_v63 = vld [vmem:[#allocation13 + $0x178] sm:$0xff] }
 0xa05   :  { %2384 = vmatprep.subr.mxu1 %v565_v42  ;;  %2275 = vmatpush1.msra.mxu0 %v493_v3  ;;  %v652_v32 = vld [vmem:[#allocation14 + $0x320] sm:$0xff]  ;;  %v645_v42 = vld [vmem:[#allocation14 + $0x2e8] sm:$0xff]  ;;  %v533_v3 = vld [vmem:[#allocation13 + $0x170] sm:$0xff] }
 0xa06   :  { %2385 = vmatpush1.msra.mxu1 %v564_v0  ;;  %2276 = vmatprep.subr.mxu0 %v492_v4  ;;  %v644_v0 = vld [vmem:[#allocation14 + $0x2e0] sm:$0xff] }
 0xa07   :  { %2386 = vmatprep.subr.mxu1 %v561_v5  ;;  %2277 = vmatpush1.msra.mxu0 %v491_v6  ;;  %v531_v4 = vld [vmem:[#allocation13 + $0x160] sm:$0xff]  ;;  %v530_v6 = vld [vmem:[#allocation13 + $0x158] sm:$0xff] }
 0xa08   :  { %2387 = vmatpush1.msra.mxu1 %v560_v8  ;;  %2278 = vmatprep.subr.mxu0 %v490_v7  ;;  %v640_v5 = vld [vmem:[#allocation14 + $0x2c0] sm:$0xff]  ;;  %v637_v8 = vld [vmem:[#allocation14 + $0x2a8] sm:$0xff] }
 0xa09   :  { %2388 = vmatprep.subr.mxu1 %v557_v16  ;;  %2279 = vmatpush1.msra.mxu0 %v489_v17  ;;  %v633_v7 = vld [vmem:[#allocation14 + $0x288] sm:$0xff]  ;;  %v527_v16 = vld [vmem:[#allocation13 + $0x140] sm:$0xff] }
 0xa0a   :  { %2389 = vmatpush1.msra.mxu1 %v556_v19  ;;  %2280 = vmatprep.subr.mxu0 %v488_v22  ;;  %v632_v17 = vld [vmem:[#allocation14 + $0x280] sm:$0xff]  ;;  %v629_v19 = vld [vmem:[#allocation14 + $0x268] sm:$0xff]  ;;  %v525_v22 = vld [vmem:[#allocation13 + $0x130] sm:$0xff] }
 0xa0b   :  { %2390 = vmatprep.subr.mxu1 %v553_v39  ;;  %2281 = vmatpush1.msra.mxu0 %v487_v25  ;;  %v628_v39 = vld [vmem:[#allocation14 + $0x260] sm:$0xff]  ;;  %v524_v25 = vld [vmem:[#allocation13 + $0x128] sm:$0xff] }
 0xa0c   :  { %2391 = vmatpush1.msra.mxu1 %v552_v27  ;;  %2282 = vmatprep.subr.mxu0 %v550_v38  ;;  %v625_v27 = vld [vmem:[#allocation14 + $0x248] sm:$0xff]  ;;  %v523_v38 = vld [vmem:[#allocation13 + $0x120] sm:$0xff] }
 0xa0d   :  { %2392 = vmatprep.subr.mxu1 %v677_v21  ;;  %2283 = vmatpush2.msra.mxu0 %v549_v20  ;;  %v624_v21 = vld [vmem:[#allocation14 + $0x240] sm:$0xff]  ;;  %v522_v20 = vld [vmem:[#allocation13 + $0x118] sm:$0xff] }
 0xa0e   :  { %2393 = vmatpush2.msra.mxu1 %v676_v28  ;;  %2284 = vmatprep.subr.mxu0 %v548_v45  ;;  %v621_v28 = vld [vmem:[#allocation14 + $0x228] sm:$0xff]  ;;  %v521_v45 = vld [vmem:[#allocation13 + $0x110] sm:$0xff] }
 0xa0f   :  { %2394 = vmatprep.subr.mxu1 %v673_v29  ;;  %2285 = vmatpush2.msra.mxu0 %v547_v30  ;;  %v620_v29 = vld [vmem:[#allocation14 + $0x220] sm:$0xff]  ;;  %v520_v30 = vld [vmem:[#allocation13 + $0x108] sm:$0xff] }
 0xa10   :  { %2395 = vmatpush2.msra.mxu1 %v672_v31  ;;  %2286 = vmatprep.subr.mxu0 %v546_v33  ;;  %v617_v31 = vld [vmem:[#allocation14 + $0x208] sm:$0xff]  ;;  %v519_v33 = vld [vmem:[#allocation13 + $0x100] sm:$0xff] }
 0xa6d   :  { %v4124_v35 = vpop.f32.mrf.mxu1 }
 0xa6f   :  { %v2012_v36 = vpop.f32.mrf.mxu1 }
 0xa70   :  { %2108 = vmatprep.mubr.f32.mxu1 %v2012_v36  ;;  %v545_v36 = vld [vmem:[#allocation13 + $0x1d0] sm:$0xff] }
 0xa71   :  { %2109 = vmatmul.mubr.f32.gmra.mxu1 %v4933_v13  ;;  %2287 = vmatpush2.msra.mxu0 %v545_v36  ;;  %v4977_v36 = vld [vmem:[#allocation5 + $0x8] sm:$0xff] }
 0xa72   :  { %2114 = vmatprep.mubr.f32.mxu1 %v4124_v35  ;;  %v669_v35 = vld [vmem:[#allocation14 + $0x3a8] sm:$0xff] }
 0xa73   :  { %2396 = vmatprep.subr.mxu1 %v669_v35  ;;  %v616_v35 = vld [vmem:[#allocation14 + $0x200] sm:$0xff] }
 0xa74   :  { %2397 = vmatpush2.msra.mxu1 %v668_v37  ;;  %v4979_v37 = vld [vmem:[#allocation5] sm:$0xff] }
 0xa75   :  { %2115 = vmatmul.mubr.f32.gmra.mxu1 %v4931_v23  ;;  %v4336_v23 = vld [vmem:[#allocation2 + $0x8] sm:$0xff] }
 0xa76   :  { %2424 = vmatprep.mubr.f32.mxu1 %v4977_v36 }
 0xaad   :  { %v2098_v44 = vpop.f32.mrf.mxu1 }
 0xaae   :  { %v2099_v46 = vadd.f32 %v2098_v44, %v4948_v40  ;;  %v544_v44 = vld [vmem:[#allocation13 + $0x1c8] sm:$0xff] }
 0xaaf   :  { %v2100_v47 = vpop.f32.mrf.mxu1  ;;  %2288 = vmatprep.subr.mxu0 %v544_v44 }
 0xab0   :  { %v4954_v50 = vadd.f32 %v4335_v49, %v2099_v46  ;;  %v2101_v51 = vadd.f32 %v2100_v47, %v4951_v41  ;;  %v665_v46 = vld [vmem:[#allocation14 + $0x388] sm:$0xff]  ;;  %v543_v47 = vld [vmem:[#allocation13 + $0x1c0] sm:$0xff] }
 0xab1   :  { %v2104_v13 = vpop.f32.mrf.mxu1  ;;  %v664_v49 = vld [vmem:[#allocation14 + $0x380] sm:$0xff]  ;;  %2398 = vmatprep.subr.mxu1 %v665_v46  ;;  %2289 = vmatpush2.msra.mxu0 %v543_v47 }
 0xab2   :  { %v4957_v55 = vadd.f32 %v4336_v23, %v2101_v51  ;;  %v2105_v56 = vadd.f32 %v2104_v13, %v4948_v40  ;;  %v2145_v60 = vmul.f32 %v4954_v50, %v4954_v50  ;;  %v542_v51 = vld [vmem:[#allocation13 + $0x1b8] sm:$0xff]  ;;  %v661_v13 = vld [vmem:[#allocation14 + $0x368] sm:$0xff]  ;;  %2399 = vmatpush2.msra.mxu1 %v664_v49 }
 0xab3   :  { %v2106_v59 = vpop.f32.mrf.mxu1  ;;  %2290 = vmatprep.subr.mxu0 %v542_v51  ;;  %v540_v23 = vld [vmem:[#allocation13 + $0x1a8] sm:$0xff]  ;;  %2400 = vmatprep.subr.mxu1 %v661_v13  ;;  %v4339_v49 = vld [vmem:[#allocation2 + $0x20] sm:$0xff] }
 0xab4   :  { %v4962_v48 = vadd.f32 %v4337_v34, %v2105_v56  ;;  %v2107_v43 = vadd.f32 %v2106_v59, %v4951_v41  ;;  %v2129_v62 = vadd.f32 %v4957_v55, %v4954_v50  ;;  %v2146_v24 = vmul.f32 %v4957_v55, %v4957_v55  ;;  %v657_v56 = vld [vmem:[#allocation14 + $0x348] sm:$0xff]  ;;  %2291 = vmatpush2.msra.mxu0 %v541_v52  ;;  %v538_v59 = vld [vmem:[#allocation13 + $0x198] sm:$0xff] }
 0xab5   :  { %2401 = vmatpush2.msra.mxu1 %v660_v53  ;;  %2292 = vmatprep.subr.mxu0 %v540_v23  ;;  %v536_v34 = vld [vmem:[#allocation13 + $0x188] sm:$0xff]  ;;  %v4340_v53 = vld [vmem:[#allocation2 + $0x28] sm:$0xff] }
 0xab6   :  { %v4969_v54 = vadd.f32 %v4338_v14, %v2107_v43  ;;  %2130 = vadd.xlane.f32.xlu0 %v2129_v62  ;;  %v2153_v2 = vadd.f32 %v2146_v24, %v2145_v60  ;;  %v2147_v11 = vmul.f32 %v4962_v48, %v4962_v48  ;;  %v653_v60 = vld [vmem:[#allocation14 + $0x328] sm:$0xff]  ;;  %2402 = vmatprep.subr.mxu1 %v657_v56  ;;  %v535_v62 = vld [vmem:[#allocation13 + $0x180] sm:$0xff] }
 0xab7   :  { %2293 = vmatpush2.msra.mxu0 %v539_v57  ;;  %2403 = vmatpush2.msra.mxu1 %v656_v58  ;;  %v649_v43 = vld [vmem:[#allocation14 + $0x308] sm:$0xff]  ;;  %v648_v24 = vld [vmem:[#allocation14 + $0x300] sm:$0xff] }
 0xab8   :  { %2154 = vadd.xlane.f32.xlu1 %v2153_v2  ;;  %v2132_v9 = vadd.f32 %v4969_v54, %v4962_v48  ;;  %v2148_v12 = vmul.f32 %v4969_v54, %v4969_v54  ;;  %2294 = vmatprep.subr.mxu0 %v538_v59  ;;  %v532_v14 = vld [vmem:[#allocation13 + $0x168] sm:$0xff] }
 0xab9   :  { %2404 = vmatprep.subr.mxu1 %v653_v60  ;;  %2295 = vmatpush2.msra.mxu0 %v537_v61  ;;  %v641_v2 = vld [vmem:[#allocation14 + $0x2c8] sm:$0xff] }
 0xaba   :  { %2133 = vadd.xlane.f32.xlu0 %v2132_v9  ;;  %v2156_v18 = vadd.f32 %v2148_v12, %v2147_v11  ;;  %2405 = vmatpush2.msra.mxu1 %v652_v32  ;;  %v529_v9 = vld [vmem:[#allocation13 + $0x150] sm:$0xff]  ;;  %v636_v11 = vld [vmem:[#allocation14 + $0x2a0] sm:$0xff]  ;;  %v528_v12 = vld [vmem:[#allocation13 + $0x148] sm:$0xff] }
 0xabb   :  { %2296 = vmatprep.subr.mxu0 %v536_v34  ;;  %2406 = vmatprep.subr.mxu1 %v649_v43  ;;  %v4341_v59 = vld [vmem:[#allocation2 + $0x30] sm:$0xff]  ;;  %v4342_v43 = vld [vmem:[#allocation2 + $0x38] sm:$0xff] }
 0xabc   :  { %2157 = vadd.xlane.f32.xlu1 %v2156_v18  ;;  %2297 = vmatpush2.msra.mxu0 %v535_v62  ;;  %v526_v18 = vld [vmem:[#allocation13 + $0x138] sm:$0xff] }
 0xabd   :  { %2407 = vmatpush2.msra.mxu1 %v648_v24  ;;  %2298 = vmatprep.subr.mxu0 %v534_v63 }
 0xabe   :  { %2408 = vmatprep.subr.mxu1 %v645_v42  ;;  %2299 = vmatpush2.msra.mxu0 %v533_v3 }
 0xabf   :  { %2409 = vmatpush2.msra.mxu1 %v644_v0  ;;  %2300 = vmatprep.subr.mxu0 %v532_v14 }
 0xac0   :  { %2410 = vmatprep.subr.mxu1 %v641_v2  ;;  %2301 = vmatpush2.msra.mxu0 %v531_v4 }
 0xac1   :  { %2411 = vmatpush2.msra.mxu1 %v640_v5  ;;  %2302 = vmatprep.subr.mxu0 %v530_v6 }
 0xac2   :  { %2412 = vmatprep.subr.mxu1 %v637_v8  ;;  %2303 = vmatpush2.msra.mxu0 %v529_v9 }
 0xac3   :  { %2413 = vmatpush2.msra.mxu1 %v636_v11  ;;  %2304 = vmatprep.subr.mxu0 %v528_v12 }
 0xac4   :  { %2414 = vmatprep.subr.mxu1 %v633_v7  ;;  %2305 = vmatpush2.msra.mxu0 %v527_v16 }
 0xac5   :  { %2415 = vmatpush2.msra.mxu1 %v632_v17  ;;  %2306 = vmatprep.subr.mxu0 %v526_v18  ;;  %v746_v18 = vld [vmem:[%s5676_s12] sm:$0x3] }
 0xac6   :  { %2416 = vmatprep.subr.mxu1 %v629_v19  ;;  %2307 = vmatpush2.msra.mxu0 %v525_v22  ;;  %v615_v19 = vld [vmem:[#allocation14 + $0x1f8] sm:$0xff] }
 0xac7   :  { %2417 = vmatpush2.msra.mxu1 %v628_v39  ;;  %2308 = vmatprep.subr.mxu0 %v524_v25  ;;  %v747_v22 = vld [vmem:[%s5677_s13] sm:$0x3] }
 0xac8   :  { %2418 = vmatprep.subr.mxu1 %v625_v27  ;;  %2309 = vmatpush2.msra.mxu0 %v523_v38  ;;  %v5016_v27 = vrot.slane %v746_v18, %v4819_v15  ;;  %v5019_v38 = vrot.slane %v746_v18, %v4843_v26  ;;  %v559_v18 = vld [vmem:[#allocation14 + $0x38] sm:$0xff] }
 0xac9   :  { %2419 = vmatpush2.msra.mxu1 %v624_v21  ;;  %2310 = vmatprep.subr.mxu0 %v522_v20 }
 0xaca   :  { %2420 = vmatprep.subr.mxu1 %v621_v28  ;;  %2311 = vmatpush2.msra.mxu0 %v521_v45  ;;  %v5022_v28 = vrot.slane %v747_v22, %v4819_v15  ;;  %v5025_v45 = vrot.slane %v747_v22, %v4843_v26  ;;  %v555_v22 = vld [vmem:[#allocation14 + $0x18] sm:$0xff] }
 0xacb   :  { %2421 = vmatpush2.msra.mxu1 %v620_v29  ;;  %2312 = vmatprep.subr.mxu0 %v520_v30 }
 0xacc   :  { %2422 = vmatprep.subr.mxu1 %v617_v31  ;;  %2313 = vmatpush2.msra.mxu0 %v519_v33 }
 0xacd   :  { %2423 = vmatpush2.msra.mxu1 %v616_v35  ;;  %2437 = vmatprep.subr.mxu0 %v615_v19  ;;  %v558_v19 = vld [vmem:[#allocation14 + $0x30] sm:$0xff] }
 0xace   :  { %2425 = vmatmul.mubr.f32.vlgmr.msra.gmra.mxu1 %v4979_v37 }
 0xb31   :  { %v2110_v44 = vpop.f32.mrf.mxu1 }
 0xb32   :  { %v2111_v46 = vadd.f32 %v2110_v44, %v4948_v40 }
 0xb33   :  { %v2112_v47 = vpop.f32.mrf.mxu1 }
 0xb34   :  { %v4984_v51 = vadd.f32 %v4339_v49, %v2111_v46  ;;  %v2113_v13 = vadd.f32 %v2112_v47, %v4951_v41  ;;  %v614_v49 = vld [vmem:[#allocation14 + $0x1f0] sm:$0xff] }
 0xb35   :  { %v2116_v52 = vpop.f32.mrf.mxu1 }
 0xb36   :  { %v4987_v23 = vadd.f32 %v4340_v53, %v2113_v13  ;;  %v2117_v56 = vadd.f32 %v2116_v52, %v4948_v40  ;;  %v2149_v58 = vmul.f32 %v4984_v51, %v4984_v51  ;;  %v611_v13 = vld [vmem:[#allocation14 + $0x1d8] sm:$0xff] }
 0xb37   :  { %v2118_v57 = vpop.f32.mrf.mxu1 }
 0xb38   :  { %v4992_v60 = vadd.f32 %v4341_v59, %v2117_v56  ;;  %v2119_v61 = vadd.f32 %v2118_v57, %v4951_v41  ;;  %v2135_v32 = vadd.f32 %v4987_v23, %v4984_v51  ;;  %v2150_v34 = vmul.f32 %v4987_v23, %v4987_v23  ;;  %v5047_v57 = vld [vmem:[#allocation5 + $0x18] sm:$0xff]  ;;  %v5050_v59 = vld [vmem:[#allocation5 + $0x10] sm:$0xff] }
 0xb39   :  { %2430 = vmatprep.mubr.f32.mxu1 %v5047_v57 }
 0xb3a   :  { %v4999_v62 = vadd.f32 %v4342_v43, %v2119_v61  ;;  %2136 = vadd.xlane.f32.xlu0 %v2135_v32  ;;  %v2159_v40 = vadd.f32 %v2150_v34, %v2149_v58  ;;  %v2151_v63 = vmul.f32 %v4992_v60, %v4992_v60  ;;  %v607_v58 = vld [vmem:[#allocation14 + $0x1b8] sm:$0xff]  ;;  %v606_v61 = vld [vmem:[#allocation14 + $0x1b0] sm:$0xff]  ;;  %2431 = vmatmul.mubr.f32.gmra.mxu1 %v5050_v59 }
 0xb3b   :  { %v603_v32 = vld [vmem:[#allocation14 + $0x198] sm:$0xff]  ;;  %v602_v34 = vld [vmem:[#allocation14 + $0x190] sm:$0xff] }
 0xb3c   :  { %2160 = vadd.xlane.f32.xlu1 %v2159_v40  ;;  %v2138_v24 = vadd.f32 %v4999_v62, %v4992_v60  ;;  %v2152_v41 = vmul.f32 %v4999_v62, %v4999_v62  ;;  %v599_v43 = vld [vmem:[#allocation14 + $0x178] sm:$0xff]  ;;  %v598_v40 = vld [vmem:[#allocation14 + $0x170] sm:$0xff] }
 0xb3e   :  { %2139 = vadd.xlane.f32.xlu0 %v2138_v24  ;;  %v2162_v42 = vadd.f32 %v2152_v41, %v2151_v63  ;;  %v595_v24 = vld [vmem:[#allocation14 + $0x158] sm:$0xff]  ;;  %v594_v63 = vld [vmem:[#allocation14 + $0x150] sm:$0xff] }
 0xb3f   :  { %v2131_v3 = vpop.xlane.xlu0 %2130  ;;  %v591_v41 = vld [vmem:[#allocation14 + $0x138] sm:$0xff] }
 0xb40   :  { %v2141_v0 = vmul.f32 0.00390625, %v2131_v3  ;;  %2163 = vadd.xlane.f32.xlu1 %v2162_v42  ;;  %v590_v42 = vld [vmem:[#allocation14 + $0x130] sm:$0xff]  ;;  %v587_v3 = vld [vmem:[#allocation14 + $0x118] sm:$0xff] }
 0xb41   :  { %v2155_v14 = vpop.xlane.xlu1 %2154 }
 0xb42   :  { %v2165_v2 = vmul.f32 0.00390625, %v2155_v14  ;;  %v2169_v4 = vmul.f32 %v2141_v0, %v2141_v0  ;;  %v2177_v39 = vsub.f32 %v4954_v50, %v2141_v0  ;;  %v2178_v25 = vsub.f32 %v4957_v55, %v2141_v0  ;;  %v586_v0 = vld [vmem:[#allocation14 + $0x110] sm:$0xff]  ;;  %v583_v14 = vld [vmem:[#allocation14 + $0xf8] sm:$0xff] }
 0xb43   :  { %v2134_v5 = vpop.xlane.xlu0 %2133 }
 0xb44   :  { %v2173_v6 = vsub.f32 %v2165_v2, %v2169_v4  ;;  %v2142_v8 = vmul.f32 0.00390625, %v2134_v5  ;;  %v582_v2 = vld [vmem:[#allocation14 + $0xf0] sm:$0xff]  ;;  %v579_v4 = vld [vmem:[#allocation14 + $0xd8] sm:$0xff] }
 0xb45   :  { %v2158_v9 = vpop.xlane.xlu1 %2157  ;;  %v578_v5 = vld [vmem:[#allocation14 + $0xd0] sm:$0xff] }
 0xb46   :  { %v2185_v11 = vadd.f32 1e-05, %v2173_v6  ;;  %v2166_v12 = vmul.f32 0.00390625, %v2158_v9  ;;  %v2170_v7 = vmul.f32 %v2142_v8, %v2142_v8  ;;  %v2179_v55 = vsub.f32 %v4962_v48, %v2142_v8  ;;  %v575_v6 = vld [vmem:[#allocation14 + $0xb8] sm:$0xff] }
 0xb47   :  { %v2180_v31 = vsub.f32 %v4969_v54, %v2142_v8  ;;  %v610_v54 = vld [vmem:[#allocation14 + $0x1d0] sm:$0xff]  ;;  %v571_v9 = vld [vmem:[#allocation14 + $0x98] sm:$0xff] }
 0xb48   :  { %4279 = vrsqrt.f32 %v2185_v11  ;;  %v2174_v16 = vsub.f32 %v2166_v12, %v2170_v7  ;;  %v574_v8 = vld [vmem:[#allocation14 + $0xb0] sm:$0xff]  ;;  %v567_v12 = vld [vmem:[#allocation14 + $0x78] sm:$0xff] }
 0xb49   :  { %v570_v11 = vld [vmem:[#allocation14 + $0x90] sm:$0xff] }
 0xb4a   :  { %v2186_v17 = vadd.f32 1e-05, %v2174_v16  ;;  %v566_v7 = vld [vmem:[#allocation14 + $0x70] sm:$0xff]  ;;  %v563_v16 = vld [vmem:[#allocation14 + $0x58] sm:$0xff] }
 0xb4c   :  { %4281 = vrsqrt.f32 %v2186_v17  ;;  %v562_v17 = vld [vmem:[#allocation14 + $0x50] sm:$0xff] }
 0xb55   :  { %v4280_v21 = vpop.eup %4279 }
 0xb56   :  { %v2194_v20 = vmul.f32 %v4280_v21, %v2178_v25  ;;  %v2193_v29 = vmul.f32 %v4280_v21, %v2177_v39  ;;  %v554_v39 = vld [vmem:[#allocation14 + $0x10] sm:$0xff]  ;;  %v679_v25 = vld [vmem:[#allocation14 + $0x3f8] sm:$0xff] }
 0xb57   :  { %v678_v21 = vld [vmem:[#allocation14 + $0x3f0] sm:$0xff] }
 0xb58   :  { %v2213_v30 = vmul.f32 %v5019_v38, %v2194_v20  ;;  %v2212_v50 = vmul.f32 %v5016_v27, %v2193_v29  ;;  %v675_v20 = vld [vmem:[#allocation14 + $0x3d8] sm:$0xff]  ;;  %v674_v29 = vld [vmem:[#allocation14 + $0x3d0] sm:$0xff] }
 0xb59   :  { %v4282_v33 = vpop.eup %4281 }
 0xb5a   :  { %v5032_v35 = vadd.f32 %v5025_v45, %v2213_v30  ;;  %v5035_v44 = vadd.f32 %v5022_v28, %v2212_v50  ;;  %v2196_v46 = vmul.f32 %v4282_v33, %v2180_v31  ;;  %v2195_v47 = vmul.f32 %v4282_v33, %v2179_v55  ;;  %v671_v30 = vld [vmem:[#allocation14 + $0x3b8] sm:$0xff]  ;;  %v670_v50 = vld [vmem:[#allocation14 + $0x3b0] sm:$0xff] }
 0xb5b   :  { %v667_v55 = vld [vmem:[#allocation14 + $0x398] sm:$0xff]  ;;  %v666_v31 = vld [vmem:[#allocation14 + $0x390] sm:$0xff] }
 0xb5c   :  { %2314 = vmatprep.mubr.f32.mxu0 %v5032_v35  ;;  %v2215_v52 = vmul.f32 %v5019_v38, %v2196_v46  ;;  %v2214_v48 = vmul.f32 %v5016_v27, %v2195_v47  ;;  %v663_v33 = vld [vmem:[#allocation14 + $0x378] sm:$0xff]  ;;  %v662_v46 = vld [vmem:[#allocation14 + $0x370] sm:$0xff] }
 0xb5d   :  { %2315 = vmatmul.mubr.f32.vlgmr.msra.gmra.mxu0 %v5035_v44  ;;  %v659_v47 = vld [vmem:[#allocation14 + $0x358] sm:$0xff] }
 0xb5e   :  { %2438 = vmatpush1.msra.mxu0 %v614_v49  ;;  %v5042_v53 = vadd.f32 %v5025_v45, %v2215_v52  ;;  %v5045_v56 = vadd.f32 %v5022_v28, %v2214_v48  ;;  %v658_v49 = vld [vmem:[#allocation14 + $0x350] sm:$0xff]  ;;  %v651_v48 = vld [vmem:[#allocation14 + $0x318] sm:$0xff] }
 0xb5f   :  { %2439 = vmatprep.subr.mxu0 %v611_v13  ;;  %v655_v13 = vld [vmem:[#allocation14 + $0x338] sm:$0xff]  ;;  %v654_v52 = vld [vmem:[#allocation14 + $0x330] sm:$0xff] }
 0xb60   :  { %2440 = vmatpush1.msra.mxu0 %v610_v54  ;;  %2320 = vmatprep.mubr.f32.mxu0 %v5042_v53  ;;  %v650_v54 = vld [vmem:[#allocation14 + $0x310] sm:$0xff] }
 0xb61   :  { %2441 = vmatprep.subr.mxu0 %v607_v58  ;;  %2321 = vmatmul.mubr.f32.gmra.mxu0 %v5045_v56  ;;  %v647_v58 = vld [vmem:[#allocation14 + $0x2f8] sm:$0xff] }
 0xb62   :  { %2442 = vmatpush1.msra.mxu0 %v606_v61  ;;  %v646_v61 = vld [vmem:[#allocation14 + $0x2f0] sm:$0xff] }
 0xb63   :  { %2443 = vmatprep.subr.mxu0 %v603_v32  ;;  %v643_v32 = vld [vmem:[#allocation14 + $0x2d8] sm:$0xff] }
 0xb64   :  { %2444 = vmatpush1.msra.mxu0 %v602_v34  ;;  %v642_v34 = vld [vmem:[#allocation14 + $0x2d0] sm:$0xff] }
 0xb65   :  { %2445 = vmatprep.subr.mxu0 %v599_v43  ;;  %v639_v43 = vld [vmem:[#allocation14 + $0x2b8] sm:$0xff] }
 0xb66   :  { %2446 = vmatpush1.msra.mxu0 %v598_v40  ;;  %v638_v40 = vld [vmem:[#allocation14 + $0x2b0] sm:$0xff] }
 0xb67   :  { %2447 = vmatprep.subr.mxu0 %v595_v24  ;;  %v635_v24 = vld [vmem:[#allocation14 + $0x298] sm:$0xff] }
 0xb68   :  { %2448 = vmatpush1.msra.mxu0 %v594_v63  ;;  %v634_v63 = vld [vmem:[#allocation14 + $0x290] sm:$0xff] }
 0xb69   :  { %2449 = vmatprep.subr.mxu0 %v591_v41  ;;  %v631_v41 = vld [vmem:[#allocation14 + $0x278] sm:$0xff] }
 0xb6a   :  { %2450 = vmatpush1.msra.mxu0 %v590_v42  ;;  %v630_v42 = vld [vmem:[#allocation14 + $0x270] sm:$0xff] }
 0xb6b   :  { %2451 = vmatprep.subr.mxu0 %v587_v3  ;;  %v627_v3 = vld [vmem:[#allocation14 + $0x258] sm:$0xff] }
 0xb6c   :  { %2452 = vmatpush1.msra.mxu0 %v586_v0  ;;  %v626_v0 = vld [vmem:[#allocation14 + $0x250] sm:$0xff] }
 0xb6d   :  { %2453 = vmatprep.subr.mxu0 %v583_v14  ;;  %v623_v14 = vld [vmem:[#allocation14 + $0x238] sm:$0xff] }
 0xb6e   :  { %2454 = vmatpush1.msra.mxu0 %v582_v2  ;;  %v622_v2 = vld [vmem:[#allocation14 + $0x230] sm:$0xff] }
 0xb6f   :  { %2455 = vmatprep.subr.mxu0 %v579_v4  ;;  %v619_v4 = vld [vmem:[#allocation14 + $0x218] sm:$0xff] }
 0xb70   :  { %2456 = vmatpush1.msra.mxu0 %v578_v5  ;;  %v618_v5 = vld [vmem:[#allocation14 + $0x210] sm:$0xff] }
 0xb71   :  { %2457 = vmatprep.subr.mxu0 %v575_v6  ;;  %v5058_v6 = vld [vmem:[%s5673_s9] sm:$0xf] }
 0xb72   :  { %2458 = vmatpush1.msra.mxu0 %v574_v8  ;;  %v5062_v8 = vrot.slane %v5058_v6, %v4819_v15 }
 0xb73   :  { %2459 = vmatprep.subr.mxu0 %v571_v9  ;;  %v5066_v9 = vrot.slane %v5058_v6, %v4843_v26 }
 0xb74   :  { %2460 = vmatpush1.msra.mxu0 %v570_v11 }
 0xb75   :  { %2461 = vmatprep.subr.mxu0 %v567_v12 }
 0xb76   :  { %2462 = vmatpush1.msra.mxu0 %v566_v7 }
 0xb77   :  { %2463 = vmatprep.subr.mxu0 %v563_v16 }
 0xb78   :  { %2464 = vmatpush1.msra.mxu0 %v562_v17 }
 0xb79   :  { %2465 = vmatprep.subr.mxu0 %v559_v18 }
 0xb7a   :  { %2466 = vmatpush1.msra.mxu0 %v558_v19 }
 0xb7b   :  { %2467 = vmatprep.subr.mxu0 %v555_v22 }
 0xb7c   :  { %2468 = vmatpush1.msra.mxu0 %v554_v39 }
 0xb7d   :  { %2469 = vmatprep.subr.mxu0 %v679_v25 }
 0xb7e   :  { %2470 = vmatpush2.msra.mxu0 %v678_v21 }
 0xb7f   :  { %2471 = vmatprep.subr.mxu0 %v675_v20 }
 0xb80   :  { %2472 = vmatpush2.msra.mxu0 %v674_v29 }
 0xb81   :  { %2473 = vmatprep.subr.mxu0 %v671_v30 }
 0xb82   :  { %2474 = vmatpush2.msra.mxu0 %v670_v50 }
 0xb83   :  { %2475 = vmatprep.subr.mxu0 %v667_v55 }
 0xb84   :  { %2476 = vmatpush2.msra.mxu0 %v666_v31 }
 0xb85   :  { %2477 = vmatprep.subr.mxu0 %v663_v33 }
 0xb86   :  { %2478 = vmatpush2.msra.mxu0 %v662_v46 }
 0xb87   :  { %2479 = vmatprep.subr.mxu0 %v659_v47 }
 0xb88   :  { %2480 = vmatpush2.msra.mxu0 %v658_v49 }
 0xb89   :  { %2481 = vmatprep.subr.mxu0 %v655_v13 }
 0xb8a   :  { %2482 = vmatpush2.msra.mxu0 %v654_v52 }
 0xb8b   :  { %2483 = vmatprep.subr.mxu0 %v651_v48 }
 0xb8c   :  { %2484 = vmatpush2.msra.mxu0 %v650_v54 }
 0xb8d   :  { %2485 = vmatprep.subr.mxu0 %v647_v58 }
 0xb8e   :  { %2486 = vmatpush2.msra.mxu0 %v646_v61  ;;  %v2426_v11 = vpop.f32.mrf.mxu1 }
 0xb8f   :  { %2487 = vmatprep.subr.mxu0 %v643_v32  ;;  %v2427_v12 = vadd.f32 %v2426_v11, %v5062_v8 }
 0xb90   :  { %2488 = vmatpush2.msra.mxu0 %v642_v34  ;;  %v2428_v7 = vpop.f32.mrf.mxu1 }
 0xb91   :  { %2489 = vmatprep.subr.mxu0 %v639_v43  ;;  %v2429_v16 = vadd.f32 %v2428_v7, %v5066_v9  ;;  %4125 = vmatprep.subr.mxu1 %v2427_v12 }
 0xb92   :  { %2490 = vmatpush2.msra.mxu0 %v638_v40  ;;  %4126 = vmatpush3.xpose.msra.mxu1 %v2427_v12 }
 0xb93   :  { %2491 = vmatprep.subr.mxu0 %v635_v24 }
 0xb94   :  { %2492 = vmatpush2.msra.mxu0 %v634_v63 }
 0xb95   :  { %2493 = vmatprep.subr.mxu0 %v631_v41 }
 0xb96   :  { %2494 = vmatpush2.msra.mxu0 %v630_v42 }
 0xb97   :  { %2495 = vmatprep.subr.mxu0 %v627_v3 }
 0xb98   :  { %2496 = vmatpush2.msra.mxu0 %v626_v0 }
 0xb99   :  { %2497 = vmatprep.subr.mxu0 %v623_v14 }
 0xb9a   :  { %2498 = vmatpush2.msra.mxu0 %v622_v2 }
 0xb9b   :  { %2499 = vmatprep.subr.mxu0 %v619_v4 }
 0xb9c   :  { %2500 = vmatpush2.msra.mxu0 %v618_v5 }
 0xb9d   :  { %4135 = vmatprep.subr.mxu0 %v2429_v16 }
 0xbc3   :  { %v2137_v17 = vpop.xlane.xlu0 %2136 }
 0xbc4   :  { %v2143_v18 = vmul.f32 0.00390625, %v2137_v17 }
 0xbc5   :  { %v2161_v19 = vpop.xlane.xlu1 %2160 }
 0xbc6   :  { %v2167_v22 = vmul.f32 0.00390625, %v2161_v19  ;;  %v2171_v39 = vmul.f32 %v2143_v18, %v2143_v18  ;;  %v2181_v46 = vsub.f32 %v4984_v51, %v2143_v18  ;;  %v2182_v47 = vsub.f32 %v4987_v23, %v2143_v18 }
 0xbc7   :  { %v2140_v25 = vpop.xlane.xlu0 %2139  ;;  %v2355_v18 = vrot.slane %v5058_v6, %v4822_v1 }
 0xbc8   :  { %v2175_v21 = vsub.f32 %v2167_v22, %v2171_v39  ;;  %v2144_v20 = vmul.f32 0.00390625, %v2140_v25 }
 0xbc9   :  { %v2164_v29 = vpop.xlane.xlu1 %2163 }
 0xbca   :  { %v2187_v30 = vadd.f32 1e-05, %v2175_v21  ;;  %v2168_v50 = vmul.f32 0.00390625, %v2164_v29  ;;  %v2172_v55 = vmul.f32 %v2144_v20, %v2144_v20  ;;  %v2183_v58 = vsub.f32 %v4992_v60, %v2144_v20 }
 0xbcb   :  { %v2184_v61 = vsub.f32 %v4999_v62, %v2144_v20 }
 0xbcc   :  { %4283 = vrsqrt.f32 %v2187_v30  ;;  %v2176_v31 = vsub.f32 %v2168_v50, %v2172_v55 }
 0xbce   :  { %v2188_v33 = vadd.f32 1e-05, %v2176_v31 }
 0xbd0   :  { %4285 = vrsqrt.f32 %v2188_v33 }
 0xbd9   :  { %v4284_v49 = vpop.eup %4283 }
 0xbda   :  { %v2198_v13 = vmul.f32 %v4284_v49, %v2182_v47  ;;  %v2197_v52 = vmul.f32 %v4284_v49, %v2181_v46 }
 0xbdc   :  { %v2217_v48 = vmul.f32 %v5019_v38, %v2198_v13  ;;  %v2216_v54 = vmul.f32 %v5016_v27, %v2197_v52 }
 0xbdd   :  { %v4286_v32 = vpop.eup %4285 }
 0xbde   :  { %v5077_v34 = vadd.f32 %v5025_v45, %v2217_v48  ;;  %v5080_v43 = vadd.f32 %v5022_v28, %v2216_v54  ;;  %v2200_v51 = vmul.f32 %v4286_v32, %v2184_v61  ;;  %v2199_v23 = vmul.f32 %v4286_v32, %v2183_v58 }
 0xbe0   :  { %2326 = vmatprep.mubr.f32.mxu0 %v5077_v34  ;;  %v2219_v40 = vmul.f32 %v5019_v38, %v2200_v51  ;;  %v2218_v24 = vmul.f32 %v5016_v27, %v2199_v23  ;;  %v551_v27 = vld [vmem:[%s5671_s7] sm:$0x3] }
 0xbe1   :  { %2327 = vmatmul.mubr.f32.gmra.mxu0 %v5080_v43  ;;  %v2243_v38 = vrot.slane %v551_v27, %v4819_v15 }
 0xbe2   :  { %v5087_v60 = vadd.f32 %v5025_v45, %v2219_v40  ;;  %v5090_v62 = vadd.f32 %v5022_v28, %v2218_v24  ;;  %v2247_v28 = vrot.slane %v551_v27, %v4843_v26 }
 0xbe4   :  { %2332 = vmatprep.mubr.f32.mxu0 %v5087_v60 }
 0xbe5   :  { %2333 = vmatmul.mubr.f32.gmra.mxu0 %v5090_v62 }
 0xbe6   :  { %2501 = vmatprep.mubr.f32.mxu0 %v4977_v36 }
 0xbe9   :  { %2502 = vmatmul.mubr.f32.vlgmr.msra.gmra.mxu0 %v4979_v37 }
 0xbea   :  { %2507 = vmatprep.mubr.f32.mxu0 %v5047_v57  ;;  %4136 = vmatpush3.xpose.msra.mxu0 %v2429_v16  ;;  %v2351_v16 = vrot.slane %v5058_v6, %v4829_v10 }
 0xbed   :  { %2508 = vmatmul.mubr.f32.gmra.mxu0 %v5050_v59 }
 0xbfa   :  { %v2432_v37 = vpop.f32.mrf.mxu1 }
 0xbfb   :  { %v2433_v3 = vadd.f32 %v2432_v37, %v5062_v8 }
 0xbfc   :  { %v2434_v0 = vpop.f32.mrf.mxu1 }
 0xbfd   :  { %4145 = vmatprep.subr.mxu0 %v2433_v3  ;;  %v2435_v2 = vadd.f32 %v2434_v0, %v5066_v9 }
 0xc1d   :  { %v2316_v45 = vpop.f32.mrf.mxu0 }
 0xc1e   :  { %v2317_v63 = vadd.f32 %v2316_v45, %v2243_v38 }
 0xc1f   :  { %v2318_v41 = vpop.f32.mrf.mxu0 }
 0xc20   :  { %v2319_v42 = vadd.f32 %v2318_v41, %v2247_v28  ;;  %4127 = vmatprep.mubr.f32.mxu1 %v2317_v63 }
 0xc21   :  { %v2322_v36 = vpop.f32.mrf.mxu0 }
 0xc22   :  { %4137 = vmatprep.mubr.f32.mxu0 %v2319_v42  ;;  %v2323_v57 = vadd.f32 %v2322_v36, %v2243_v38 }
 0xc23   :  { %v2324_v59 = vpop.f32.mrf.mxu0 }
 0xc24   :  { %v2325_v14 = vadd.f32 %v2324_v59, %v2247_v28  ;;  %4128 = vmatmul.mubr.f32.vlgmr.msra.gmra.mxu1 %v2323_v57 }
 0xc26   :  { %4138 = vmatmul.mubr.f32.vlgmr.msra.gmra.mxu0 %v2325_v14 }
 0xc27   :  { %4146 = vmatpush3.xpose.msra.mxu0 %v2433_v3 }
 0xc28   :  { %4155 = vmatprep.subr.mxu0 %v2435_v2 }
 0xca1   :  { %v2328_v4 = vpop.f32.mrf.mxu0 }
 0xca2   :  { %v2329_v5 = vadd.f32 %v2328_v4, %v2243_v38 }
 0xca3   :  { %v2330_v11 = vpop.f32.mrf.mxu0 }
 0xca4   :  { %4147 = vmatprep.mubr.f32.mxu0 %v2329_v5  ;;  %v2331_v8 = vadd.f32 %v2330_v11, %v2247_v28 }
 0xca5   :  { %v2334_v12 = vpop.f32.mrf.mxu0 }
 0xca6   :  { %v2335_v7 = vadd.f32 %v2334_v12, %v2243_v38 }
 0xca7   :  { %v2336_v17 = vpop.f32.mrf.mxu0 }
 0xca8   :  { %4148 = vmatmul.mubr.f32.vlgmr.msra.gmra.mxu0 %v2335_v7  ;;  %v2337_v19 = vadd.f32 %v2336_v17, %v2247_v28 }
 0xca9   :  { %4156 = vmatpush3.xpose.msra.mxu0 %v2435_v2  ;;  %4157 = vmatprep.mubr.f32.mxu0 %v2331_v8  ;;  %v2503_v9 = vpop.f32.mrf.mxu0 }
 0xcaa   :  { %v2504_v22 = vadd.f32 %v2503_v9, %v2351_v16 }
 0xcab   :  { %v2505_v39 = vpop.f32.mrf.mxu0 }
 0xcac   :  { %4158 = vmatmul.mubr.f32.vlgmr.msra.gmra.mxu0 %v2337_v19  ;;  %v5109_v25 = vadd.f32 %v2505_v39, %v2355_v18  ;;  %4130 = vmatprep.subr.mxu1 %v2504_v22 }
 0xcad   :  { %v2509_v21 = vpop.f32.mrf.mxu0  ;;  %4131 = vmatpush3.msra.mxu1 %v2504_v22 }
 0xcae   :  { %v5111_v20 = vadd.f32 %v2509_v21, %v2351_v16  ;;  %4140 = vmatprep.subr.mxu1 %v5109_v25 }
 0xcaf   :  { %v2511_v29 = vpop.f32.mrf.mxu0 }
 0xcb0   :  { %v5114_v30 = vadd.f32 %v2511_v29, %v2355_v18 }
 0xce4   :  { %v4129_v6 = vpop.f32.mrf.mxu1 }
 0xce5   :  { %v2593_v50 = vsel %vm2589_vm1, %v4129_v6, -inf }
 0xce6   :  { %2594 = vmax.xlane.f32.xlu1 %v2593_v50  ;;  %v2580_v55 = vpop.f32.mrf.mxu1  ;;  %v4139_v31 = vpop.f32.mrf.mxu0 }
 0xce7   :  { %v2590_v33 = vsel %vm2589_vm1, %v2580_v55, -inf  ;;  %v2771_v47 = vsel %vm2589_vm1, %v4139_v31, -inf }
 0xce8   :  { %2591 = vmax.xlane.f32.xlu0 %v2590_v33  ;;  %v2759_v46 = vpop.f32.mrf.mxu0 }
 0xce9   :  { %v2768_v49 = vsel %vm2589_vm1, %v2759_v46, -inf }
 0xcea   :  { %2772 = vmax.xlane.f32.xlu1 %v2771_v47 }
 0xcec   :  { %2769 = vmax.xlane.f32.xlu0 %v2768_v49 }
 0xd68   :  { %v4149_v13 = vpop.f32.mrf.mxu0 }
 0xd69   :  { %v2949_v52 = vsel %vm2589_vm1, %v4149_v13, -inf }
 0xd6a   :  { %2950 = vmax.xlane.f32.xlu1 %v2949_v52  ;;  %v2937_v48 = vpop.f32.mrf.mxu0 }
 0xd6b   :  { %v2946_v54 = vsel %vm2589_vm1, %v2937_v48, -inf }
 0xd6c   :  { %v4159_v58 = vpop.f32.mrf.mxu0  ;;  %2947 = vmax.xlane.f32.xlu0 %v2946_v54 }
 0xd6d   :  { %v3127_v61 = vsel %vm2589_vm1, %v4159_v58, -inf }
 0xd6e   :  { %3128 = vmax.xlane.f32.xlu1 %v3127_v61  ;;  %v3115_v32 = vpop.f32.mrf.mxu0 }
 0xd6f   :  { %v2595_v51 = vpop.xlane.xlu1 %2594  ;;  %v3124_v23 = vsel %vm2589_vm1, %v3115_v32, -inf }
 0xd70   :  { %v2597_v40 = vsub.f32 %v4129_v6, %v2595_v51  ;;  %3125 = vmax.xlane.f32.xlu0 %v3124_v23 }
 0xd71   :  { %v2592_v24 = vpop.xlane.xlu0 %2591 }
 0xd72   :  { %v2600_v27 = vmul.f32 1.442695, %v2597_v40  ;;  %v2596_v38 = vsub.f32 %v2580_v55, %v2592_v24 }
 0xd73   :  { %v2773_v28 = vpop.xlane.xlu1 %2772 }
 0xd74   :  { %4287 = vpow2.f32 %v2600_v27  ;;  %v2598_v45 = vmul.f32 1.442695, %v2596_v38  ;;  %v2775_v63 = vsub.f32 %v4139_v31, %v2773_v28  ;;  %v712_v27 = vld [vmem:[#allocation16 + $0xf8] sm:$0xff]  ;;  %v711_v38 = vld [vmem:[#allocation16 + $0xf0] sm:$0xff]  ;;  %v710_v28 = vld [vmem:[#allocation16 + $0xe8] sm:$0xff] }
 0xd75   :  { %v2770_v41 = vpop.xlane.xlu0 %2769  ;;  %3238 = vmatprep.subr.mxu0 %v712_v27  ;;  %v729_v27 = vld [vmem:[#allocation16 + $0x180] sm:$0xff] }
 0xd76   :  { %4289 = vpow2.f32 %v2598_v45  ;;  %v2778_v42 = vmul.f32 1.442695, %v2775_v63  ;;  %v2774_v36 = vsub.f32 %v2759_v46, %v2770_v41  ;;  %v709_v45 = vld [vmem:[#allocation16 + $0xe0] sm:$0xff]  ;;  %3239 = vmatpush1.msra.mxu0 %v711_v38  ;;  %v708_v63 = vld [vmem:[#allocation16 + $0xd8] sm:$0xff]  ;;  %v706_v41 = vld [vmem:[#allocation16 + $0xc8] sm:$0xff] }
 0xd77   :  { %3240 = vmatprep.subr.mxu0 %v710_v28  ;;  %v728_v38 = vld [vmem:[#allocation16 + $0x178] sm:$0xff]  ;;  %v727_v28 = vld [vmem:[#allocation16 + $0x170] sm:$0xff] }
 0xd78   :  { %4291 = vpow2.f32 %v2778_v42  ;;  %v2776_v37 = vmul.f32 1.442695, %v2774_v36  ;;  %3241 = vmatpush1.msra.mxu0 %v709_v45  ;;  %v705_v42 = vld [vmem:[#allocation16 + $0xc0] sm:$0xff]  ;;  %v704_v36 = vld [vmem:[#allocation16 + $0xb8] sm:$0xff]  ;;  %v726_v45 = vld [vmem:[#allocation16 + $0x168] sm:$0xff] }
 0xd79   :  { %3242 = vmatprep.subr.mxu0 %v708_v63  ;;  %v725_v63 = vld [vmem:[#allocation16 + $0x160] sm:$0xff] }
 0xd7a   :  { %4293 = vpow2.f32 %v2776_v37  ;;  %v703_v37 = vld [vmem:[#allocation16 + $0xb0] sm:$0xff] }
 0xd81   :  { %v4288_v57 = vpop.eup %4287 }
 0xd82   :  { %v2605_v3 = vsel %vm2589_vm1, %v4288_v57, 0.0 }
 0xd83   :  { %v4290_v59 = vpop.eup %4289  ;;  %2606 = vadd.xlane.f32.xlu1 %v2605_v3  ;;  %v700_v3 = vld [vmem:[#allocation16 + $0x98] sm:$0xff] }
 0xd84   :  { %v2602_v0 = vsel %vm2589_vm1, %v4290_v59, 0.0 }
 0xd85   :  { %v4292_v14 = vpop.eup %4291  ;;  %2603 = vadd.xlane.f32.xlu0 %v2602_v0  ;;  %v698_v0 = vld [vmem:[#allocation16 + $0x88] sm:$0xff] }
 0xd86   :  { %v2783_v2 = vsel %vm2589_vm1, %v4292_v14, 0.0 }
 0xd87   :  { %v4294_v4 = vpop.eup %4293  ;;  %2784 = vadd.xlane.f32.xlu1 %v2783_v2  ;;  %v696_v2 = vld [vmem:[#allocation16 + $0x78] sm:$0xff] }
 0xd88   :  { %v2780_v5 = vsel %vm2589_vm1, %v4294_v4, 0.0 }
 0xd89   :  { %2781 = vadd.xlane.f32.xlu0 %v2780_v5  ;;  %v694_v5 = vld [vmem:[#allocation16 + $0x68] sm:$0xff] }
 0xdf3   :  { %v2951_v11 = vpop.xlane.xlu1 %2950 }
 0xdf4   :  { %v2953_v12 = vsub.f32 %v4149_v13, %v2951_v11  ;;  %v693_v11 = vld [vmem:[#allocation16 + $0x60] sm:$0xff] }
 0xdf5   :  { %v2948_v7 = vpop.xlane.xlu0 %2947 }
 0xdf6   :  { %v2956_v16 = vmul.f32 1.442695, %v2953_v12  ;;  %v2952_v8 = vsub.f32 %v2937_v48, %v2948_v7  ;;  %v692_v12 = vld [vmem:[#allocation16 + $0x58] sm:$0xff]  ;;  %v691_v7 = vld [vmem:[#allocation16 + $0x50] sm:$0xff] }
 0xdf7   :  { %v3129_v17 = vpop.xlane.xlu1 %3128 }
 0xdf8   :  { %4295 = vpow2.f32 %v2956_v16  ;;  %v2954_v18 = vmul.f32 1.442695, %v2952_v8  ;;  %v3131_v9 = vsub.f32 %v4159_v58, %v3129_v17  ;;  %v690_v16 = vld [vmem:[#allocation16 + $0x48] sm:$0xff]  ;;  %v689_v8 = vld [vmem:[#allocation16 + $0x40] sm:$0xff]  ;;  %v688_v17 = vld [vmem:[#allocation16 + $0x38] sm:$0xff] }
 0xdf9   :  { %v3126_v19 = vpop.xlane.xlu0 %3125 }
 0xdfa   :  { %4297 = vpow2.f32 %v2954_v18  ;;  %v3134_v22 = vmul.f32 1.442695, %v3131_v9  ;;  %v3130_v39 = vsub.f32 %v3115_v32, %v3126_v19  ;;  %v687_v18 = vld [vmem:[#allocation16 + $0x30] sm:$0xff]  ;;  %v686_v9 = vld [vmem:[#allocation16 + $0x28] sm:$0xff]  ;;  %v685_v19 = vld [vmem:[#allocation16 + $0x20] sm:$0xff] }
 0xdfc   :  { %4299 = vpow2.f32 %v3134_v22  ;;  %v3132_v21 = vmul.f32 1.442695, %v3130_v39  ;;  %v684_v22 = vld [vmem:[#allocation16 + $0x18] sm:$0xff]  ;;  %v683_v39 = vld [vmem:[#allocation16 + $0x10] sm:$0xff] }
 0xdfe   :  { %4301 = vpow2.f32 %v3132_v21  ;;  %v682_v21 = vld [vmem:[#allocation16 + $0x8] sm:$0xff] }
 0xe05   :  { %v5128_v29 = vpop.eup %4295 }
 0xe06   :  { %v2961_v6 = vsel %vm2589_vm1, %v5128_v29, 0.0 }
 0xe07   :  { %v5132_v50 = vpop.eup %4297  ;;  %2962 = vadd.xlane.f32.xlu1 %v2961_v6  ;;  %v681_v6 = vld [vmem:[#allocation16] sm:$0xff] }
 0xe08   :  { %v2958_v55 = vsel %vm2589_vm1, %v5132_v50, 0.0 }
 0xe09   :  { %v5136_v31 = vpop.eup %4299  ;;  %2959 = vadd.xlane.f32.xlu0 %v2958_v55  ;;  %v744_v55 = vld [vmem:[#allocation16 + $0x1f8] sm:$0xff] }
 0xe0a   :  { %v3139_v33 = vsel %vm2589_vm1, %v5136_v31, 0.0 }
 0xe0b   :  { %v5140_v46 = vpop.eup %4301  ;;  %3140 = vadd.xlane.f32.xlu1 %v3139_v33  ;;  %v743_v33 = vld [vmem:[#allocation16 + $0x1f0] sm:$0xff] }
 0xe0c   :  { %v2607_v47 = vpop.xlane.xlu1 %2606  ;;  %v3136_v49 = vsel %vm2589_vm1, %v5140_v46, 0.0 }
 0xe0d   :  { %3137 = vadd.xlane.f32.xlu0 %v3136_v49  ;;  %4303 = vrcp.f32 %v2607_v47  ;;  %v742_v47 = vld [vmem:[#allocation16 + $0x1e8] sm:$0xff]  ;;  %v741_v49 = vld [vmem:[#allocation16 + $0x1e0] sm:$0xff] }
 0xe0e   :  { %v2604_v13 = vpop.xlane.xlu0 %2603 }
 0xe0f   :  { %4305 = vrcp.f32 %v2604_v13  ;;  %v740_v13 = vld [vmem:[#allocation16 + $0x1d8] sm:$0xff] }
 0xe10   :  { %v2785_v52 = vpop.xlane.xlu1 %2784 }
 0xe11   :  { %4307 = vrcp.f32 %v2785_v52  ;;  %v739_v52 = vld [vmem:[#allocation16 + $0x1d0] sm:$0xff] }
 0xe12   :  { %v2782_v48 = vpop.xlane.xlu0 %2781 }
 0xe13   :  { %4309 = vrcp.f32 %v2782_v48  ;;  %v738_v48 = vld [vmem:[#allocation16 + $0x1c8] sm:$0xff] }
 0xe1a   :  { %v4304_v54 = vpop.eup %4303 }
 0xe1b   :  { %v2611_v32 = vmul.f32 %v4304_v54, %v4288_v57  ;;  %v701_v57 = vld [vmem:[#allocation16 + $0xa0] sm:$0xff] }
 0xe1c   :  { %v4306_v58 = vpop.eup %4305  ;;  %v737_v54 = vld [vmem:[#allocation16 + $0x1c0] sm:$0xff] }
 0xe1d   :  { %v2610_v61 = vmul.f32 %v4306_v58, %v4290_v59  ;;  %v699_v59 = vld [vmem:[#allocation16 + $0x90] sm:$0xff]  ;;  %v736_v58 = vld [vmem:[#allocation16 + $0x1b8] sm:$0xff] }
 0xe1e   :  { %v4308_v51 = vpop.eup %4307 }
 0xe1f   :  { %4132 = vmatprep.mubr.msk.f32.mxu1 %vm2589_vm1, %v2610_v61  ;;  %v2789_v24 = vmul.f32 %v4308_v51, %v4292_v14  ;;  %v697_v14 = vld [vmem:[#allocation16 + $0x80] sm:$0xff]  ;;  %v735_v61 = vld [vmem:[#allocation16 + $0x1b0] sm:$0xff] }
 0xe20   :  { %v4310_v23 = vpop.eup %4309  ;;  %4133 = vmatmul.mubr.msk.f32.vlgmr.msra.gmra.mxu1 %vm2589_vm1, %v2611_v32  ;;  %v734_v32 = vld [vmem:[#allocation16 + $0x1a8] sm:$0xff]  ;;  %v733_v51 = vld [vmem:[#allocation16 + $0x1a0] sm:$0xff] }
 0xe21   :  { %4141 = vmatpush3.msra.mxu1 %v5109_v25  ;;  %v2788_v40 = vmul.f32 %v4310_v23, %v4294_v4  ;;  %v707_v25 = vld [vmem:[#allocation16 + $0xd0] sm:$0xff]  ;;  %v732_v23 = vld [vmem:[#allocation16 + $0x198] sm:$0xff] }
 0xe22   :  { %4150 = vmatprep.subr.mxu1 %v5111_v20  ;;  %3243 = vmatpush1.msra.mxu0 %v707_v25  ;;  %v695_v4 = vld [vmem:[#allocation16 + $0x70] sm:$0xff]  ;;  %v724_v25 = vld [vmem:[#allocation16 + $0x158] sm:$0xff] }
 0xe23   :  { %4142 = vmatprep.mubr.msk.f32.mxu1 %vm2589_vm1, %v2788_v40  ;;  %3244 = vmatprep.subr.mxu0 %v706_v41  ;;  %v731_v40 = vld [vmem:[#allocation16 + $0x190] sm:$0xff] }
 0xe24   :  { %4143 = vmatmul.mubr.msk.f32.vlgmr.msra.gmra.mxu1 %vm2589_vm1, %v2789_v24  ;;  %3245 = vmatpush1.msra.mxu0 %v705_v42  ;;  %v730_v24 = vld [vmem:[#allocation16 + $0x188] sm:$0xff]  ;;  %v723_v41 = vld [vmem:[#allocation16 + $0x150] sm:$0xff] }
 0xe25   :  { %4151 = vmatpush3.msra.mxu1 %v5111_v20  ;;  %v702_v20 = vld [vmem:[#allocation16 + $0xa8] sm:$0xff]  ;;  %3246 = vmatprep.subr.mxu0 %v704_v36  ;;  %v721_v36 = vld [vmem:[#allocation16 + $0x140] sm:$0xff] }
 0xe26   :  { %4160 = vmatprep.subr.mxu1 %v5114_v30  ;;  %3247 = vmatpush1.msra.mxu0 %v703_v37  ;;  %v722_v42 = vld [vmem:[#allocation16 + $0x148] sm:$0xff]  ;;  %v720_v37 = vld [vmem:[#allocation16 + $0x138] sm:$0xff] }
 0xe27   :  { %3248 = vmatprep.subr.mxu0 %v702_v20  ;;  %v719_v20 = vld [vmem:[#allocation16 + $0x130] sm:$0xff] }
 0xe28   :  { %3249 = vmatpush1.msra.mxu0 %v701_v57  ;;  %v718_v57 = vld [vmem:[#allocation16 + $0x128] sm:$0xff] }
 0xe29   :  { %3250 = vmatprep.subr.mxu0 %v700_v3  ;;  %v717_v3 = vld [vmem:[#allocation16 + $0x120] sm:$0xff] }
 0xe2a   :  { %3251 = vmatpush1.msra.mxu0 %v699_v59  ;;  %v716_v59 = vld [vmem:[#allocation16 + $0x118] sm:$0xff] }
 0xe2b   :  { %3252 = vmatprep.subr.mxu0 %v698_v0  ;;  %v715_v0 = vld [vmem:[#allocation16 + $0x110] sm:$0xff] }
 0xe2c   :  { %3253 = vmatpush1.msra.mxu0 %v697_v14  ;;  %v714_v14 = vld [vmem:[#allocation16 + $0x108] sm:$0xff] }
 0xe2d   :  { %3254 = vmatprep.subr.mxu0 %v696_v2  ;;  %v713_v2 = vld [vmem:[#allocation16 + $0x100] sm:$0xff] }
 0xe2e   :  { %3255 = vmatpush1.msra.mxu0 %v695_v4 }
 0xe2f   :  { %3256 = vmatprep.subr.mxu0 %v694_v5 }
 0xe30   :  { %3257 = vmatpush1.msra.mxu0 %v693_v11 }
 0xe31   :  { %3258 = vmatprep.subr.mxu0 %v692_v12 }
 0xe32   :  { %3259 = vmatpush1.msra.mxu0 %v691_v7 }
 0xe33   :  { %3260 = vmatprep.subr.mxu0 %v690_v16 }
 0xe34   :  { %3261 = vmatpush1.msra.mxu0 %v689_v8 }
 0xe35   :  { %3262 = vmatprep.subr.mxu0 %v688_v17 }
 0xe36   :  { %3263 = vmatpush1.msra.mxu0 %v687_v18 }
 0xe37   :  { %3264 = vmatprep.subr.mxu0 %v686_v9 }
 0xe38   :  { %3265 = vmatpush1.msra.mxu0 %v685_v19 }
 0xe39   :  { %3266 = vmatprep.subr.mxu0 %v684_v22 }
 0xe3a   :  { %3267 = vmatpush1.msra.mxu0 %v683_v39 }
 0xe3b   :  { %3268 = vmatprep.subr.mxu0 %v682_v21 }
 0xe3c   :  { %3269 = vmatpush1.msra.mxu0 %v681_v6  ;;  %v813_v6 = vld [vmem:[#allocation17 + $0x1e8] sm:$0xff] }
 0xe3d   :  { %3270 = vmatprep.subr.mxu0 %v744_v55  ;;  %v815_v55 = vld [vmem:[#allocation17 + $0x1f8] sm:$0xff] }
 0xe3e   :  { %3271 = vmatpush2.msra.mxu0 %v743_v33  ;;  %v812_v33 = vld [vmem:[#allocation17 + $0x1e0] sm:$0xff] }
 0xe3f   :  { %3272 = vmatprep.subr.mxu0 %v742_v47  ;;  %v808_v47 = vld [vmem:[#allocation17 + $0x1c0] sm:$0xff] }
 0xe40   :  { %3273 = vmatpush2.msra.mxu0 %v741_v49  ;;  %v810_v49 = vld [vmem:[#allocation17 + $0x1d0] sm:$0xff] }
 0xe41   :  { %3274 = vmatprep.subr.mxu0 %v740_v13  ;;  %v805_v13 = vld [vmem:[#allocation17 + $0x1a8] sm:$0xff] }
 0xe42   :  { %3275 = vmatpush2.msra.mxu0 %v739_v52  ;;  %v807_v52 = vld [vmem:[#allocation17 + $0x1b8] sm:$0xff] }
 0xe43   :  { %3276 = vmatprep.subr.mxu0 %v738_v48  ;;  %v804_v48 = vld [vmem:[#allocation17 + $0x1a0] sm:$0xff] }
 0xe44   :  { %3277 = vmatpush2.msra.mxu0 %v737_v54  ;;  %v806_v54 = vld [vmem:[#allocation17 + $0x1b0] sm:$0xff] }
 0xe45   :  { %3278 = vmatprep.subr.mxu0 %v736_v58  ;;  %v801_v58 = vld [vmem:[#allocation17 + $0x188] sm:$0xff] }
 0xe46   :  { %3279 = vmatpush2.msra.mxu0 %v735_v61  ;;  %v803_v61 = vld [vmem:[#allocation17 + $0x198] sm:$0xff] }
 0xe47   :  { %3280 = vmatprep.subr.mxu0 %v734_v32  ;;  %v800_v32 = vld [vmem:[#allocation17 + $0x180] sm:$0xff] }
 0xe48   :  { %3281 = vmatpush2.msra.mxu0 %v733_v51  ;;  %v802_v51 = vld [vmem:[#allocation17 + $0x190] sm:$0xff] }
 0xe49   :  { %3282 = vmatprep.subr.mxu0 %v732_v23  ;;  %v797_v23 = vld [vmem:[#allocation17 + $0x168] sm:$0xff] }
 0xe4a   :  { %3283 = vmatpush2.msra.mxu0 %v731_v40  ;;  %v799_v40 = vld [vmem:[#allocation17 + $0x178] sm:$0xff] }
 0xe4b   :  { %3284 = vmatprep.subr.mxu0 %v730_v24  ;;  %v796_v24 = vld [vmem:[#allocation17 + $0x160] sm:$0xff] }
 0xe4c   :  { %3285 = vmatpush2.msra.mxu0 %v729_v27  ;;  %v798_v27 = vld [vmem:[#allocation17 + $0x170] sm:$0xff] }
 0xe4d   :  { %3286 = vmatprep.subr.mxu0 %v728_v38  ;;  %v793_v38 = vld [vmem:[#allocation17 + $0x148] sm:$0xff] }
 0xe4e   :  { %3287 = vmatpush2.msra.mxu0 %v727_v28  ;;  %v795_v28 = vld [vmem:[#allocation17 + $0x158] sm:$0xff] }
 0xe4f   :  { %3288 = vmatprep.subr.mxu0 %v726_v45  ;;  %v792_v45 = vld [vmem:[#allocation17 + $0x140] sm:$0xff] }
 0xe50   :  { %3289 = vmatpush2.msra.mxu0 %v725_v63  ;;  %v794_v63 = vld [vmem:[#allocation17 + $0x150] sm:$0xff] }
 0xe51   :  { %3290 = vmatprep.subr.mxu0 %v724_v25  ;;  %v789_v25 = vld [vmem:[#allocation17 + $0x128] sm:$0xff] }
 0xe52   :  { %3291 = vmatpush2.msra.mxu0 %v723_v41  ;;  %v791_v41 = vld [vmem:[#allocation17 + $0x138] sm:$0xff] }
 0xe53   :  { %3292 = vmatprep.subr.mxu0 %v722_v42  ;;  %v788_v42 = vld [vmem:[#allocation17 + $0x120] sm:$0xff] }
 0xe54   :  { %3293 = vmatpush2.msra.mxu0 %v721_v36  ;;  %v790_v36 = vld [vmem:[#allocation17 + $0x130] sm:$0xff] }
 0xe55   :  { %3294 = vmatprep.subr.mxu0 %v720_v37  ;;  %v785_v37 = vld [vmem:[#allocation17 + $0x108] sm:$0xff] }
 0xe56   :  { %3295 = vmatpush2.msra.mxu0 %v719_v20  ;;  %v787_v20 = vld [vmem:[#allocation17 + $0x118] sm:$0xff] }
 0xe57   :  { %3296 = vmatprep.subr.mxu0 %v718_v57  ;;  %v784_v57 = vld [vmem:[#allocation17 + $0x100] sm:$0xff] }
 0xe58   :  { %3297 = vmatpush2.msra.mxu0 %v717_v3  ;;  %v786_v3 = vld [vmem:[#allocation17 + $0x110] sm:$0xff] }
 0xe59   :  { %3298 = vmatprep.subr.mxu0 %v716_v59  ;;  %v781_v59 = vld [vmem:[#allocation17 + $0xe8] sm:$0xff] }
 0xe5a   :  { %3299 = vmatpush2.msra.mxu0 %v715_v0  ;;  %v783_v0 = vld [vmem:[#allocation17 + $0xf8] sm:$0xff] }
 0xe5b   :  { %3300 = vmatprep.subr.mxu0 %v714_v14  ;;  %v780_v14 = vld [vmem:[#allocation17 + $0xe0] sm:$0xff] }
 0xe5c   :  { %3301 = vmatpush2.msra.mxu0 %v713_v2  ;;  %v782_v2 = vld [vmem:[#allocation17 + $0xf0] sm:$0xff] }
 0xe5d   :  { %3555 = vmatprep.subr.mxu0 %v815_v55 }
 0xe90   :  { %v2963_v4 = vpop.xlane.xlu1 %2962 }
 0xe91   :  { %4311 = vrcp.f32 %v2963_v4  ;;  %v777_v4 = vld [vmem:[#allocation17 + $0xc8] sm:$0xff] }
 0xe92   :  { %v2960_v5 = vpop.xlane.xlu0 %2959 }
 0xe93   :  { %4313 = vrcp.f32 %v2960_v5  ;;  %v779_v5 = vld [vmem:[#allocation17 + $0xd8] sm:$0xff] }
 0xe94   :  { %v3141_v11 = vpop.xlane.xlu1 %3140 }
 0xe95   :  { %4315 = vrcp.f32 %v3141_v11  ;;  %v776_v11 = vld [vmem:[#allocation17 + $0xc0] sm:$0xff] }
 0xe96   :  { %v3138_v12 = vpop.xlane.xlu0 %3137 }
 0xe97   :  { %4317 = vrcp.f32 %v3138_v12  ;;  %v778_v12 = vld [vmem:[#allocation17 + $0xd0] sm:$0xff] }
 0xe9e   :  { %v4312_v7 = vpop.eup %4311 }
 0xe9f   :  { %v2967_v17 = vmul.f32 %v4312_v7, %v5128_v29  ;;  %v773_v7 = vld [vmem:[#allocation17 + $0xa8] sm:$0xff] }
 0xea0   :  { %v4314_v16 = vpop.eup %4313 }
 0xea1   :  { %v2966_v8 = vmul.f32 %v4314_v16, %v5132_v50  ;;  %v775_v16 = vld [vmem:[#allocation17 + $0xb8] sm:$0xff] }
 0xea2   :  { %v4316_v18 = vpop.eup %4315 }
 0xea3   :  { %4152 = vmatprep.mubr.msk.f32.mxu1 %vm2589_vm1, %v2966_v8  ;;  %v3145_v22 = vmul.f32 %v4316_v18, %v5136_v31  ;;  %v811_v31 = vld [vmem:[#allocation17 + $0x1d8] sm:$0xff] }
 0xea4   :  { %v4318_v9 = vpop.eup %4317  ;;  %4153 = vmatmul.mubr.msk.f32.vlgmr.msra.gmra.mxu1 %vm2589_vm1, %v2967_v17 }
 0xea5   :  { %4161 = vmatpush3.msra.mxu1 %v5114_v30  ;;  %v3144_v19 = vmul.f32 %v4318_v9, %v5140_v46  ;;  %v814_v30 = vld [vmem:[#allocation17 + $0x1f0] sm:$0xff]  ;;  %v809_v46 = vld [vmem:[#allocation17 + $0x1c8] sm:$0xff] }
 0xea6   :  { %3466 = vmatprep.subr.mxu1 %v813_v6 }
 0xea7   :  { %4162 = vmatprep.mubr.msk.f32.mxu1 %vm2589_vm1, %v3144_v19  ;;  %v745_v19 = vld [vmem:[%s5675_s11] sm:$0x3] }
 0xea8   :  { %4163 = vmatmul.mubr.msk.f32.vlgmr.msra.gmra.mxu1 %vm2589_vm1, %v3145_v22  ;;  %v5165_v22 = vrot.slane %v745_v19, %v4819_v15 }
 0xea9   :  { %3467 = vmatpush1.msra.mxu1 %v812_v33 }
 0xeaa   :  { %3468 = vmatprep.subr.mxu1 %v809_v46 }
 0xeab   :  { %3469 = vmatpush1.msra.mxu1 %v808_v47  ;;  %v774_v47 = vld [vmem:[#allocation17 + $0xb0] sm:$0xff] }
 0xeac   :  { %3470 = vmatprep.subr.mxu1 %v805_v13 }
 0xead   :  { %3471 = vmatpush1.msra.mxu1 %v804_v48  ;;  %v771_v48 = vld [vmem:[#allocation17 + $0x98] sm:$0xff] }
 0xeae   :  { %3472 = vmatprep.subr.mxu1 %v801_v58 }
 0xeaf   :  { %3473 = vmatpush1.msra.mxu1 %v800_v32  ;;  %v770_v32 = vld [vmem:[#allocation17 + $0x90] sm:$0xff] }
 0xeb0   :  { %3474 = vmatprep.subr.mxu1 %v797_v23  ;;  %v767_v23 = vld [vmem:[#allocation17 + $0x78] sm:$0xff] }
 0xeb1   :  { %3475 = vmatpush1.msra.mxu1 %v796_v24  ;;  %v764_v24 = vld [vmem:[#allocation17 + $0x60] sm:$0xff] }
 0xeb2   :  { %3476 = vmatprep.subr.mxu1 %v793_v38  ;;  %v761_v38 = vld [vmem:[#allocation17 + $0x48] sm:$0xff] }
 0xeb3   :  { %3477 = vmatpush1.msra.mxu1 %v792_v45 }
 0xeb4   :  { %3478 = vmatprep.subr.mxu1 %v789_v25  ;;  %v760_v25 = vld [vmem:[#allocation17 + $0x40] sm:$0xff] }
 0xeb5   :  { %3479 = vmatpush1.msra.mxu1 %v788_v42  ;;  %v757_v42 = vld [vmem:[#allocation17 + $0x28] sm:$0xff] }
 0xeb6   :  { %3480 = vmatprep.subr.mxu1 %v785_v37  ;;  %v759_v37 = vld [vmem:[#allocation17 + $0x38] sm:$0xff] }
 0xeb7   :  { %3481 = vmatpush1.msra.mxu1 %v784_v57  ;;  %v758_v57 = vld [vmem:[#allocation17 + $0x30] sm:$0xff] }
 0xeb8   :  { %3482 = vmatprep.subr.mxu1 %v781_v59  ;;  %v755_v59 = vld [vmem:[#allocation17 + $0x18] sm:$0xff] }
 0xeb9   :  { %3483 = vmatpush1.msra.mxu1 %v780_v14  ;;  %v754_v14 = vld [vmem:[#allocation17 + $0x10] sm:$0xff] }
 0xeba   :  { %3484 = vmatprep.subr.mxu1 %v777_v4  ;;  %v879_v4 = vld [vmem:[#allocation17 + $0x3f8] sm:$0xff] }
 0xebb   :  { %3485 = vmatpush1.msra.mxu1 %v776_v11  ;;  %v878_v11 = vld [vmem:[#allocation17 + $0x3f0] sm:$0xff] }
 0xebc   :  { %3486 = vmatprep.subr.mxu1 %v773_v7  ;;  %v875_v7 = vld [vmem:[#allocation17 + $0x3d8] sm:$0xff] }
 0xee0   :  { %v4134_v39 = vpop.f32.mrf.mxu1 }
 0xee2   :  { %v2684_v50 = vpop.f32.mrf.mxu1 }
 0xee4   :  { %v4144_v21 = vpop.f32.mrf.mxu1 }
 0xee6   :  { %v2862_v29 = vpop.f32.mrf.mxu1 }
 0xee7   :  { %3302 = vmatprep.mubr.f32.mxu0 %v2862_v29 }
 0xee8   :  { %3303 = vmatmul.mubr.f32.vlgmr.msra.gmra.mxu0 %v2684_v50 }
 0xee9   :  { %3308 = vmatprep.mubr.f32.mxu0 %v4144_v21  ;;  %3556 = vmatpush1.msra.mxu0 %v814_v30 }
 0xeea   :  { %3557 = vmatprep.subr.mxu0 %v811_v31  ;;  %v772_v31 = vld [vmem:[#allocation17 + $0xa0] sm:$0xff] }
 0xeeb   :  { %3558 = vmatpush1.msra.mxu0 %v810_v49  ;;  %3487 = vmatpush1.msra.mxu1 %v772_v31  ;;  %v860_v31 = vld [vmem:[#allocation17 + $0x360] sm:$0xff] }
 0xeec   :  { %3309 = vmatmul.mubr.f32.gmra.mxu0 %v4134_v39  ;;  %3559 = vmatprep.subr.mxu0 %v807_v52  ;;  %v5168_v39 = vrot.slane %v745_v19, %v4843_v26  ;;  %v769_v52 = vld [vmem:[#allocation17 + $0x88] sm:$0xff]  ;;  %v870_v19 = vld [vmem:[#allocation17 + $0x3b0] sm:$0xff] }
 0xeed   :  { %3560 = vmatpush1.msra.mxu0 %v806_v54  ;;  %3488 = vmatprep.subr.mxu1 %v769_v52  ;;  %v856_v52 = vld [vmem:[#allocation17 + $0x340] sm:$0xff] }
 0xeee   :  { %3561 = vmatprep.subr.mxu0 %v803_v61  ;;  %v768_v61 = vld [vmem:[#allocation17 + $0x80] sm:$0xff] }
 0xeef   :  { %3562 = vmatpush1.msra.mxu0 %v802_v51  ;;  %3489 = vmatpush1.msra.mxu1 %v768_v61  ;;  %v765_v51 = vld [vmem:[#allocation17 + $0x68] sm:$0xff]  ;;  %v854_v61 = vld [vmem:[#allocation17 + $0x330] sm:$0xff] }
 0xef0   :  { %3563 = vmatprep.subr.mxu0 %v799_v40  ;;  %3490 = vmatprep.subr.mxu1 %v765_v51  ;;  %v851_v51 = vld [vmem:[#allocation17 + $0x318] sm:$0xff] }
 0xef1   :  { %3564 = vmatpush1.msra.mxu0 %v798_v27  ;;  %v766_v27 = vld [vmem:[#allocation17 + $0x70] sm:$0xff]  ;;  %3491 = vmatpush1.msra.mxu1 %v764_v24  ;;  %v845_v24 = vld [vmem:[#allocation17 + $0x2e8] sm:$0xff] }
 0xef2   :  { %3565 = vmatprep.subr.mxu0 %v795_v28  ;;  %v763_v28 = vld [vmem:[#allocation17 + $0x58] sm:$0xff]  ;;  %3492 = vmatprep.subr.mxu1 %v761_v38  ;;  %v844_v38 = vld [vmem:[#allocation17 + $0x2e0] sm:$0xff] }
 0xef3   :  { %3566 = vmatpush1.msra.mxu0 %v794_v63  ;;  %3493 = vmatpush1.msra.mxu1 %v760_v25  ;;  %v842_v25 = vld [vmem:[#allocation17 + $0x2d0] sm:$0xff] }
 0xef4   :  { %3567 = vmatprep.subr.mxu0 %v791_v41  ;;  %v762_v41 = vld [vmem:[#allocation17 + $0x50] sm:$0xff]  ;;  %3494 = vmatprep.subr.mxu1 %v757_v42  ;;  %v839_v42 = vld [vmem:[#allocation17 + $0x2b8] sm:$0xff] }
 0xef5   :  { %3568 = vmatpush1.msra.mxu0 %v790_v36 }
 0xef6   :  { %3569 = vmatprep.subr.mxu0 %v787_v20  ;;  %v756_v20 = vld [vmem:[#allocation17 + $0x20] sm:$0xff] }
 0xef7   :  { %3570 = vmatpush1.msra.mxu0 %v786_v3  ;;  %v753_v3 = vld [vmem:[#allocation17 + $0x8] sm:$0xff]  ;;  %3495 = vmatpush1.msra.mxu1 %v756_v20 }
 0xef8   :  { %3571 = vmatprep.subr.mxu0 %v783_v0  ;;  %v752_v0 = vld [vmem:[#allocation17] sm:$0xff]  ;;  %3496 = vmatprep.subr.mxu1 %v753_v3  ;;  %v833_v20 = vld [vmem:[#allocation17 + $0x288] sm:$0xff] }
 0xef9   :  { %3572 = vmatpush1.msra.mxu0 %v782_v2  ;;  %v877_v2 = vld [vmem:[#allocation17 + $0x3e8] sm:$0xff]  ;;  %3497 = vmatpush1.msra.mxu1 %v752_v0  ;;  %v832_v3 = vld [vmem:[#allocation17 + $0x280] sm:$0xff] }
 0xefa   :  { %3573 = vmatprep.subr.mxu0 %v779_v5  ;;  %v876_v5 = vld [vmem:[#allocation17 + $0x3e0] sm:$0xff]  ;;  %3498 = vmatprep.subr.mxu1 %v877_v2  ;;  %v829_v0 = vld [vmem:[#allocation17 + $0x268] sm:$0xff] }
 0xefb   :  { %3574 = vmatpush1.msra.mxu0 %v778_v12  ;;  %v873_v12 = vld [vmem:[#allocation17 + $0x3c8] sm:$0xff]  ;;  %3499 = vmatpush2.msra.mxu1 %v876_v5  ;;  %v828_v2 = vld [vmem:[#allocation17 + $0x260] sm:$0xff] }
 0xefc   :  { %3575 = vmatprep.subr.mxu0 %v775_v16  ;;  %v872_v16 = vld [vmem:[#allocation17 + $0x3c0] sm:$0xff]  ;;  %3500 = vmatprep.subr.mxu1 %v873_v12  ;;  %v825_v5 = vld [vmem:[#allocation17 + $0x248] sm:$0xff] }
 0xefd   :  { %3576 = vmatpush1.msra.mxu0 %v774_v47  ;;  %3501 = vmatpush2.msra.mxu1 %v872_v16  ;;  %v862_v47 = vld [vmem:[#allocation17 + $0x370] sm:$0xff]  ;;  %v824_v12 = vld [vmem:[#allocation17 + $0x240] sm:$0xff]  ;;  %v821_v16 = vld [vmem:[#allocation17 + $0x228] sm:$0xff] }
 0xefe   :  { %3577 = vmatprep.subr.mxu0 %v771_v48  ;;  %v858_v48 = vld [vmem:[#allocation17 + $0x350] sm:$0xff] }
 0xeff   :  { %3578 = vmatpush1.msra.mxu0 %v770_v32  ;;  %v849_v32 = vld [vmem:[#allocation17 + $0x308] sm:$0xff] }
 0xf00   :  { %3579 = vmatprep.subr.mxu0 %v767_v23  ;;  %v848_v23 = vld [vmem:[#allocation17 + $0x300] sm:$0xff] }
 0xf01   :  { %3580 = vmatpush1.msra.mxu0 %v766_v27  ;;  %v847_v27 = vld [vmem:[#allocation17 + $0x2f8] sm:$0xff] }
 0xf02   :  { %3581 = vmatprep.subr.mxu0 %v763_v28  ;;  %v846_v28 = vld [vmem:[#allocation17 + $0x2f0] sm:$0xff] }
 0xf03   :  { %3582 = vmatpush1.msra.mxu0 %v762_v41  ;;  %v837_v41 = vld [vmem:[#allocation17 + $0x2a8] sm:$0xff] }
 0xf04   :  { %3583 = vmatprep.subr.mxu0 %v759_v37  ;;  %v838_v37 = vld [vmem:[#allocation17 + $0x2b0] sm:$0xff] }
 0xf05   :  { %3584 = vmatpush1.msra.mxu0 %v758_v57  ;;  %v835_v57 = vld [vmem:[#allocation17 + $0x298] sm:$0xff] }
 0xf06   :  { %3585 = vmatprep.subr.mxu0 %v755_v59  ;;  %v834_v59 = vld [vmem:[#allocation17 + $0x290] sm:$0xff] }
 0xf07   :  { %3586 = vmatpush1.msra.mxu0 %v754_v14  ;;  %v831_v14 = vld [vmem:[#allocation17 + $0x278] sm:$0xff] }
 0xf08   :  { %3587 = vmatprep.subr.mxu0 %v879_v4  ;;  %v830_v4 = vld [vmem:[#allocation17 + $0x270] sm:$0xff] }
 0xf09   :  { %3588 = vmatpush2.msra.mxu0 %v878_v11  ;;  %v827_v11 = vld [vmem:[#allocation17 + $0x258] sm:$0xff] }
 0xf0a   :  { %3589 = vmatprep.subr.mxu0 %v875_v7  ;;  %v826_v7 = vld [vmem:[#allocation17 + $0x250] sm:$0xff] }
 0xf64   :  { %v4154_v8 = vpop.f32.mrf.mxu1 }
 0xf66   :  { %v3040_v17 = vpop.f32.mrf.mxu1 }
 0xf68   :  { %v4164_v18 = vpop.f32.mrf.mxu1 }
 0xf6a   :  { %v3218_v9 = vpop.f32.mrf.mxu1 }
 0xf6b   :  { %3314 = vmatprep.mubr.f32.mxu0 %v3218_v9  ;;  %v868_v9 = vld [vmem:[#allocation17 + $0x3a0] sm:$0xff] }
 0xf6c   :  { %3315 = vmatmul.mubr.f32.gmra.mxu0 %v3040_v17  ;;  %v869_v17 = vld [vmem:[#allocation17 + $0x3a8] sm:$0xff] }
 0xf6d   :  { %3320 = vmatprep.mubr.f32.mxu0 %v4164_v18  ;;  %v871_v18 = vld [vmem:[#allocation17 + $0x3b8] sm:$0xff]  ;;  %3502 = vmatprep.subr.mxu1 %v869_v17  ;;  %v820_v17 = vld [vmem:[#allocation17 + $0x220] sm:$0xff] }
 0xf6e   :  { %3503 = vmatpush2.msra.mxu1 %v868_v9  ;;  %v817_v9 = vld [vmem:[#allocation17 + $0x208] sm:$0xff] }
 0xf70   :  { %3321 = vmatmul.mubr.f32.gmra.mxu0 %v4154_v8  ;;  %v874_v8 = vld [vmem:[#allocation17 + $0x3d0] sm:$0xff] }
 0xf71   :  { %3590 = vmatpush2.msra.mxu0 %v874_v8  ;;  %v823_v8 = vld [vmem:[#allocation17 + $0x238] sm:$0xff] }
 0xf72   :  { %3591 = vmatprep.subr.mxu0 %v871_v18  ;;  %v822_v18 = vld [vmem:[#allocation17 + $0x230] sm:$0xff] }
 0xf73   :  { %3592 = vmatpush2.msra.mxu0 %v870_v19  ;;  %v819_v19 = vld [vmem:[#allocation17 + $0x218] sm:$0xff] }
 0xfa8   :  { %v3304_v50 = vpop.f32.mrf.mxu0 }
 0xfa9   :  { %v3305_v21 = vadd.f32 %v3304_v50, %v5165_v22  ;;  %v865_v50 = vld [vmem:[#allocation17 + $0x388] sm:$0xff] }
 0xfaa   :  { %v3306_v29 = vpop.f32.mrf.mxu0  ;;  %3504 = vmatprep.subr.mxu1 %v865_v50  ;;  %v816_v50 = vld [vmem:[#allocation17 + $0x200] sm:$0xff] }
 0xfab   :  { %v5172_v6 = vadd.f32 %v3305_v21, %v5035_v44  ;;  %v3307_v55 = vadd.f32 %v3306_v29, %v5168_v39  ;;  %v867_v21 = vld [vmem:[#allocation17 + $0x398] sm:$0xff]  ;;  %v864_v29 = vld [vmem:[#allocation17 + $0x380] sm:$0xff] }
 0xfac   :  { %v3310_v33 = vpop.f32.mrf.mxu0  ;;  %3593 = vmatprep.subr.mxu0 %v867_v21  ;;  %3505 = vmatpush2.msra.mxu1 %v864_v29  ;;  %v818_v21 = vld [vmem:[#allocation17 + $0x210] sm:$0xff] }
 0xfad   :  { %v5176_v30 = vadd.f32 %v3307_v55, %v5032_v35  ;;  %v3311_v46 = vadd.f32 %v3310_v33, %v5165_v22  ;;  %v3351_v13 = vmul.f32 %v5172_v6, %v5172_v6  ;;  %v866_v55 = vld [vmem:[#allocation17 + $0x390] sm:$0xff]  ;;  %v861_v33 = vld [vmem:[#allocation17 + $0x368] sm:$0xff] }
 0xfae   :  { %v3312_v49 = vpop.f32.mrf.mxu0  ;;  %3594 = vmatpush2.msra.mxu0 %v866_v55  ;;  %3506 = vmatprep.subr.mxu1 %v861_v33 }
 0xfaf   :  { %v5182_v44 = vadd.f32 %v3311_v46, %v5045_v56  ;;  %v3313_v54 = vadd.f32 %v3312_v49, %v5168_v39  ;;  %v3335_v35 = vadd.f32 %v5176_v30, %v5172_v6  ;;  %v3352_v58 = vmul.f32 %v5176_v30, %v5176_v30  ;;  %v863_v46 = vld [vmem:[#allocation17 + $0x378] sm:$0xff]  ;;  %v857_v49 = vld [vmem:[#allocation17 + $0x348] sm:$0xff]  ;;  %3507 = vmatpush2.msra.mxu1 %v860_v31 }
 0xfb0   :  { %3595 = vmatprep.subr.mxu0 %v863_v46  ;;  %3508 = vmatprep.subr.mxu1 %v857_v49 }
 0xfb1   :  { %v5190_v40 = vadd.f32 %v3313_v54, %v5042_v53  ;;  %3336 = vadd.xlane.f32.xlu0 %v3335_v35  ;;  %v3359_v56 = vadd.f32 %v3352_v58, %v3351_v13  ;;  %v3353_v63 = vmul.f32 %v5182_v44, %v5182_v44  ;;  %v859_v13 = vld [vmem:[#allocation17 + $0x358] sm:$0xff]  ;;  %v853_v54 = vld [vmem:[#allocation17 + $0x328] sm:$0xff]  ;;  %3596 = vmatpush2.msra.mxu0 %v862_v47  ;;  %v852_v58 = vld [vmem:[#allocation17 + $0x320] sm:$0xff] }
 0xfb2   :  { %v855_v35 = vld [vmem:[#allocation17 + $0x338] sm:$0xff]  ;;  %3597 = vmatprep.subr.mxu0 %v859_v13  ;;  %3509 = vmatpush2.msra.mxu1 %v856_v52 }
 0xfb3   :  { %3360 = vadd.xlane.f32.xlu1 %v3359_v56  ;;  %v3338_v45 = vadd.f32 %v5190_v40, %v5182_v44  ;;  %v3354_v53 = vmul.f32 %v5190_v40, %v5190_v40  ;;  %3598 = vmatpush2.msra.mxu0 %v858_v48  ;;  %v850_v56 = vld [vmem:[#allocation17 + $0x310] sm:$0xff] }
 0xfb4   :  { %3510 = vmatprep.subr.mxu1 %v853_v54  ;;  %3599 = vmatprep.subr.mxu0 %v855_v35 }
 0xfb5   :  { %3339 = vadd.xlane.f32.xlu0 %v3338_v45  ;;  %v3362_v36 = vadd.f32 %v3354_v53, %v3353_v63  ;;  %3511 = vmatpush2.msra.mxu1 %v852_v58  ;;  %v841_v45 = vld [vmem:[#allocation17 + $0x2c8] sm:$0xff]  ;;  %v843_v63 = vld [vmem:[#allocation17 + $0x2d8] sm:$0xff]  ;;  %v840_v53 = vld [vmem:[#allocation17 + $0x2c0] sm:$0xff] }
 0xfb6   :  { %3600 = vmatpush2.msra.mxu0 %v854_v61  ;;  %3512 = vmatprep.subr.mxu1 %v849_v32 }
 0xfb7   :  { %3363 = vadd.xlane.f32.xlu1 %v3362_v36  ;;  %3601 = vmatprep.subr.mxu0 %v851_v51  ;;  %v836_v36 = vld [vmem:[#allocation17 + $0x2a0] sm:$0xff] }
 0xfb8   :  { %3513 = vmatpush2.msra.mxu1 %v848_v23  ;;  %3602 = vmatpush2.msra.mxu0 %v850_v56 }
 0xfb9   :  { %3514 = vmatprep.subr.mxu1 %v845_v24  ;;  %3603 = vmatprep.subr.mxu0 %v847_v27 }
 0xfba   :  { %3515 = vmatpush2.msra.mxu1 %v844_v38  ;;  %3604 = vmatpush2.msra.mxu0 %v846_v28 }
 0xfbb   :  { %3516 = vmatprep.subr.mxu1 %v841_v45  ;;  %3605 = vmatprep.subr.mxu0 %v843_v63 }
 0xfbc   :  { %3517 = vmatpush2.msra.mxu1 %v840_v53  ;;  %3606 = vmatpush2.msra.mxu0 %v842_v25 }
 0xfbd   :  { %3518 = vmatprep.subr.mxu1 %v837_v41  ;;  %3607 = vmatprep.subr.mxu0 %v839_v42 }
 0xfbe   :  { %3519 = vmatpush2.msra.mxu1 %v836_v36  ;;  %3608 = vmatpush2.msra.mxu0 %v838_v37  ;;  %v748_v36 = vld [vmem:[%s5678_s14] sm:$0x3] }
 0xfbf   :  { %3520 = vmatprep.subr.mxu1 %v833_v20  ;;  %3609 = vmatprep.subr.mxu0 %v835_v57  ;;  %v749_v37 = vld [vmem:[%s5679_s15] sm:$0x3] }
 0xfc0   :  { %3521 = vmatpush2.msra.mxu1 %v832_v3  ;;  %3610 = vmatpush2.msra.mxu0 %v834_v59  ;;  %v5235_v3 = vrot.slane %v748_v36, %v4819_v15  ;;  %v5238_v59 = vrot.slane %v748_v36, %v4843_v26  ;;  %v896_v36 = vld [vmem:[#allocation19 + $0x78] sm:$0xff] }
 0xfc1   :  { %3522 = vmatprep.subr.mxu1 %v829_v0  ;;  %3611 = vmatprep.subr.mxu0 %v831_v14 }
 0xfc2   :  { %3523 = vmatpush2.msra.mxu1 %v828_v2  ;;  %3612 = vmatpush2.msra.mxu0 %v830_v4  ;;  %v5241_v2 = vrot.slane %v749_v37, %v4819_v15  ;;  %v5244_v4 = vrot.slane %v749_v37, %v4843_v26  ;;  %v5318_v37 = vld [vmem:[#allocation19 + $0x278] sm:$0xff] }
 0xfc3   :  { %3524 = vmatprep.subr.mxu1 %v825_v5  ;;  %3613 = vmatprep.subr.mxu0 %v827_v11 }
 0xfc4   :  { %3525 = vmatpush2.msra.mxu1 %v824_v12  ;;  %3614 = vmatpush2.msra.mxu0 %v826_v7 }
 0xfc5   :  { %3526 = vmatprep.subr.mxu1 %v821_v16  ;;  %3615 = vmatprep.subr.mxu0 %v823_v8 }
 0xfc6   :  { %3527 = vmatpush2.msra.mxu1 %v820_v17  ;;  %3616 = vmatpush2.msra.mxu0 %v822_v18 }
 0xfc7   :  { %3528 = vmatprep.subr.mxu1 %v817_v9  ;;  %3617 = vmatprep.subr.mxu0 %v819_v19 }
 0xfc8   :  { %3529 = vmatpush2.msra.mxu1 %v816_v50  ;;  %3618 = vmatpush2.msra.mxu0 %v818_v21  ;;  %v912_v50 = vld [vmem:[#allocation19 + $0xf8] sm:$0xff] }
 0xfc9   :  { %v5272_v21 = vld [vmem:[#allocation19 + $0x2f8] sm:$0xff]  ;;  %3671 = vmatprep.subr.mxu1 %v912_v50 }
 0xfca   :  { %3760 = vmatprep.subr.mxu0 %v5272_v21  ;;  %v888_v50 = vld [vmem:[#allocation19 + $0x38] sm:$0xff] }
0x102c   :  { %v3316_v29 = vpop.f32.mrf.mxu0 }
0x102d   :  { %v3317_v55 = vadd.f32 %v3316_v29, %v5165_v22  ;;  %v911_v29 = vld [vmem:[#allocation19 + $0xf0] sm:$0xff] }
0x102e   :  { %v3318_v33 = vpop.f32.mrf.mxu0 }
0x102f   :  { %v5200_v46 = vadd.f32 %v3317_v55, %v5080_v43  ;;  %v3319_v31 = vadd.f32 %v3318_v33, %v5168_v39  ;;  %v5275_v55 = vld [vmem:[#allocation19 + $0x2f0] sm:$0xff]  ;;  %v910_v33 = vld [vmem:[#allocation19 + $0xe8] sm:$0xff] }
0x1030   :  { %v3322_v47 = vpop.f32.mrf.mxu0 }
0x1031   :  { %v5204_v49 = vadd.f32 %v3319_v31, %v5077_v34  ;;  %v3323_v13 = vadd.f32 %v3322_v47, %v5165_v22  ;;  %v3355_v48 = vmul.f32 %v5200_v46, %v5200_v46  ;;  %v5278_v31 = vld [vmem:[#allocation19 + $0x2e8] sm:$0xff]  ;;  %v909_v47 = vld [vmem:[#allocation19 + $0xe0] sm:$0xff] }
0x1032   :  { %v3324_v52 = vpop.f32.mrf.mxu0 }
0x1033   :  { %v5210_v54 = vadd.f32 %v3323_v13, %v5090_v62  ;;  %v3325_v35 = vadd.f32 %v3324_v52, %v5168_v39  ;;  %v3341_v43 = vadd.f32 %v5204_v49, %v5200_v46  ;;  %v3356_v58 = vmul.f32 %v5204_v49, %v5204_v49  ;;  %v5280_v13 = vld [vmem:[#allocation19 + $0x2e0] sm:$0xff]  ;;  %v908_v52 = vld [vmem:[#allocation19 + $0xd8] sm:$0xff] }
0x1035   :  { %v5218_v34 = vadd.f32 %v3325_v35, %v5087_v60  ;;  %3342 = vadd.xlane.f32.xlu0 %v3341_v43  ;;  %v3365_v22 = vadd.f32 %v3356_v58, %v3355_v48  ;;  %v3357_v62 = vmul.f32 %v5210_v54, %v5210_v54  ;;  %v5283_v48 = vld [vmem:[#allocation19 + $0x2d8] sm:$0xff]  ;;  %v907_v35 = vld [vmem:[#allocation19 + $0xd0] sm:$0xff]  ;;  %v906_v58 = vld [vmem:[#allocation19 + $0xc8] sm:$0xff] }
0x1036   :  { %v5286_v43 = vld [vmem:[#allocation19 + $0x2d0] sm:$0xff] }
0x1037   :  { %3366 = vadd.xlane.f32.xlu1 %v3365_v22  ;;  %v3344_v61 = vadd.f32 %v5218_v34, %v5210_v54  ;;  %v3358_v39 = vmul.f32 %v5218_v34, %v5218_v34  ;;  %v5288_v22 = vld [vmem:[#allocation19 + $0x2c8] sm:$0xff] }
0x1039   :  { %3345 = vadd.xlane.f32.xlu0 %v3344_v61  ;;  %v3368_v32 = vadd.f32 %v3358_v39, %v3357_v62  ;;  %v905_v61 = vld [vmem:[#allocation19 + $0xc0] sm:$0xff]  ;;  %v904_v39 = vld [vmem:[#allocation19 + $0xb8] sm:$0xff] }
0x103a   :  { %v3337_v51 = vpop.xlane.xlu0 %3336  ;;  %v5291_v62 = vld [vmem:[#allocation19 + $0x2c0] sm:$0xff] }
0x103b   :  { %v3347_v23 = vmul.f32 0.00390625, %v3337_v51  ;;  %3369 = vadd.xlane.f32.xlu1 %v3368_v32  ;;  %v5294_v32 = vld [vmem:[#allocation19 + $0x2b8] sm:$0xff]  ;;  %v903_v51 = vld [vmem:[#allocation19 + $0xb0] sm:$0xff] }
0x103c   :  { %v3361_v56 = vpop.xlane.xlu1 %3360 }
0x103d   :  { %v3371_v60 = vmul.f32 0.00390625, %v3361_v56  ;;  %v3375_v24 = vmul.f32 %v3347_v23, %v3347_v23  ;;  %v3383_v20 = vsub.f32 %v5172_v6, %v3347_v23  ;;  %v3384_v57 = vsub.f32 %v5176_v30, %v3347_v23  ;;  %v5297_v23 = vld [vmem:[#allocation19 + $0x2b0] sm:$0xff]  ;;  %v902_v56 = vld [vmem:[#allocation19 + $0xa8] sm:$0xff] }
0x103e   :  { %v3340_v27 = vpop.xlane.xlu0 %3339 }
0x103f   :  { %v3379_v38 = vsub.f32 %v3371_v60, %v3375_v24  ;;  %v3348_v28 = vmul.f32 0.00390625, %v3340_v27  ;;  %v5300_v60 = vld [vmem:[#allocation19 + $0x2a8] sm:$0xff]  ;;  %v901_v24 = vld [vmem:[#allocation19 + $0xa0] sm:$0xff] }
0x1040   :  { %v3364_v45 = vpop.xlane.xlu1 %3363  ;;  %v5303_v27 = vld [vmem:[#allocation19 + $0x2a0] sm:$0xff] }
0x1041   :  { %v3391_v63 = vadd.f32 1e-05, %v3379_v38  ;;  %v3372_v53 = vmul.f32 0.00390625, %v3364_v45  ;;  %v3376_v25 = vmul.f32 %v3348_v28, %v3348_v28  ;;  %v3385_v30 = vsub.f32 %v5182_v44, %v3348_v28  ;;  %v900_v38 = vld [vmem:[#allocation19 + $0x98] sm:$0xff]  ;;  %v899_v45 = vld [vmem:[#allocation19 + $0x90] sm:$0xff] }
0x1042   :  { %v3386_v12 = vsub.f32 %v5190_v40, %v3348_v28  ;;  %v5306_v28 = vld [vmem:[#allocation19 + $0x298] sm:$0xff] }
0x1043   :  { %4319 = vrsqrt.f32 %v3391_v63  ;;  %v3380_v41 = vsub.f32 %v3372_v53, %v3376_v25  ;;  %v5309_v63 = vld [vmem:[#allocation19 + $0x290] sm:$0xff]  ;;  %v898_v53 = vld [vmem:[#allocation19 + $0x88] sm:$0xff] }
0x1044   :  { %v5312_v25 = vld [vmem:[#allocation19 + $0x288] sm:$0xff] }
0x1045   :  { %v3392_v42 = vadd.f32 1e-05, %v3380_v41  ;;  %v897_v41 = vld [vmem:[#allocation19 + $0x80] sm:$0xff] }
0x1047   :  { %4321 = vrsqrt.f32 %v3392_v42  ;;  %v5315_v42 = vld [vmem:[#allocation19 + $0x280] sm:$0xff] }
0x1050   :  { %v4320_v0 = vpop.eup %4319 }
0x1051   :  { %v3400_v14 = vmul.f32 %v4320_v0, %v3384_v57  ;;  %v3399_v5 = vmul.f32 %v4320_v0, %v3383_v20  ;;  %v895_v20 = vld [vmem:[#allocation19 + $0x70] sm:$0xff]  ;;  %v894_v0 = vld [vmem:[#allocation19 + $0x68] sm:$0xff] }
0x1052   :  { %v5321_v57 = vld [vmem:[#allocation19 + $0x270] sm:$0xff] }
0x1053   :  { %v3419_v11 = vmul.f32 %v5238_v59, %v3400_v14  ;;  %v3418_v6 = vmul.f32 %v5235_v3, %v3399_v5  ;;  %v5324_v14 = vld [vmem:[#allocation19 + $0x268] sm:$0xff]  ;;  %v893_v5 = vld [vmem:[#allocation19 + $0x60] sm:$0xff] }
0x1054   :  { %v4322_v7 = vpop.eup %4321 }
0x1055   :  { %v5251_v16 = vadd.f32 %v5244_v4, %v3419_v11  ;;  %v5254_v8 = vadd.f32 %v5241_v2, %v3418_v6  ;;  %v3402_v17 = vmul.f32 %v4322_v7, %v3386_v12  ;;  %v3401_v18 = vmul.f32 %v4322_v7, %v3385_v30  ;;  %v5327_v11 = vld [vmem:[#allocation19 + $0x260] sm:$0xff]  ;;  %v892_v6 = vld [vmem:[#allocation19 + $0x58] sm:$0xff]  ;;  %v891_v12 = vld [vmem:[#allocation19 + $0x50] sm:$0xff] }
0x1056   :  { %v5330_v30 = vld [vmem:[#allocation19 + $0x258] sm:$0xff]  ;;  %v5333_v7 = vld [vmem:[#allocation19 + $0x250] sm:$0xff] }
0x1057   :  { %5735 = vst [vmem:[#allocation28_spill] sm:$0xff] %v5251_v16  ;;  %5736 = vst [vmem:[#allocation29_spill] sm:$0xff] %v5254_v8  ;;  %3530 = vmatprep.mubr.f32.mxu1 %v5251_v16  ;;  %3619 = vmatprep.mubr.f32.mxu0 %v5251_v16  ;;  %v3421_v44 = vmul.f32 %v5238_v59, %v3402_v17  ;;  %v3420_v40 = vmul.f32 %v5235_v3, %v3401_v18  ;;  %v890_v17 = vld [vmem:[#allocation19 + $0x48] sm:$0xff]  ;;  %v5402_v16 = vld [vmem:[#allocation19 + $0x398] sm:$0xff] }
0x1058   :  { %3531 = vmatmul.mubr.f32.vlgmr.msra.gmra.mxu1 %v5254_v8  ;;  %3620 = vmatmul.mubr.f32.vlgmr.msra.gmra.mxu0 %v5254_v8  ;;  %v5336_v18 = vld [vmem:[#allocation19 + $0x248] sm:$0xff]  ;;  %5748 = vst [vmem:[#allocation41_spill] sm:$0xff] %v5402_v16  ;;  %v5405_v8 = vld [vmem:[#allocation19 + $0x390] sm:$0xff] }
0x1059   :  { %v5263_v9 = vadd.f32 %v5244_v4, %v3421_v44  ;;  %v5266_v19 = vadd.f32 %v5241_v2, %v3420_v40  ;;  %3672 = vmatpush1.msra.mxu1 %v911_v29  ;;  %3761 = vmatpush1.msra.mxu0 %v5275_v55  ;;  %v889_v44 = vld [vmem:[#allocation19 + $0x40] sm:$0xff]  ;;  %v5342_v29 = vld [vmem:[#allocation19 + $0x238] sm:$0xff]  ;;  %5749 = vst [vmem:[#allocation42_spill] sm:$0xff] %v5405_v8 }
0x105a   :  { %3673 = vmatprep.subr.mxu1 %v910_v33  ;;  %3762 = vmatprep.subr.mxu0 %v5278_v31  ;;  %v5339_v40 = vld [vmem:[#allocation19 + $0x240] sm:$0xff]  ;;  %v887_v33 = vld [vmem:[#allocation19 + $0x30] sm:$0xff] }
0x105b   :  { %5737 = vst [vmem:[#allocation30_spill] sm:$0xff] %v5263_v9  ;;  %5738 = vst [vmem:[#allocation31_spill] sm:$0xff] %v5266_v19  ;;  %3536 = vmatprep.mubr.f32.mxu1 %v5263_v9  ;;  %3625 = vmatprep.mubr.f32.mxu0 %v5263_v9  ;;  %v5396_v9 = vld [vmem:[#allocation19 + $0x3a8] sm:$0xff] }
0x105c   :  { %3537 = vmatmul.mubr.f32.gmra.mxu1 %v5266_v19  ;;  %3626 = vmatmul.mubr.f32.gmra.mxu0 %v5266_v19  ;;  %5746 = vst [vmem:[#allocation39_spill] sm:$0xff] %v5396_v9  ;;  %v5399_v19 = vld [vmem:[#allocation19 + $0x3a0] sm:$0xff] }
0x105d   :  { %3674 = vmatpush1.msra.mxu1 %v909_v47  ;;  %3763 = vmatpush1.msra.mxu0 %v5280_v13  ;;  %v5345_v47 = vld [vmem:[#allocation19 + $0x230] sm:$0xff]  ;;  %5747 = vst [vmem:[#allocation40_spill] sm:$0xff] %v5399_v19 }
0x105e   :  { %3675 = vmatprep.subr.mxu1 %v908_v52  ;;  %3764 = vmatprep.subr.mxu0 %v5283_v48  ;;  %v886_v52 = vld [vmem:[#allocation19 + $0x28] sm:$0xff] }
0x105f   :  { %3676 = vmatpush1.msra.mxu1 %v907_v35  ;;  %3765 = vmatpush1.msra.mxu0 %v5286_v43  ;;  %v5348_v35 = vld [vmem:[#allocation19 + $0x228] sm:$0xff] }
0x1060   :  { %3677 = vmatprep.subr.mxu1 %v906_v58  ;;  %3766 = vmatprep.subr.mxu0 %v5288_v22  ;;  %v885_v58 = vld [vmem:[#allocation19 + $0x20] sm:$0xff] }
0x1061   :  { %3678 = vmatpush1.msra.mxu1 %v905_v61  ;;  %3767 = vmatpush1.msra.mxu0 %v5291_v62  ;;  %v5351_v61 = vld [vmem:[#allocation19 + $0x220] sm:$0xff] }
0x1062   :  { %3679 = vmatprep.subr.mxu1 %v904_v39  ;;  %3768 = vmatprep.subr.mxu0 %v5294_v32  ;;  %v884_v39 = vld [vmem:[#allocation19 + $0x18] sm:$0xff] }
0x1063   :  { %3680 = vmatpush1.msra.mxu1 %v903_v51  ;;  %3769 = vmatpush1.msra.mxu0 %v5297_v23  ;;  %v5354_v51 = vld [vmem:[#allocation19 + $0x218] sm:$0xff] }
0x1064   :  { %3681 = vmatprep.subr.mxu1 %v902_v56  ;;  %3770 = vmatprep.subr.mxu0 %v5300_v60  ;;  %v883_v56 = vld [vmem:[#allocation19 + $0x10] sm:$0xff] }
0x1065   :  { %3682 = vmatpush1.msra.mxu1 %v901_v24  ;;  %3771 = vmatpush1.msra.mxu0 %v5303_v27  ;;  %v5357_v24 = vld [vmem:[#allocation19 + $0x210] sm:$0xff] }
0x1066   :  { %3683 = vmatprep.subr.mxu1 %v900_v38  ;;  %3772 = vmatprep.subr.mxu0 %v5306_v28  ;;  %v882_v38 = vld [vmem:[#allocation19 + $0x8] sm:$0xff] }
0x1067   :  { %3684 = vmatpush1.msra.mxu1 %v899_v45  ;;  %3773 = vmatpush1.msra.mxu0 %v5309_v63  ;;  %v5360_v45 = vld [vmem:[#allocation19 + $0x208] sm:$0xff] }
0x1068   :  { %3685 = vmatprep.subr.mxu1 %v898_v53  ;;  %3774 = vmatprep.subr.mxu0 %v5312_v25  ;;  %v881_v53 = vld [vmem:[#allocation19] sm:$0xff] }
0x1069   :  { %3686 = vmatpush1.msra.mxu1 %v897_v41  ;;  %3775 = vmatpush1.msra.mxu0 %v5315_v42  ;;  %v5363_v41 = vld [vmem:[#allocation19 + $0x200] sm:$0xff] }
0x106a   :  { %3687 = vmatprep.subr.mxu1 %v896_v36  ;;  %3776 = vmatprep.subr.mxu0 %v5318_v37  ;;  %v944_v36 = vld [vmem:[#allocation19 + $0x1f8] sm:$0xff] }
0x106b   :  { %3688 = vmatpush1.msra.mxu1 %v895_v20  ;;  %3777 = vmatpush1.msra.mxu0 %v5321_v57  ;;  %v5366_v20 = vld [vmem:[#allocation19 + $0x3f8] sm:$0xff] }
0x106c   :  { %3689 = vmatprep.subr.mxu1 %v894_v0  ;;  %3778 = vmatprep.subr.mxu0 %v5324_v14  ;;  %v943_v0 = vld [vmem:[#allocation19 + $0x1f0] sm:$0xff] }
0x106d   :  { %3690 = vmatpush1.msra.mxu1 %v893_v5  ;;  %3779 = vmatpush1.msra.mxu0 %v5327_v11  ;;  %v5369_v5 = vld [vmem:[#allocation19 + $0x3f0] sm:$0xff] }
0x106e   :  { %3691 = vmatprep.subr.mxu1 %v892_v6  ;;  %3780 = vmatprep.subr.mxu0 %v5330_v30  ;;  %v942_v6 = vld [vmem:[#allocation19 + $0x1e8] sm:$0xff] }
0x106f   :  { %3692 = vmatpush1.msra.mxu1 %v891_v12  ;;  %3781 = vmatpush1.msra.mxu0 %v5333_v7  ;;  %v5372_v12 = vld [vmem:[#allocation19 + $0x3e8] sm:$0xff] }
0x1070   :  { %3693 = vmatprep.subr.mxu1 %v890_v17  ;;  %3782 = vmatprep.subr.mxu0 %v5336_v18  ;;  %v941_v17 = vld [vmem:[#allocation19 + $0x1e0] sm:$0xff] }
0x1071   :  { %3694 = vmatpush1.msra.mxu1 %v889_v44  ;;  %3783 = vmatpush1.msra.mxu0 %v5339_v40  ;;  %v5375_v44 = vld [vmem:[#allocation19 + $0x3e0] sm:$0xff] }
0x1072   :  { %3695 = vmatprep.subr.mxu1 %v888_v50  ;;  %3784 = vmatprep.subr.mxu0 %v5342_v29  ;;  %5739 = vst [vmem:[#allocation32_spill] sm:$0xff] %v5375_v44  ;;  %v940_v50 = vld [vmem:[#allocation19 + $0x1d8] sm:$0xff] }
0x1073   :  { %3696 = vmatpush1.msra.mxu1 %v887_v33  ;;  %3785 = vmatpush1.msra.mxu0 %v5345_v47  ;;  %v5378_v33 = vld [vmem:[#allocation19 + $0x3d8] sm:$0xff] }
0x1074   :  { %3697 = vmatprep.subr.mxu1 %v886_v52  ;;  %3786 = vmatprep.subr.mxu0 %v5348_v35  ;;  %5740 = vst [vmem:[#allocation33_spill] sm:$0xff] %v5378_v33  ;;  %v939_v52 = vld [vmem:[#allocation19 + $0x1d0] sm:$0xff] }
0x1075   :  { %3698 = vmatpush1.msra.mxu1 %v885_v58  ;;  %3787 = vmatpush1.msra.mxu0 %v5351_v61  ;;  %v5381_v58 = vld [vmem:[#allocation19 + $0x3d0] sm:$0xff] }
0x1076   :  { %3699 = vmatprep.subr.mxu1 %v884_v39  ;;  %3788 = vmatprep.subr.mxu0 %v5354_v51  ;;  %5741 = vst [vmem:[#allocation34_spill] sm:$0xff] %v5381_v58  ;;  %v938_v39 = vld [vmem:[#allocation19 + $0x1c8] sm:$0xff] }
0x1077   :  { %3700 = vmatpush1.msra.mxu1 %v883_v56  ;;  %3789 = vmatpush1.msra.mxu0 %v5357_v24  ;;  %v5384_v56 = vld [vmem:[#allocation19 + $0x3c8] sm:$0xff] }
0x1078   :  { %3701 = vmatprep.subr.mxu1 %v882_v38  ;;  %3790 = vmatprep.subr.mxu0 %v5360_v45  ;;  %5742 = vst [vmem:[#allocation35_spill] sm:$0xff] %v5384_v56  ;;  %v937_v38 = vld [vmem:[#allocation19 + $0x1c0] sm:$0xff] }
0x1079   :  { %3702 = vmatpush1.msra.mxu1 %v881_v53  ;;  %3791 = vmatpush1.msra.mxu0 %v5363_v41  ;;  %v5387_v53 = vld [vmem:[#allocation19 + $0x3c0] sm:$0xff] }
0x107a   :  { %3703 = vmatprep.subr.mxu1 %v944_v36  ;;  %3792 = vmatprep.subr.mxu0 %v5366_v20  ;;  %5743 = vst [vmem:[#allocation36_spill] sm:$0xff] %v5387_v53  ;;  %v936_v36 = vld [vmem:[#allocation19 + $0x1b8] sm:$0xff] }
0x107b   :  { %3704 = vmatpush2.msra.mxu1 %v943_v0  ;;  %3793 = vmatpush2.msra.mxu0 %v5369_v5  ;;  %v5390_v0 = vld [vmem:[#allocation19 + $0x3b8] sm:$0xff] }
0x107c   :  { %3705 = vmatprep.subr.mxu1 %v942_v6  ;;  %3794 = vmatprep.subr.mxu0 %v5372_v12  ;;  %5744 = vst [vmem:[#allocation37_spill] sm:$0xff] %v5390_v0  ;;  %v935_v6 = vld [vmem:[#allocation19 + $0x1b0] sm:$0xff] }
0x107d   :  { %3706 = vmatpush2.msra.mxu1 %v941_v17  ;;  %3795 = vmatpush2.msra.mxu0 %v5375_v44  ;;  %v5393_v17 = vld [vmem:[#allocation19 + $0x3b0] sm:$0xff] }
0x107e   :  { %3707 = vmatprep.subr.mxu1 %v940_v50  ;;  %3796 = vmatprep.subr.mxu0 %v5378_v33  ;;  %5745 = vst [vmem:[#allocation38_spill] sm:$0xff] %v5393_v17  ;;  %v934_v50 = vld [vmem:[#allocation19 + $0x1a8] sm:$0xff] }
0x107f   :  { %3708 = vmatpush2.msra.mxu1 %v939_v52  ;;  %3797 = vmatpush2.msra.mxu0 %v5381_v58  ;;  %v933_v52 = vld [vmem:[#allocation19 + $0x1a0] sm:$0xff] }
0x1080   :  { %3709 = vmatprep.subr.mxu1 %v938_v39  ;;  %3798 = vmatprep.subr.mxu0 %v5384_v56  ;;  %v932_v39 = vld [vmem:[#allocation19 + $0x198] sm:$0xff] }
0x1081   :  { %3710 = vmatpush2.msra.mxu1 %v937_v38  ;;  %3799 = vmatpush2.msra.mxu0 %v5387_v53  ;;  %v931_v38 = vld [vmem:[#allocation19 + $0x190] sm:$0xff] }
0x1082   :  { %3711 = vmatprep.subr.mxu1 %v936_v36  ;;  %3800 = vmatprep.subr.mxu0 %v5390_v0  ;;  %v930_v36 = vld [vmem:[#allocation19 + $0x188] sm:$0xff] }
0x1083   :  { %3712 = vmatpush2.msra.mxu1 %v935_v6  ;;  %3801 = vmatpush2.msra.mxu0 %v5393_v17  ;;  %v5408_v0 = vld [vmem:[#allocation19 + $0x388] sm:$0xff]  ;;  %v929_v6 = vld [vmem:[#allocation19 + $0x180] sm:$0xff] }
0x1084   :  { %3713 = vmatprep.subr.mxu1 %v934_v50  ;;  %3802 = vmatprep.subr.mxu0 %v5396_v9  ;;  %5750 = vst [vmem:[#allocation43_spill] sm:$0xff] %v5408_v0  ;;  %v5411_v17 = vld [vmem:[#allocation19 + $0x380] sm:$0xff]  ;;  %v928_v50 = vld [vmem:[#allocation19 + $0x178] sm:$0xff] }
0x1085   :  { %3714 = vmatpush2.msra.mxu1 %v933_v52  ;;  %3803 = vmatpush2.msra.mxu0 %v5399_v19  ;;  %5751 = vst [vmem:[#allocation44_spill] sm:$0xff] %v5411_v17  ;;  %v5414_v9 = vld [vmem:[#allocation19 + $0x378] sm:$0xff]  ;;  %v927_v52 = vld [vmem:[#allocation19 + $0x170] sm:$0xff] }
0x1086   :  { %3715 = vmatprep.subr.mxu1 %v932_v39  ;;  %3804 = vmatprep.subr.mxu0 %v5402_v16  ;;  %5752 = vst [vmem:[#allocation45_spill] sm:$0xff] %v5414_v9  ;;  %v5417_v19 = vld [vmem:[#allocation19 + $0x370] sm:$0xff]  ;;  %v926_v39 = vld [vmem:[#allocation19 + $0x168] sm:$0xff] }
0x1087   :  { %3716 = vmatpush2.msra.mxu1 %v931_v38  ;;  %3805 = vmatpush2.msra.mxu0 %v5405_v8  ;;  %5753 = vst [vmem:[#allocation46_spill] sm:$0xff] %v5417_v19  ;;  %v5420_v16 = vld [vmem:[#allocation19 + $0x368] sm:$0xff]  ;;  %v925_v38 = vld [vmem:[#allocation19 + $0x160] sm:$0xff] }
0x1088   :  { %3717 = vmatprep.subr.mxu1 %v930_v36  ;;  %3806 = vmatprep.subr.mxu0 %v5408_v0  ;;  %5754 = vst [vmem:[#allocation47_spill] sm:$0xff] %v5420_v16  ;;  %v5423_v8 = vld [vmem:[#allocation19 + $0x360] sm:$0xff]  ;;  %v924_v36 = vld [vmem:[#allocation19 + $0x158] sm:$0xff] }
0x1089   :  { %3718 = vmatpush2.msra.mxu1 %v929_v6  ;;  %3807 = vmatpush2.msra.mxu0 %v5411_v17  ;;  %5755 = vst [vmem:[#allocation48_spill] sm:$0xff] %v5423_v8  ;;  %v5426_v0 = vld [vmem:[#allocation19 + $0x358] sm:$0xff]  ;;  %v923_v6 = vld [vmem:[#allocation19 + $0x150] sm:$0xff] }
0x108a   :  { %3719 = vmatprep.subr.mxu1 %v928_v50  ;;  %3808 = vmatprep.subr.mxu0 %v5414_v9  ;;  %5756 = vst [vmem:[#allocation49_spill] sm:$0xff] %v5426_v0  ;;  %v5429_v17 = vld [vmem:[#allocation19 + $0x350] sm:$0xff]  ;;  %v922_v50 = vld [vmem:[#allocation19 + $0x148] sm:$0xff] }
0x108b   :  { %3720 = vmatpush2.msra.mxu1 %v927_v52  ;;  %3809 = vmatpush2.msra.mxu0 %v5417_v19  ;;  %5757 = vst [vmem:[#allocation50_spill] sm:$0xff] %v5429_v17  ;;  %v5432_v9 = vld [vmem:[#allocation19 + $0x348] sm:$0xff]  ;;  %v921_v52 = vld [vmem:[#allocation19 + $0x140] sm:$0xff] }
0x108c   :  { %3721 = vmatprep.subr.mxu1 %v926_v39  ;;  %3810 = vmatprep.subr.mxu0 %v5420_v16  ;;  %5758 = vst [vmem:[#allocation51_spill] sm:$0xff] %v5432_v9  ;;  %v5435_v19 = vld [vmem:[#allocation19 + $0x340] sm:$0xff]  ;;  %v920_v39 = vld [vmem:[#allocation19 + $0x138] sm:$0xff] }
0x108d   :  { %3722 = vmatpush2.msra.mxu1 %v925_v38  ;;  %3811 = vmatpush2.msra.mxu0 %v5423_v8  ;;  %5759 = vst [vmem:[#allocation52_spill] sm:$0xff] %v5435_v19  ;;  %v5440_v38 = vld [vmem:[#allocation19 + $0x338] sm:$0xff] }
0x108e   :  { %3723 = vmatprep.subr.mxu1 %v924_v36  ;;  %3812 = vmatprep.subr.mxu0 %v5426_v0  ;;  %5760 = vst [vmem:[#allocation53_spill] sm:$0xff] %v5440_v38  ;;  %v919_v36 = vld [vmem:[#allocation19 + $0x130] sm:$0xff] }
0x108f   :  { %3724 = vmatpush2.msra.mxu1 %v923_v6  ;;  %3813 = vmatpush2.msra.mxu0 %v5429_v17  ;;  %v5443_v0 = vld [vmem:[#allocation19 + $0x330] sm:$0xff]  ;;  %v918_v6 = vld [vmem:[#allocation19 + $0x128] sm:$0xff] }
0x1090   :  { %3725 = vmatprep.subr.mxu1 %v922_v50  ;;  %3814 = vmatprep.subr.mxu0 %v5432_v9  ;;  %5761 = vst [vmem:[#allocation54_spill] sm:$0xff] %v5443_v0  ;;  %v5446_v17 = vld [vmem:[#allocation19 + $0x328] sm:$0xff]  ;;  %v917_v50 = vld [vmem:[#allocation19 + $0x120] sm:$0xff] }
0x1091   :  { %3726 = vmatpush2.msra.mxu1 %v921_v52  ;;  %3815 = vmatpush2.msra.mxu0 %v5435_v19  ;;  %5762 = vst [vmem:[#allocation55_spill] sm:$0xff] %v5446_v17  ;;  %v5449_v52 = vld [vmem:[#allocation19 + $0x320] sm:$0xff] }
0x1092   :  { %3727 = vmatprep.subr.mxu1 %v920_v39  ;;  %3816 = vmatprep.subr.mxu0 %v5440_v38  ;;  %5763 = vst [vmem:[#allocation56_spill] sm:$0xff] %v5449_v52  ;;  %v916_v39 = vld [vmem:[#allocation19 + $0x118] sm:$0xff] }
0x1093   :  { %3728 = vmatpush2.msra.mxu1 %v919_v36  ;;  %3817 = vmatpush2.msra.mxu0 %v5443_v0  ;;  %v5452_v38 = vld [vmem:[#allocation19 + $0x318] sm:$0xff]  ;;  %v915_v36 = vld [vmem:[#allocation19 + $0x110] sm:$0xff] }
0x1094   :  { %3729 = vmatprep.subr.mxu1 %v918_v6  ;;  %3818 = vmatprep.subr.mxu0 %v5446_v17  ;;  %5764 = vst [vmem:[#allocation57_spill] sm:$0xff] %v5452_v38  ;;  %v5455_v0 = vld [vmem:[#allocation19 + $0x310] sm:$0xff]  ;;  %v914_v6 = vld [vmem:[#allocation19 + $0x108] sm:$0xff] }
0x1095   :  { %3730 = vmatpush2.msra.mxu1 %v917_v50  ;;  %3819 = vmatpush2.msra.mxu0 %v5449_v52  ;;  %5765 = vst [vmem:[#allocation58_spill] sm:$0xff] %v5455_v0  ;;  %v5458_v17 = vld [vmem:[#allocation19 + $0x308] sm:$0xff]  ;;  %v913_v50 = vld [vmem:[#allocation19 + $0x100] sm:$0xff] }
0x1096   :  { %3731 = vmatprep.subr.mxu1 %v916_v39  ;;  %3820 = vmatprep.subr.mxu0 %v5452_v38  ;;  %5766 = vst [vmem:[#allocation59_spill] sm:$0xff] %v5458_v17  ;;  %v5461_v52 = vld [vmem:[#allocation19 + $0x300] sm:$0xff] }
0x1097   :  { %3732 = vmatpush2.msra.mxu1 %v915_v36  ;;  %3821 = vmatpush2.msra.mxu0 %v5455_v0  ;;  %5767 = vst [vmem:[#allocation60_spill] sm:$0xff] %v5461_v52 }
0x1098   :  { %3733 = vmatprep.subr.mxu1 %v914_v6  ;;  %3822 = vmatprep.subr.mxu0 %v5458_v17 }
0x1099   :  { %3734 = vmatpush2.msra.mxu1 %v913_v50  ;;  %3823 = vmatpush2.msra.mxu0 %v5461_v52 }
0x109a   :  { %4165 = vmatprep.subr.mxu1 %v5272_v21 }
0x10be   :  { %v3343_v39 = vpop.xlane.xlu0 %3342 }
0x10bf   :  { %v3349_v38 = vmul.f32 0.00390625, %v3343_v39 }
0x10c0   :  { %v3367_v19 = vpop.xlane.xlu1 %3366 }
0x10c1   :  { %v3373_v36 = vmul.f32 0.00390625, %v3367_v19  ;;  %v3377_v9 = vmul.f32 %v3349_v38, %v3349_v38  ;;  %v3387_v50 = vsub.f32 %v5200_v46, %v3349_v38  ;;  %v3388_v21 = vsub.f32 %v5204_v49, %v3349_v38 }
0x10c2   :  { %v3346_v0 = vpop.xlane.xlu0 %3345 }
0x10c3   :  { %v3381_v8 = vsub.f32 %v3373_v36, %v3377_v9  ;;  %v3350_v16 = vmul.f32 0.00390625, %v3346_v0 }
0x10c4   :  { %v3370_v53 = vpop.xlane.xlu1 %3369 }
0x10c5   :  { %v3393_v6 = vadd.f32 1e-05, %v3381_v8  ;;  %v3374_v56 = vmul.f32 0.00390625, %v3370_v53  ;;  %v3378_v17 = vmul.f32 %v3350_v16, %v3350_v16  ;;  %v3389_v0 = vsub.f32 %v5210_v54, %v3350_v16 }
0x10c6   :  { %v3390_v8 = vsub.f32 %v5218_v34, %v3350_v16 }
0x10c7   :  { %4323 = vrsqrt.f32 %v3393_v6  ;;  %v3382_v58 = vsub.f32 %v3374_v56, %v3378_v17 }
0x10c9   :  { %v3394_v33 = vadd.f32 1e-05, %v3382_v58 }
0x10cb   :  { %4325 = vrsqrt.f32 %v3394_v33 }
0x10d4   :  { %v4324_v52 = vpop.eup %4323 }
0x10d5   :  { %v3404_v39 = vmul.f32 %v4324_v52, %v3388_v21  ;;  %v3403_v44 = vmul.f32 %v4324_v52, %v3387_v50 }
0x10d7   :  { %v3423_v19 = vmul.f32 %v5238_v59, %v3404_v39  ;;  %v3422_v9 = vmul.f32 %v5235_v3, %v3403_v44 }
0x10d8   :  { %v4326_v53 = vpop.eup %4325 }
0x10d9   :  { %v5472_v56 = vadd.f32 %v5244_v4, %v3423_v19  ;;  %v5475_v33 = vadd.f32 %v5241_v2, %v3422_v9  ;;  %v3406_v46 = vmul.f32 %v4326_v53, %v3390_v8  ;;  %v3405_v49 = vmul.f32 %v4326_v53, %v3389_v0 }
0x10db   :  { %3542 = vmatprep.mubr.f32.mxu1 %v5472_v56  ;;  %3631 = vmatprep.mubr.f32.mxu0 %v5472_v56  ;;  %v3425_v54 = vmul.f32 %v5238_v59, %v3406_v46  ;;  %v3424_v34 = vmul.f32 %v5235_v3, %v3405_v49  ;;  %v880_v59 = vld [vmem:[%s5683_s19] sm:$0xf] }
0x10dc   :  { %3543 = vmatmul.mubr.f32.gmra.mxu1 %v5475_v33  ;;  %3632 = vmatmul.mubr.f32.gmra.mxu0 %v5475_v33  ;;  %v5497_v3 = vrot.slane %v880_v59, %v4819_v15  ;;  %v5506_v58 = vrot.slane %v880_v59, %v4822_v1 }
0x10dd   :  { %v5484_v16 = vadd.f32 %v5244_v4, %v3425_v54  ;;  %v5487_v44 = vadd.f32 %v5241_v2, %v3424_v34  ;;  %v5500_v4 = vrot.slane %v880_v59, %v4829_v10  ;;  %v5503_v2 = vrot.slane %v880_v59, %v4843_v26 }
0x10df   :  { %3548 = vmatprep.mubr.f32.mxu1 %v5484_v16  ;;  %3637 = vmatprep.mubr.f32.mxu0 %v5484_v16 }
0x10e0   :  { %3549 = vmatmul.mubr.f32.gmra.mxu1 %v5487_v44  ;;  %3638 = vmatmul.mubr.f32.gmra.mxu0 %v5487_v44 }
0x1118   :  { %v3532_v17 = vpop.f32.mrf.mxu1  ;;  %v3621_v38 = vpop.f32.mrf.mxu0 }
0x1119   :  { %v3533_v52 = vadd.f32 %v3532_v17, %v5497_v3  ;;  %v3622_v36 = vadd.f32 %v3621_v38, %v5500_v4 }
0x111a   :  { %v3534_v6 = vpop.f32.mrf.mxu1  ;;  %v3623_v50 = vpop.f32.mrf.mxu0 }
0x111b   :  { %v3535_v21 = vadd.f32 %v3534_v6, %v5503_v2  ;;  %v3624_v39 = vadd.f32 %v3623_v50, %v5506_v58  ;;  %v3644_v8 = vmax.f32 %v3533_v52, 0.0  ;;  %v3646_v53 = vmax.f32 %v3622_v36, 0.0 }
0x111c   :  { %v3538_v9 = vpop.f32.mrf.mxu1  ;;  %v3627_v0 = vpop.f32.mrf.mxu0 }
0x111d   :  { %v3645_v10 = vmax.f32 %v3535_v21, 0.0  ;;  %v3647_v19 = vmax.f32 %v3624_v39, 0.0  ;;  %v3539_v1 = vadd.f32 %v3538_v9, %v5497_v3  ;;  %v3628_v46 = vadd.f32 %v3627_v0, %v5500_v4 }
0x111e   :  { %v3540_v49 = vpop.f32.mrf.mxu1  ;;  %v3629_v54 = vpop.f32.mrf.mxu0 }
0x111f   :  { %3735 = vmatprep.mubr.f32.mxu1 %v3645_v10  ;;  %3824 = vmatprep.mubr.f32.mxu0 %v3647_v19  ;;  %v3541_v34 = vadd.f32 %v3540_v49, %v5503_v2  ;;  %v3630_v59 = vadd.f32 %v3629_v54, %v5506_v58  ;;  %v3648_v52 = vmax.f32 %v3539_v1, 0.0  ;;  %v3650_v36 = vmax.f32 %v3628_v46, 0.0 }
0x1120   :  { %3736 = vmatmul.mubr.f32.vlgmr.msra.gmra.mxu1 %v3644_v8  ;;  %3825 = vmatmul.mubr.f32.vlgmr.msra.gmra.mxu0 %v3646_v53 }
0x1121   :  { %4197 = vmatpush1.msra.mxu1 %v5275_v55  ;;  %v3649_v17 = vmax.f32 %v3541_v34, 0.0  ;;  %v3651_v38 = vmax.f32 %v3630_v59, 0.0  ;;  %v5768_v55 = vld [vmem:[#allocation32_spill] sm:$0xff] }
0x1122   :  { %4166 = vmatprep.subr.mxu1 %v5278_v31  ;;  %v5769_v31 = vld [vmem:[#allocation33_spill] sm:$0xff] }
0x1123   :  { %4198 = vmatpush1.msra.mxu1 %v5280_v13  ;;  %3741 = vmatprep.mubr.f32.mxu1 %v3649_v17  ;;  %v5770_v13 = vld [vmem:[#allocation34_spill] sm:$0xff] }
0x1124   :  { %3830 = vmatprep.mubr.f32.mxu0 %v3651_v38  ;;  %3742 = vmatmul.mubr.f32.gmra.mxu1 %v3648_v52 }
0x1125   :  { %3831 = vmatmul.mubr.f32.gmra.mxu0 %v3650_v36  ;;  %4167 = vmatprep.subr.mxu1 %v5283_v48  ;;  %v5771_v48 = vld [vmem:[#allocation35_spill] sm:$0xff] }
0x1126   :  { %4199 = vmatpush1.msra.mxu1 %v5286_v43  ;;  %v5772_v43 = vld [vmem:[#allocation36_spill] sm:$0xff] }
0x1127   :  { %4168 = vmatprep.subr.mxu1 %v5288_v22  ;;  %v5773_v22 = vld [vmem:[#allocation37_spill] sm:$0xff] }
0x1128   :  { %4200 = vmatpush1.msra.mxu1 %v5291_v62  ;;  %v5774_v62 = vld [vmem:[#allocation38_spill] sm:$0xff] }
0x1129   :  { %4169 = vmatprep.subr.mxu1 %v5294_v32  ;;  %v5775_v32 = vld [vmem:[#allocation39_spill] sm:$0xff] }
0x112a   :  { %4201 = vmatpush1.msra.mxu1 %v5297_v23  ;;  %v5776_v23 = vld [vmem:[#allocation40_spill] sm:$0xff] }
0x112b   :  { %4170 = vmatprep.subr.mxu1 %v5300_v60  ;;  %v5777_v60 = vld [vmem:[#allocation41_spill] sm:$0xff] }
0x112c   :  { %4202 = vmatpush1.msra.mxu1 %v5303_v27  ;;  %v5778_v27 = vld [vmem:[#allocation42_spill] sm:$0xff] }
0x112d   :  { %4171 = vmatprep.subr.mxu1 %v5306_v28  ;;  %v5779_v28 = vld [vmem:[#allocation43_spill] sm:$0xff] }
0x112e   :  { %4203 = vmatpush1.msra.mxu1 %v5309_v63  ;;  %v5780_v63 = vld [vmem:[#allocation44_spill] sm:$0xff] }
0x112f   :  { %4172 = vmatprep.subr.mxu1 %v5312_v25  ;;  %v5781_v25 = vld [vmem:[#allocation45_spill] sm:$0xff] }
0x1130   :  { %4204 = vmatpush1.msra.mxu1 %v5315_v42  ;;  %v5782_v42 = vld [vmem:[#allocation46_spill] sm:$0xff] }
0x1131   :  { %4173 = vmatprep.subr.mxu1 %v5318_v37  ;;  %v5783_v37 = vld [vmem:[#allocation47_spill] sm:$0xff] }
0x1132   :  { %4205 = vmatpush1.msra.mxu1 %v5321_v57  ;;  %v5784_v57 = vld [vmem:[#allocation48_spill] sm:$0xff] }
0x1133   :  { %4174 = vmatprep.subr.mxu1 %v5324_v14  ;;  %v5785_v14 = vld [vmem:[#allocation49_spill] sm:$0xff] }
0x1134   :  { %4206 = vmatpush1.msra.mxu1 %v5327_v11  ;;  %v5786_v11 = vld [vmem:[#allocation50_spill] sm:$0xff] }
0x1135   :  { %4175 = vmatprep.subr.mxu1 %v5330_v30  ;;  %v5787_v30 = vld [vmem:[#allocation51_spill] sm:$0xff] }
0x1136   :  { %4207 = vmatpush1.msra.mxu1 %v5333_v7  ;;  %v5788_v7 = vld [vmem:[#allocation52_spill] sm:$0xff] }
0x1137   :  { %4176 = vmatprep.subr.mxu1 %v5336_v18  ;;  %v5789_v18 = vld [vmem:[#allocation53_spill] sm:$0xff] }
0x1138   :  { %4208 = vmatpush1.msra.mxu1 %v5339_v40  ;;  %v5790_v40 = vld [vmem:[#allocation54_spill] sm:$0xff] }
0x1139   :  { %4177 = vmatprep.subr.mxu1 %v5342_v29  ;;  %v5791_v29 = vld [vmem:[#allocation55_spill] sm:$0xff] }
0x113a   :  { %4209 = vmatpush1.msra.mxu1 %v5345_v47  ;;  %v5792_v47 = vld [vmem:[#allocation56_spill] sm:$0xff] }
0x113b   :  { %4178 = vmatprep.subr.mxu1 %v5348_v35  ;;  %v5793_v35 = vld [vmem:[#allocation57_spill] sm:$0xff] }
0x113c   :  { %4210 = vmatpush1.msra.mxu1 %v5351_v61  ;;  %v5794_v61 = vld [vmem:[#allocation58_spill] sm:$0xff] }
0x113d   :  { %4179 = vmatprep.subr.mxu1 %v5354_v51  ;;  %v5795_v51 = vld [vmem:[#allocation59_spill] sm:$0xff] }
0x113e   :  { %4211 = vmatpush1.msra.mxu1 %v5357_v24  ;;  %v5796_v24 = vld [vmem:[#allocation60_spill] sm:$0xff] }
0x113f   :  { %4180 = vmatprep.subr.mxu1 %v5360_v45 }
0x1140   :  { %4212 = vmatpush1.msra.mxu1 %v5363_v41 }
0x1141   :  { %4181 = vmatprep.subr.mxu1 %v5366_v20 }
0x1142   :  { %4213 = vmatpush2.msra.mxu1 %v5369_v5 }
0x1143   :  { %4182 = vmatprep.subr.mxu1 %v5372_v12 }
0x1144   :  { %4214 = vmatpush2.msra.mxu1 %v5768_v55 }
0x1145   :  { %4183 = vmatprep.subr.mxu1 %v5769_v31 }
0x1146   :  { %4215 = vmatpush2.msra.mxu1 %v5770_v13 }
0x1147   :  { %4184 = vmatprep.subr.mxu1 %v5771_v48 }
0x1148   :  { %4216 = vmatpush2.msra.mxu1 %v5772_v43 }
0x1149   :  { %4185 = vmatprep.subr.mxu1 %v5773_v22 }
0x114a   :  { %4217 = vmatpush2.msra.mxu1 %v5774_v62 }
0x114b   :  { %4186 = vmatprep.subr.mxu1 %v5775_v32 }
0x114c   :  { %4218 = vmatpush2.msra.mxu1 %v5776_v23 }
0x114d   :  { %4187 = vmatprep.subr.mxu1 %v5777_v60  ;;  %v5797_v60 = vld [vmem:[#allocation29_spill] sm:$0xff] }
0x114e   :  { %4219 = vmatpush2.msra.mxu1 %v5778_v27 }
0x114f   :  { %4188 = vmatprep.subr.mxu1 %v5779_v28  ;;  %v5798_v28 = vld [vmem:[#allocation28_spill] sm:$0xff] }
0x1150   :  { %4220 = vmatpush2.msra.mxu1 %v5780_v63 }
0x1151   :  { %4189 = vmatprep.subr.mxu1 %v5781_v25 }
0x1152   :  { %4221 = vmatpush2.msra.mxu1 %v5782_v42 }
0x1153   :  { %4190 = vmatprep.subr.mxu1 %v5783_v37 }
0x1154   :  { %4222 = vmatpush2.msra.mxu1 %v5784_v57 }
0x1155   :  { %4191 = vmatprep.subr.mxu1 %v5785_v14 }
0x1156   :  { %4223 = vmatpush2.msra.mxu1 %v5786_v11 }
0x1157   :  { %4192 = vmatprep.subr.mxu1 %v5787_v30 }
0x1158   :  { %4224 = vmatpush2.msra.mxu1 %v5788_v7 }
0x1159   :  { %4193 = vmatprep.subr.mxu1 %v5789_v18  ;;  %v5799_v18 = vld [vmem:[#allocation31_spill] sm:$0xff] }
0x115a   :  { %4225 = vmatpush2.msra.mxu1 %v5790_v40 }
0x115b   :  { %4194 = vmatprep.subr.mxu1 %v5791_v29  ;;  %v5800_v29 = vld [vmem:[#allocation30_spill] sm:$0xff] }
0x115c   :  { %4226 = vmatpush2.msra.mxu1 %v5792_v47 }
0x115d   :  { %4195 = vmatprep.subr.mxu1 %v5793_v35 }
0x115e   :  { %4227 = vmatpush2.msra.mxu1 %v5794_v61 }
0x115f   :  { %4196 = vmatprep.subr.mxu1 %v5795_v51 }
0x1160   :  { %4228 = vmatpush2.msra.mxu1 %v5796_v24 }
0x119c   :  { %v3544_v45 = vpop.f32.mrf.mxu1  ;;  %v3633_v41 = vpop.f32.mrf.mxu0 }
0x119d   :  { %v3545_v20 = vadd.f32 %v3544_v45, %v5497_v3  ;;  %v3634_v46 = vadd.f32 %v3633_v41, %v5500_v4 }
0x119e   :  { %v3546_v5 = vpop.f32.mrf.mxu1  ;;  %v3635_v12 = vpop.f32.mrf.mxu0 }
0x119f   :  { %v3547_v6 = vadd.f32 %v3546_v5, %v5503_v2  ;;  %v3652_v10 = vmax.f32 %v3545_v20, 0.0  ;;  %v3636_v0 = vadd.f32 %v3635_v12, %v5506_v58  ;;  %v3654_v59 = vmax.f32 %v3634_v46, 0.0 }
0x11a0   :  { %v3550_v21 = vpop.f32.mrf.mxu1  ;;  %v3639_v39 = vpop.f32.mrf.mxu0 }
0x11a1   :  { %v3653_v50 = vmax.f32 %v3547_v6, 0.0  ;;  %v3551_v19 = vadd.f32 %v3550_v21, %v5497_v3  ;;  %v3655_v54 = vmax.f32 %v3636_v0, 0.0  ;;  %v3640_v3 = vadd.f32 %v3639_v39, %v5500_v4 }
0x11a2   :  { %v3552_v9 = vpop.f32.mrf.mxu1  ;;  %v3641_v53 = vpop.f32.mrf.mxu0 }
0x11a3   :  { %3747 = vmatprep.mubr.f32.mxu1 %v3653_v50  ;;  %v3553_v8 = vadd.f32 %v3552_v9, %v5503_v2  ;;  %v3656_v49 = vmax.f32 %v3551_v19, 0.0  ;;  %v3642_v34 = vadd.f32 %v3641_v53, %v5506_v58  ;;  %v3658_v38 = vmax.f32 %v3640_v3, 0.0  ;;  %v1009_v2 = vld [vmem:[%s5685_s21] sm:$0x3] }
0x11a4   :  { %3748 = vmatmul.mubr.f32.gmra.mxu1 %v3652_v10  ;;  %v3664_v52 = vrot.slane %v1009_v2, %v4819_v15  ;;  %v3668_v36 = vrot.slane %v1009_v2, %v4843_v26 }
0x11a5   :  { %v3657_v1 = vmax.f32 %v3553_v8, 0.0  ;;  %v3659_v17 = vmax.f32 %v3642_v34, 0.0 }
0x11a7   :  { %3753 = vmatprep.mubr.f32.mxu1 %v3657_v1 }
0x11a8   :  { %3754 = vmatmul.mubr.f32.gmra.mxu1 %v3656_v49 }
0x11a9   :  { %3836 = vmatprep.mubr.f32.mxu1 %v3655_v54 }
0x11ac   :  { %3837 = vmatmul.mubr.f32.vlgmr.msra.gmra.mxu1 %v3654_v59 }
0x11ad   :  { %3842 = vmatprep.mubr.f32.mxu1 %v3659_v17 }
0x11b0   :  { %3843 = vmatmul.mubr.f32.gmra.mxu1 %v3658_v38 }
0x11e0   :  { %v3737_v58 = vpop.f32.mrf.mxu1  ;;  %v3826_v55 = vpop.f32.mrf.mxu0 }
0x11e1   :  { %v3738_v31 = vadd.f32 %v3737_v58, %v3664_v52 }
0x11e2   :  { %v3739_v13 = vpop.f32.mrf.mxu1  ;;  %v3828_v48 = vpop.f32.mrf.mxu0 }
0x11e3   :  { %v3827_v43 = vadd.f32 %v3826_v55, %v3738_v31  ;;  %v3740_v4 = vadd.f32 %v3739_v13, %v3668_v36 }
0x11e4   :  { %v3743_v62 = vpop.f32.mrf.mxu1 }
0x11e5   :  { %v3829_v22 = vadd.f32 %v3828_v48, %v3740_v4  ;;  %v3832_v32 = vpop.f32.mrf.mxu0  ;;  %v3744_v23 = vadd.f32 %v3743_v62, %v3664_v52  ;;  %v5593_v27 = vadd.f32 %v3827_v43, %v5797_v60 }
0x11e6   :  { %v3745_v25 = vpop.f32.mrf.mxu1 }
0x11e7   :  { %v5596_v63 = vadd.f32 %v3829_v22, %v5798_v28  ;;  %v3833_v42 = vadd.f32 %v3832_v32, %v3744_v23  ;;  %v3746_v37 = vadd.f32 %v3745_v25, %v3668_v36  ;;  %v3834_v57 = vpop.f32.mrf.mxu0  ;;  %v3873_v7 = vmul.f32 %v5593_v27, %v5593_v27  ;;  %v750_v28 = vld [vmem:[%s5680_s16] sm:$0x3]  ;;  %s4614_s16 = smov [#allocation20]  }
0x11e8   :  { %v751_v25 = vld [vmem:[%s5681_s17] sm:$0x3]  ;;  %s3980_s17 = sshll.u32 %s4614_s16, 4  ;;  %s3981_s17 = int_to_ptr.vmem [resolvable:$true] %s3980_s17 }
0x11e9   :  { %v3857_v14 = vadd.f32 %v5596_v63, %v5593_v27  ;;  %v3874_v11 = vmul.f32 %v5596_v63, %v5596_v63  ;;  %v3835_v30 = vadd.f32 %v3834_v57, %v3746_v37  ;;  %v5605_v40 = vadd.f32 %v3833_v42, %v5799_v18  ;;  %s4563_s28 = scalar_lea.vmem %s3981_s17, 1024  ;;  %p4568_p0 = scmp.lt.s32.totalorder %s3981_s17, %s3981_s17 }
0x11ea   :  { %v3933_v57 = vrot.slane %v750_v28, %v4819_v15  ;;  %p4564_p13 = scmp.ne.s32.totalorder %s3981_s17, %s4563_s28  ;;  %p4569_p1 = scmp.lt.s32.totalorder %s4563_s28, %s4563_s28 }
0x11eb   :  { %3858 = vadd.xlane.f32.xlu0 %v3857_v14  ;;  %v5608_v47 = vadd.f32 %v3835_v30, %v5800_v29  ;;  %v3881_v35 = vadd.f32 %v3874_v11, %v3873_v7  ;;  %v3875_v24 = vmul.f32 %v5605_v40, %v5605_v40  ;;  %v3937_v14 = vrot.slane %v750_v28, %v4843_v26 }
0x11ec   :  { %v3952_v30 = vrot.slane %v751_v25, %v4819_v15  ;;  %v3956_v7 = vrot.slane %v751_v25, %v4843_v26  ;;  %p4570_p2 = por %p4569_p1, %p4568_p0 }
0x11ed   :  { %v3860_v61 = vadd.f32 %v5608_v47, %v5605_v40  ;;  %v3876_v51 = vmul.f32 %v5608_v47, %v5608_v47 }
0x11ee   :  { %p4571_p3 = pnand %p4570_p2, %p4564_p13 }
0x11ef   :  { %3882 = vadd.xlane.f32.xlu0 %v3881_v35  ;;  %3861 = vadd.xlane.f32.xlu1 %v3860_v61  ;;  %v3884_v45 = vadd.f32 %v3876_v51, %v3875_v24 }
0x11f3   :  { %3885 = vadd.xlane.f32.xlu1 %v3884_v45 }
0x1264   :  { %v3749_v41 = vpop.f32.mrf.mxu1 }
0x1265   :  { %v3750_v6 = vadd.f32 %v3749_v41, %v3664_v52 }
0x1266   :  { %v3751_v20 = vpop.f32.mrf.mxu1 }
0x1267   :  { %v3752_v21 = vadd.f32 %v3751_v20, %v3668_v36 }
0x1268   :  { %v3755_v5 = vpop.f32.mrf.mxu1 }
0x1269   :  { %v3756_v19 = vadd.f32 %v3755_v5, %v3664_v52 }
0x126a   :  { %v3757_v12 = vpop.f32.mrf.mxu1 }
0x126b   :  { %v3758_v8 = vadd.f32 %v3757_v12, %v3668_v36 }
0x126c   :  { %v3838_v50 = vpop.f32.mrf.mxu1 }
0x126d   :  { %v3839_v39 = vadd.f32 %v3838_v50, %v3750_v6 }
0x126e   :  { %v3840_v10 = vpop.f32.mrf.mxu1 }
0x126f   :  { %v3841_v9 = vadd.f32 %v3840_v10, %v3752_v21  ;;  %v5617_v53 = vadd.f32 %v3839_v39, %v5475_v33 }
0x1270   :  { %v3844_v0 = vpop.f32.mrf.mxu1 }
0x1271   :  { %v5620_v1 = vadd.f32 %v3841_v9, %v5472_v56  ;;  %v3845_v46 = vadd.f32 %v3844_v0, %v3756_v19  ;;  %v3877_v56 = vmul.f32 %v5617_v53, %v5617_v53 }
0x1272   :  { %v3846_v49 = vpop.f32.mrf.mxu1 }
0x1273   :  { %v3847_v54 = vadd.f32 %v3846_v49, %v3758_v8  ;;  %v3863_v59 = vadd.f32 %v5620_v1, %v5617_v53  ;;  %v3878_v3 = vmul.f32 %v5620_v1, %v5620_v1  ;;  %v5627_v38 = vadd.f32 %v3845_v46, %v5487_v44 }
0x1274   :  { %v3859_v34 = vpop.xlane.xlu0 %3858 }
0x1275   :  { %v3869_v17 = vmul.f32 0.00390625, %v3859_v34  ;;  %v5630_v33 = vadd.f32 %v3847_v54, %v5484_v16  ;;  %3864 = vadd.xlane.f32.xlu0 %v3863_v59  ;;  %v3887_v52 = vadd.f32 %v3878_v3, %v3877_v56  ;;  %v3879_v16 = vmul.f32 %v5627_v38, %v5627_v38 }
0x1277   :  { %v3866_v36 = vadd.f32 %v5630_v33, %v5627_v38  ;;  %v3880_v58 = vmul.f32 %v5630_v33, %v5630_v33  ;;  %v3897_v31 = vmul.f32 %v3869_v17, %v3869_v17  ;;  %v3905_v42 = vsub.f32 %v5593_v27, %v3869_v17 }
0x1278   :  { %v3883_v2 = vpop.xlane.xlu0 %3882  ;;  %v3862_v55 = vpop.xlane.xlu1 %3861  ;;  %v3906_v37 = vsub.f32 %v5596_v63, %v3869_v17 }
0x1279   :  { %v3893_v13 = vmul.f32 0.00390625, %v3883_v2  ;;  %v3870_v44 = vmul.f32 0.00390625, %v3862_v55  ;;  %3888 = vadd.xlane.f32.xlu0 %v3887_v52  ;;  %3867 = vadd.xlane.f32.xlu1 %v3866_v36  ;;  %v3890_v43 = vadd.f32 %v3880_v58, %v3879_v16 }
0x127b   :  { %v3901_v48 = vsub.f32 %v3893_v13, %v3897_v31  ;;  %v3898_v62 = vmul.f32 %v3870_v44, %v3870_v44  ;;  %v3907_v51 = vsub.f32 %v5605_v40, %v3870_v44  ;;  %v3908_v24 = vsub.f32 %v5608_v47, %v3870_v44 }
0x127c   :  { %v3886_v22 = vpop.xlane.xlu1 %3885 }
0x127d   :  { %v3913_v4 = vadd.f32 1e-05, %v3901_v48  ;;  %v3894_v32 = vmul.f32 0.00390625, %v3886_v22  ;;  %3891 = vadd.xlane.f32.xlu1 %v3890_v43 }
0x127f   :  { %4327 = vrsqrt.f32 %v3913_v4  ;;  %v3902_v23 = vsub.f32 %v3894_v32, %v3898_v62 }
0x1281   :  { %v3914_v60 = vadd.f32 1e-05, %v3902_v23 }
0x1283   :  { %4329 = vrsqrt.f32 %v3914_v60 }
0x128c   :  { %v4328_v11 = vpop.eup %4327 }
0x128d   :  { %v3921_v18 = vmul.f32 %v4328_v11, %v3905_v42  ;;  %v3922_v29 = vmul.f32 %v4328_v11, %v3906_v37 }
0x128f   :  { %v3940_v35 = vmul.f32 %v3933_v57, %v3921_v18  ;;  %v3941_v61 = vmul.f32 %v3937_v14, %v3922_v29 }
0x1290   :  { %v4330_v27 = vpop.eup %4329 }
0x1291   :  { %v3959_v45 = vadd.f32 %v3952_v30, %v3940_v35  ;;  %v3960_v63 = vadd.f32 %v3956_v7, %v3941_v61  ;;  %v3923_v41 = vmul.f32 %v4330_v27, %v3907_v51  ;;  %v3924_v20 = vmul.f32 %v4330_v27, %v3908_v24 }
0x1293   :  { %3967 = vst [vmem:[#allocation20] sm:$0xff] %v3959_v45  ;;  %3968 = vst [vmem:[#allocation20 + $0x8] sm:$0xff] %v3960_v63  ;;  %v3942_v5 = vmul.f32 %v3933_v57, %v3923_v41  ;;  %v3943_v12 = vmul.f32 %v3937_v14, %v3924_v20 }
0x1295   :  { %v3961_v15 = vadd.f32 %v3952_v30, %v3942_v5  ;;  %v3962_v6 = vadd.f32 %v3956_v7, %v3943_v12 }
0x1297   :  { %3969 = vst [vmem:[#allocation20 + $0x10] sm:$0xff] %v3961_v15  ;;  %3970 = vst [vmem:[#allocation20 + $0x18] sm:$0xff] %v3962_v6 }
0x12fe   :  { %v3865_v26 = vpop.xlane.xlu0 %3864 }
0x12ff   :  { %v3871_v50 = vmul.f32 0.00390625, %v3865_v26 }
0x1301   :  { %v3899_v40 = vmul.f32 %v3871_v50, %v3871_v50  ;;  %v3909_v34 = vsub.f32 %v5617_v53, %v3871_v50  ;;  %v3910_v59 = vsub.f32 %v5620_v1, %v3871_v50 }
0x1302   :  { %v3889_v21 = vpop.xlane.xlu0 %3888  ;;  %v3868_v39 = vpop.xlane.xlu1 %3867 }
0x1303   :  { %v3895_v10 = vmul.f32 0.00390625, %v3889_v21  ;;  %v3872_v47 = vmul.f32 0.00390625, %v3868_v39 }
0x1305   :  { %v3903_v19 = vsub.f32 %v3895_v10, %v3899_v40  ;;  %v3900_v8 = vmul.f32 %v3872_v47, %v3872_v47  ;;  %v3911_v36 = vsub.f32 %v5627_v38, %v3872_v47  ;;  %v3912_v58 = vsub.f32 %v5630_v33, %v3872_v47 }
0x1306   :  { %v3892_v9 = vpop.xlane.xlu1 %3891 }
0x1307   :  { %v3915_v0 = vadd.f32 1e-05, %v3903_v19  ;;  %v3896_v46 = vmul.f32 0.00390625, %v3892_v9 }
0x1309   :  { %4331 = vrsqrt.f32 %v3915_v0  ;;  %v3904_v49 = vsub.f32 %v3896_v46, %v3900_v8 }
0x130b   :  { %v3916_v54 = vadd.f32 1e-05, %v3904_v49 }
0x130d   :  { %4333 = vrsqrt.f32 %v3916_v54 }
0x1316   :  { %v4332_v3 = vpop.eup %4331 }
0x1317   :  { %v3925_v17 = vmul.f32 %v4332_v3, %v3909_v34  ;;  %v3926_v56 = vmul.f32 %v4332_v3, %v3910_v59 }
0x1319   :  { %v3944_v2 = vmul.f32 %v3933_v57, %v3925_v17  ;;  %v3945_v52 = vmul.f32 %v3937_v14, %v3926_v56 }
0x131a   :  { %v4334_v55 = vpop.eup %4333 }
0x131b   :  { %v3963_v31 = vadd.f32 %v3952_v30, %v3944_v2  ;;  %v3964_v13 = vadd.f32 %v3956_v7, %v3945_v52  ;;  %v3927_v44 = vmul.f32 %v4334_v55, %v3911_v36  ;;  %v3928_v16 = vmul.f32 %v4334_v55, %v3912_v58 }
0x131d   :  { %3971 = vst [vmem:[#allocation20 + $0x20] sm:$0xff] %v3963_v31  ;;  %3972 = vst [vmem:[#allocation20 + $0x28] sm:$0xff] %v3964_v13  ;;  %v3946_v53 = vmul.f32 %v3933_v57, %v3927_v44  ;;  %v3947_v1 = vmul.f32 %v3937_v14, %v3928_v16 }
0x131f   :  { %v3965_v48 = vadd.f32 %v3952_v30, %v3946_v53  ;;  %v3966_v43 = vadd.f32 %v3956_v7, %v3947_v1 }
0x1321   :  { %3973 = vst [vmem:[#allocation20 + $0x30] sm:$0xff] %v3965_v48  ;;  %3974 = vst [vmem:[#allocation20 + $0x38] sm:$0xff] %v3966_v43 }
0x1322   :  { %4574 = shalt.err (!%p4571_p3)
}
0x1323   :  { %s5801_s5 = sld [smem:[#allocation68_spill]] }
0x1329   :  { %3986 = dma.vmem_to_hbm [thread:$0]  %s3981_s17, 1024, %s5801_s5, [#allocation4], %s4599_s0, %s4599_s0, %s4600_s23  }
0x132a   :  { %4595 = dma.done.wait [#allocation4], 1024  }
0x132b   :  { %4596 = vsyncadd [#allocation4], 4294966272 }
0x132c   :  { %3990 = vsyncpa [#allocation3], 1 }
0x132d   :  { %3991 = vsyncpa [#allocation6], 1 }
0x132e   :  { %3992 = vsyncpa [#allocation9], 1 }
0x132f   :  { %3993 = vsyncpa [#allocation12], 1 }
0x1330   :  { %3994 = vsyncpa [#allocation15], 1 }
0x1331   :  { %3995 = vsyncpa [#allocation18], 1 }
0x1332   :  { %3996 = vsyncpa [#allocation4], 1 }

</bundles_post_ra>
